<compile_context>
chip_gen: v6e
topology: v6e:2x2x1
jax: 0.10.0
libtpu: 0.0.40
codegen_flags: <defaults>
</compile_context>

<pallas_src>
import functools

import jax
import jax.numpy as jnp
from jax.experimental import pallas as pl
from jax.experimental.pallas import tpu as pltpu


# ----------------------------------------------------------------------------
# Fused Pallas kernel: num_layers-deep LSTM + linear head, single grid step.
# ----------------------------------------------------------------------------
def _fused_lstm_classifier_kernel(*refs, num_layers, hp, seq_len, batch):
    # refs layout: x2d, (w_ih, w_hh, b) * num_layers, fc_w, fc_b, out, xproj
    x_ref = refs[0]
    fc_w_ref = refs[1 + 3 * num_layers]
    fc_b_ref = refs[2 + 3 * num_layers]
    out_ref = refs[3 + 3 * num_layers]
    xproj_ref = refs[4 + 3 * num_layers]          # VMEM scratch (T, B, 4*Hp)

    HP = hp
    G = 4 * HP
    B = batch
    T = seq_len

    w_ih = [refs[1 + 3 * l] for l in range(num_layers)]
    w_hh = [refs[2 + 3 * l] for l in range(num_layers)]
    b_r = [refs[3 + 3 * l] for l in range(num_layers)]

    # ---- One-shot layer-0 input projection (bias folded), off the serial
    #      recurrence path: (T*B, I) x (I, 4Hp) -> (T*B, 4Hp).
    proj = (jnp.dot(x_ref[...], w_ih[0][...], preferred_element_type=jnp.float32)
            + b_r[0][...])
    # Scatter into the (T, B, 4Hp) scratch with static slices so the time loop
    # only does cheap leading-dim dynamic loads xproj_ref[t].
    for t in range(T):
        xproj_ref[t] = proj[t * B:(t + 1) * B, :]

    # Hoisted bias broadcasts for layers >= 1 (layer-0 bias already folded).
    b_bcast = [jnp.broadcast_to(b_r[l][...], (B, G)) for l in range(1, num_layers)]

    def gate_update(gates, c_prev):
        # gates: (B, 4Hp), PyTorch order [i, f, g, o]; slices are vreg-aligned.
        i_g = jax.nn.sigmoid(gates[:, 0 * HP:1 * HP])
        f_g = jax.nn.sigmoid(gates[:, 1 * HP:2 * HP])
        g_g = jnp.tanh(gates[:, 2 * HP:3 * HP])
        o_g = jax.nn.sigmoid(gates[:, 3 * HP:4 * HP])
        c_new = f_g * c_prev + i_g * g_g
        h_new = o_g * jnp.tanh(c_new)
        return h_new, c_new

    zeros = jnp.zeros((B, HP), jnp.float32)
    init = tuple(zeros for _ in range(2 * num_layers))   # (h0, c0, h1, c1, ...)

    def body(t, carry):
        new = []
        # Layer 0: x-projection precomputed, only the recurrent dot remains.
        gates = xproj_ref[t] + jnp.dot(carry[0], w_hh[0][...],
                                       preferred_element_type=jnp.float32)
        h_new, c_new = gate_update(gates, carry[1])
        new += [h_new, c_new]
        inp = h_new
        for l in range(1, num_layers):
            gates = (jnp.dot(inp, w_ih[l][...], preferred_element_type=jnp.float32)
                     + jnp.dot(carry[2 * l], w_hh[l][...],
                               preferred_element_type=jnp.float32)
                     + b_bcast[l - 1])
            h_new, c_new = gate_update(gates, carry[2 * l + 1])
            new += [h_new, c_new]
            inp = h_new
        return tuple(new)

    # Short static trip count (T*num_layers <= 32) -> fully unrolled.
    carry = jax.lax.fori_loop(0, T, body, init, unroll=True)
    last_h = carry[2 * (num_layers - 1)]                  # == out[:, -1, :] (padded)

    logits = (jnp.dot(last_h, fc_w_ref[...], preferred_element_type=jnp.float32)
              + fc_b_ref[...])
    out_ref[...] = logits.astype(out_ref.dtype)


# ----------------------------------------------------------------------------
# Wrapper-side weight packing: pad each gate block to 128 lanes, pad recurrent
# input rows H -> Hp with zeros.  Exact (padding provably stays zero).
# ----------------------------------------------------------------------------
def _pack_params(params, hidden_size, hp, num_layers):
    H, HP = hidden_size, hp

    def pad_gate_cols(w):                      # (rows, 4H) -> (rows, 4Hp)
        if HP == H:
            return w
        blocks = [w[:, k * H:(k + 1) * H] for k in range(4)]
        return jnp.concatenate(
            [jnp.pad(blk, ((0, 0), (0, HP - H))) for blk in blocks], axis=1)

    def pad_rows(w):                           # (H, cols) -> (Hp, cols)
        if HP == H:
            return w
        return jnp.pad(w, ((0, HP - H), (0, 0)))

    packed = {"lstm": []}
    for l in range(num_layers):
        p = params["lstm"][l]
        w_ih = pad_gate_cols(p["w_ih"])
        if l > 0:
            w_ih = pad_rows(w_ih)              # stacked input is padded h
        packed["lstm"].append({
            "w_ih": w_ih,
            "w_hh": pad_rows(pad_gate_cols(p["w_hh"])),
            "b": pad_gate_cols(p["b"]),
        })
    packed["fc"] = {"w": pad_rows(params["fc"]["w"]), "b": params["fc"]["b"]}
    return packed


# ----------------------------------------------------------------------------
# Wrapper
# ----------------------------------------------------------------------------
def lstm_classifier_forward(x, params, hidden_size, num_layers):
    """x: (B, T, input_size) batch_first, like the PyTorch module."""
    B, T, I = x.shape
    H = hidden_size
    HP = ((H + 127) // 128) * 128              # pad each gate block to 128 lanes
    C = params["fc"]["w"].shape[1]

    kp = _pack_params(params, H, HP, num_layers)

    # Time-major 2D slab for the one-shot layer-0 projection.  At this size the
    # reorder is negligible; TODO(synk): at large T*B*I fold it into the kernel
    # / stream x along T with emit_pipeline instead of a wrapper-side pass.
    x2d = jnp.transpose(x, (1, 0, 2)).reshape(T * B, I).astype(jnp.float32)

    # NOTE: all index_map lambdas are zero-arg because this call is grid-less;
    # they must be updated if a grid axis is ever added.
    inputs = [x2d]
    in_specs = [pl.BlockSpec((T * B, I), lambda: (0, 0))]
    for l in range(num_layers):
        p = kp["lstm"][l]
        in_dim = I if l == 0 else HP
        inputs += [p["w_ih"], p["w_hh"], p["b"]]
        in_specs += [
            pl.BlockSpec((in_dim, 4 * HP), lambda: (0, 0)),
            pl.BlockSpec((HP, 4 * HP), lambda: (0, 0)),
            pl.BlockSpec((1, 4 * HP), lambda: (0, 0)),
        ]
    inputs += [kp["fc"]["w"], kp["fc"]["b"]]
    in_specs += [
        pl.BlockSpec((HP, C), lambda: (0, 0)),
        pl.BlockSpec((1, C), lambda: (0, 0)),
    ]

    kernel = functools.partial(
        _fused_lstm_classifier_kernel,
        num_layers=num_layers, hp=HP, seq_len=T, batch=B)

    return pl.pallas_call(
        kernel,
        out_shape=jax.ShapeDtypeStruct((B, C), jnp.float32),
        in_specs=in_specs,
        out_specs=pl.BlockSpec((B, C), lambda: (0, 0)),
        scratch_shapes=[pltpu.VMEM((T, B, 4 * HP), jnp.float32)],
    )(*inputs)


# ----------------------------------------------------------------------------
# Deterministic parameter init (same shapes as nn.LSTM / nn.Linear, logical
# i.e. unpadded; kernel packing happens in the wrapper).
# ----------------------------------------------------------------------------
def init_params(key, input_size, hidden_size, num_layers, num_classes):
    params = {"lstm": []}
    bound = 1.0 / jnp.sqrt(hidden_size)
    for layer in range(num_layers):
        in_dim = input_size if layer == 0 else hidden_size
        key, k1, k2, k3, k4 = jax.random.split(key, 5)
        # PyTorch stores weight_ih (4H, in), weight_hh (4H, H); we transpose.
        w_ih = jax.random.uniform(k1, (in_dim, 4 * hidden_size),
                                  jnp.float32, -bound, bound)
        w_hh = jax.random.uniform(k2, (hidden_size, 4 * hidden_size),
                                  jnp.float32, -bound, bound)
        b_ih = jax.random.uniform(k3, (4 * hidden_size,), jnp.float32, -bound, bound)
        b_hh = jax.random.uniform(k4, (4 * hidden_size,), jnp.float32, -bound, bound)
        params["lstm"].append({
            "w_ih": w_ih,
            "w_hh": w_hh,
            "b": (b_ih + b_hh).reshape(1, 4 * hidden_size),
        })
    key, k5, k6 = jax.random.split(key, 3)
    fc_bound = 1.0 / jnp.sqrt(hidden_size)
    params["fc"] = {
        "w": jax.random.uniform(k5, (hidden_size, num_classes),
                                jnp.float32, -fc_bound, fc_bound),
        "b": jax.random.uniform(k6, (1, num_classes),
                                jnp.float32, -fc_bound, fc_bound),
    }
    return params


# ----------------------------------------------------------------------------
# Pure-JAX reference (for correctness check)
# ----------------------------------------------------------------------------
def reference_forward(x, params, hidden_size, num_layers):
    B = x.shape[0]
    seq = jnp.transpose(x, (1, 0, 2)).astype(jnp.float32)  # (T, B, I)
    for layer in range(num_layers):
        p = params["lstm"][layer]

        def step(carry, x_t):
            h, c = carry
            gates = x_t @ p["w_ih"] + h @ p["w_hh"] + p["b"]
            H = hidden_size
            i = jax.nn.sigmoid(gates[:, 0 * H:1 * H])
            f = jax.nn.sigmoid(gates[:, 1 * H:2 * H])
            g = jnp.tanh(gates[:, 2 * H:3 * H])
            o = jax.nn.sigmoid(gates[:, 3 * H:4 * H])
            c = f * c + i * g
            h = o * jnp.tanh(c)
            return (h, c), h

        init = (jnp.zeros((B, hidden_size), jnp.float32),
                jnp.zeros((B, hidden_size), jnp.float32))
        _, seq = jax.lax.scan(step, init, seq)
    return seq[-1] @ params["fc"]["w"] + params["fc"]["b"]


# ----------------------------------------------------------------------------
if __name__ == "__main__":
    B, T = 2, 8
    input_size, hidden_size, num_layers, num_classes = 16, 32, 2, 4

    key = jax.random.PRNGKey(0)
    key, kx, kp = jax.random.split(key, 3)
    x = jax.random.normal(kx, (B, T, input_size), jnp.float32)
    params = init_params(kp, input_size, hidden_size, num_layers, num_classes)

    logits = lstm_classifier_forward(x, params, hidden_size, num_layers)
    logits = jax.block_until_ready(logits)

    ref = reference_forward(x, params, hidden_size, num_layers)
    assert logits.shape == (B, num_classes)
    assert jnp.allclose(logits, ref, atol=1e-5, rtol=1e-5), "mismatch vs reference"

    print("KERNEL_OK")
</pallas_src>

<mosaic_0001>
module attributes {stable_mosaic.version = 11 : i64} {
  func.func @_fused_lstm_classifier_kernel(%arg0: memref<16x16xf32, #tpu.memory_space<vmem>>, %arg1: memref<16x512xf32, #tpu.memory_space<vmem>>, %arg2: memref<128x512xf32, #tpu.memory_space<vmem>>, %arg3: memref<1x512xf32, #tpu.memory_space<vmem>>, %arg4: memref<128x512xf32, #tpu.memory_space<vmem>>, %arg5: memref<128x512xf32, #tpu.memory_space<vmem>>, %arg6: memref<1x512xf32, #tpu.memory_space<vmem>>, %arg7: memref<128x4xf32, #tpu.memory_space<vmem>>, %arg8: memref<1x4xf32, #tpu.memory_space<vmem>>, %arg9: memref<2x4xf32, #tpu.memory_space<vmem>>, %arg10: memref<8x2x512xf32, #tpu.memory_space<vmem>>) attributes {dimension_semantics = [], scalar_prefetch = 0 : i64, scratch_operands = 1 : i64, tpu.core_type = #tpu.core_type<tc>} {
    %c0 = arith.constant 0 : index
    %c0_0 = arith.constant 0 : index
    %0 = vector.load %arg0[%c0, %c0_0] : memref<16x16xf32, #tpu.memory_space<vmem>>, vector<16x16xf32>
    %c0_1 = arith.constant 0 : index
    %c0_2 = arith.constant 0 : index
    %1 = vector.load %arg1[%c0_1, %c0_2] : memref<16x512xf32, #tpu.memory_space<vmem>>, vector<16x512xf32>
    %cst = arith.constant dense<0.000000e+00> : vector<16x512xf32>
    %2 = tpu.matmul %0, %1, %cst {dimension_numbers = #tpu.dot_dimension_numbers<[1], [0], [0], [1], [0, 0, 1, 1], [], []>} : vector<16x16xf32>, vector<16x512xf32>, vector<16x512xf32> -> vector<16x512xf32>
    %c0_3 = arith.constant 0 : index
    %c0_4 = arith.constant 0 : index
    %3 = vector.load %arg3[%c0_3, %c0_4] : memref<1x512xf32, #tpu.memory_space<vmem>>, vector<1x512xf32>
    %4 = vector.broadcast %3 : vector<1x512xf32> to vector<16x512xf32>
    %5 = arith.addf %2, %4 : vector<16x512xf32>
    %6 = vector.extract_strided_slice %5 {offsets = [0, 0], sizes = [2, 512], strides = [1, 1]} : vector<16x512xf32> to vector<2x512xf32>
    %c0_5 = arith.constant 0 : index
    %c0_6 = arith.constant 0 : index
    %c0_7 = arith.constant 0 : index
    %7 = vector.load %arg10[%c0_5, %c0_6, %c0_7] : memref<8x2x512xf32, #tpu.memory_space<vmem>>, vector<1x2x512xf32>
    %8 = vector.shape_cast %7 : vector<1x2x512xf32> to vector<2x512xf32>
    %9 = vector.shape_cast %6 : vector<2x512xf32> to vector<1x2x512xf32>
    tpu.vector_store %arg10[%c0_5, %c0_6, %c0_7], %9 {strides = array<i32>} : memref<8x2x512xf32, #tpu.memory_space<vmem>>, vector<1x2x512xf32>,
    %10 = vector.extract_strided_slice %5 {offsets = [2, 0], sizes = [2, 512], strides = [1, 1]} : vector<16x512xf32> to vector<2x512xf32>
    %c1 = arith.constant 1 : index
    %c0_8 = arith.constant 0 : index
    %c0_9 = arith.constant 0 : index
    %11 = vector.load %arg10[%c1, %c0_8, %c0_9] : memref<8x2x512xf32, #tpu.memory_space<vmem>>, vector<1x2x512xf32>
    %12 = vector.shape_cast %11 : vector<1x2x512xf32> to vector<2x512xf32>
    %13 = vector.shape_cast %10 : vector<2x512xf32> to vector<1x2x512xf32>
    tpu.vector_store %arg10[%c1, %c0_8, %c0_9], %13 {strides = array<i32>} : memref<8x2x512xf32, #tpu.memory_space<vmem>>, vector<1x2x512xf32>,
    %14 = vector.extract_strided_slice %5 {offsets = [4, 0], sizes = [2, 512], strides = [1, 1]} : vector<16x512xf32> to vector<2x512xf32>
    %c2 = arith.constant 2 : index
    %c0_10 = arith.constant 0 : index
    %c0_11 = arith.constant 0 : index
    %15 = vector.load %arg10[%c2, %c0_10, %c0_11] : memref<8x2x512xf32, #tpu.memory_space<vmem>>, vector<1x2x512xf32>
    %16 = vector.shape_cast %15 : vector<1x2x512xf32> to vector<2x512xf32>
    %17 = vector.shape_cast %14 : vector<2x512xf32> to vector<1x2x512xf32>
    tpu.vector_store %arg10[%c2, %c0_10, %c0_11], %17 {strides = array<i32>} : memref<8x2x512xf32, #tpu.memory_space<vmem>>, vector<1x2x512xf32>,
    %18 = vector.extract_strided_slice %5 {offsets = [6, 0], sizes = [2, 512], strides = [1, 1]} : vector<16x512xf32> to vector<2x512xf32>
    %c3 = arith.constant 3 : index
    %c0_12 = arith.constant 0 : index
    %c0_13 = arith.constant 0 : index
    %19 = vector.load %arg10[%c3, %c0_12, %c0_13] : memref<8x2x512xf32, #tpu.memory_space<vmem>>, vector<1x2x512xf32>
    %20 = vector.shape_cast %19 : vector<1x2x512xf32> to vector<2x512xf32>
    %21 = vector.shape_cast %18 : vector<2x512xf32> to vector<1x2x512xf32>
    tpu.vector_store %arg10[%c3, %c0_12, %c0_13], %21 {strides = array<i32>} : memref<8x2x512xf32, #tpu.memory_space<vmem>>, vector<1x2x512xf32>,
    %22 = vector.extract_strided_slice %5 {offsets = [8, 0], sizes = [2, 512], strides = [1, 1]} : vector<16x512xf32> to vector<2x512xf32>
    %c4 = arith.constant 4 : index
    %c0_14 = arith.constant 0 : index
    %c0_15 = arith.constant 0 : index
    %23 = vector.load %arg10[%c4, %c0_14, %c0_15] : memref<8x2x512xf32, #tpu.memory_space<vmem>>, vector<1x2x512xf32>
    %24 = vector.shape_cast %23 : vector<1x2x512xf32> to vector<2x512xf32>
    %25 = vector.shape_cast %22 : vector<2x512xf32> to vector<1x2x512xf32>
    tpu.vector_store %arg10[%c4, %c0_14, %c0_15], %25 {strides = array<i32>} : memref<8x2x512xf32, #tpu.memory_space<vmem>>, vector<1x2x512xf32>,
    %26 = vector.extract_strided_slice %5 {offsets = [10, 0], sizes = [2, 512], strides = [1, 1]} : vector<16x512xf32> to vector<2x512xf32>
    %c5 = arith.constant 5 : index
    %c0_16 = arith.constant 0 : index
    %c0_17 = arith.constant 0 : index
    %27 = vector.load %arg10[%c5, %c0_16, %c0_17] : memref<8x2x512xf32, #tpu.memory_space<vmem>>, vector<1x2x512xf32>
    %28 = vector.shape_cast %27 : vector<1x2x512xf32> to vector<2x512xf32>
    %29 = vector.shape_cast %26 : vector<2x512xf32> to vector<1x2x512xf32>
    tpu.vector_store %arg10[%c5, %c0_16, %c0_17], %29 {strides = array<i32>} : memref<8x2x512xf32, #tpu.memory_space<vmem>>, vector<1x2x512xf32>,
    %30 = vector.extract_strided_slice %5 {offsets = [12, 0], sizes = [2, 512], strides = [1, 1]} : vector<16x512xf32> to vector<2x512xf32>
    %c6 = arith.constant 6 : index
    %c0_18 = arith.constant 0 : index
    %c0_19 = arith.constant 0 : index
    %31 = vector.load %arg10[%c6, %c0_18, %c0_19] : memref<8x2x512xf32, #tpu.memory_space<vmem>>, vector<1x2x512xf32>
    %32 = vector.shape_cast %31 : vector<1x2x512xf32> to vector<2x512xf32>
    %33 = vector.shape_cast %30 : vector<2x512xf32> to vector<1x2x512xf32>
    tpu.vector_store %arg10[%c6, %c0_18, %c0_19], %33 {strides = array<i32>} : memref<8x2x512xf32, #tpu.memory_space<vmem>>, vector<1x2x512xf32>,
    %34 = vector.extract_strided_slice %5 {offsets = [14, 0], sizes = [2, 512], strides = [1, 1]} : vector<16x512xf32> to vector<2x512xf32>
    %c7 = arith.constant 7 : index
    %c0_20 = arith.constant 0 : index
    %c0_21 = arith.constant 0 : index
    %35 = vector.load %arg10[%c7, %c0_20, %c0_21] : memref<8x2x512xf32, #tpu.memory_space<vmem>>, vector<1x2x512xf32>
    %36 = vector.shape_cast %35 : vector<1x2x512xf32> to vector<2x512xf32>
    %37 = vector.shape_cast %34 : vector<2x512xf32> to vector<1x2x512xf32>
    tpu.vector_store %arg10[%c7, %c0_20, %c0_21], %37 {strides = array<i32>} : memref<8x2x512xf32, #tpu.memory_space<vmem>>, vector<1x2x512xf32>,
    %c0_22 = arith.constant 0 : index
    %c0_23 = arith.constant 0 : index
    %38 = vector.load %arg6[%c0_22, %c0_23] : memref<1x512xf32, #tpu.memory_space<vmem>>, vector<1x512xf32>
    %39 = vector.shape_cast %38 : vector<1x512xf32> to vector<1x512xf32>
    %40 = vector.broadcast %39 : vector<1x512xf32> to vector<2x512xf32>
    %cst_24 = arith.constant 0.000000e+00 : f32
    %41 = vector.broadcast %cst_24 : f32 to vector<2x128xf32>
    %c0_i32 = arith.constant 0 : i32
    %42 = arith.index_cast %c0_i32 : i32 to index
    %c0_25 = arith.constant 0 : index
    %c0_26 = arith.constant 0 : index
    %43 = vector.load %arg10[%42, %c0_25, %c0_26] : memref<8x2x512xf32, #tpu.memory_space<vmem>>, vector<1x2x512xf32>
    %44 = vector.shape_cast %43 : vector<1x2x512xf32> to vector<2x512xf32>
    %c0_27 = arith.constant 0 : index
    %c0_28 = arith.constant 0 : index
    %45 = vector.load %arg2[%c0_27, %c0_28] : memref<128x512xf32, #tpu.memory_space<vmem>>, vector<128x512xf32>
    %cst_29 = arith.constant dense<0.000000e+00> : vector<2x512xf32>
    %46 = tpu.matmul %41, %45, %cst_29 {dimension_numbers = #tpu.dot_dimension_numbers<[1], [0], [0], [1], [0, 0, 1, 1], [], []>} : vector<2x128xf32>, vector<128x512xf32>, vector<2x512xf32> -> vector<2x512xf32>
    %47 = arith.addf %44, %46 : vector<2x512xf32>
    %48 = vector.extract_strided_slice %47 {offsets = [0, 0], sizes = [2, 128], strides = [1, 1]} : vector<2x512xf32> to vector<2x128xf32>
    %49 = arith.negf %48 : vector<2x128xf32>
    %50 = math.exp %49 : vector<2x128xf32>
    %cst_30 = arith.constant 1.000000e+00 : f32
    %51 = vector.broadcast %cst_30 : f32 to vector<2x128xf32>
    %52 = arith.addf %51, %50 : vector<2x128xf32>
    %53 = arith.divf %51, %52 : vector<2x128xf32>
    %54 = vector.extract_strided_slice %47 {offsets = [0, 128], sizes = [2, 128], strides = [1, 1]} : vector<2x512xf32> to vector<2x128xf32>
    %55 = arith.negf %54 : vector<2x128xf32>
    %56 = math.exp %55 : vector<2x128xf32>
    %cst_31 = arith.constant 1.000000e+00 : f32
    %57 = vector.broadcast %cst_31 : f32 to vector<2x128xf32>
    %58 = arith.addf %57, %56 : vector<2x128xf32>
    %59 = arith.divf %57, %58 : vector<2x128xf32>
    %60 = vector.extract_strided_slice %47 {offsets = [0, 256], sizes = [2, 128], strides = [1, 1]} : vector<2x512xf32> to vector<2x128xf32>
    %61 = math.tanh %60 : vector<2x128xf32>
    %62 = vector.extract_strided_slice %47 {offsets = [0, 384], sizes = [2, 128], strides = [1, 1]} : vector<2x512xf32> to vector<2x128xf32>
    %63 = arith.negf %62 : vector<2x128xf32>
    %64 = math.exp %63 : vector<2x128xf32>
    %cst_32 = arith.constant 1.000000e+00 : f32
    %65 = vector.broadcast %cst_32 : f32 to vector<2x128xf32>
    %66 = arith.addf %65, %64 : vector<2x128xf32>
    %67 = arith.divf %65, %66 : vector<2x128xf32>
    %68 = arith.mulf %59, %41 : vector<2x128xf32>
    %69 = arith.mulf %53, %61 : vector<2x128xf32>
    %70 = arith.addf %68, %69 : vector<2x128xf32>
    %71 = math.tanh %70 : vector<2x128xf32>
    %72 = arith.mulf %67, %71 : vector<2x128xf32>
    %c0_33 = arith.constant 0 : index
    %c0_34 = arith.constant 0 : index
    %73 = vector.load %arg4[%c0_33, %c0_34] : memref<128x512xf32, #tpu.memory_space<vmem>>, vector<128x512xf32>
    %cst_35 = arith.constant dense<0.000000e+00> : vector<2x512xf32>
    %74 = tpu.matmul %72, %73, %cst_35 {dimension_numbers = #tpu.dot_dimension_numbers<[1], [0], [0], [1], [0, 0, 1, 1], [], []>} : vector<2x128xf32>, vector<128x512xf32>, vector<2x512xf32> -> vector<2x512xf32>
    %c0_36 = arith.constant 0 : index
    %c0_37 = arith.constant 0 : index
    %75 = vector.load %arg5[%c0_36, %c0_37] : memref<128x512xf32, #tpu.memory_space<vmem>>, vector<128x512xf32>
    %cst_38 = arith.constant dense<0.000000e+00> : vector<2x512xf32>
    %76 = tpu.matmul %41, %75, %cst_38 {dimension_numbers = #tpu.dot_dimension_numbers<[1], [0], [0], [1], [0, 0, 1, 1], [], []>} : vector<2x128xf32>, vector<128x512xf32>, vector<2x512xf32> -> vector<2x512xf32>
    %77 = arith.addf %74, %76 : vector<2x512xf32>
    %78 = arith.addf %77, %40 : vector<2x512xf32>
    %79 = vector.extract_strided_slice %78 {offsets = [0, 0], sizes = [2, 128], strides = [1, 1]} : vector<2x512xf32> to vector<2x128xf32>
    %80 = arith.negf %79 : vector<2x128xf32>
    %81 = math.exp %80 : vector<2x128xf32>
    %cst_39 = arith.constant 1.000000e+00 : f32
    %82 = vector.broadcast %cst_39 : f32 to vector<2x128xf32>
    %83 = arith.addf %82, %81 : vector<2x128xf32>
    %84 = arith.divf %82, %83 : vector<2x128xf32>
    %85 = vector.extract_strided_slice %78 {offsets = [0, 128], sizes = [2, 128], strides = [1, 1]} : vector<2x512xf32> to vector<2x128xf32>
    %86 = arith.negf %85 : vector<2x128xf32>
    %87 = math.exp %86 : vector<2x128xf32>
    %cst_40 = arith.constant 1.000000e+00 : f32
    %88 = vector.broadcast %cst_40 : f32 to vector<2x128xf32>
    %89 = arith.addf %88, %87 : vector<2x128xf32>
    %90 = arith.divf %88, %89 : vector<2x128xf32>
    %91 = vector.extract_strided_slice %78 {offsets = [0, 256], sizes = [2, 128], strides = [1, 1]} : vector<2x512xf32> to vector<2x128xf32>
    %92 = math.tanh %91 : vector<2x128xf32>
    %93 = vector.extract_strided_slice %78 {offsets = [0, 384], sizes = [2, 128], strides = [1, 1]} : vector<2x512xf32> to vector<2x128xf32>
    %94 = arith.negf %93 : vector<2x128xf32>
    %95 = math.exp %94 : vector<2x128xf32>
    %cst_41 = arith.constant 1.000000e+00 : f32
    %96 = vector.broadcast %cst_41 : f32 to vector<2x128xf32>
    %97 = arith.addf %96, %95 : vector<2x128xf32>
    %98 = arith.divf %96, %97 : vector<2x128xf32>
    %99 = arith.mulf %90, %41 : vector<2x128xf32>
    %100 = arith.mulf %84, %92 : vector<2x128xf32>
    %101 = arith.addf %99, %100 : vector<2x128xf32>
    %102 = math.tanh %101 : vector<2x128xf32>
    %103 = arith.mulf %98, %102 : vector<2x128xf32>
    %c1_i32 = arith.constant 1 : i32
    %104 = arith.index_cast %c1_i32 : i32 to index
    %c0_42 = arith.constant 0 : index
    %c0_43 = arith.constant 0 : index
    %105 = vector.load %arg10[%104, %c0_42, %c0_43] : memref<8x2x512xf32, #tpu.memory_space<vmem>>, vector<1x2x512xf32>
    %106 = vector.shape_cast %105 : vector<1x2x512xf32> to vector<2x512xf32>
    %c0_44 = arith.constant 0 : index
    %c0_45 = arith.constant 0 : index
    %107 = vector.load %arg2[%c0_44, %c0_45] : memref<128x512xf32, #tpu.memory_space<vmem>>, vector<128x512xf32>
    %cst_46 = arith.constant dense<0.000000e+00> : vector<2x512xf32>
    %108 = tpu.matmul %72, %107, %cst_46 {dimension_numbers = #tpu.dot_dimension_numbers<[1], [0], [0], [1], [0, 0, 1, 1], [], []>} : vector<2x128xf32>, vector<128x512xf32>, vector<2x512xf32> -> vector<2x512xf32>
    %109 = arith.addf %106, %108 : vector<2x512xf32>
    %110 = vector.extract_strided_slice %109 {offsets = [0, 0], sizes = [2, 128], strides = [1, 1]} : vector<2x512xf32> to vector<2x128xf32>
    %111 = arith.negf %110 : vector<2x128xf32>
    %112 = math.exp %111 : vector<2x128xf32>
    %cst_47 = arith.constant 1.000000e+00 : f32
    %113 = vector.broadcast %cst_47 : f32 to vector<2x128xf32>
    %114 = arith.addf %113, %112 : vector<2x128xf32>
    %115 = arith.divf %113, %114 : vector<2x128xf32>
    %116 = vector.extract_strided_slice %109 {offsets = [0, 128], sizes = [2, 128], strides = [1, 1]} : vector<2x512xf32> to vector<2x128xf32>
    %117 = arith.negf %116 : vector<2x128xf32>
    %118 = math.exp %117 : vector<2x128xf32>
    %cst_48 = arith.constant 1.000000e+00 : f32
    %119 = vector.broadcast %cst_48 : f32 to vector<2x128xf32>
    %120 = arith.addf %119, %118 : vector<2x128xf32>
    %121 = arith.divf %119, %120 : vector<2x128xf32>
    %122 = vector.extract_strided_slice %109 {offsets = [0, 256], sizes = [2, 128], strides = [1, 1]} : vector<2x512xf32> to vector<2x128xf32>
    %123 = math.tanh %122 : vector<2x128xf32>
    %124 = vector.extract_strided_slice %109 {offsets = [0, 384], sizes = [2, 128], strides = [1, 1]} : vector<2x512xf32> to vector<2x128xf32>
    %125 = arith.negf %124 : vector<2x128xf32>
    %126 = math.exp %125 : vector<2x128xf32>
    %cst_49 = arith.constant 1.000000e+00 : f32
    %127 = vector.broadcast %cst_49 : f32 to vector<2x128xf32>
    %128 = arith.addf %127, %126 : vector<2x128xf32>
    %129 = arith.divf %127, %128 : vector<2x128xf32>
    %130 = arith.mulf %121, %70 : vector<2x128xf32>
    %131 = arith.mulf %115, %123 : vector<2x128xf32>
    %132 = arith.addf %130, %131 : vector<2x128xf32>
    %133 = math.tanh %132 : vector<2x128xf32>
    %134 = arith.mulf %129, %133 : vector<2x128xf32>
    %c0_50 = arith.constant 0 : index
    %c0_51 = arith.constant 0 : index
    %135 = vector.load %arg4[%c0_50, %c0_51] : memref<128x512xf32, #tpu.memory_space<vmem>>, vector<128x512xf32>
    %cst_52 = arith.constant dense<0.000000e+00> : vector<2x512xf32>
    %136 = tpu.matmul %134, %135, %cst_52 {dimension_numbers = #tpu.dot_dimension_numbers<[1], [0], [0], [1], [0, 0, 1, 1], [], []>} : vector<2x128xf32>, vector<128x512xf32>, vector<2x512xf32> -> vector<2x512xf32>
    %c0_53 = arith.constant 0 : index
    %c0_54 = arith.constant 0 : index
    %137 = vector.load %arg5[%c0_53, %c0_54] : memref<128x512xf32, #tpu.memory_space<vmem>>, vector<128x512xf32>
    %cst_55 = arith.constant dense<0.000000e+00> : vector<2x512xf32>
    %138 = tpu.matmul %103, %137, %cst_55 {dimension_numbers = #tpu.dot_dimension_numbers<[1], [0], [0], [1], [0, 0, 1, 1], [], []>} : vector<2x128xf32>, vector<128x512xf32>, vector<2x512xf32> -> vector<2x512xf32>
    %139 = arith.addf %136, %138 : vector<2x512xf32>
    %140 = arith.addf %139, %40 : vector<2x512xf32>
    %141 = vector.extract_strided_slice %140 {offsets = [0, 0], sizes = [2, 128], strides = [1, 1]} : vector<2x512xf32> to vector<2x128xf32>
    %142 = arith.negf %141 : vector<2x128xf32>
    %143 = math.exp %142 : vector<2x128xf32>
    %cst_56 = arith.constant 1.000000e+00 : f32
    %144 = vector.broadcast %cst_56 : f32 to vector<2x128xf32>
    %145 = arith.addf %144, %143 : vector<2x128xf32>
    %146 = arith.divf %144, %145 : vector<2x128xf32>
    %147 = vector.extract_strided_slice %140 {offsets = [0, 128], sizes = [2, 128], strides = [1, 1]} : vector<2x512xf32> to vector<2x128xf32>
    %148 = arith.negf %147 : vector<2x128xf32>
    %149 = math.exp %148 : vector<2x128xf32>
    %cst_57 = arith.constant 1.000000e+00 : f32
    %150 = vector.broadcast %cst_57 : f32 to vector<2x128xf32>
    %151 = arith.addf %150, %149 : vector<2x128xf32>
    %152 = arith.divf %150, %151 : vector<2x128xf32>
    %153 = vector.extract_strided_slice %140 {offsets = [0, 256], sizes = [2, 128], strides = [1, 1]} : vector<2x512xf32> to vector<2x128xf32>
    %154 = math.tanh %153 : vector<2x128xf32>
    %155 = vector.extract_strided_slice %140 {offsets = [0, 384], sizes = [2, 128], strides = [1, 1]} : vector<2x512xf32> to vector<2x128xf32>
    %156 = arith.negf %155 : vector<2x128xf32>
    %157 = math.exp %156 : vector<2x128xf32>
    %cst_58 = arith.constant 1.000000e+00 : f32
    %158 = vector.broadcast %cst_58 : f32 to vector<2x128xf32>
    %159 = arith.addf %158, %157 : vector<2x128xf32>
    %160 = arith.divf %158, %159 : vector<2x128xf32>
    %161 = arith.mulf %152, %101 : vector<2x128xf32>
    %162 = arith.mulf %146, %154 : vector<2x128xf32>
    %163 = arith.addf %161, %162 : vector<2x128xf32>
    %164 = math.tanh %163 : vector<2x128xf32>
    %165 = arith.mulf %160, %164 : vector<2x128xf32>
    %c2_i32 = arith.constant 2 : i32
    %166 = arith.index_cast %c2_i32 : i32 to index
    %c0_59 = arith.constant 0 : index
    %c0_60 = arith.constant 0 : index
    %167 = vector.load %arg10[%166, %c0_59, %c0_60] : memref<8x2x512xf32, #tpu.memory_space<vmem>>, vector<1x2x512xf32>
    %168 = vector.shape_cast %167 : vector<1x2x512xf32> to vector<2x512xf32>
    %c0_61 = arith.constant 0 : index
    %c0_62 = arith.constant 0 : index
    %169 = vector.load %arg2[%c0_61, %c0_62] : memref<128x512xf32, #tpu.memory_space<vmem>>, vector<128x512xf32>
    %cst_63 = arith.constant dense<0.000000e+00> : vector<2x512xf32>
    %170 = tpu.matmul %134, %169, %cst_63 {dimension_numbers = #tpu.dot_dimension_numbers<[1], [0], [0], [1], [0, 0, 1, 1], [], []>} : vector<2x128xf32>, vector<128x512xf32>, vector<2x512xf32> -> vector<2x512xf32>
    %171 = arith.addf %168, %170 : vector<2x512xf32>
    %172 = vector.extract_strided_slice %171 {offsets = [0, 0], sizes = [2, 128], strides = [1, 1]} : vector<2x512xf32> to vector<2x128xf32>
    %173 = arith.negf %172 : vector<2x128xf32>
    %174 = math.exp %173 : vector<2x128xf32>
    %cst_64 = arith.constant 1.000000e+00 : f32
    %175 = vector.broadcast %cst_64 : f32 to vector<2x128xf32>
    %176 = arith.addf %175, %174 : vector<2x128xf32>
    %177 = arith.divf %175, %176 : vector<2x128xf32>
    %178 = vector.extract_strided_slice %171 {offsets = [0, 128], sizes = [2, 128], strides = [1, 1]} : vector<2x512xf32> to vector<2x128xf32>
    %179 = arith.negf %178 : vector<2x128xf32>
    %180 = math.exp %179 : vector<2x128xf32>
    %cst_65 = arith.constant 1.000000e+00 : f32
    %181 = vector.broadcast %cst_65 : f32 to vector<2x128xf32>
    %182 = arith.addf %181, %180 : vector<2x128xf32>
    %183 = arith.divf %181, %182 : vector<2x128xf32>
    %184 = vector.extract_strided_slice %171 {offsets = [0, 256], sizes = [2, 128], strides = [1, 1]} : vector<2x512xf32> to vector<2x128xf32>
    %185 = math.tanh %184 : vector<2x128xf32>
    %186 = vector.extract_strided_slice %171 {offsets = [0, 384], sizes = [2, 128], strides = [1, 1]} : vector<2x512xf32> to vector<2x128xf32>
    %187 = arith.negf %186 : vector<2x128xf32>
    %188 = math.exp %187 : vector<2x128xf32>
    %cst_66 = arith.constant 1.000000e+00 : f32
    %189 = vector.broadcast %cst_66 : f32 to vector<2x128xf32>
    %190 = arith.addf %189, %188 : vector<2x128xf32>
    %191 = arith.divf %189, %190 : vector<2x128xf32>
    %192 = arith.mulf %183, %132 : vector<2x128xf32>
    %193 = arith.mulf %177, %185 : vector<2x128xf32>
    %194 = arith.addf %192, %193 : vector<2x128xf32>
    %195 = math.tanh %194 : vector<2x128xf32>
    %196 = arith.mulf %191, %195 : vector<2x128xf32>
    %c0_67 = arith.constant 0 : index
    %c0_68 = arith.constant 0 : index
    %197 = vector.load %arg4[%c0_67, %c0_68] : memref<128x512xf32, #tpu.memory_space<vmem>>, vector<128x512xf32>
    %cst_69 = arith.constant dense<0.000000e+00> : vector<2x512xf32>
    %198 = tpu.matmul %196, %197, %cst_69 {dimension_numbers = #tpu.dot_dimension_numbers<[1], [0], [0], [1], [0, 0, 1, 1], [], []>} : vector<2x128xf32>, vector<128x512xf32>, vector<2x512xf32> -> vector<2x512xf32>
    %c0_70 = arith.constant 0 : index
    %c0_71 = arith.constant 0 : index
    %199 = vector.load %arg5[%c0_70, %c0_71] : memref<128x512xf32, #tpu.memory_space<vmem>>, vector<128x512xf32>
    %cst_72 = arith.constant dense<0.000000e+00> : vector<2x512xf32>
    %200 = tpu.matmul %165, %199, %cst_72 {dimension_numbers = #tpu.dot_dimension_numbers<[1], [0], [0], [1], [0, 0, 1, 1], [], []>} : vector<2x128xf32>, vector<128x512xf32>, vector<2x512xf32> -> vector<2x512xf32>
    %201 = arith.addf %198, %200 : vector<2x512xf32>
    %202 = arith.addf %201, %40 : vector<2x512xf32>
    %203 = vector.extract_strided_slice %202 {offsets = [0, 0], sizes = [2, 128], strides = [1, 1]} : vector<2x512xf32> to vector<2x128xf32>
    %204 = arith.negf %203 : vector<2x128xf32>
    %205 = math.exp %204 : vector<2x128xf32>
    %cst_73 = arith.constant 1.000000e+00 : f32
    %206 = vector.broadcast %cst_73 : f32 to vector<2x128xf32>
    %207 = arith.addf %206, %205 : vector<2x128xf32>
    %208 = arith.divf %206, %207 : vector<2x128xf32>
    %209 = vector.extract_strided_slice %202 {offsets = [0, 128], sizes = [2, 128], strides = [1, 1]} : vector<2x512xf32> to vector<2x128xf32>
    %210 = arith.negf %209 : vector<2x128xf32>
    %211 = math.exp %210 : vector<2x128xf32>
    %cst_74 = arith.constant 1.000000e+00 : f32
    %212 = vector.broadcast %cst_74 : f32 to vector<2x128xf32>
    %213 = arith.addf %212, %211 : vector<2x128xf32>
    %214 = arith.divf %212, %213 : vector<2x128xf32>
    %215 = vector.extract_strided_slice %202 {offsets = [0, 256], sizes = [2, 128], strides = [1, 1]} : vector<2x512xf32> to vector<2x128xf32>
    %216 = math.tanh %215 : vector<2x128xf32>
    %217 = vector.extract_strided_slice %202 {offsets = [0, 384], sizes = [2, 128], strides = [1, 1]} : vector<2x512xf32> to vector<2x128xf32>
    %218 = arith.negf %217 : vector<2x128xf32>
    %219 = math.exp %218 : vector<2x128xf32>
    %cst_75 = arith.constant 1.000000e+00 : f32
    %220 = vector.broadcast %cst_75 : f32 to vector<2x128xf32>
    %221 = arith.addf %220, %219 : vector<2x128xf32>
    %222 = arith.divf %220, %221 : vector<2x128xf32>
    %223 = arith.mulf %214, %163 : vector<2x128xf32>
    %224 = arith.mulf %208, %216 : vector<2x128xf32>
    %225 = arith.addf %223, %224 : vector<2x128xf32>
    %226 = math.tanh %225 : vector<2x128xf32>
    %227 = arith.mulf %222, %226 : vector<2x128xf32>
    %c3_i32 = arith.constant 3 : i32
    %228 = arith.index_cast %c3_i32 : i32 to index
    %c0_76 = arith.constant 0 : index
    %c0_77 = arith.constant 0 : index
    %229 = vector.load %arg10[%228, %c0_76, %c0_77] : memref<8x2x512xf32, #tpu.memory_space<vmem>>, vector<1x2x512xf32>
    %230 = vector.shape_cast %229 : vector<1x2x512xf32> to vector<2x512xf32>
    %c0_78 = arith.constant 0 : index
    %c0_79 = arith.constant 0 : index
    %231 = vector.load %arg2[%c0_78, %c0_79] : memref<128x512xf32, #tpu.memory_space<vmem>>, vector<128x512xf32>
    %cst_80 = arith.constant dense<0.000000e+00> : vector<2x512xf32>
    %232 = tpu.matmul %196, %231, %cst_80 {dimension_numbers = #tpu.dot_dimension_numbers<[1], [0], [0], [1], [0, 0, 1, 1], [], []>} : vector<2x128xf32>, vector<128x512xf32>, vector<2x512xf32> -> vector<2x512xf32>
    %233 = arith.addf %230, %232 : vector<2x512xf32>
    %234 = vector.extract_strided_slice %233 {offsets = [0, 0], sizes = [2, 128], strides = [1, 1]} : vector<2x512xf32> to vector<2x128xf32>
    %235 = arith.negf %234 : vector<2x128xf32>
    %236 = math.exp %235 : vector<2x128xf32>
    %cst_81 = arith.constant 1.000000e+00 : f32
    %237 = vector.broadcast %cst_81 : f32 to vector<2x128xf32>
    %238 = arith.addf %237, %236 : vector<2x128xf32>
    %239 = arith.divf %237, %238 : vector<2x128xf32>
    %240 = vector.extract_strided_slice %233 {offsets = [0, 128], sizes = [2, 128], strides = [1, 1]} : vector<2x512xf32> to vector<2x128xf32>
    %241 = arith.negf %240 : vector<2x128xf32>
    %242 = math.exp %241 : vector<2x128xf32>
    %cst_82 = arith.constant 1.000000e+00 : f32
    %243 = vector.broadcast %cst_82 : f32 to vector<2x128xf32>
    %244 = arith.addf %243, %242 : vector<2x128xf32>
    %245 = arith.divf %243, %244 : vector<2x128xf32>
    %246 = vector.extract_strided_slice %233 {offsets = [0, 256], sizes = [2, 128], strides = [1, 1]} : vector<2x512xf32> to vector<2x128xf32>
    %247 = math.tanh %246 : vector<2x128xf32>
    %248 = vector.extract_strided_slice %233 {offsets = [0, 384], sizes = [2, 128], strides = [1, 1]} : vector<2x512xf32> to vector<2x128xf32>
    %249 = arith.negf %248 : vector<2x128xf32>
    %250 = math.exp %249 : vector<2x128xf32>
    %cst_83 = arith.constant 1.000000e+00 : f32
    %251 = vector.broadcast %cst_83 : f32 to vector<2x128xf32>
    %252 = arith.addf %251, %250 : vector<2x128xf32>
    %253 = arith.divf %251, %252 : vector<2x128xf32>
    %254 = arith.mulf %245, %194 : vector<2x128xf32>
    %255 = arith.mulf %239, %247 : vector<2x128xf32>
    %256 = arith.addf %254, %255 : vector<2x128xf32>
    %257 = math.tanh %256 : vector<2x128xf32>
    %258 = arith.mulf %253, %257 : vector<2x128xf32>
    %c0_84 = arith.constant 0 : index
    %c0_85 = arith.constant 0 : index
    %259 = vector.load %arg4[%c0_84, %c0_85] : memref<128x512xf32, #tpu.memory_space<vmem>>, vector<128x512xf32>
    %cst_86 = arith.constant dense<0.000000e+00> : vector<2x512xf32>
    %260 = tpu.matmul %258, %259, %cst_86 {dimension_numbers = #tpu.dot_dimension_numbers<[1], [0], [0], [1], [0, 0, 1, 1], [], []>} : vector<2x128xf32>, vector<128x512xf32>, vector<2x512xf32> -> vector<2x512xf32>
    %c0_87 = arith.constant 0 : index
    %c0_88 = arith.constant 0 : index
    %261 = vector.load %arg5[%c0_87, %c0_88] : memref<128x512xf32, #tpu.memory_space<vmem>>, vector<128x512xf32>
    %cst_89 = arith.constant dense<0.000000e+00> : vector<2x512xf32>
    %262 = tpu.matmul %227, %261, %cst_89 {dimension_numbers = #tpu.dot_dimension_numbers<[1], [0], [0], [1], [0, 0, 1, 1], [], []>} : vector<2x128xf32>, vector<128x512xf32>, vector<2x512xf32> -> vector<2x512xf32>
    %263 = arith.addf %260, %262 : vector<2x512xf32>
    %264 = arith.addf %263, %40 : vector<2x512xf32>
    %265 = vector.extract_strided_slice %264 {offsets = [0, 0], sizes = [2, 128], strides = [1, 1]} : vector<2x512xf32> to vector<2x128xf32>
    %266 = arith.negf %265 : vector<2x128xf32>
    %267 = math.exp %266 : vector<2x128xf32>
    %cst_90 = arith.constant 1.000000e+00 : f32
    %268 = vector.broadcast %cst_90 : f32 to vector<2x128xf32>
    %269 = arith.addf %268, %267 : vector<2x128xf32>
    %270 = arith.divf %268, %269 : vector<2x128xf32>
    %271 = vector.extract_strided_slice %264 {offsets = [0, 128], sizes = [2, 128], strides = [1, 1]} : vector<2x512xf32> to vector<2x128xf32>
    %272 = arith.negf %271 : vector<2x128xf32>
    %273 = math.exp %272 : vector<2x128xf32>
    %cst_91 = arith.constant 1.000000e+00 : f32
    %274 = vector.broadcast %cst_91 : f32 to vector<2x128xf32>
    %275 = arith.addf %274, %273 : vector<2x128xf32>
    %276 = arith.divf %274, %275 : vector<2x128xf32>
    %277 = vector.extract_strided_slice %264 {offsets = [0, 256], sizes = [2, 128], strides = [1, 1]} : vector<2x512xf32> to vector<2x128xf32>
    %278 = math.tanh %277 : vector<2x128xf32>
    %279 = vector.extract_strided_slice %264 {offsets = [0, 384], sizes = [2, 128], strides = [1, 1]} : vector<2x512xf32> to vector<2x128xf32>
    %280 = arith.negf %279 : vector<2x128xf32>
    %281 = math.exp %280 : vector<2x128xf32>
    %cst_92 = arith.constant 1.000000e+00 : f32
    %282 = vector.broadcast %cst_92 : f32 to vector<2x128xf32>
    %283 = arith.addf %282, %281 : vector<2x128xf32>
    %284 = arith.divf %282, %283 : vector<2x128xf32>
    %285 = arith.mulf %276, %225 : vector<2x128xf32>
    %286 = arith.mulf %270, %278 : vector<2x128xf32>
    %287 = arith.addf %285, %286 : vector<2x128xf32>
    %288 = math.tanh %287 : vector<2x128xf32>
    %289 = arith.mulf %284, %288 : vector<2x128xf32>
    %c4_i32 = arith.constant 4 : i32
    %290 = arith.index_cast %c4_i32 : i32 to index
    %c0_93 = arith.constant 0 : index
    %c0_94 = arith.constant 0 : index
    %291 = vector.load %arg10[%290, %c0_93, %c0_94] : memref<8x2x512xf32, #tpu.memory_space<vmem>>, vector<1x2x512xf32>
    %292 = vector.shape_cast %291 : vector<1x2x512xf32> to vector<2x512xf32>
    %c0_95 = arith.constant 0 : index
    %c0_96 = arith.constant 0 : index
    %293 = vector.load %arg2[%c0_95, %c0_96] : memref<128x512xf32, #tpu.memory_space<vmem>>, vector<128x512xf32>
    %cst_97 = arith.constant dense<0.000000e+00> : vector<2x512xf32>
    %294 = tpu.matmul %258, %293, %cst_97 {dimension_numbers = #tpu.dot_dimension_numbers<[1], [0], [0], [1], [0, 0, 1, 1], [], []>} : vector<2x128xf32>, vector<128x512xf32>, vector<2x512xf32> -> vector<2x512xf32>
    %295 = arith.addf %292, %294 : vector<2x512xf32>
    %296 = vector.extract_strided_slice %295 {offsets = [0, 0], sizes = [2, 128], strides = [1, 1]} : vector<2x512xf32> to vector<2x128xf32>
    %297 = arith.negf %296 : vector<2x128xf32>
    %298 = math.exp %297 : vector<2x128xf32>
    %cst_98 = arith.constant 1.000000e+00 : f32
    %299 = vector.broadcast %cst_98 : f32 to vector<2x128xf32>
    %300 = arith.addf %299, %298 : vector<2x128xf32>
    %301 = arith.divf %299, %300 : vector<2x128xf32>
    %302 = vector.extract_strided_slice %295 {offsets = [0, 128], sizes = [2, 128], strides = [1, 1]} : vector<2x512xf32> to vector<2x128xf32>
    %303 = arith.negf %302 : vector<2x128xf32>
    %304 = math.exp %303 : vector<2x128xf32>
    %cst_99 = arith.constant 1.000000e+00 : f32
    %305 = vector.broadcast %cst_99 : f32 to vector<2x128xf32>
    %306 = arith.addf %305, %304 : vector<2x128xf32>
    %307 = arith.divf %305, %306 : vector<2x128xf32>
    %308 = vector.extract_strided_slice %295 {offsets = [0, 256], sizes = [2, 128], strides = [1, 1]} : vector<2x512xf32> to vector<2x128xf32>
    %309 = math.tanh %308 : vector<2x128xf32>
    %310 = vector.extract_strided_slice %295 {offsets = [0, 384], sizes = [2, 128], strides = [1, 1]} : vector<2x512xf32> to vector<2x128xf32>
    %311 = arith.negf %310 : vector<2x128xf32>
    %312 = math.exp %311 : vector<2x128xf32>
    %cst_100 = arith.constant 1.000000e+00 : f32
    %313 = vector.broadcast %cst_100 : f32 to vector<2x128xf32>
    %314 = arith.addf %313, %312 : vector<2x128xf32>
    %315 = arith.divf %313, %314 : vector<2x128xf32>
    %316 = arith.mulf %307, %256 : vector<2x128xf32>
    %317 = arith.mulf %301, %309 : vector<2x128xf32>
    %318 = arith.addf %316, %317 : vector<2x128xf32>
    %319 = math.tanh %318 : vector<2x128xf32>
    %320 = arith.mulf %315, %319 : vector<2x128xf32>
    %c0_101 = arith.constant 0 : index
    %c0_102 = arith.constant 0 : index
    %321 = vector.load %arg4[%c0_101, %c0_102] : memref<128x512xf32, #tpu.memory_space<vmem>>, vector<128x512xf32>
    %cst_103 = arith.constant dense<0.000000e+00> : vector<2x512xf32>
    %322 = tpu.matmul %320, %321, %cst_103 {dimension_numbers = #tpu.dot_dimension_numbers<[1], [0], [0], [1], [0, 0, 1, 1], [], []>} : vector<2x128xf32>, vector<128x512xf32>, vector<2x512xf32> -> vector<2x512xf32>
    %c0_104 = arith.constant 0 : index
    %c0_105 = arith.constant 0 : index
    %323 = vector.load %arg5[%c0_104, %c0_105] : memref<128x512xf32, #tpu.memory_space<vmem>>, vector<128x512xf32>
    %cst_106 = arith.constant dense<0.000000e+00> : vector<2x512xf32>
    %324 = tpu.matmul %289, %323, %cst_106 {dimension_numbers = #tpu.dot_dimension_numbers<[1], [0], [0], [1], [0, 0, 1, 1], [], []>} : vector<2x128xf32>, vector<128x512xf32>, vector<2x512xf32> -> vector<2x512xf32>
    %325 = arith.addf %322, %324 : vector<2x512xf32>
    %326 = arith.addf %325, %40 : vector<2x512xf32>
    %327 = vector.extract_strided_slice %326 {offsets = [0, 0], sizes = [2, 128], strides = [1, 1]} : vector<2x512xf32> to vector<2x128xf32>
    %328 = arith.negf %327 : vector<2x128xf32>
    %329 = math.exp %328 : vector<2x128xf32>
    %cst_107 = arith.constant 1.000000e+00 : f32
    %330 = vector.broadcast %cst_107 : f32 to vector<2x128xf32>
    %331 = arith.addf %330, %329 : vector<2x128xf32>
    %332 = arith.divf %330, %331 : vector<2x128xf32>
    %333 = vector.extract_strided_slice %326 {offsets = [0, 128], sizes = [2, 128], strides = [1, 1]} : vector<2x512xf32> to vector<2x128xf32>
    %334 = arith.negf %333 : vector<2x128xf32>
    %335 = math.exp %334 : vector<2x128xf32>
    %cst_108 = arith.constant 1.000000e+00 : f32
    %336 = vector.broadcast %cst_108 : f32 to vector<2x128xf32>
    %337 = arith.addf %336, %335 : vector<2x128xf32>
    %338 = arith.divf %336, %337 : vector<2x128xf32>
    %339 = vector.extract_strided_slice %326 {offsets = [0, 256], sizes = [2, 128], strides = [1, 1]} : vector<2x512xf32> to vector<2x128xf32>
    %340 = math.tanh %339 : vector<2x128xf32>
    %341 = vector.extract_strided_slice %326 {offsets = [0, 384], sizes = [2, 128], strides = [1, 1]} : vector<2x512xf32> to vector<2x128xf32>
    %342 = arith.negf %341 : vector<2x128xf32>
    %343 = math.exp %342 : vector<2x128xf32>
    %cst_109 = arith.constant 1.000000e+00 : f32
    %344 = vector.broadcast %cst_109 : f32 to vector<2x128xf32>
    %345 = arith.addf %344, %343 : vector<2x128xf32>
    %346 = arith.divf %344, %345 : vector<2x128xf32>
    %347 = arith.mulf %338, %287 : vector<2x128xf32>
    %348 = arith.mulf %332, %340 : vector<2x128xf32>
    %349 = arith.addf %347, %348 : vector<2x128xf32>
    %350 = math.tanh %349 : vector<2x128xf32>
    %351 = arith.mulf %346, %350 : vector<2x128xf32>
    %c5_i32 = arith.constant 5 : i32
    %352 = arith.index_cast %c5_i32 : i32 to index
    %c0_110 = arith.constant 0 : index
    %c0_111 = arith.constant 0 : index
    %353 = vector.load %arg10[%352, %c0_110, %c0_111] : memref<8x2x512xf32, #tpu.memory_space<vmem>>, vector<1x2x512xf32>
    %354 = vector.shape_cast %353 : vector<1x2x512xf32> to vector<2x512xf32>
    %c0_112 = arith.constant 0 : index
    %c0_113 = arith.constant 0 : index
    %355 = vector.load %arg2[%c0_112, %c0_113] : memref<128x512xf32, #tpu.memory_space<vmem>>, vector<128x512xf32>
    %cst_114 = arith.constant dense<0.000000e+00> : vector<2x512xf32>
    %356 = tpu.matmul %320, %355, %cst_114 {dimension_numbers = #tpu.dot_dimension_numbers<[1], [0], [0], [1], [0, 0, 1, 1], [], []>} : vector<2x128xf32>, vector<128x512xf32>, vector<2x512xf32> -> vector<2x512xf32>
    %357 = arith.addf %354, %356 : vector<2x512xf32>
    %358 = vector.extract_strided_slice %357 {offsets = [0, 0], sizes = [2, 128], strides = [1, 1]} : vector<2x512xf32> to vector<2x128xf32>
    %359 = arith.negf %358 : vector<2x128xf32>
    %360 = math.exp %359 : vector<2x128xf32>
    %cst_115 = arith.constant 1.000000e+00 : f32
    %361 = vector.broadcast %cst_115 : f32 to vector<2x128xf32>
    %362 = arith.addf %361, %360 : vector<2x128xf32>
    %363 = arith.divf %361, %362 : vector<2x128xf32>
    %364 = vector.extract_strided_slice %357 {offsets = [0, 128], sizes = [2, 128], strides = [1, 1]} : vector<2x512xf32> to vector<2x128xf32>
    %365 = arith.negf %364 : vector<2x128xf32>
    %366 = math.exp %365 : vector<2x128xf32>
    %cst_116 = arith.constant 1.000000e+00 : f32
    %367 = vector.broadcast %cst_116 : f32 to vector<2x128xf32>
    %368 = arith.addf %367, %366 : vector<2x128xf32>
    %369 = arith.divf %367, %368 : vector<2x128xf32>
    %370 = vector.extract_strided_slice %357 {offsets = [0, 256], sizes = [2, 128], strides = [1, 1]} : vector<2x512xf32> to vector<2x128xf32>
    %371 = math.tanh %370 : vector<2x128xf32>
    %372 = vector.extract_strided_slice %357 {offsets = [0, 384], sizes = [2, 128], strides = [1, 1]} : vector<2x512xf32> to vector<2x128xf32>
    %373 = arith.negf %372 : vector<2x128xf32>
    %374 = math.exp %373 : vector<2x128xf32>
    %cst_117 = arith.constant 1.000000e+00 : f32
    %375 = vector.broadcast %cst_117 : f32 to vector<2x128xf32>
    %376 = arith.addf %375, %374 : vector<2x128xf32>
    %377 = arith.divf %375, %376 : vector<2x128xf32>
    %378 = arith.mulf %369, %318 : vector<2x128xf32>
    %379 = arith.mulf %363, %371 : vector<2x128xf32>
    %380 = arith.addf %378, %379 : vector<2x128xf32>
    %381 = math.tanh %380 : vector<2x128xf32>
    %382 = arith.mulf %377, %381 : vector<2x128xf32>
    %c0_118 = arith.constant 0 : index
    %c0_119 = arith.constant 0 : index
    %383 = vector.load %arg4[%c0_118, %c0_119] : memref<128x512xf32, #tpu.memory_space<vmem>>, vector<128x512xf32>
    %cst_120 = arith.constant dense<0.000000e+00> : vector<2x512xf32>
    %384 = tpu.matmul %382, %383, %cst_120 {dimension_numbers = #tpu.dot_dimension_numbers<[1], [0], [0], [1], [0, 0, 1, 1], [], []>} : vector<2x128xf32>, vector<128x512xf32>, vector<2x512xf32> -> vector<2x512xf32>
    %c0_121 = arith.constant 0 : index
    %c0_122 = arith.constant 0 : index
    %385 = vector.load %arg5[%c0_121, %c0_122] : memref<128x512xf32, #tpu.memory_space<vmem>>, vector<128x512xf32>
    %cst_123 = arith.constant dense<0.000000e+00> : vector<2x512xf32>
    %386 = tpu.matmul %351, %385, %cst_123 {dimension_numbers = #tpu.dot_dimension_numbers<[1], [0], [0], [1], [0, 0, 1, 1], [], []>} : vector<2x128xf32>, vector<128x512xf32>, vector<2x512xf32> -> vector<2x512xf32>
    %387 = arith.addf %384, %386 : vector<2x512xf32>
    %388 = arith.addf %387, %40 : vector<2x512xf32>
    %389 = vector.extract_strided_slice %388 {offsets = [0, 0], sizes = [2, 128], strides = [1, 1]} : vector<2x512xf32> to vector<2x128xf32>
    %390 = arith.negf %389 : vector<2x128xf32>
    %391 = math.exp %390 : vector<2x128xf32>
    %cst_124 = arith.constant 1.000000e+00 : f32
    %392 = vector.broadcast %cst_124 : f32 to vector<2x128xf32>
    %393 = arith.addf %392, %391 : vector<2x128xf32>
    %394 = arith.divf %392, %393 : vector<2x128xf32>
    %395 = vector.extract_strided_slice %388 {offsets = [0, 128], sizes = [2, 128], strides = [1, 1]} : vector<2x512xf32> to vector<2x128xf32>
    %396 = arith.negf %395 : vector<2x128xf32>
    %397 = math.exp %396 : vector<2x128xf32>
    %cst_125 = arith.constant 1.000000e+00 : f32
    %398 = vector.broadcast %cst_125 : f32 to vector<2x128xf32>
    %399 = arith.addf %398, %397 : vector<2x128xf32>
    %400 = arith.divf %398, %399 : vector<2x128xf32>
    %401 = vector.extract_strided_slice %388 {offsets = [0, 256], sizes = [2, 128], strides = [1, 1]} : vector<2x512xf32> to vector<2x128xf32>
    %402 = math.tanh %401 : vector<2x128xf32>
    %403 = vector.extract_strided_slice %388 {offsets = [0, 384], sizes = [2, 128], strides = [1, 1]} : vector<2x512xf32> to vector<2x128xf32>
    %404 = arith.negf %403 : vector<2x128xf32>
    %405 = math.exp %404 : vector<2x128xf32>
    %cst_126 = arith.constant 1.000000e+00 : f32
    %406 = vector.broadcast %cst_126 : f32 to vector<2x128xf32>
    %407 = arith.addf %406, %405 : vector<2x128xf32>
    %408 = arith.divf %406, %407 : vector<2x128xf32>
    %409 = arith.mulf %400, %349 : vector<2x128xf32>
    %410 = arith.mulf %394, %402 : vector<2x128xf32>
    %411 = arith.addf %409, %410 : vector<2x128xf32>
    %412 = math.tanh %411 : vector<2x128xf32>
    %413 = arith.mulf %408, %412 : vector<2x128xf32>
    %c6_i32 = arith.constant 6 : i32
    %414 = arith.index_cast %c6_i32 : i32 to index
    %c0_127 = arith.constant 0 : index
    %c0_128 = arith.constant 0 : index
    %415 = vector.load %arg10[%414, %c0_127, %c0_128] : memref<8x2x512xf32, #tpu.memory_space<vmem>>, vector<1x2x512xf32>
    %416 = vector.shape_cast %415 : vector<1x2x512xf32> to vector<2x512xf32>
    %c0_129 = arith.constant 0 : index
    %c0_130 = arith.constant 0 : index
    %417 = vector.load %arg2[%c0_129, %c0_130] : memref<128x512xf32, #tpu.memory_space<vmem>>, vector<128x512xf32>
    %cst_131 = arith.constant dense<0.000000e+00> : vector<2x512xf32>
    %418 = tpu.matmul %382, %417, %cst_131 {dimension_numbers = #tpu.dot_dimension_numbers<[1], [0], [0], [1], [0, 0, 1, 1], [], []>} : vector<2x128xf32>, vector<128x512xf32>, vector<2x512xf32> -> vector<2x512xf32>
    %419 = arith.addf %416, %418 : vector<2x512xf32>
    %420 = vector.extract_strided_slice %419 {offsets = [0, 0], sizes = [2, 128], strides = [1, 1]} : vector<2x512xf32> to vector<2x128xf32>
    %421 = arith.negf %420 : vector<2x128xf32>
    %422 = math.exp %421 : vector<2x128xf32>
    %cst_132 = arith.constant 1.000000e+00 : f32
    %423 = vector.broadcast %cst_132 : f32 to vector<2x128xf32>
    %424 = arith.addf %423, %422 : vector<2x128xf32>
    %425 = arith.divf %423, %424 : vector<2x128xf32>
    %426 = vector.extract_strided_slice %419 {offsets = [0, 128], sizes = [2, 128], strides = [1, 1]} : vector<2x512xf32> to vector<2x128xf32>
    %427 = arith.negf %426 : vector<2x128xf32>
    %428 = math.exp %427 : vector<2x128xf32>
    %cst_133 = arith.constant 1.000000e+00 : f32
    %429 = vector.broadcast %cst_133 : f32 to vector<2x128xf32>
    %430 = arith.addf %429, %428 : vector<2x128xf32>
    %431 = arith.divf %429, %430 : vector<2x128xf32>
    %432 = vector.extract_strided_slice %419 {offsets = [0, 256], sizes = [2, 128], strides = [1, 1]} : vector<2x512xf32> to vector<2x128xf32>
    %433 = math.tanh %432 : vector<2x128xf32>
    %434 = vector.extract_strided_slice %419 {offsets = [0, 384], sizes = [2, 128], strides = [1, 1]} : vector<2x512xf32> to vector<2x128xf32>
    %435 = arith.negf %434 : vector<2x128xf32>
    %436 = math.exp %435 : vector<2x128xf32>
    %cst_134 = arith.constant 1.000000e+00 : f32
    %437 = vector.broadcast %cst_134 : f32 to vector<2x128xf32>
    %438 = arith.addf %437, %436 : vector<2x128xf32>
    %439 = arith.divf %437, %438 : vector<2x128xf32>
    %440 = arith.mulf %431, %380 : vector<2x128xf32>
    %441 = arith.mulf %425, %433 : vector<2x128xf32>
    %442 = arith.addf %440, %441 : vector<2x128xf32>
    %443 = math.tanh %442 : vector<2x128xf32>
    %444 = arith.mulf %439, %443 : vector<2x128xf32>
    %c0_135 = arith.constant 0 : index
    %c0_136 = arith.constant 0 : index
    %445 = vector.load %arg4[%c0_135, %c0_136] : memref<128x512xf32, #tpu.memory_space<vmem>>, vector<128x512xf32>
    %cst_137 = arith.constant dense<0.000000e+00> : vector<2x512xf32>
    %446 = tpu.matmul %444, %445, %cst_137 {dimension_numbers = #tpu.dot_dimension_numbers<[1], [0], [0], [1], [0, 0, 1, 1], [], []>} : vector<2x128xf32>, vector<128x512xf32>, vector<2x512xf32> -> vector<2x512xf32>
    %c0_138 = arith.constant 0 : index
    %c0_139 = arith.constant 0 : index
    %447 = vector.load %arg5[%c0_138, %c0_139] : memref<128x512xf32, #tpu.memory_space<vmem>>, vector<128x512xf32>
    %cst_140 = arith.constant dense<0.000000e+00> : vector<2x512xf32>
    %448 = tpu.matmul %413, %447, %cst_140 {dimension_numbers = #tpu.dot_dimension_numbers<[1], [0], [0], [1], [0, 0, 1, 1], [], []>} : vector<2x128xf32>, vector<128x512xf32>, vector<2x512xf32> -> vector<2x512xf32>
    %449 = arith.addf %446, %448 : vector<2x512xf32>
    %450 = arith.addf %449, %40 : vector<2x512xf32>
    %451 = vector.extract_strided_slice %450 {offsets = [0, 0], sizes = [2, 128], strides = [1, 1]} : vector<2x512xf32> to vector<2x128xf32>
    %452 = arith.negf %451 : vector<2x128xf32>
    %453 = math.exp %452 : vector<2x128xf32>
    %cst_141 = arith.constant 1.000000e+00 : f32
    %454 = vector.broadcast %cst_141 : f32 to vector<2x128xf32>
    %455 = arith.addf %454, %453 : vector<2x128xf32>
    %456 = arith.divf %454, %455 : vector<2x128xf32>
    %457 = vector.extract_strided_slice %450 {offsets = [0, 128], sizes = [2, 128], strides = [1, 1]} : vector<2x512xf32> to vector<2x128xf32>
    %458 = arith.negf %457 : vector<2x128xf32>
    %459 = math.exp %458 : vector<2x128xf32>
    %cst_142 = arith.constant 1.000000e+00 : f32
    %460 = vector.broadcast %cst_142 : f32 to vector<2x128xf32>
    %461 = arith.addf %460, %459 : vector<2x128xf32>
    %462 = arith.divf %460, %461 : vector<2x128xf32>
    %463 = vector.extract_strided_slice %450 {offsets = [0, 256], sizes = [2, 128], strides = [1, 1]} : vector<2x512xf32> to vector<2x128xf32>
    %464 = math.tanh %463 : vector<2x128xf32>
    %465 = vector.extract_strided_slice %450 {offsets = [0, 384], sizes = [2, 128], strides = [1, 1]} : vector<2x512xf32> to vector<2x128xf32>
    %466 = arith.negf %465 : vector<2x128xf32>
    %467 = math.exp %466 : vector<2x128xf32>
    %cst_143 = arith.constant 1.000000e+00 : f32
    %468 = vector.broadcast %cst_143 : f32 to vector<2x128xf32>
    %469 = arith.addf %468, %467 : vector<2x128xf32>
    %470 = arith.divf %468, %469 : vector<2x128xf32>
    %471 = arith.mulf %462, %411 : vector<2x128xf32>
    %472 = arith.mulf %456, %464 : vector<2x128xf32>
    %473 = arith.addf %471, %472 : vector<2x128xf32>
    %474 = math.tanh %473 : vector<2x128xf32>
    %475 = arith.mulf %470, %474 : vector<2x128xf32>
    %c7_i32 = arith.constant 7 : i32
    %476 = arith.index_cast %c7_i32 : i32 to index
    %c0_144 = arith.constant 0 : index
    %c0_145 = arith.constant 0 : index
    %477 = vector.load %arg10[%476, %c0_144, %c0_145] : memref<8x2x512xf32, #tpu.memory_space<vmem>>, vector<1x2x512xf32>
    %478 = vector.shape_cast %477 : vector<1x2x512xf32> to vector<2x512xf32>
    %c0_146 = arith.constant 0 : index
    %c0_147 = arith.constant 0 : index
    %479 = vector.load %arg2[%c0_146, %c0_147] : memref<128x512xf32, #tpu.memory_space<vmem>>, vector<128x512xf32>
    %cst_148 = arith.constant dense<0.000000e+00> : vector<2x512xf32>
    %480 = tpu.matmul %444, %479, %cst_148 {dimension_numbers = #tpu.dot_dimension_numbers<[1], [0], [0], [1], [0, 0, 1, 1], [], []>} : vector<2x128xf32>, vector<128x512xf32>, vector<2x512xf32> -> vector<2x512xf32>
    %481 = arith.addf %478, %480 : vector<2x512xf32>
    %482 = vector.extract_strided_slice %481 {offsets = [0, 0], sizes = [2, 128], strides = [1, 1]} : vector<2x512xf32> to vector<2x128xf32>
    %483 = arith.negf %482 : vector<2x128xf32>
    %484 = math.exp %483 : vector<2x128xf32>
    %cst_149 = arith.constant 1.000000e+00 : f32
    %485 = vector.broadcast %cst_149 : f32 to vector<2x128xf32>
    %486 = arith.addf %485, %484 : vector<2x128xf32>
    %487 = arith.divf %485, %486 : vector<2x128xf32>
    %488 = vector.extract_strided_slice %481 {offsets = [0, 128], sizes = [2, 128], strides = [1, 1]} : vector<2x512xf32> to vector<2x128xf32>
    %489 = arith.negf %488 : vector<2x128xf32>
    %490 = math.exp %489 : vector<2x128xf32>
    %cst_150 = arith.constant 1.000000e+00 : f32
    %491 = vector.broadcast %cst_150 : f32 to vector<2x128xf32>
    %492 = arith.addf %491, %490 : vector<2x128xf32>
    %493 = arith.divf %491, %492 : vector<2x128xf32>
    %494 = vector.extract_strided_slice %481 {offsets = [0, 256], sizes = [2, 128], strides = [1, 1]} : vector<2x512xf32> to vector<2x128xf32>
    %495 = math.tanh %494 : vector<2x128xf32>
    %496 = vector.extract_strided_slice %481 {offsets = [0, 384], sizes = [2, 128], strides = [1, 1]} : vector<2x512xf32> to vector<2x128xf32>
    %497 = arith.negf %496 : vector<2x128xf32>
    %498 = math.exp %497 : vector<2x128xf32>
    %cst_151 = arith.constant 1.000000e+00 : f32
    %499 = vector.broadcast %cst_151 : f32 to vector<2x128xf32>
    %500 = arith.addf %499, %498 : vector<2x128xf32>
    %501 = arith.divf %499, %500 : vector<2x128xf32>
    %502 = arith.mulf %493, %442 : vector<2x128xf32>
    %503 = arith.mulf %487, %495 : vector<2x128xf32>
    %504 = arith.addf %502, %503 : vector<2x128xf32>
    %505 = math.tanh %504 : vector<2x128xf32>
    %506 = arith.mulf %501, %505 : vector<2x128xf32>
    %c0_152 = arith.constant 0 : index
    %c0_153 = arith.constant 0 : index
    %507 = vector.load %arg4[%c0_152, %c0_153] : memref<128x512xf32, #tpu.memory_space<vmem>>, vector<128x512xf32>
    %cst_154 = arith.constant dense<0.000000e+00> : vector<2x512xf32>
    %508 = tpu.matmul %506, %507, %cst_154 {dimension_numbers = #tpu.dot_dimension_numbers<[1], [0], [0], [1], [0, 0, 1, 1], [], []>} : vector<2x128xf32>, vector<128x512xf32>, vector<2x512xf32> -> vector<2x512xf32>
    %c0_155 = arith.constant 0 : index
    %c0_156 = arith.constant 0 : index
    %509 = vector.load %arg5[%c0_155, %c0_156] : memref<128x512xf32, #tpu.memory_space<vmem>>, vector<128x512xf32>
    %cst_157 = arith.constant dense<0.000000e+00> : vector<2x512xf32>
    %510 = tpu.matmul %475, %509, %cst_157 {dimension_numbers = #tpu.dot_dimension_numbers<[1], [0], [0], [1], [0, 0, 1, 1], [], []>} : vector<2x128xf32>, vector<128x512xf32>, vector<2x512xf32> -> vector<2x512xf32>
    %511 = arith.addf %508, %510 : vector<2x512xf32>
    %512 = arith.addf %511, %40 : vector<2x512xf32>
    %513 = vector.extract_strided_slice %512 {offsets = [0, 0], sizes = [2, 128], strides = [1, 1]} : vector<2x512xf32> to vector<2x128xf32>
    %514 = arith.negf %513 : vector<2x128xf32>
    %515 = math.exp %514 : vector<2x128xf32>
    %cst_158 = arith.constant 1.000000e+00 : f32
    %516 = vector.broadcast %cst_158 : f32 to vector<2x128xf32>
    %517 = arith.addf %516, %515 : vector<2x128xf32>
    %518 = arith.divf %516, %517 : vector<2x128xf32>
    %519 = vector.extract_strided_slice %512 {offsets = [0, 128], sizes = [2, 128], strides = [1, 1]} : vector<2x512xf32> to vector<2x128xf32>
    %520 = arith.negf %519 : vector<2x128xf32>
    %521 = math.exp %520 : vector<2x128xf32>
    %cst_159 = arith.constant 1.000000e+00 : f32
    %522 = vector.broadcast %cst_159 : f32 to vector<2x128xf32>
    %523 = arith.addf %522, %521 : vector<2x128xf32>
    %524 = arith.divf %522, %523 : vector<2x128xf32>
    %525 = vector.extract_strided_slice %512 {offsets = [0, 256], sizes = [2, 128], strides = [1, 1]} : vector<2x512xf32> to vector<2x128xf32>
    %526 = math.tanh %525 : vector<2x128xf32>
    %527 = vector.extract_strided_slice %512 {offsets = [0, 384], sizes = [2, 128], strides = [1, 1]} : vector<2x512xf32> to vector<2x128xf32>
    %528 = arith.negf %527 : vector<2x128xf32>
    %529 = math.exp %528 : vector<2x128xf32>
    %cst_160 = arith.constant 1.000000e+00 : f32
    %530 = vector.broadcast %cst_160 : f32 to vector<2x128xf32>
    %531 = arith.addf %530, %529 : vector<2x128xf32>
    %532 = arith.divf %530, %531 : vector<2x128xf32>
    %533 = arith.mulf %524, %473 : vector<2x128xf32>
    %534 = arith.mulf %518, %526 : vector<2x128xf32>
    %535 = arith.addf %533, %534 : vector<2x128xf32>
    %536 = math.tanh %535 : vector<2x128xf32>
    %537 = arith.mulf %532, %536 : vector<2x128xf32>
    %c8_i32 = arith.constant 8 : i32
    %c0_161 = arith.constant 0 : index
    %c0_162 = arith.constant 0 : index
    %538 = vector.load %arg7[%c0_161, %c0_162] : memref<128x4xf32, #tpu.memory_space<vmem>>, vector<128x4xf32>
    %cst_163 = arith.constant dense<0.000000e+00> : vector<2x4xf32>
    %539 = tpu.matmul %537, %538, %cst_163 {dimension_numbers = #tpu.dot_dimension_numbers<[1], [0], [0], [1], [0, 0, 1, 1], [], []>} : vector<2x128xf32>, vector<128x4xf32>, vector<2x4xf32> -> vector<2x4xf32>
    %c0_164 = arith.constant 0 : index
    %c0_165 = arith.constant 0 : index
    %540 = vector.load %arg8[%c0_164, %c0_165] : memref<1x4xf32, #tpu.memory_space<vmem>>, vector<1x4xf32>
    %541 = vector.broadcast %540 : vector<1x4xf32> to vector<2x4xf32>
    %542 = arith.addf %539, %541 : vector<2x4xf32>
    %c0_166 = arith.constant 0 : index
    %c0_167 = arith.constant 0 : index
    %543 = vector.load %arg9[%c0_166, %c0_167] : memref<2x4xf32, #tpu.memory_space<vmem>>, vector<2x4xf32>
    tpu.vector_store %arg9[%c0_166, %c0_167], %542 {strides = array<i32>} : memref<2x4xf32, #tpu.memory_space<vmem>>, vector<2x4xf32>,
    return
  }
}

</mosaic_0001>

<bundles_post_ra>
// kernel: tpu_custom_call.1
= control target key start
LH: loop header
LB: loop body
LE: loop exit
PB: predicated region body
PF: predicated region fallthrough
CT: control target
= control target key end

     0   :  { %14 = vsyncpa [#allocation4], 0  ;;  %s9346_s0 = inlined_call_operand.vmem [shape: f32[16,16], index: 0, kind: input, shape index: {}]   ;;  %s9347_s1 = inlined_call_operand.vmem [shape: f32[16,512], index: 1, kind: input, shape index: {}]   ;;  %s9348_s2 = inlined_call_operand.hbm [shape: f32[128,512], index: 2, kind: input, shape index: {}]   ;;  %s9349_s3 = inlined_call_operand.vmem [shape: f32[1,512], index: 3, kind: input, shape index: {}]   ;;  %s9350_s4 = inlined_call_operand.hbm [shape: f32[128,512], index: 4, kind: input, shape index: {}]   ;;  %s9351_s5 = inlined_call_operand.hbm [shape: f32[128,512], index: 5, kind: input, shape index: {}]   ;;  %s9352_s6 = inlined_call_operand.vmem [shape: f32[1,512], index: 6, kind: input, shape index: {}]   ;;  %s9353_s7 = inlined_call_operand.vmem [shape: f32[128,4], index: 7, kind: input, shape index: {}]   ;;  %s9354_s8 = inlined_call_operand.vmem [shape: f32[1,4], index: 8, kind: input, shape index: {}]   ;;  %s9355_s9 = inlined_call_operand.hbm [shape: f32[2,4], index: 9, kind: output, shape index: {}]  }
   0x1   :  { %15 = vsyncpa [#allocation7], 0 }
   0x2   :  { %16 = vsyncpa [#allocation5], 0  ;;  %s5799_s30 = smov [#allocation6]   ;;  %s5800_s11 = smov [#allocation3]  }
   0x3   :  { %s40_s10 = sshll.u32 %s5799_s30, 4  ;;  %s26_s12 = sshll.u32 %s5800_s11, 4  ;;  %s41_s10 = int_to_ptr.vmem [resolvable:$true] %s40_s10  ;;  %s27_s12 = int_to_ptr.vmem [resolvable:$true] %s26_s12 }
   0x4   :  { %s5721_s13 = scalar_lea.vmem %s41_s10, 8192  ;;  %p5726_p1 = scmp.lt.s32.totalorder %s41_s10, %s41_s10 }
   0x5   :  { %p5722_p0 = scmp.ne.s32.totalorder %s41_s10, %s5721_s13  ;;  %p5727_p2 = scmp.lt.s32.totalorder %s5721_s13, %s5721_s13 }
   0x7   :  { %p5728_p3 = por %p5727_p2, %p5726_p1 }
   0x9   :  { %p5729_p4 = pnand %p5728_p3, %p5722_p0 }
   0xb   :  { %5732 = shalt.err (!%p5729_p4)
}
   0xc   :  { %s5801_s14 = smov 512   ;;  %s5802_s15 = smov 32  }
   0xd   :  { %46 = dma.hbm_to_vmem [thread:$0]  %s9350_s4, 8192, %s41_s10, [#allocation7], %s5801_s14, %s5801_s14, %s5802_s15  }
   0xe   :  { %s5741_s18 = scalar_lea.vmem %s27_s12, 8192  ;;  %p5746_p6 = scmp.lt.s32.totalorder %s27_s12, %s27_s12 }
   0xf   :  { %p5742_p5 = scmp.ne.s32.totalorder %s27_s12, %s5741_s18  ;;  %p5747_p7 = scmp.lt.s32.totalorder %s5741_s18, %s5741_s18 }
  0x11   :  { %p5748_p8 = por %p5747_p7, %p5746_p6 }
  0x13   :  { %p5749_p9 = pnand %p5748_p8, %p5742_p5 }
  0x15   :  { %5752 = shalt.err (!%p5749_p9)
}
  0x16   :  { %32 = dma.hbm_to_vmem [thread:$0]  %s9348_s2, 8192, %s27_s12, [#allocation4], %s5801_s14, %s5801_s14, %s5802_s15  }
  0x17   :  { %s5803_s21 = smov [#allocation8]  }
  0x18   :  { %s52_s22 = sshll.u32 %s5803_s21, 4  ;;  %s53_s22 = int_to_ptr.vmem [resolvable:$true] %s52_s22 }
  0x19   :  { %s5761_s23 = scalar_lea.vmem %s53_s22, 8192  ;;  %p5766_p11 = scmp.lt.s32.totalorder %s53_s22, %s53_s22 }
  0x1a   :  { %p5762_p10 = scmp.ne.s32.totalorder %s53_s22, %s5761_s23  ;;  %p5767_p12 = scmp.lt.s32.totalorder %s5761_s23, %s5761_s23 }
  0x1c   :  { %p5768_p13 = por %p5767_p12, %p5766_p11 }
  0x1e   :  { %p5769_p0 = pnand %p5768_p13, %p5762_p10 }
  0x20   :  { %5772 = shalt.err (!%p5769_p0)
}
  0x21   :  { %58 = dma.hbm_to_vmem [thread:$0]  %s9351_s5, 8192, %s53_s22, [#allocation7], %s5801_s14, %s5801_s14, %s5802_s15  }
  0x22   :  { %5793 = dma.done.wait [#allocation4], 8192  }
  0x23   :  { %5794 = vsyncadd [#allocation4], 4294959104 }
  0x24   :  { %5795 = dma.done.wait [#allocation7], 16384  }
  0x25   :  { %5796 = vsyncadd [#allocation7], 4294950912  ;;  %v9363_v0 = vmov 0.0   ;;  %v81_v1 = vld [vmem:[%s9347_s1 + $0x28] sm:$0xff]  ;;  %v80_v2 = vld [vmem:[%s9347_s1 + $0x20] sm:$0xff]  ;;  %vm106_vm0 = vcmask 130048  }
  0x26   :  { %177 = vmatprep.mubr.f32.mxu1 %v9363_v0  ;;  %521 = vmatprep.mubr.f32.mxu0 %v9363_v0  ;;  %v77_v3 = vld [vmem:[%s9347_s1 + $0x8] sm:$0xff]  ;;  %v76_v4 = vld [vmem:[%s9347_s1] sm:$0xff]  ;;  %v83_v6 = vld [vmem:[%s9347_s1 + $0x38] sm:$0xff]  ;;  %vm5806_vm1 = vmmov 0   ;;  %s5807_s25 = smov [#allocation9]   ;;  %vm4749_vm2 = vcmask 25600  }
  0x27   :  { %141 = vmatprep.subr.mxu1 %v81_v1  ;;  %v74_v5 = vld [vmem:[%s9346_s0] sm:$0xff]  ;;  %v82_v7 = vld [vmem:[%s9347_s1 + $0x30] sm:$0xff]  ;;  %v5890_v8 = vld [vmem:[#allocation3 + $0x1e8] sm:$0xff]  ;;  %s4757_s26 = sshll.u32 %s5807_s25, 4  ;;  %s4758_s26 = int_to_ptr.vmem [resolvable:$true] %s4757_s26 }
  0x28   :  { %142 = vmatpush1.msra.mxu1 %v80_v2  ;;  %v79_v9 = vld [vmem:[%s9347_s1 + $0x18] sm:$0xff]  ;;  %457 = vmatprep.subr.mxu0 %v5890_v8  ;;  %v5896_v10 = vld [vmem:[#allocation3 + $0x1e0] sm:$0xff]  ;;  %v78_v11 = vld [vmem:[%s9347_s1 + $0x10] sm:$0xff]  ;;  %s5773_s27 = scalar_lea.vmem %s4758_s26, 32  ;;  %p5778_p2 = scmp.lt.s32.totalorder %s4758_s26, %s4758_s26 }
  0x29   :  { %143 = vmatprep.subr.mxu1 %v77_v3  ;;  %v5902_v12 = vld [vmem:[#allocation3 + $0x1c8] sm:$0xff]  ;;  %v5908_v14 = vld [vmem:[#allocation3 + $0x1f8] sm:$0xff]  ;;  %458 = vmatpush1.msra.mxu0 %v5896_v10  ;;  %v5911_v15 = vld [vmem:[#allocation3 + $0x1c0] sm:$0xff]  ;;  %p5774_p1 = scmp.ne.s32.totalorder %s4758_s26, %s5773_s27  ;;  %p5779_p3 = scmp.lt.s32.totalorder %s5773_s27, %s5773_s27 }
  0x2a   :  { %144 = vmatpush1.msra.mxu1 %v76_v4  ;;  %v75_v13 = vld [vmem:[%s9346_s0 + $0x8] sm:$0xff]  ;;  %459 = vmatprep.subr.mxu0 %v5902_v12  ;;  %v5918_v17 = vld [vmem:[#allocation3 + $0x1a0] sm:$0xff]  ;;  %v5924_v19 = vld [vmem:[#allocation3 + $0x1f0] sm:$0xff] }
  0x2b   :  { %4767 = vmatmul.mubr.msk.f32.vlgmr.msra.gmra.mxu1 %vm106_vm0, %v74_v5  ;;  %218 = vmatprep.subr.mxu1 %v83_v6  ;;  %v5914_v16 = vld [vmem:[#allocation3 + $0x1a8] sm:$0xff]  ;;  %v5927_v20 = vld [vmem:[#allocation3 + $0x1d8] sm:$0xff]  ;;  %v5930_v21 = vld [vmem:[#allocation3 + $0x180] sm:$0xff]  ;;  %p5780_p4 = por %p5779_p3, %p5778_p2 }
  0x2c   :  { %219 = vmatpush1.msra.mxu1 %v82_v7  ;;  %183 = vmatprep.mubr.f32.mxu1 %v9363_v0  ;;  %v5922_v18 = vld [vmem:[#allocation3 + $0x188] sm:$0xff]  ;;  %v5933_v22 = vld [vmem:[#allocation3 + $0x1d0] sm:$0xff]  ;;  %v5940_v24 = vld [vmem:[#allocation3 + $0x1b8] sm:$0xff] }
  0x2d   :  { %220 = vmatprep.subr.mxu1 %v79_v9  ;;  %460 = vmatpush1.msra.mxu0 %v5911_v15  ;;  %v5936_v23 = vld [vmem:[#allocation3 + $0x168] sm:$0xff]  ;;  %v5943_v25 = vld [vmem:[#allocation3 + $0x1b0] sm:$0xff]  ;;  %v5946_v26 = vld [vmem:[#allocation3 + $0x160] sm:$0xff]  ;;  %p5781_p5 = pnand %p5780_p4, %p5774_p1 }
  0x2e   :  { %221 = vmatpush1.msra.mxu1 %v78_v11  ;;  %461 = vmatprep.subr.mxu0 %v5914_v16  ;;  %v5949_v27 = vld [vmem:[#allocation3 + $0x198] sm:$0xff]  ;;  %v5952_v28 = vld [vmem:[#allocation3 + $0x148] sm:$0xff]  ;;  %v5956_v29 = vld [vmem:[#allocation3 + $0x190] sm:$0xff] }
  0x2f   :  { %4768 = vmatmul.mubr.msk.f32.gmra.mxu1 %vm106_vm0, %v75_v13  ;;  %528 = vmatprep.subr.mxu1 %v5908_v14  ;;  %v5958_v30 = vld [vmem:[#allocation3 + $0x140] sm:$0xff]  ;;  %v5962_v31 = vld [vmem:[#allocation3 + $0x178] sm:$0xff]  ;;  %v5964_v32 = vld [vmem:[#allocation3 + $0x128] sm:$0xff] }
  0x30   :  { %254 = vmatprep.mubr.f32.mxu1 %v9363_v0  ;;  %462 = vmatpush1.msra.mxu0 %v5918_v17  ;;  %v5968_v33 = vld [vmem:[#allocation3 + $0x170] sm:$0xff]  ;;  %v5970_v34 = vld [vmem:[#allocation3 + $0x120] sm:$0xff]  ;;  %v5974_v35 = vld [vmem:[#allocation3 + $0x158] sm:$0xff] }
  0x31   :  { %463 = vmatprep.subr.mxu0 %v5922_v18  ;;  %v5976_v36 = vld [vmem:[#allocation3 + $0x108] sm:$0xff]  ;;  %v5980_v37 = vld [vmem:[#allocation3 + $0x150] sm:$0xff]  ;;  %v5982_v38 = vld [vmem:[#allocation3 + $0x100] sm:$0xff] }
  0x32   :  { %464 = vmatpush1.msra.mxu0 %v5930_v21  ;;  %v5986_v39 = vld [vmem:[#allocation3 + $0x138] sm:$0xff]  ;;  %v5988_v40 = vld [vmem:[#allocation3 + $0xe8] sm:$0xff]  ;;  %v5992_v41 = vld [vmem:[#allocation3 + $0x130] sm:$0xff] }
  0x33   :  { %4769 = vmatmul.mubr.msk.f32.vlgmr.msra.gmra.mxu1 %vm106_vm0, %v74_v5  ;;  %465 = vmatprep.subr.mxu0 %v5936_v23  ;;  %v5994_v42 = vld [vmem:[#allocation3 + $0xe0] sm:$0xff]  ;;  %v5998_v43 = vld [vmem:[#allocation3 + $0x118] sm:$0xff]  ;;  %v6000_v44 = vld [vmem:[#allocation3 + $0xc8] sm:$0xff] }
  0x34   :  { %529 = vmatpush1.msra.mxu1 %v5924_v19  ;;  %260 = vmatprep.mubr.f32.mxu1 %v9363_v0  ;;  %v6004_v45 = vld [vmem:[#allocation3 + $0x110] sm:$0xff]  ;;  %v6006_v46 = vld [vmem:[#allocation3 + $0xc0] sm:$0xff]  ;;  %v6010_v47 = vld [vmem:[#allocation3 + $0xf8] sm:$0xff] }
  0x35   :  { %530 = vmatprep.subr.mxu1 %v5927_v20  ;;  %466 = vmatpush1.msra.mxu0 %v5946_v26  ;;  %v6012_v48 = vld [vmem:[#allocation3 + $0xa8] sm:$0xff]  ;;  %v6016_v49 = vld [vmem:[#allocation3 + $0xf0] sm:$0xff]  ;;  %v6018_v50 = vld [vmem:[#allocation3 + $0xa0] sm:$0xff] }
  0x36   :  { %531 = vmatpush1.msra.mxu1 %v5933_v22  ;;  %467 = vmatprep.subr.mxu0 %v5952_v28  ;;  %9946 = vst [vmem:[#allocation13_spill] sm:$0xff] %v6018_v50  ;;  %v6022_v51 = vld [vmem:[#allocation3 + $0xd8] sm:$0xff]  ;;  %v6024_v52 = vld [vmem:[#allocation3 + $0x88] sm:$0xff]  ;;  %v6028_v53 = vld [vmem:[#allocation3 + $0xd0] sm:$0xff] }
  0x37   :  { %532 = vmatprep.subr.mxu1 %v5940_v24  ;;  %4770 = vmatmul.mubr.msk.f32.gmra.mxu1 %vm106_vm0, %v75_v13  ;;  %9947 = vst [vmem:[#allocation14_spill] sm:$0xff] %v6024_v52  ;;  %v6030_v54 = vld [vmem:[#allocation3 + $0x80] sm:$0xff]  ;;  %v6034_v55 = vld [vmem:[#allocation3 + $0xb8] sm:$0xff]  ;;  %v6036_v56 = vld [vmem:[#allocation3 + $0x68] sm:$0xff] }
  0x38   :  { %533 = vmatpush1.msra.mxu1 %v5943_v25  ;;  %468 = vmatpush1.msra.mxu0 %v5958_v30  ;;  %9948 = vst [vmem:[#allocation15_spill] sm:$0xff] %v6030_v54  ;;  %9949 = vst [vmem:[#allocation16_spill] sm:$0xff] %v6034_v55  ;;  %v6040_v57 = vld [vmem:[#allocation3 + $0xb0] sm:$0xff]  ;;  %v6042_v58 = vld [vmem:[#allocation3 + $0x60] sm:$0xff] }
  0x39   :  { %534 = vmatprep.subr.mxu1 %v5949_v27  ;;  %469 = vmatprep.subr.mxu0 %v5964_v32  ;;  %9950 = vst [vmem:[#allocation17_spill] sm:$0xff] %v6036_v56  ;;  %9951 = vst [vmem:[#allocation18_spill] sm:$0xff] %v6040_v57  ;;  %v6046_v59 = vld [vmem:[#allocation3 + $0x98] sm:$0xff]  ;;  %v6048_v60 = vld [vmem:[#allocation3 + $0x48] sm:$0xff] }
  0x3a   :  { %535 = vmatpush1.msra.mxu1 %v5956_v29  ;;  %470 = vmatpush1.msra.mxu0 %v5970_v34  ;;  %9952 = vst [vmem:[#allocation19_spill] sm:$0xff] %v6042_v58  ;;  %9953 = vst [vmem:[#allocation20_spill] sm:$0xff] %v6046_v59  ;;  %v6052_v61 = vld [vmem:[#allocation3 + $0x90] sm:$0xff]  ;;  %v6054_v62 = vld [vmem:[#allocation3 + $0x40] sm:$0xff] }
  0x3b   :  { %536 = vmatprep.subr.mxu1 %v5962_v31  ;;  %471 = vmatprep.subr.mxu0 %v5976_v36  ;;  %9954 = vst [vmem:[#allocation21_spill] sm:$0xff] %v6048_v60  ;;  %9955 = vst [vmem:[#allocation22_spill] sm:$0xff] %v6052_v61  ;;  %v6058_v63 = vld [vmem:[#allocation3 + $0x78] sm:$0xff]  ;;  %v6060_v1 = vld [vmem:[#allocation3 + $0x28] sm:$0xff] }
  0x3c   :  { %537 = vmatpush1.msra.mxu1 %v5968_v33  ;;  %472 = vmatpush1.msra.mxu0 %v5982_v38  ;;  %9956 = vst [vmem:[#allocation23_spill] sm:$0xff] %v6054_v62  ;;  %9957 = vst [vmem:[#allocation24_spill] sm:$0xff] %v6058_v63  ;;  %v6064_v2 = vld [vmem:[#allocation3 + $0x70] sm:$0xff]  ;;  %v6066_v3 = vld [vmem:[#allocation3 + $0x20] sm:$0xff] }
  0x3d   :  { %538 = vmatprep.subr.mxu1 %v5974_v35  ;;  %473 = vmatprep.subr.mxu0 %v5988_v40  ;;  %9958 = vst [vmem:[#allocation25_spill] sm:$0xff] %v6060_v1  ;;  %9959 = vst [vmem:[#allocation26_spill] sm:$0xff] %v6064_v2  ;;  %v6070_v4 = vld [vmem:[#allocation3 + $0x58] sm:$0xff]  ;;  %v6072_v5 = vld [vmem:[#allocation3 + $0x8] sm:$0xff] }
  0x3e   :  { %539 = vmatpush1.msra.mxu1 %v5980_v37  ;;  %474 = vmatpush1.msra.mxu0 %v5994_v42  ;;  %9960 = vst [vmem:[#allocation27_spill] sm:$0xff] %v6066_v3  ;;  %9961 = vst [vmem:[#allocation28_spill] sm:$0xff] %v6070_v4  ;;  %v6076_v6 = vld [vmem:[#allocation3 + $0x50] sm:$0xff]  ;;  %v6078_v7 = vld [vmem:[#allocation3] sm:$0xff] }
  0x3f   :  { %540 = vmatprep.subr.mxu1 %v5986_v39  ;;  %475 = vmatprep.subr.mxu0 %v6000_v44  ;;  %9962 = vst [vmem:[#allocation29_spill] sm:$0xff] %v6072_v5  ;;  %9963 = vst [vmem:[#allocation30_spill] sm:$0xff] %v6076_v6  ;;  %v6082_v9 = vld [vmem:[#allocation3 + $0x38] sm:$0xff]  ;;  %v6086_v11 = vld [vmem:[#allocation3 + $0x30] sm:$0xff] }
  0x40   :  { %541 = vmatpush1.msra.mxu1 %v5992_v41  ;;  %476 = vmatpush1.msra.mxu0 %v6006_v46  ;;  %9964 = vst [vmem:[#allocation31_spill] sm:$0xff] %v6078_v7  ;;  %9965 = vst [vmem:[#allocation32_spill] sm:$0xff] %v6082_v9  ;;  %v6090_v13 = vld [vmem:[#allocation3 + $0x18] sm:$0xff] }
  0x41   :  { %542 = vmatprep.subr.mxu1 %v5998_v43  ;;  %477 = vmatprep.subr.mxu0 %v6012_v48  ;;  %9966 = vst [vmem:[#allocation33_spill] sm:$0xff] %v6086_v11  ;;  %9967 = vst [vmem:[#allocation34_spill] sm:$0xff] %v6090_v13 }
  0x42   :  { %543 = vmatpush1.msra.mxu1 %v6004_v45  ;;  %478 = vmatpush1.msra.mxu0 %v6018_v50 }
  0x43   :  { %544 = vmatprep.subr.mxu1 %v6010_v47  ;;  %479 = vmatprep.subr.mxu0 %v6024_v52 }
  0x44   :  { %545 = vmatpush1.msra.mxu1 %v6016_v49  ;;  %480 = vmatpush1.msra.mxu0 %v6030_v54 }
  0x45   :  { %546 = vmatprep.subr.mxu1 %v6022_v51  ;;  %481 = vmatprep.subr.mxu0 %v6036_v56 }
  0x46   :  { %547 = vmatpush1.msra.mxu1 %v6028_v53  ;;  %482 = vmatpush1.msra.mxu0 %v6042_v58 }
  0x47   :  { %548 = vmatprep.subr.mxu1 %v6034_v55  ;;  %483 = vmatprep.subr.mxu0 %v6048_v60  ;;  %v6419_v60 = vld [vmem:[#allocation6 + $0xa0] sm:$0xff] }
  0x48   :  { %549 = vmatpush1.msra.mxu1 %v6040_v57  ;;  %484 = vmatpush1.msra.mxu0 %v6054_v62  ;;  %v6395_v62 = vld [vmem:[#allocation6 + $0xe0] sm:$0xff]  ;;  %10076 = vst [vmem:[#allocation142_spill] sm:$0xff] %v6419_v60 }
  0x49   :  { %550 = vmatprep.subr.mxu1 %v6046_v59  ;;  %485 = vmatprep.subr.mxu0 %v6060_v1  ;;  %v6094_v1 = vld [vmem:[#allocation3 + $0x10] sm:$0xff]  ;;  %10068 = vst [vmem:[#allocation134_spill] sm:$0xff] %v6395_v62 }
  0x4a   :  { %551 = vmatpush1.msra.mxu1 %v6052_v61  ;;  %486 = vmatpush1.msra.mxu0 %v6066_v3  ;;  %9968 = vst [vmem:[#allocation35_spill] sm:$0xff] %v6094_v1  ;;  %v6111_v3 = vld [vmem:[#allocation8 + $0x1f0] sm:$0xff] }
  0x4b   :  { %552 = vmatprep.subr.mxu1 %v6058_v63  ;;  %487 = vmatprep.subr.mxu0 %v6072_v5  ;;  %v6105_v5 = vld [vmem:[#allocation8 + $0x1f8] sm:$0xff]  ;;  %9972 = vst [vmem:[#allocation39_spill] sm:$0xff] %v6111_v3 }
  0x4c   :  { %553 = vmatpush1.msra.mxu1 %v6064_v2  ;;  %488 = vmatpush1.msra.mxu0 %v6078_v7  ;;  %v6103_v7 = vld [vmem:[#allocation8 + $0x1e8] sm:$0xff]  ;;  %9970 = vst [vmem:[#allocation37_spill] sm:$0xff] %v6105_v5 }
  0x4d   :  { %554 = vmatprep.subr.mxu1 %v6070_v4  ;;  %522 = vmatmul.mubr.f32.vlgmr.msra.gmra.mxu0 %v9363_v0  ;;  %9969 = vst [vmem:[#allocation36_spill] sm:$0xff] %v6103_v7  ;;  %v6403_v4 = vld [vmem:[#allocation6 + $0xd8] sm:$0xff] }
  0x4e   :  { %555 = vmatpush1.msra.mxu1 %v6076_v6  ;;  %592 = vmatprep.mubr.f32.mxu1 %v9363_v0  ;;  %v6387_v6 = vld [vmem:[#allocation6 + $0x110] sm:$0xff]  ;;  %10071 = vst [vmem:[#allocation137_spill] sm:$0xff] %v6403_v4 }
  0x4f   :  { %556 = vmatprep.subr.mxu1 %v6082_v9  ;;  %845 = vmatprep.mubr.f32.mxu0 %v9363_v0  ;;  %v6315_v9 = vld [vmem:[#allocation6 + $0x1c0] sm:$0xff]  ;;  %10065 = vst [vmem:[#allocation131_spill] sm:$0xff] %v6387_v6 }
  0x50   :  { %557 = vmatpush1.msra.mxu1 %v6086_v11  ;;  %781 = vmatprep.subr.mxu0 %v6103_v7  ;;  %v6109_v11 = vld [vmem:[#allocation8 + $0x1e0] sm:$0xff]  ;;  %v6123_v7 = vld [vmem:[#allocation8 + $0x1d0] sm:$0xff]  ;;  %10040 = vst [vmem:[#allocation106_spill] sm:$0xff] %v6315_v9 }
  0x51   :  { %558 = vmatprep.subr.mxu1 %v6090_v13  ;;  %9971 = vst [vmem:[#allocation38_spill] sm:$0xff] %v6109_v11  ;;  %782 = vmatpush1.msra.mxu0 %v6109_v11  ;;  %v6117_v13 = vld [vmem:[#allocation8 + $0x1d8] sm:$0xff]  ;;  %9976 = vst [vmem:[#allocation43_spill] sm:$0xff] %v6123_v7 }
  0x52   :  { %559 = vmatpush1.msra.mxu1 %v6094_v1  ;;  %v6115_v1 = vld [vmem:[#allocation8 + $0x1c8] sm:$0xff]  ;;  %9974 = vst [vmem:[#allocation41_spill] sm:$0xff] %v6117_v13  ;;  %v6129_v11 = vld [vmem:[#allocation8 + $0x1b8] sm:$0xff] }
  0x53   :  { %593 = vmatmul.mubr.f32.vlgmr.msra.gmra.mxu1 %v9363_v0  ;;  %852 = vmatprep.subr.mxu1 %v6105_v5  ;;  %9973 = vst [vmem:[#allocation40_spill] sm:$0xff] %v6115_v1  ;;  %v6127_v5 = vld [vmem:[#allocation8 + $0x1a8] sm:$0xff]  ;;  %9978 = vst [vmem:[#allocation45_spill] sm:$0xff] %v6129_v11 }
  0x54   :  { %916 = vmatprep.mubr.f32.mxu1 %v9363_v0  ;;  %853 = vmatpush1.msra.mxu1 %v6111_v3  ;;  %v6121_v0 = vld [vmem:[#allocation8 + $0x1c0] sm:$0xff]  ;;  %9977 = vst [vmem:[#allocation44_spill] sm:$0xff] %v6127_v5 }
  0x55   :  { %783 = vmatprep.subr.mxu0 %v6115_v1  ;;  %854 = vmatprep.subr.mxu1 %v6117_v13  ;;  %9975 = vst [vmem:[#allocation42_spill] sm:$0xff] %v6121_v0  ;;  %v6133_v3 = vld [vmem:[#allocation8 + $0x1a0] sm:$0xff]  ;;  %v6135_v1 = vld [vmem:[#allocation8 + $0x1b0] sm:$0xff]  ;;  %v6139_v13 = vld [vmem:[#allocation8 + $0x188] sm:$0xff] }
  0x56   :  { %784 = vmatpush1.msra.mxu0 %v6121_v0  ;;  %855 = vmatpush1.msra.mxu1 %v6123_v7  ;;  %9979 = vst [vmem:[#allocation46_spill] sm:$0xff] %v6133_v3  ;;  %9980 = vst [vmem:[#allocation47_spill] sm:$0xff] %v6135_v1  ;;  %v6141_v0 = vld [vmem:[#allocation8 + $0x198] sm:$0xff]  ;;  %v6145_v7 = vld [vmem:[#allocation8 + $0x180] sm:$0xff] }
  0x57   :  { %785 = vmatprep.subr.mxu0 %v6127_v5  ;;  %856 = vmatprep.subr.mxu1 %v6129_v11  ;;  %9981 = vst [vmem:[#allocation48_spill] sm:$0xff] %v6139_v13  ;;  %9982 = vst [vmem:[#allocation49_spill] sm:$0xff] %v6141_v0  ;;  %v6147_v5 = vld [vmem:[#allocation8 + $0x190] sm:$0xff]  ;;  %v6151_v11 = vld [vmem:[#allocation8 + $0x168] sm:$0xff] }
  0x58   :  { %786 = vmatpush1.msra.mxu0 %v6133_v3  ;;  %857 = vmatpush1.msra.mxu1 %v6135_v1  ;;  %9983 = vst [vmem:[#allocation50_spill] sm:$0xff] %v6145_v7  ;;  %9984 = vst [vmem:[#allocation51_spill] sm:$0xff] %v6147_v5  ;;  %v6153_v3 = vld [vmem:[#allocation8 + $0x178] sm:$0xff]  ;;  %v6157_v1 = vld [vmem:[#allocation8 + $0x160] sm:$0xff] }
  0x59   :  { %787 = vmatprep.subr.mxu0 %v6139_v13  ;;  %858 = vmatprep.subr.mxu1 %v6141_v0  ;;  %9985 = vst [vmem:[#allocation52_spill] sm:$0xff] %v6151_v11  ;;  %9986 = vst [vmem:[#allocation53_spill] sm:$0xff] %v6153_v3  ;;  %v6159_v13 = vld [vmem:[#allocation8 + $0x170] sm:$0xff]  ;;  %v6163_v0 = vld [vmem:[#allocation8 + $0x148] sm:$0xff] }
  0x5a   :  { %788 = vmatpush1.msra.mxu0 %v6145_v7  ;;  %859 = vmatpush1.msra.mxu1 %v6147_v5  ;;  %9987 = vst [vmem:[#allocation54_spill] sm:$0xff] %v6157_v1  ;;  %9988 = vst [vmem:[#allocation55_spill] sm:$0xff] %v6159_v13  ;;  %v6165_v7 = vld [vmem:[#allocation8 + $0x158] sm:$0xff]  ;;  %v6169_v5 = vld [vmem:[#allocation8 + $0x140] sm:$0xff] }
  0x5b   :  { %789 = vmatprep.subr.mxu0 %v6151_v11  ;;  %860 = vmatprep.subr.mxu1 %v6153_v3  ;;  %9989 = vst [vmem:[#allocation56_spill] sm:$0xff] %v6163_v0  ;;  %9990 = vst [vmem:[#allocation57_spill] sm:$0xff] %v6165_v7  ;;  %v6171_v11 = vld [vmem:[#allocation8 + $0x150] sm:$0xff]  ;;  %v6175_v3 = vld [vmem:[#allocation8 + $0x128] sm:$0xff] }
  0x5c   :  { %790 = vmatpush1.msra.mxu0 %v6157_v1  ;;  %861 = vmatpush1.msra.mxu1 %v6159_v13  ;;  %9991 = vst [vmem:[#allocation58_spill] sm:$0xff] %v6169_v5  ;;  %9992 = vst [vmem:[#allocation59_spill] sm:$0xff] %v6171_v11  ;;  %v6177_v1 = vld [vmem:[#allocation8 + $0x138] sm:$0xff]  ;;  %v6181_v13 = vld [vmem:[#allocation8 + $0x120] sm:$0xff] }
  0x5d   :  { %791 = vmatprep.subr.mxu0 %v6163_v0  ;;  %862 = vmatprep.subr.mxu1 %v6165_v7  ;;  %9993 = vst [vmem:[#allocation60_spill] sm:$0xff] %v6175_v3  ;;  %9994 = vst [vmem:[#allocation61_spill] sm:$0xff] %v6177_v1  ;;  %v6183_v0 = vld [vmem:[#allocation8 + $0x130] sm:$0xff]  ;;  %v6187_v7 = vld [vmem:[#allocation8 + $0x108] sm:$0xff] }
  0x5e   :  { %792 = vmatpush1.msra.mxu0 %v6169_v5  ;;  %863 = vmatpush1.msra.mxu1 %v6171_v11  ;;  %9995 = vst [vmem:[#allocation62_spill] sm:$0xff] %v6181_v13  ;;  %9996 = vst [vmem:[#allocation63_spill] sm:$0xff] %v6183_v0  ;;  %v6189_v5 = vld [vmem:[#allocation8 + $0x118] sm:$0xff]  ;;  %v6193_v11 = vld [vmem:[#allocation8 + $0x100] sm:$0xff] }
  0x5f   :  { %793 = vmatprep.subr.mxu0 %v6175_v3  ;;  %864 = vmatprep.subr.mxu1 %v6177_v1  ;;  %9997 = vst [vmem:[#allocation64_spill] sm:$0xff] %v6187_v7  ;;  %9998 = vst [vmem:[#allocation65_spill] sm:$0xff] %v6189_v5  ;;  %v6195_v3 = vld [vmem:[#allocation8 + $0x110] sm:$0xff]  ;;  %v6199_v1 = vld [vmem:[#allocation8 + $0xe8] sm:$0xff] }
  0x60   :  { %794 = vmatpush1.msra.mxu0 %v6181_v13  ;;  %865 = vmatpush1.msra.mxu1 %v6183_v0  ;;  %9999 = vst [vmem:[#allocation66_spill] sm:$0xff] %v6193_v11  ;;  %10000 = vst [vmem:[#allocation67_spill] sm:$0xff] %v6195_v3  ;;  %v6201_v13 = vld [vmem:[#allocation8 + $0xf8] sm:$0xff]  ;;  %v6205_v0 = vld [vmem:[#allocation8 + $0xe0] sm:$0xff] }
  0x61   :  { %795 = vmatprep.subr.mxu0 %v6187_v7  ;;  %866 = vmatprep.subr.mxu1 %v6189_v5  ;;  %10001 = vst [vmem:[#allocation68_spill] sm:$0xff] %v6199_v1  ;;  %10002 = vst [vmem:[#allocation69_spill] sm:$0xff] %v6201_v13  ;;  %v6207_v7 = vld [vmem:[#allocation8 + $0xf0] sm:$0xff]  ;;  %v6211_v5 = vld [vmem:[#allocation8 + $0xc8] sm:$0xff] }
  0x62   :  { %796 = vmatpush1.msra.mxu0 %v6193_v11  ;;  %867 = vmatpush1.msra.mxu1 %v6195_v3  ;;  %10003 = vst [vmem:[#allocation70_spill] sm:$0xff] %v6205_v0  ;;  %10004 = vst [vmem:[#allocation71_spill] sm:$0xff] %v6207_v7  ;;  %v6213_v11 = vld [vmem:[#allocation8 + $0xd8] sm:$0xff]  ;;  %v6217_v3 = vld [vmem:[#allocation8 + $0xc0] sm:$0xff] }
  0x63   :  { %797 = vmatprep.subr.mxu0 %v6199_v1  ;;  %868 = vmatprep.subr.mxu1 %v6201_v13  ;;  %10005 = vst [vmem:[#allocation72_spill] sm:$0xff] %v6211_v5  ;;  %10006 = vst [vmem:[#allocation73_spill] sm:$0xff] %v6213_v11  ;;  %v6219_v1 = vld [vmem:[#allocation8 + $0xd0] sm:$0xff]  ;;  %v6223_v13 = vld [vmem:[#allocation8 + $0xa8] sm:$0xff] }
  0x64   :  { %798 = vmatpush1.msra.mxu0 %v6205_v0  ;;  %869 = vmatpush1.msra.mxu1 %v6207_v7  ;;  %10007 = vst [vmem:[#allocation74_spill] sm:$0xff] %v6217_v3  ;;  %10008 = vst [vmem:[#allocation75_spill] sm:$0xff] %v6219_v1  ;;  %v6225_v0 = vld [vmem:[#allocation8 + $0xb8] sm:$0xff]  ;;  %v6229_v7 = vld [vmem:[#allocation8 + $0xa0] sm:$0xff] }
  0x65   :  { %799 = vmatprep.subr.mxu0 %v6211_v5  ;;  %870 = vmatprep.subr.mxu1 %v6213_v11  ;;  %10009 = vst [vmem:[#allocation76_spill] sm:$0xff] %v6223_v13  ;;  %10010 = vst [vmem:[#allocation77_spill] sm:$0xff] %v6225_v0  ;;  %v6231_v5 = vld [vmem:[#allocation8 + $0xb0] sm:$0xff]  ;;  %v6235_v11 = vld [vmem:[#allocation8 + $0x88] sm:$0xff] }
  0x66   :  { %800 = vmatpush1.msra.mxu0 %v6217_v3  ;;  %871 = vmatpush1.msra.mxu1 %v6219_v1  ;;  %10011 = vst [vmem:[#allocation78_spill] sm:$0xff] %v6229_v7  ;;  %10012 = vst [vmem:[#allocation79_spill] sm:$0xff] %v6231_v5  ;;  %v6237_v3 = vld [vmem:[#allocation8 + $0x98] sm:$0xff]  ;;  %v6241_v1 = vld [vmem:[#allocation8 + $0x80] sm:$0xff] }
  0x67   :  { %801 = vmatprep.subr.mxu0 %v6223_v13  ;;  %872 = vmatprep.subr.mxu1 %v6225_v0  ;;  %10013 = vst [vmem:[#allocation80_spill] sm:$0xff] %v6235_v11  ;;  %10014 = vst [vmem:[#allocation81_spill] sm:$0xff] %v6237_v3  ;;  %v6243_v13 = vld [vmem:[#allocation8 + $0x90] sm:$0xff]  ;;  %v6247_v0 = vld [vmem:[#allocation8 + $0x68] sm:$0xff] }
  0x68   :  { %802 = vmatpush1.msra.mxu0 %v6229_v7  ;;  %873 = vmatpush1.msra.mxu1 %v6231_v5  ;;  %10015 = vst [vmem:[#allocation82_spill] sm:$0xff] %v6241_v1  ;;  %10016 = vst [vmem:[#allocation83_spill] sm:$0xff] %v6243_v13  ;;  %v6249_v7 = vld [vmem:[#allocation8 + $0x78] sm:$0xff]  ;;  %v6253_v5 = vld [vmem:[#allocation8 + $0x60] sm:$0xff] }
  0x69   :  { %803 = vmatprep.subr.mxu0 %v6235_v11  ;;  %874 = vmatprep.subr.mxu1 %v6237_v3  ;;  %10017 = vst [vmem:[#allocation84_spill] sm:$0xff] %v6247_v0  ;;  %10018 = vst [vmem:[#allocation85_spill] sm:$0xff] %v6249_v7  ;;  %v6255_v11 = vld [vmem:[#allocation8 + $0x70] sm:$0xff]  ;;  %v6259_v3 = vld [vmem:[#allocation8 + $0x48] sm:$0xff] }
  0x6a   :  { %804 = vmatpush1.msra.mxu0 %v6241_v1  ;;  %875 = vmatpush1.msra.mxu1 %v6243_v13  ;;  %10019 = vst [vmem:[#allocation86_spill] sm:$0xff] %v6253_v5  ;;  %10020 = vst [vmem:[#allocation87_spill] sm:$0xff] %v6255_v11  ;;  %v6261_v1 = vld [vmem:[#allocation8 + $0x58] sm:$0xff]  ;;  %v6265_v13 = vld [vmem:[#allocation8 + $0x40] sm:$0xff] }
  0x6b   :  { %805 = vmatprep.subr.mxu0 %v6247_v0  ;;  %876 = vmatprep.subr.mxu1 %v6249_v7  ;;  %10021 = vst [vmem:[#allocation88_spill] sm:$0xff] %v6259_v3  ;;  %10022 = vst [vmem:[#allocation89_spill] sm:$0xff] %v6261_v1  ;;  %v6267_v0 = vld [vmem:[#allocation8 + $0x50] sm:$0xff]  ;;  %v6271_v7 = vld [vmem:[#allocation8 + $0x28] sm:$0xff] }
  0x6c   :  { %806 = vmatpush1.msra.mxu0 %v6253_v5  ;;  %877 = vmatpush1.msra.mxu1 %v6255_v11  ;;  %10023 = vst [vmem:[#allocation90_spill] sm:$0xff] %v6265_v13  ;;  %10024 = vst [vmem:[#allocation91_spill] sm:$0xff] %v6267_v0  ;;  %v6273_v5 = vld [vmem:[#allocation8 + $0x38] sm:$0xff]  ;;  %v6277_v11 = vld [vmem:[#allocation8 + $0x20] sm:$0xff] }
  0x6d   :  { %807 = vmatprep.subr.mxu0 %v6259_v3  ;;  %878 = vmatprep.subr.mxu1 %v6261_v1  ;;  %10025 = vst [vmem:[#allocation92_spill] sm:$0xff] %v6271_v7  ;;  %10026 = vst [vmem:[#allocation93_spill] sm:$0xff] %v6273_v5  ;;  %v6279_v3 = vld [vmem:[#allocation8 + $0x30] sm:$0xff]  ;;  %v6283_v1 = vld [vmem:[#allocation8 + $0x8] sm:$0xff] }
  0x6e   :  { %808 = vmatpush1.msra.mxu0 %v6265_v13  ;;  %879 = vmatpush1.msra.mxu1 %v6267_v0  ;;  %10027 = vst [vmem:[#allocation94_spill] sm:$0xff] %v6277_v11  ;;  %10028 = vst [vmem:[#allocation95_spill] sm:$0xff] %v6279_v3  ;;  %v6285_v13 = vld [vmem:[#allocation8 + $0x18] sm:$0xff]  ;;  %v6289_v0 = vld [vmem:[#allocation8] sm:$0xff] }
  0x6f   :  { %809 = vmatprep.subr.mxu0 %v6271_v7  ;;  %880 = vmatprep.subr.mxu1 %v6273_v5  ;;  %10029 = vst [vmem:[#allocation96_spill] sm:$0xff] %v6283_v1  ;;  %10030 = vst [vmem:[#allocation97_spill] sm:$0xff] %v6285_v13  ;;  %v6291_v7 = vld [vmem:[#allocation8 + $0x10] sm:$0xff]  ;;  %v10033_v5 = vmov 0.0  }
  0x70   :  { %810 = vmatpush1.msra.mxu0 %v6277_v11  ;;  %881 = vmatpush1.msra.mxu1 %v6279_v3  ;;  %10031 = vst [vmem:[#allocation98_spill] sm:$0xff] %v6289_v0  ;;  %10032 = vst [vmem:[#allocation99_spill] sm:$0xff] %v6291_v7  ;;  %v6297_v3 = vld [vmem:[#allocation6 + $0x1e8] sm:$0xff]  ;;  %v6299_v11 = vld [vmem:[#allocation6 + $0x1f8] sm:$0xff] }
  0x71   :  { %811 = vmatprep.subr.mxu0 %v6283_v1  ;;  %882 = vmatprep.subr.mxu1 %v6285_v13  ;;  %10034 = vst [vmem:[#allocation100_spill] sm:$0xff] %v6297_v3  ;;  %10035 = vst [vmem:[#allocation101_spill] sm:$0xff] %v6299_v11  ;;  %v6303_v13 = vld [vmem:[#allocation6 + $0x1e0] sm:$0xff]  ;;  %v6305_v1 = vld [vmem:[#allocation6 + $0x1f0] sm:$0xff] }
  0x72   :  { %812 = vmatpush1.msra.mxu0 %v6289_v0  ;;  %883 = vmatpush1.msra.mxu1 %v6291_v7  ;;  %10036 = vst [vmem:[#allocation102_spill] sm:$0xff] %v6303_v13  ;;  %10037 = vst [vmem:[#allocation103_spill] sm:$0xff] %v6305_v1  ;;  %v6309_v7 = vld [vmem:[#allocation6 + $0x1c8] sm:$0xff]  ;;  %v6311_v0 = vld [vmem:[#allocation6 + $0x1d8] sm:$0xff] }
  0x73   :  { %846 = vmatmul.mubr.f32.vlgmr.msra.gmra.mxu0 %v10033_v5  ;;  %917 = vmatmul.mubr.f32.vlgmr.msra.gmra.mxu1 %v10033_v5  ;;  %10038 = vst [vmem:[#allocation104_spill] sm:$0xff] %v6309_v7  ;;  %10039 = vst [vmem:[#allocation105_spill] sm:$0xff] %v6311_v0 }
  0x74   :  { %923 = vmatprep.subr.mxu0 %v6297_v3  ;;  %994 = vmatprep.subr.mxu1 %v6299_v11  ;;  %v6317_v3 = vld [vmem:[#allocation6 + $0x1d0] sm:$0xff]  ;;  %v6321_v11 = vld [vmem:[#allocation6 + $0x1a8] sm:$0xff] }
  0x75   :  { %924 = vmatpush1.msra.mxu0 %v6303_v13  ;;  %995 = vmatpush1.msra.mxu1 %v6305_v1  ;;  %10041 = vst [vmem:[#allocation107_spill] sm:$0xff] %v6317_v3  ;;  %10042 = vst [vmem:[#allocation108_spill] sm:$0xff] %v6321_v11  ;;  %v6323_v13 = vld [vmem:[#allocation6 + $0x1b8] sm:$0xff]  ;;  %v6327_v1 = vld [vmem:[#allocation6 + $0x1a0] sm:$0xff] }
  0x76   :  { %925 = vmatprep.subr.mxu0 %v6309_v7  ;;  %996 = vmatprep.subr.mxu1 %v6311_v0  ;;  %10043 = vst [vmem:[#allocation109_spill] sm:$0xff] %v6323_v13  ;;  %10044 = vst [vmem:[#allocation110_spill] sm:$0xff] %v6327_v1  ;;  %v6329_v7 = vld [vmem:[#allocation6 + $0x1b0] sm:$0xff]  ;;  %v6333_v0 = vld [vmem:[#allocation6 + $0x188] sm:$0xff] }
  0x77   :  { %926 = vmatpush1.msra.mxu0 %v6315_v9  ;;  %997 = vmatpush1.msra.mxu1 %v6317_v3  ;;  %10045 = vst [vmem:[#allocation111_spill] sm:$0xff] %v6329_v7  ;;  %10046 = vst [vmem:[#allocation112_spill] sm:$0xff] %v6333_v0  ;;  %v6335_v9 = vld [vmem:[#allocation6 + $0x198] sm:$0xff]  ;;  %v6339_v3 = vld [vmem:[#allocation6 + $0x180] sm:$0xff] }
  0x78   :  { %927 = vmatprep.subr.mxu0 %v6321_v11  ;;  %998 = vmatprep.subr.mxu1 %v6323_v13  ;;  %10047 = vst [vmem:[#allocation113_spill] sm:$0xff] %v6335_v9  ;;  %10048 = vst [vmem:[#allocation114_spill] sm:$0xff] %v6339_v3  ;;  %v6341_v11 = vld [vmem:[#allocation6 + $0x190] sm:$0xff]  ;;  %v6345_v13 = vld [vmem:[#allocation6 + $0x168] sm:$0xff] }
  0x79   :  { %928 = vmatpush1.msra.mxu0 %v6327_v1  ;;  %999 = vmatpush1.msra.mxu1 %v6329_v7  ;;  %10049 = vst [vmem:[#allocation115_spill] sm:$0xff] %v6341_v11  ;;  %10050 = vst [vmem:[#allocation116_spill] sm:$0xff] %v6345_v13  ;;  %v6347_v1 = vld [vmem:[#allocation6 + $0x178] sm:$0xff]  ;;  %v6351_v7 = vld [vmem:[#allocation6 + $0x160] sm:$0xff] }
  0x7a   :  { %929 = vmatprep.subr.mxu0 %v6333_v0  ;;  %1000 = vmatprep.subr.mxu1 %v6335_v9  ;;  %10051 = vst [vmem:[#allocation117_spill] sm:$0xff] %v6347_v1  ;;  %10052 = vst [vmem:[#allocation118_spill] sm:$0xff] %v6351_v7  ;;  %v6353_v0 = vld [vmem:[#allocation6 + $0x170] sm:$0xff]  ;;  %v6357_v9 = vld [vmem:[#allocation6 + $0x148] sm:$0xff] }
  0x7b   :  { %930 = vmatpush1.msra.mxu0 %v6339_v3  ;;  %1001 = vmatpush1.msra.mxu1 %v6341_v11  ;;  %10053 = vst [vmem:[#allocation119_spill] sm:$0xff] %v6353_v0  ;;  %10054 = vst [vmem:[#allocation120_spill] sm:$0xff] %v6357_v9  ;;  %v6359_v3 = vld [vmem:[#allocation6 + $0x158] sm:$0xff]  ;;  %v6363_v11 = vld [vmem:[#allocation6 + $0x140] sm:$0xff] }
  0x7c   :  { %931 = vmatprep.subr.mxu0 %v6345_v13  ;;  %1002 = vmatprep.subr.mxu1 %v6347_v1  ;;  %10055 = vst [vmem:[#allocation121_spill] sm:$0xff] %v6359_v3  ;;  %10056 = vst [vmem:[#allocation122_spill] sm:$0xff] %v6363_v11  ;;  %v6365_v13 = vld [vmem:[#allocation6 + $0x150] sm:$0xff]  ;;  %v6369_v1 = vld [vmem:[#allocation6 + $0x128] sm:$0xff] }
  0x7d   :  { %932 = vmatpush1.msra.mxu0 %v6351_v7  ;;  %1003 = vmatpush1.msra.mxu1 %v6353_v0  ;;  %10057 = vst [vmem:[#allocation123_spill] sm:$0xff] %v6365_v13  ;;  %10058 = vst [vmem:[#allocation124_spill] sm:$0xff] %v6369_v1  ;;  %v6371_v7 = vld [vmem:[#allocation6 + $0x138] sm:$0xff]  ;;  %v6375_v0 = vld [vmem:[#allocation6 + $0x120] sm:$0xff] }
  0x7e   :  { %933 = vmatprep.subr.mxu0 %v6357_v9  ;;  %1004 = vmatprep.subr.mxu1 %v6359_v3  ;;  %10059 = vst [vmem:[#allocation125_spill] sm:$0xff] %v6371_v7  ;;  %10060 = vst [vmem:[#allocation126_spill] sm:$0xff] %v6375_v0  ;;  %v6377_v9 = vld [vmem:[#allocation6 + $0x130] sm:$0xff]  ;;  %v6379_v3 = vld [vmem:[#allocation6 + $0x108] sm:$0xff] }
  0x7f   :  { %934 = vmatpush1.msra.mxu0 %v6363_v11  ;;  %1005 = vmatpush1.msra.mxu1 %v6365_v13  ;;  %10061 = vst [vmem:[#allocation127_spill] sm:$0xff] %v6377_v9  ;;  %10062 = vst [vmem:[#allocation128_spill] sm:$0xff] %v6379_v3  ;;  %v6383_v11 = vld [vmem:[#allocation6 + $0x118] sm:$0xff]  ;;  %v6385_v13 = vld [vmem:[#allocation6 + $0x100] sm:$0xff] }
  0x80   :  { %935 = vmatprep.subr.mxu0 %v6369_v1  ;;  %1006 = vmatprep.subr.mxu1 %v6371_v7  ;;  %10063 = vst [vmem:[#allocation129_spill] sm:$0xff] %v6383_v11  ;;  %10064 = vst [vmem:[#allocation130_spill] sm:$0xff] %v6385_v13  ;;  %v6391_v7 = vld [vmem:[#allocation6 + $0xe8] sm:$0xff]  ;;  %v6393_v1 = vld [vmem:[#allocation6 + $0xf8] sm:$0xff] }
  0x81   :  { %936 = vmatpush1.msra.mxu0 %v6375_v0  ;;  %1007 = vmatpush1.msra.mxu1 %v6377_v9  ;;  %10066 = vst [vmem:[#allocation132_spill] sm:$0xff] %v6391_v7  ;;  %10067 = vst [vmem:[#allocation133_spill] sm:$0xff] %v6393_v1  ;;  %v6399_v9 = vld [vmem:[#allocation6 + $0xf0] sm:$0xff]  ;;  %v6401_v0 = vld [vmem:[#allocation6 + $0xc8] sm:$0xff] }
  0x82   :  { %937 = vmatprep.subr.mxu0 %v6379_v3  ;;  %1008 = vmatprep.subr.mxu1 %v6383_v11  ;;  %10069 = vst [vmem:[#allocation135_spill] sm:$0xff] %v6399_v9  ;;  %10070 = vst [vmem:[#allocation136_spill] sm:$0xff] %v6401_v0  ;;  %v6407_v11 = vld [vmem:[#allocation6 + $0xc0] sm:$0xff]  ;;  %v6409_v3 = vld [vmem:[#allocation6 + $0xd0] sm:$0xff] }
  0x83   :  { %938 = vmatpush1.msra.mxu0 %v6385_v13  ;;  %1009 = vmatpush1.msra.mxu1 %v6387_v6  ;;  %10072 = vst [vmem:[#allocation138_spill] sm:$0xff] %v6407_v11  ;;  %10073 = vst [vmem:[#allocation139_spill] sm:$0xff] %v6409_v3  ;;  %v6413_v13 = vld [vmem:[#allocation6 + $0xa8] sm:$0xff]  ;;  %v6415_v6 = vld [vmem:[#allocation6 + $0xb8] sm:$0xff] }
  0x84   :  { %939 = vmatprep.subr.mxu0 %v6391_v7  ;;  %1010 = vmatprep.subr.mxu1 %v6393_v1  ;;  %10074 = vst [vmem:[#allocation140_spill] sm:$0xff] %v6413_v13  ;;  %10075 = vst [vmem:[#allocation141_spill] sm:$0xff] %v6415_v6  ;;  %v6421_v7 = vld [vmem:[#allocation6 + $0xb0] sm:$0xff]  ;;  %v6425_v1 = vld [vmem:[#allocation6 + $0x88] sm:$0xff] }
  0x85   :  { %940 = vmatpush1.msra.mxu0 %v6395_v62  ;;  %1011 = vmatpush1.msra.mxu1 %v6399_v9  ;;  %10077 = vst [vmem:[#allocation143_spill] sm:$0xff] %v6421_v7  ;;  %10078 = vst [vmem:[#allocation144_spill] sm:$0xff] %v6425_v1  ;;  %v6427_v62 = vld [vmem:[#allocation6 + $0x98] sm:$0xff]  ;;  %v6431_v9 = vld [vmem:[#allocation6 + $0x80] sm:$0xff] }
  0x86   :  { %941 = vmatprep.subr.mxu0 %v6401_v0  ;;  %1012 = vmatprep.subr.mxu1 %v6403_v4  ;;  %10079 = vst [vmem:[#allocation145_spill] sm:$0xff] %v6427_v62  ;;  %10080 = vst [vmem:[#allocation146_spill] sm:$0xff] %v6431_v9  ;;  %v6433_v0 = vld [vmem:[#allocation6 + $0x90] sm:$0xff]  ;;  %v6437_v4 = vld [vmem:[#allocation6 + $0x68] sm:$0xff] }
  0x87   :  { %942 = vmatpush1.msra.mxu0 %v6407_v11  ;;  %1013 = vmatpush1.msra.mxu1 %v6409_v3  ;;  %10081 = vst [vmem:[#allocation147_spill] sm:$0xff] %v6433_v0  ;;  %10082 = vst [vmem:[#allocation148_spill] sm:$0xff] %v6437_v4  ;;  %v6439_v11 = vld [vmem:[#allocation6 + $0x78] sm:$0xff]  ;;  %v6443_v3 = vld [vmem:[#allocation6 + $0x60] sm:$0xff] }
  0x88   :  { %943 = vmatprep.subr.mxu0 %v6413_v13  ;;  %1014 = vmatprep.subr.mxu1 %v6415_v6  ;;  %10083 = vst [vmem:[#allocation149_spill] sm:$0xff] %v6439_v11  ;;  %10084 = vst [vmem:[#allocation150_spill] sm:$0xff] %v6443_v3  ;;  %v6445_v13 = vld [vmem:[#allocation6 + $0x70] sm:$0xff]  ;;  %v6449_v6 = vld [vmem:[#allocation6 + $0x48] sm:$0xff] }
  0x89   :  { %944 = vmatpush1.msra.mxu0 %v6419_v60  ;;  %1015 = vmatpush1.msra.mxu1 %v6421_v7  ;;  %10085 = vst [vmem:[#allocation151_spill] sm:$0xff] %v6445_v13  ;;  %10086 = vst [vmem:[#allocation152_spill] sm:$0xff] %v6449_v6  ;;  %v6451_v60 = vld [vmem:[#allocation6 + $0x58] sm:$0xff]  ;;  %v6455_v7 = vld [vmem:[#allocation6 + $0x40] sm:$0xff] }
  0x8a   :  { %945 = vmatprep.subr.mxu0 %v6425_v1  ;;  %1016 = vmatprep.subr.mxu1 %v6427_v62  ;;  %10087 = vst [vmem:[#allocation153_spill] sm:$0xff] %v6451_v60  ;;  %10088 = vst [vmem:[#allocation154_spill] sm:$0xff] %v6455_v7  ;;  %v6457_v1 = vld [vmem:[#allocation6 + $0x50] sm:$0xff]  ;;  %v6461_v62 = vld [vmem:[#allocation6 + $0x28] sm:$0xff] }
  0x8b   :  { %946 = vmatpush1.msra.mxu0 %v6431_v9  ;;  %1017 = vmatpush1.msra.mxu1 %v6433_v0  ;;  %10089 = vst [vmem:[#allocation155_spill] sm:$0xff] %v6457_v1  ;;  %10090 = vst [vmem:[#allocation156_spill] sm:$0xff] %v6461_v62  ;;  %v6463_v9 = vld [vmem:[#allocation6 + $0x38] sm:$0xff]  ;;  %v6467_v0 = vld [vmem:[#allocation6 + $0x20] sm:$0xff] }
  0x8c   :  { %947 = vmatprep.subr.mxu0 %v6437_v4  ;;  %1018 = vmatprep.subr.mxu1 %v6439_v11  ;;  %10091 = vst [vmem:[#allocation157_spill] sm:$0xff] %v6463_v9  ;;  %10092 = vst [vmem:[#allocation158_spill] sm:$0xff] %v6467_v0  ;;  %v6469_v4 = vld [vmem:[#allocation6 + $0x30] sm:$0xff]  ;;  %v6473_v11 = vld [vmem:[#allocation6 + $0x8] sm:$0xff] }
  0x8d   :  { %948 = vmatpush1.msra.mxu0 %v6443_v3  ;;  %1019 = vmatpush1.msra.mxu1 %v6445_v13  ;;  %10093 = vst [vmem:[#allocation159_spill] sm:$0xff] %v6469_v4  ;;  %10094 = vst [vmem:[#allocation160_spill] sm:$0xff] %v6473_v11  ;;  %v6475_v3 = vld [vmem:[#allocation6 + $0x18] sm:$0xff]  ;;  %v6479_v13 = vld [vmem:[#allocation6] sm:$0xff] }
  0x8e   :  { %949 = vmatprep.subr.mxu0 %v6449_v6  ;;  %1020 = vmatprep.subr.mxu1 %v6451_v60  ;;  %10095 = vst [vmem:[#allocation161_spill] sm:$0xff] %v6475_v3  ;;  %10096 = vst [vmem:[#allocation162_spill] sm:$0xff] %v6479_v13  ;;  %v6481_v6 = vld [vmem:[#allocation6 + $0x10] sm:$0xff] }
  0x8f   :  { %950 = vmatpush1.msra.mxu0 %v6455_v7  ;;  %1021 = vmatpush1.msra.mxu1 %v6457_v1  ;;  %10097 = vst [vmem:[#allocation163_spill] sm:$0xff] %v6481_v6 }
  0x90   :  { %951 = vmatprep.subr.mxu0 %v6461_v62  ;;  %1022 = vmatprep.subr.mxu1 %v6463_v9  ;;  %v86_v9 = vlaneseq  ;;  %v5805_v62 = vmov 1983009808  }
  0x91   :  { %952 = vmatpush1.msra.mxu0 %v6467_v0  ;;  %1023 = vmatpush1.msra.mxu1 %v6469_v4 }
  0x92   :  { %953 = vmatprep.subr.mxu0 %v6473_v11  ;;  %1024 = vmatprep.subr.mxu1 %v6475_v3  ;;  %v6493_v0 = vshrl.u32 %v86_v9, 7 }
  0x93   :  { %954 = vmatpush1.msra.mxu0 %v6479_v13  ;;  %1025 = vmatpush1.msra.mxu1 %v6481_v6  ;;  %v84_v13 = vld [vmem:[%s9349_s3] sm:$0xf] }
  0x94   :  { %987 = vmatprep.mubr.f32.mxu0 %v10033_v5  ;;  %1058 = vmatprep.mubr.f32.mxu1 %v10033_v5  ;;  %v9505_v4 = vsub.s32 0, %v6493_v0  ;;  %v9506_v11 = vsub.s32 1, %v6493_v0  ;;  %v9512_v60 = vsub.s32 2, %v6493_v0  ;;  %v9513_v5 = vsub.s32 3, %v6493_v0 }
  0x95   :  { %1094 = vmatprep.subr.mxu0 %v5890_v8  ;;  %1165 = vmatprep.subr.mxu1 %v5908_v14  ;;  %v274_v14 = vunpack.c.l.s4 %v5805_v62 }
  0x96   :  { %v89_v6 = vrot.slane %v84_v13, %v9505_v4  ;;  %v93_v3 = vrot.slane %v84_v13, %v9506_v11  ;;  %v97_v4 = vrot.slane %v84_v13, %v9512_v60  ;;  %v101_v11 = vrot.slane %v84_v13, %v9513_v5 }
  0x97   :  { %v275_v56 = vunpack.c.0.s8 %v274_v14 }
  0xeb   :  { %v179_v8 = vpop.f32.mrf.mxu1 }
  0xec   :  { %v180_v9 = vadd.f32 %v179_v8, %v89_v6 }
  0xed   :  { %v181_v1 = vpop.f32.mrf.mxu1 }
  0xee   :  { %v182_v7 = vadd.f32 %v181_v1, %v93_v3  ;;  %v6511_v1 = vsub.s32 %v275_v56, %v6493_v0 }
  0xef   :  { %v185_v2 = vpop.f32.mrf.mxu1 }
  0xf0   :  { %v294_v58 = vcombine.high %v180_v9, %v182_v7  ;;  %v186_v63 = vadd.f32 %v185_v2, %v89_v6  ;;  %v271_v52 = vcombine.low %v180_v9, %v182_v7 }
  0xf1   :  { %v187_v61 = vpop.f32.mrf.mxu1 }
  0xf2   :  { %v188_v54 = vadd.f32 %v187_v61, %v93_v3  ;;  %v6514_v3 = vrot.slane %v271_v52, %v6511_v1  ;;  %v6517_v13 = vrot.slane %v294_v58, %v6511_v1 }
  0xf3   :  { %v256_v62 = vpop.f32.mrf.mxu1 }
  0xf4   :  { %v322_v59 = vcombine.low %v186_v63, %v188_v54  ;;  %v346_v8 = vcombine.high %v186_v63, %v188_v54  ;;  %v257_v50 = vadd.f32 %v256_v62, %v97_v4 }
  0xf5   :  { %v258_v57 = vpop.f32.mrf.mxu1 }
  0xf6   :  { %v259_v55 = vadd.f32 %v258_v57, %v101_v11  ;;  %v6532_v58 = vrot.slane %v322_v59, %v6511_v1  ;;  %v6535_v7 = vrot.slane %v346_v8, %v6511_v1 }
  0xf7   :  { %v262_v2 = vpop.f32.mrf.mxu1 }
  0xf8   :  { %v272_v6 = vcombine.low %v257_v50, %v259_v55  ;;  %v295_v14 = vcombine.high %v257_v50, %v259_v55  ;;  %v263_v61 = vadd.f32 %v262_v2, %v97_v4  ;;  %10098 = vst [vmem:[#allocation164_spill] sm:$0xff] %v6532_v58  ;;  %10099 = vst [vmem:[#allocation165_spill] sm:$0xff] %v6535_v7  ;;  %v6955_v58 = vld [vmem:[#allocation3 + $0x48] sm:$0xff] }
  0xf9   :  { %v264_v60 = vpop.f32.mrf.mxu1 }
  0xfa   :  { %v6520_v54 = vrot.slane %v272_v6, %v6511_v1  ;;  %v6523_v56 = vrot.slane %v295_v14, %v6511_v1  ;;  %v265_v63 = vadd.f32 %v264_v60, %v101_v11 }
  0xfc   :  { %v323_v55 = vcombine.low %v263_v61, %v265_v63  ;;  %v347_v4 = vcombine.high %v263_v61, %v265_v63  ;;  %v287_v11 = vcombine.low %v6514_v3, %v6520_v54 }
  0xfe   :  { %v6538_v9 = vrot.slane %v323_v55, %v6511_v1  ;;  %v6541_v60 = vrot.slane %v347_v4, %v6511_v1 }
 0x100   :  { %10100 = vst [vmem:[#allocation166_spill] sm:$0xff] %v6538_v9  ;;  %10101 = vst [vmem:[#allocation167_spill] sm:$0xff] %v6541_v60  ;;  %v6952_v9 = vld [vmem:[#allocation3 + $0x70] sm:$0xff] }
 0x10d   :  { %v523_v8 = vpop.f32.mrf.mxu0 }
 0x10f   :  { %v525_v6 = vpop.f32.mrf.mxu0 }
 0x110   :  { %v603_v61 = vcombine.low %v523_v8, %v525_v6 }
 0x112   :  { %v611_v4 = vrot.slane %v603_v61, %v6511_v1 }
 0x113   :  { %v594_v14 = vpop.f32.mrf.mxu1 }
 0x115   :  { %v596_v63 = vpop.f32.mrf.mxu1 }
 0x116   :  { %v604_v55 = vcombine.low %v594_v14, %v596_v63 }
 0x118   :  { %v618_v52 = vrot.slane %v604_v55, %v6511_v1 }
 0x11a   :  { %v619_v62 = vcombine.low %v611_v4, %v618_v52 }
 0x11c   :  { %v621_v50 = vadd.f32 %v619_v62, %v287_v11 }
 0x11e   :  { %v4771_v57 = vmul.f32 -1.442695, %v621_v50  ;;  %v629_v2 = vrot.slane %v621_v50, 2  ;;  %v640_v59 = vrot.slane %v621_v50, 6  ;;  %v637_v8 = vrot.slane %v621_v50, 4 }
 0x120   :  { %4881 = vpow2.f32 %v4771_v57  ;;  %v4772_v5 = vmul.f32 -1.442695, %v629_v2  ;;  %v4773_v60 = vmul.f32 -1.442695, %v640_v59  ;;  %v10142_v59 = vld [vmem:[#allocation52_spill] sm:$0xff] }
 0x122   :  { %4883 = vpow2.f32 %v4772_v5 }
 0x123   :  { %4885 = vpow2.f32 %v4773_v60  ;;  %v10141_v60 = vld [vmem:[#allocation51_spill] sm:$0xff] }
 0x12d   :  { %v4882_v7 = vpop.eup %4881 }
 0x12e   :  { %v625_v6 = vadd.f32 1.0, %v4882_v7 }
 0x12f   :  { %v4884_v14 = vpop.eup %4883 }
 0x130   :  { %4887 = vrcp.f32 %v625_v6  ;;  %v634_v61 = vadd.f32 1.0, %v4884_v14  ;;  %v4886_v63 = vpop.eup %4885  ;;  %v10144_v6 = vld [vmem:[#allocation54_spill] sm:$0xff]  ;;  %v10145_v14 = vld [vmem:[#allocation55_spill] sm:$0xff] }
 0x131   :  { %4889 = vtanh.f32 %v637_v8  ;;  %v645_v62 = vadd.f32 1.0, %v4886_v63  ;;  %v10143_v8 = vld [vmem:[#allocation53_spill] sm:$0xff] }
 0x132   :  { %4891 = vrcp.f32 %v634_v61  ;;  %v10146_v61 = vld [vmem:[#allocation56_spill] sm:$0xff]  ;;  %v10147_v63 = vld [vmem:[#allocation57_spill] sm:$0xff] }
 0x133   :  { %4893 = vrcp.f32 %v645_v62  ;;  %v10151_v62 = vld [vmem:[#allocation61_spill] sm:$0xff] }
 0x13d   :  { %v4888_v55 = vpop.eup %4887 }
 0x13e   :  { %v4890_v52 = vpop.eup %4889 }
 0x13f   :  { %v4892_v11 = vpop.eup %4891  ;;  %v649_v57 = vmul.f32 %v4890_v52, %v4888_v55  ;;  %v10148_v55 = vld [vmem:[#allocation58_spill] sm:$0xff]  ;;  %v10149_v52 = vld [vmem:[#allocation59_spill] sm:$0xff] }
 0x140   :  { %v648_v4 = vmul.f32 0.0, %v4892_v11  ;;  %v4894_v5 = vpop.eup %4893  ;;  %v10150_v11 = vld [vmem:[#allocation60_spill] sm:$0xff] }
 0x142   :  { %v6555_v2 = vadd.f32 %v649_v57, %v648_v4  ;;  %v10152_v4 = vld [vmem:[#allocation62_spill] sm:$0xff]  ;;  %v10153_v57 = vld [vmem:[#allocation63_spill] sm:$0xff] }
 0x144   :  { %4895 = vtanh.f32 %v6555_v2 }
 0x151   :  { %v4896_v50 = vpop.eup %4895 }
 0x152   :  { %v6558_v7 = vmul.f32 %v4896_v50, %v4894_v5  ;;  %v10154_v5 = vld [vmem:[#allocation64_spill] sm:$0xff]  ;;  %v10155_v50 = vld [vmem:[#allocation65_spill] sm:$0xff] }
 0x154   :  { %988 = vmatmul.mubr.f32.vlgmr.msra.gmra.mxu0 %v6558_v7  ;;  %1059 = vmatmul.mubr.f32.vlgmr.msra.gmra.mxu1 %v6558_v7 }
 0x155   :  { %1095 = vmatpush1.msra.mxu0 %v5896_v10  ;;  %1166 = vmatpush1.msra.mxu1 %v5924_v19  ;;  %v10102_v10 = vld [vmem:[#allocation16_spill] sm:$0xff]  ;;  %v10108_v19 = vld [vmem:[#allocation22_spill] sm:$0xff] }
 0x156   :  { %1096 = vmatprep.subr.mxu0 %v5902_v12  ;;  %1167 = vmatprep.subr.mxu1 %v5927_v20  ;;  %v10103_v12 = vld [vmem:[#allocation13_spill] sm:$0xff] }
 0x157   :  { %1097 = vmatpush1.msra.mxu0 %v5911_v15  ;;  %1168 = vmatpush1.msra.mxu1 %v5933_v22  ;;  %v10104_v15 = vld [vmem:[#allocation18_spill] sm:$0xff]  ;;  %v10109_v20 = vld [vmem:[#allocation17_spill] sm:$0xff]  ;;  %v10111_v22 = vld [vmem:[#allocation19_spill] sm:$0xff] }
 0x158   :  { %1098 = vmatprep.subr.mxu0 %v5914_v16  ;;  %1169 = vmatprep.subr.mxu1 %v5940_v24  ;;  %v10105_v16 = vld [vmem:[#allocation14_spill] sm:$0xff]  ;;  %v10113_v24 = vld [vmem:[#allocation21_spill] sm:$0xff] }
 0x159   :  { %1099 = vmatpush1.msra.mxu0 %v5918_v17  ;;  %1170 = vmatpush1.msra.mxu1 %v5943_v25  ;;  %v10106_v17 = vld [vmem:[#allocation20_spill] sm:$0xff] }
 0x15a   :  { %1100 = vmatprep.subr.mxu0 %v5922_v18  ;;  %1171 = vmatprep.subr.mxu1 %v5949_v27  ;;  %v10107_v18 = vld [vmem:[#allocation15_spill] sm:$0xff]  ;;  %v10114_v25 = vld [vmem:[#allocation28_spill] sm:$0xff]  ;;  %v10116_v27 = vld [vmem:[#allocation30_spill] sm:$0xff] }
 0x15b   :  { %1101 = vmatpush1.msra.mxu0 %v5930_v21  ;;  %1172 = vmatpush1.msra.mxu1 %v5956_v29  ;;  %v10110_v21 = vld [vmem:[#allocation24_spill] sm:$0xff] }
 0x15c   :  { %1102 = vmatprep.subr.mxu0 %v5936_v23  ;;  %1173 = vmatprep.subr.mxu1 %v5962_v31  ;;  %v10112_v23 = vld [vmem:[#allocation26_spill] sm:$0xff]  ;;  %v10118_v29 = vld [vmem:[#allocation32_spill] sm:$0xff]  ;;  %v10120_v31 = vld [vmem:[#allocation33_spill] sm:$0xff] }
 0x15d   :  { %1103 = vmatpush1.msra.mxu0 %v5946_v26  ;;  %1174 = vmatpush1.msra.mxu1 %v5968_v33  ;;  %v10115_v26 = vld [vmem:[#allocation23_spill] sm:$0xff]  ;;  %v10122_v33 = vld [vmem:[#allocation34_spill] sm:$0xff]  ;;  %10277 = vst [vmem:[#allocation33_spill] sm:$0xff] %v6952_v9 }
 0x15e   :  { %1104 = vmatprep.subr.mxu0 %v5952_v28  ;;  %1175 = vmatprep.subr.mxu1 %v5974_v35  ;;  %v10117_v28 = vld [vmem:[#allocation25_spill] sm:$0xff]  ;;  %v10124_v35 = vmov 0.0  }
 0x15f   :  { %1105 = vmatpush1.msra.mxu0 %v5958_v30  ;;  %1176 = vmatpush1.msra.mxu1 %v5980_v37  ;;  %v10119_v30 = vld [vmem:[#allocation27_spill] sm:$0xff]  ;;  %v10126_v37 = vld [vmem:[#allocation36_spill] sm:$0xff] }
 0x160   :  { %1106 = vmatprep.subr.mxu0 %v5964_v32  ;;  %1177 = vmatprep.subr.mxu1 %v5986_v39  ;;  %v10121_v32 = vld [vmem:[#allocation29_spill] sm:$0xff]  ;;  %v10128_v39 = vld [vmem:[#allocation38_spill] sm:$0xff] }
 0x161   :  { %1107 = vmatpush1.msra.mxu0 %v5970_v34  ;;  %1178 = vmatpush1.msra.mxu1 %v5992_v41  ;;  %v10123_v34 = vld [vmem:[#allocation31_spill] sm:$0xff]  ;;  %v10130_v41 = vld [vmem:[#allocation40_spill] sm:$0xff]  ;;  %10278 = vst [vmem:[#allocation29_spill] sm:$0xff] %v6955_v58 }
 0x162   :  { %1108 = vmatprep.subr.mxu0 %v5976_v36  ;;  %1179 = vmatprep.subr.mxu1 %v5998_v43  ;;  %v10125_v36 = vld [vmem:[#allocation35_spill] sm:$0xff]  ;;  %v10132_v43 = vld [vmem:[#allocation42_spill] sm:$0xff] }
 0x163   :  { %1109 = vmatpush1.msra.mxu0 %v5982_v38  ;;  %1180 = vmatpush1.msra.mxu1 %v6004_v45  ;;  %v10127_v38 = vld [vmem:[#allocation37_spill] sm:$0xff]  ;;  %v10134_v45 = vld [vmem:[#allocation44_spill] sm:$0xff] }
 0x164   :  { %1110 = vmatprep.subr.mxu0 %v5988_v40  ;;  %1181 = vmatprep.subr.mxu1 %v6010_v47  ;;  %v10129_v40 = vld [vmem:[#allocation39_spill] sm:$0xff]  ;;  %v10136_v47 = vld [vmem:[#allocation46_spill] sm:$0xff] }
 0x165   :  { %1111 = vmatpush1.msra.mxu0 %v5994_v42  ;;  %1182 = vmatpush1.msra.mxu1 %v6016_v49  ;;  %v10131_v42 = vld [vmem:[#allocation41_spill] sm:$0xff]  ;;  %v10138_v49 = vld [vmem:[#allocation48_spill] sm:$0xff] }
 0x166   :  { %1112 = vmatprep.subr.mxu0 %v6000_v44  ;;  %1183 = vmatprep.subr.mxu1 %v6022_v51  ;;  %v10133_v44 = vld [vmem:[#allocation43_spill] sm:$0xff]  ;;  %v10139_v51 = vld [vmem:[#allocation49_spill] sm:$0xff] }
 0x167   :  { %1113 = vmatpush1.msra.mxu0 %v6006_v46  ;;  %1184 = vmatpush1.msra.mxu1 %v6028_v53  ;;  %v10135_v46 = vld [vmem:[#allocation45_spill] sm:$0xff]  ;;  %v10140_v53 = vld [vmem:[#allocation50_spill] sm:$0xff] }
 0x168   :  { %1114 = vmatprep.subr.mxu0 %v6012_v48  ;;  %1185 = vmatprep.subr.mxu1 %v10102_v10  ;;  %v10137_v48 = vld [vmem:[#allocation47_spill] sm:$0xff] }
 0x169   :  { %1115 = vmatpush1.msra.mxu0 %v10103_v12  ;;  %1186 = vmatpush1.msra.mxu1 %v10104_v15  ;;  %v10157_v10 = vld [vmem:[#allocation67_spill] sm:$0xff]  ;;  %v10158_v12 = vld [vmem:[#allocation68_spill] sm:$0xff]  ;;  %v10159_v15 = vld [vmem:[#allocation69_spill] sm:$0xff] }
 0x16a   :  { %1116 = vmatprep.subr.mxu0 %v10105_v16  ;;  %1187 = vmatprep.subr.mxu1 %v10106_v17  ;;  %v10160_v16 = vld [vmem:[#allocation70_spill] sm:$0xff]  ;;  %v10161_v17 = vld [vmem:[#allocation71_spill] sm:$0xff] }
 0x16b   :  { %1117 = vmatpush1.msra.mxu0 %v10107_v18  ;;  %1188 = vmatpush1.msra.mxu1 %v10108_v19  ;;  %v10162_v18 = vld [vmem:[#allocation72_spill] sm:$0xff]  ;;  %v10163_v19 = vld [vmem:[#allocation73_spill] sm:$0xff] }
 0x16c   :  { %1118 = vmatprep.subr.mxu0 %v10109_v20  ;;  %1189 = vmatprep.subr.mxu1 %v10110_v21  ;;  %v10164_v20 = vld [vmem:[#allocation74_spill] sm:$0xff]  ;;  %v10165_v21 = vld [vmem:[#allocation75_spill] sm:$0xff] }
 0x16d   :  { %1119 = vmatpush1.msra.mxu0 %v10111_v22  ;;  %1190 = vmatpush1.msra.mxu1 %v10112_v23  ;;  %v10166_v22 = vld [vmem:[#allocation76_spill] sm:$0xff]  ;;  %v10167_v23 = vld [vmem:[#allocation77_spill] sm:$0xff] }
 0x16e   :  { %1120 = vmatprep.subr.mxu0 %v10113_v24  ;;  %1191 = vmatprep.subr.mxu1 %v10114_v25  ;;  %v10168_v24 = vld [vmem:[#allocation78_spill] sm:$0xff]  ;;  %v10169_v25 = vld [vmem:[#allocation79_spill] sm:$0xff] }
 0x16f   :  { %1121 = vmatpush1.msra.mxu0 %v10115_v26  ;;  %1192 = vmatpush1.msra.mxu1 %v10116_v27  ;;  %v10170_v26 = vld [vmem:[#allocation80_spill] sm:$0xff]  ;;  %v10171_v27 = vld [vmem:[#allocation81_spill] sm:$0xff] }
 0x170   :  { %1122 = vmatprep.subr.mxu0 %v10117_v28  ;;  %1193 = vmatprep.subr.mxu1 %v10118_v29  ;;  %v10172_v28 = vld [vmem:[#allocation82_spill] sm:$0xff]  ;;  %v10173_v29 = vld [vmem:[#allocation83_spill] sm:$0xff] }
 0x171   :  { %1123 = vmatpush1.msra.mxu0 %v10119_v30  ;;  %1194 = vmatpush1.msra.mxu1 %v10120_v31  ;;  %v10174_v30 = vld [vmem:[#allocation84_spill] sm:$0xff]  ;;  %v10175_v31 = vld [vmem:[#allocation85_spill] sm:$0xff] }
 0x172   :  { %1124 = vmatprep.subr.mxu0 %v10121_v32  ;;  %1195 = vmatprep.subr.mxu1 %v10122_v33  ;;  %v10176_v32 = vld [vmem:[#allocation86_spill] sm:$0xff]  ;;  %v10177_v33 = vld [vmem:[#allocation87_spill] sm:$0xff] }
 0x173   :  { %1125 = vmatpush1.msra.mxu0 %v10123_v34  ;;  %1158 = vmatprep.mubr.f32.mxu0 %v10124_v35  ;;  %v10178_v34 = vld [vmem:[#allocation88_spill] sm:$0xff] }
 0x174   :  { %1196 = vmatpush1.msra.mxu1 %v10125_v36  ;;  %1229 = vmatprep.mubr.f32.mxu1 %v10124_v35  ;;  %v10179_v36 = vld [vmem:[#allocation89_spill] sm:$0xff] }
 0x175   :  { %1159 = vmatmul.mubr.f32.vlgmr.msra.gmra.mxu0 %v6558_v7  ;;  %1230 = vmatmul.mubr.f32.vlgmr.msra.gmra.mxu1 %v6558_v7  ;;  %v10156_v7 = vld [vmem:[#allocation66_spill] sm:$0xff] }
 0x176   :  { %1290 = vmatprep.subr.mxu0 %v10126_v37  ;;  %1361 = vmatprep.subr.mxu1 %v10127_v38  ;;  %v10180_v37 = vld [vmem:[#allocation90_spill] sm:$0xff]  ;;  %v10181_v38 = vld [vmem:[#allocation91_spill] sm:$0xff] }
 0x177   :  { %1291 = vmatpush1.msra.mxu0 %v10128_v39  ;;  %1362 = vmatpush1.msra.mxu1 %v10129_v40  ;;  %v10182_v39 = vld [vmem:[#allocation92_spill] sm:$0xff]  ;;  %v10183_v40 = vld [vmem:[#allocation93_spill] sm:$0xff] }
 0x178   :  { %1292 = vmatprep.subr.mxu0 %v10130_v41  ;;  %1363 = vmatprep.subr.mxu1 %v10131_v42  ;;  %v10184_v41 = vld [vmem:[#allocation94_spill] sm:$0xff]  ;;  %v10185_v42 = vld [vmem:[#allocation95_spill] sm:$0xff] }
 0x179   :  { %1293 = vmatpush1.msra.mxu0 %v10132_v43  ;;  %1364 = vmatpush1.msra.mxu1 %v10133_v44  ;;  %v10186_v43 = vld [vmem:[#allocation96_spill] sm:$0xff]  ;;  %v10187_v44 = vld [vmem:[#allocation97_spill] sm:$0xff] }
 0x17a   :  { %1294 = vmatprep.subr.mxu0 %v10134_v45  ;;  %1365 = vmatprep.subr.mxu1 %v10135_v46  ;;  %v10188_v45 = vld [vmem:[#allocation98_spill] sm:$0xff]  ;;  %v10189_v46 = vld [vmem:[#allocation99_spill] sm:$0xff] }
 0x17b   :  { %1295 = vmatpush1.msra.mxu0 %v10136_v47  ;;  %1366 = vmatpush1.msra.mxu1 %v10137_v48  ;;  %v10190_v47 = vld [vmem:[#allocation100_spill] sm:$0xff]  ;;  %v10191_v48 = vld [vmem:[#allocation101_spill] sm:$0xff] }
 0x17c   :  { %1296 = vmatprep.subr.mxu0 %v10138_v49  ;;  %1367 = vmatprep.subr.mxu1 %v10139_v51  ;;  %v847_v49 = vpop.f32.mrf.mxu0  ;;  %v370_v51 = vld [vmem:[%s9352_s6] sm:$0xf] }
 0x17d   :  { %1297 = vmatpush1.msra.mxu0 %v10140_v53  ;;  %1368 = vmatpush1.msra.mxu1 %v10141_v60  ;;  %v918_v53 = vpop.f32.mrf.mxu1 }
 0x17e   :  { %1298 = vmatprep.subr.mxu0 %v10142_v59  ;;  %1369 = vmatprep.subr.mxu1 %v10143_v8  ;;  %v849_v60 = vpop.f32.mrf.mxu0  ;;  %v10192_v59 = vsub.s32 0, %v6493_v0 }
 0x17f   :  { %1299 = vmatpush1.msra.mxu0 %v10144_v6  ;;  %1370 = vmatpush1.msra.mxu1 %v10145_v14  ;;  %v10193_v14 = vsub.s32 1, %v6493_v0 }
 0x180   :  { %1300 = vmatprep.subr.mxu0 %v10146_v61  ;;  %1371 = vmatprep.subr.mxu1 %v10147_v63  ;;  %v6701_v8 = vrot.slane %v370_v51, %v10192_v59  ;;  %v920_v63 = vpop.f32.mrf.mxu1 }
 0x181   :  { %1301 = vmatpush1.msra.mxu0 %v10148_v55  ;;  %1372 = vmatpush1.msra.mxu1 %v10149_v52  ;;  %v6705_v61 = vrot.slane %v370_v51, %v10193_v14 }
 0x182   :  { %1302 = vmatprep.subr.mxu0 %v10150_v11  ;;  %1373 = vmatprep.subr.mxu1 %v10151_v62 }
 0x183   :  { %1303 = vmatpush1.msra.mxu0 %v10152_v4  ;;  %1374 = vmatpush1.msra.mxu1 %v10153_v57 }
 0x184   :  { %1304 = vmatprep.subr.mxu0 %v10154_v5  ;;  %1375 = vmatprep.subr.mxu1 %v10155_v50 }
 0x185   :  { %1305 = vmatpush1.msra.mxu0 %v10156_v7  ;;  %1376 = vmatpush1.msra.mxu1 %v10157_v10  ;;  %v10194_v10 = vsub.s32 3, %v6493_v0 }
 0x186   :  { %1306 = vmatprep.subr.mxu0 %v10158_v12  ;;  %1377 = vmatprep.subr.mxu1 %v10159_v15 }
 0x187   :  { %1307 = vmatpush1.msra.mxu0 %v10160_v16  ;;  %1378 = vmatpush1.msra.mxu1 %v10161_v17  ;;  %v6711_v12 = vrot.slane %v370_v51, %v10194_v10  ;;  %v10195_v17 = vsub.s32 2, %v6493_v0  ;;  %v10208_v10 = vld [vmem:[#allocation112_spill] sm:$0xff] }
 0x188   :  { %1308 = vmatprep.subr.mxu0 %v10162_v18  ;;  %1379 = vmatprep.subr.mxu1 %v10163_v19 }
 0x189   :  { %1309 = vmatpush1.msra.mxu0 %v10164_v20  ;;  %1380 = vmatpush1.msra.mxu1 %v10165_v21  ;;  %v6716_v18 = vrot.slane %v370_v51, %v10195_v17  ;;  %v10211_v17 = vld [vmem:[#allocation115_spill] sm:$0xff] }
 0x18a   :  { %1310 = vmatprep.subr.mxu0 %v10166_v22  ;;  %1381 = vmatprep.subr.mxu1 %v10167_v23 }
 0x18b   :  { %1311 = vmatpush1.msra.mxu0 %v10168_v24  ;;  %1382 = vmatpush1.msra.mxu1 %v10169_v25  ;;  %10196 = vst [vmem:[#allocation16_spill] sm:$0xff] %v6716_v18 }
 0x18c   :  { %1312 = vmatprep.subr.mxu0 %v10170_v26  ;;  %1383 = vmatprep.subr.mxu1 %v10171_v27 }
 0x18d   :  { %1313 = vmatpush1.msra.mxu0 %v10172_v28  ;;  %1384 = vmatpush1.msra.mxu1 %v10173_v29 }
 0x18e   :  { %1314 = vmatprep.subr.mxu0 %v10174_v30  ;;  %1385 = vmatprep.subr.mxu1 %v10175_v31 }
 0x18f   :  { %1315 = vmatpush1.msra.mxu0 %v10176_v32  ;;  %1386 = vmatpush1.msra.mxu1 %v10177_v33 }
 0x190   :  { %1316 = vmatprep.subr.mxu0 %v10178_v34  ;;  %1387 = vmatprep.subr.mxu1 %v10179_v36 }
 0x191   :  { %1317 = vmatpush1.msra.mxu0 %v10180_v37  ;;  %1388 = vmatpush1.msra.mxu1 %v10181_v38 }
 0x192   :  { %1318 = vmatprep.subr.mxu0 %v10182_v39  ;;  %1389 = vmatprep.subr.mxu1 %v10183_v40 }
 0x193   :  { %1319 = vmatpush1.msra.mxu0 %v10184_v41  ;;  %1390 = vmatpush1.msra.mxu1 %v10185_v42 }
 0x194   :  { %1320 = vmatprep.subr.mxu0 %v10186_v43  ;;  %1391 = vmatprep.subr.mxu1 %v10187_v44  ;;  %v10197_v43 = vcombine.high %v6514_v3, %v6520_v54  ;;  %v10199_v3 = vld [vmem:[#allocation103_spill] sm:$0xff] }
 0x195   :  { %1321 = vmatpush1.msra.mxu0 %v10188_v45  ;;  %1354 = vmatprep.mubr.f32.mxu0 %v10124_v35 }
 0x196   :  { %1392 = vmatpush1.msra.mxu1 %v10189_v46  ;;  %1425 = vmatprep.mubr.f32.mxu1 %v10124_v35 }
 0x197   :  { %1432 = vmatprep.subr.mxu0 %v10190_v47  ;;  %1503 = vmatprep.subr.mxu1 %v10191_v48 }
 0x214   :  { %v989_v6 = vpop.f32.mrf.mxu0  ;;  %v1060_v62 = vpop.f32.mrf.mxu1 }
 0x215   :  { %v990_v55 = vadd.f32 %v989_v6, %v847_v49  ;;  %v1061_v19 = vadd.f32 %v1060_v62, %v918_v53  ;;  %v10202_v62 = vld [vmem:[#allocation106_spill] sm:$0xff] }
 0x216   :  { %v991_v52 = vpop.f32.mrf.mxu0  ;;  %v1062_v7 = vpop.f32.mrf.mxu1 }
 0x217   :  { %v1065_v11 = vadd.f32 %v990_v55, %v6701_v8  ;;  %v992_v4 = vadd.f32 %v991_v52, %v849_v60  ;;  %v1063_v15 = vadd.f32 %v1062_v7, %v920_v63  ;;  %v1067_v22 = vadd.f32 %v1061_v19, %v6716_v18  ;;  %v10198_v63 = vld [vmem:[#allocation102_spill] sm:$0xff]  ;;  %v10200_v55 = vld [vmem:[#allocation104_spill] sm:$0xff]  ;;  %v10201_v52 = vld [vmem:[#allocation105_spill] sm:$0xff] }
 0x218   :  { %v10207_v7 = vld [vmem:[#allocation111_spill] sm:$0xff]  ;;  %v10212_v19 = vld [vmem:[#allocation116_spill] sm:$0xff] }
 0x219   :  { %v4774_v57 = vmul.f32 -1.442695, %v1065_v11  ;;  %v1066_v5 = vadd.f32 %v992_v4, %v6705_v61  ;;  %v1068_v16 = vadd.f32 %v1063_v15, %v6711_v12  ;;  %v10203_v4 = vld [vmem:[#allocation107_spill] sm:$0xff]  ;;  %v10209_v15 = vld [vmem:[#allocation113_spill] sm:$0xff] }
 0x21b   :  { %4897 = vpow2.f32 %v4774_v57  ;;  %v4775_v50 = vmul.f32 -1.442695, %v1066_v5  ;;  %v4776_v20 = vmul.f32 -1.442695, %v1068_v16  ;;  %v10204_v57 = vld [vmem:[#allocation108_spill] sm:$0xff]  ;;  %v10205_v5 = vld [vmem:[#allocation109_spill] sm:$0xff] }
 0x21c   :  { %v10210_v16 = vld [vmem:[#allocation114_spill] sm:$0xff] }
 0x21d   :  { %4899 = vpow2.f32 %v4775_v50  ;;  %v10206_v50 = vld [vmem:[#allocation110_spill] sm:$0xff] }
 0x21e   :  { %4901 = vpow2.f32 %v4776_v20  ;;  %v10213_v20 = vld [vmem:[#allocation117_spill] sm:$0xff] }
 0x228   :  { %v4898_v21 = vpop.eup %4897 }
 0x229   :  { %v1072_v23 = vadd.f32 1.0, %v4898_v21  ;;  %v10214_v21 = vld [vmem:[#allocation118_spill] sm:$0xff] }
 0x22a   :  { %v4900_v24 = vpop.eup %4899 }
 0x22b   :  { %4903 = vrcp.f32 %v1072_v23  ;;  %v1078_v25 = vadd.f32 1.0, %v4900_v24  ;;  %v4902_v28 = vpop.eup %4901  ;;  %v10216_v23 = vld [vmem:[#allocation120_spill] sm:$0xff]  ;;  %v10217_v24 = vld [vmem:[#allocation121_spill] sm:$0xff] }
 0x22c   :  { %4905 = vtanh.f32 %v1067_v22  ;;  %v1085_v36 = vadd.f32 1.0, %v4902_v28  ;;  %v10215_v22 = vld [vmem:[#allocation119_spill] sm:$0xff]  ;;  %v10221_v28 = vld [vmem:[#allocation125_spill] sm:$0xff] }
 0x22d   :  { %4907 = vrcp.f32 %v1078_v25  ;;  %v10218_v25 = vld [vmem:[#allocation122_spill] sm:$0xff] }
 0x22e   :  { %4909 = vrcp.f32 %v1085_v36 }
 0x235   :  { %v1160_v26 = vpop.f32.mrf.mxu0  ;;  %v1231_v27 = vpop.f32.mrf.mxu1 }
 0x237   :  { %v1162_v29 = vpop.f32.mrf.mxu0  ;;  %v1233_v30 = vpop.f32.mrf.mxu1 }
 0x238   :  { %v4904_v0 = vpop.eup %4903  ;;  %v1240_v31 = vcombine.low %v1160_v26, %v1162_v29  ;;  %v1241_v32 = vcombine.low %v1231_v27, %v1233_v30  ;;  %v10219_v26 = vld [vmem:[#allocation123_spill] sm:$0xff]  ;;  %v10220_v27 = vld [vmem:[#allocation124_spill] sm:$0xff]  ;;  %v10222_v29 = vld [vmem:[#allocation126_spill] sm:$0xff] }
 0x239   :  { %v4906_v33 = vpop.eup %4905  ;;  %v10223_v30 = vld [vmem:[#allocation127_spill] sm:$0xff] }
 0x23a   :  { %v4908_v34 = vpop.eup %4907  ;;  %v1248_v37 = vrot.slane %v1240_v31, %v6511_v1  ;;  %v1255_v38 = vrot.slane %v1241_v32, %v6511_v1  ;;  %v1089_v40 = vmul.f32 %v4906_v33, %v4904_v0  ;;  %v10224_v0 = vld [vmem:[#allocation128_spill] sm:$0xff]  ;;  %v10225_v31 = vld [vmem:[#allocation129_spill] sm:$0xff]  ;;  %v10226_v33 = vld [vmem:[#allocation130_spill] sm:$0xff] }
 0x23b   :  { %v1088_v39 = vmul.f32 0.0, %v4908_v34  ;;  %v4910_v49 = vpop.eup %4909  ;;  %v10227_v34 = vld [vmem:[#allocation131_spill] sm:$0xff] }
 0x23c   :  { %v1256_v41 = vcombine.low %v1248_v37, %v1255_v38  ;;  %v10228_v37 = vld [vmem:[#allocation132_spill] sm:$0xff]  ;;  %v10229_v38 = vld [vmem:[#allocation133_spill] sm:$0xff] }
 0x23d   :  { %v6721_v42 = vadd.f32 %v1089_v40, %v1088_v39  ;;  %v10230_v40 = vld [vmem:[#allocation134_spill] sm:$0xff] }
 0x23e   :  { %v1258_v44 = vadd.f32 %v1256_v41, %v10197_v43  ;;  %v10231_v41 = vld [vmem:[#allocation135_spill] sm:$0xff] }
 0x23f   :  { %4911 = vtanh.f32 %v6721_v42 }
 0x240   :  { %v4777_v45 = vmul.f32 -1.442695, %v1258_v44  ;;  %v1266_v46 = vrot.slane %v1258_v44, 2  ;;  %v1277_v48 = vrot.slane %v1258_v44, 6  ;;  %v1274_v6 = vrot.slane %v1258_v44, 4 }
 0x242   :  { %4913 = vpow2.f32 %v4777_v45  ;;  %v4778_v47 = vmul.f32 -1.442695, %v1266_v46  ;;  %v4779_v53 = vmul.f32 -1.442695, %v1277_v48  ;;  %v10232_v45 = vld [vmem:[#allocation136_spill] sm:$0xff]  ;;  %v10233_v46 = vld [vmem:[#allocation137_spill] sm:$0xff] }
 0x243   :  { %v10235_v48 = vld [vmem:[#allocation139_spill] sm:$0xff] }
 0x244   :  { %4915 = vpow2.f32 %v4778_v47  ;;  %v10234_v47 = vld [vmem:[#allocation138_spill] sm:$0xff] }
 0x245   :  { %4917 = vpow2.f32 %v4779_v53  ;;  %v10236_v53 = vld [vmem:[#allocation140_spill] sm:$0xff] }
 0x24c   :  { %v4912_v51 = vpop.eup %4911 }
 0x24d   :  { %v1092_v60 = vmul.f32 %v4912_v51, %v4910_v49 }
 0x24f   :  { %v4914_v59 = vpop.eup %4913  ;;  %1355 = vmatmul.mubr.f32.vlgmr.msra.gmra.mxu0 %v1092_v60  ;;  %1426 = vmatmul.mubr.f32.vlgmr.msra.gmra.mxu1 %v1092_v60  ;;  %v10237_v60 = vld [vmem:[#allocation141_spill] sm:$0xff] }
 0x250   :  { %v1262_v14 = vadd.f32 1.0, %v4914_v59  ;;  %1433 = vmatpush1.msra.mxu0 %v10198_v63  ;;  %1504 = vmatpush1.msra.mxu1 %v10199_v3  ;;  %v10238_v59 = vld [vmem:[#allocation142_spill] sm:$0xff]  ;;  %v10240_v63 = vld [vmem:[#allocation144_spill] sm:$0xff]  ;;  %v10241_v3 = vld [vmem:[#allocation145_spill] sm:$0xff] }
 0x251   :  { %v4916_v54 = vpop.eup %4915  ;;  %1434 = vmatprep.subr.mxu0 %v10200_v55  ;;  %1505 = vmatprep.subr.mxu1 %v10201_v52  ;;  %v10243_v55 = vld [vmem:[#allocation147_spill] sm:$0xff]  ;;  %v10245_v52 = vld [vmem:[#allocation149_spill] sm:$0xff] }
 0x252   :  { %4919 = vrcp.f32 %v1262_v14  ;;  %v1271_v11 = vadd.f32 1.0, %v4916_v54  ;;  %1435 = vmatpush1.msra.mxu0 %v10202_v62  ;;  %1506 = vmatpush1.msra.mxu1 %v10203_v4  ;;  %v4918_v32 = vpop.eup %4917  ;;  %v10242_v54 = vld [vmem:[#allocation146_spill] sm:$0xff]  ;;  %v10247_v62 = vld [vmem:[#allocation151_spill] sm:$0xff]  ;;  %v10248_v4 = vld [vmem:[#allocation152_spill] sm:$0xff] }
 0x253   :  { %4921 = vtanh.f32 %v1274_v6  ;;  %1436 = vmatprep.subr.mxu0 %v10204_v57  ;;  %1507 = vmatprep.subr.mxu1 %v10205_v5  ;;  %v1282_v44 = vadd.f32 1.0, %v4918_v32  ;;  %v10239_v6 = vld [vmem:[#allocation143_spill] sm:$0xff]  ;;  %v10249_v57 = vld [vmem:[#allocation153_spill] sm:$0xff]  ;;  %v10250_v5 = vld [vmem:[#allocation154_spill] sm:$0xff] }
 0x254   :  { %4923 = vrcp.f32 %v1271_v11  ;;  %1437 = vmatpush1.msra.mxu0 %v10206_v50  ;;  %1508 = vmatpush1.msra.mxu1 %v10207_v7  ;;  %v10246_v11 = vld [vmem:[#allocation150_spill] sm:$0xff]  ;;  %v10251_v50 = vld [vmem:[#allocation155_spill] sm:$0xff]  ;;  %v10252_v7 = vld [vmem:[#allocation156_spill] sm:$0xff] }
 0x255   :  { %1438 = vmatprep.subr.mxu0 %v10208_v10  ;;  %1509 = vmatprep.subr.mxu1 %v10209_v15  ;;  %4925 = vrcp.f32 %v1282_v44  ;;  %v10253_v10 = vld [vmem:[#allocation157_spill] sm:$0xff]  ;;  %v10254_v15 = vld [vmem:[#allocation158_spill] sm:$0xff] }
 0x256   :  { %1439 = vmatpush1.msra.mxu0 %v10210_v16  ;;  %1510 = vmatpush1.msra.mxu1 %v10211_v17  ;;  %v10255_v16 = vld [vmem:[#allocation159_spill] sm:$0xff]  ;;  %v10256_v17 = vld [vmem:[#allocation160_spill] sm:$0xff]  ;;  %v6823_v32 = vld [vmem:[#allocation3 + $0x1a8] sm:$0xff] }
 0x257   :  { %1440 = vmatprep.subr.mxu0 %v10212_v19  ;;  %1511 = vmatprep.subr.mxu1 %v10213_v20  ;;  %v10257_v19 = vld [vmem:[#allocation161_spill] sm:$0xff]  ;;  %v10258_v20 = vld [vmem:[#allocation162_spill] sm:$0xff] }
 0x258   :  { %1441 = vmatpush1.msra.mxu0 %v10214_v21  ;;  %1512 = vmatpush1.msra.mxu1 %v10215_v22  ;;  %v10259_v21 = vld [vmem:[#allocation163_spill] sm:$0xff]  ;;  %v6795_v22 = vld [vmem:[#allocation3 + $0x1e8] sm:$0xff]  ;;  %v6853_v44 = vld [vmem:[#allocation3 + $0x160] sm:$0xff] }
 0x259   :  { %1442 = vmatprep.subr.mxu0 %v10216_v23  ;;  %1513 = vmatprep.subr.mxu1 %v10217_v24  ;;  %v6798_v23 = vld [vmem:[#allocation3 + $0x1f8] sm:$0xff] }
 0x25a   :  { %1443 = vmatpush1.msra.mxu0 %v10218_v25  ;;  %1514 = vmatpush1.msra.mxu1 %v10219_v26 }
 0x25b   :  { %1444 = vmatprep.subr.mxu0 %v10220_v27  ;;  %1515 = vmatprep.subr.mxu1 %v10221_v28  ;;  %v6805_v27 = vld [vmem:[#allocation3 + $0x1e0] sm:$0xff]  ;;  %v6808_v28 = vld [vmem:[#allocation3 + $0x1f0] sm:$0xff] }
 0x25c   :  { %1445 = vmatpush1.msra.mxu0 %v10222_v29  ;;  %1516 = vmatpush1.msra.mxu1 %v10223_v30  ;;  %v6811_v29 = vld [vmem:[#allocation3 + $0x1c8] sm:$0xff]  ;;  %v6814_v30 = vld [vmem:[#allocation3 + $0x1d8] sm:$0xff] }
 0x25d   :  { %1446 = vmatprep.subr.mxu0 %v10224_v0  ;;  %1517 = vmatprep.subr.mxu1 %v10225_v31  ;;  %v6817_v0 = vld [vmem:[#allocation3 + $0x1c0] sm:$0xff]  ;;  %v6820_v31 = vld [vmem:[#allocation3 + $0x1d0] sm:$0xff] }
 0x25e   :  { %1447 = vmatpush1.msra.mxu0 %v10226_v33  ;;  %1518 = vmatpush1.msra.mxu1 %v10227_v34  ;;  %v6826_v33 = vld [vmem:[#allocation3 + $0x1b8] sm:$0xff]  ;;  %v6829_v34 = vld [vmem:[#allocation3 + $0x1a0] sm:$0xff] }
 0x25f   :  { %v4920_v36 = vpop.eup %4919  ;;  %1448 = vmatprep.subr.mxu0 %v10228_v37  ;;  %1519 = vmatprep.subr.mxu1 %v10229_v38  ;;  %v6835_v37 = vld [vmem:[#allocation3 + $0x188] sm:$0xff]  ;;  %v6838_v38 = vld [vmem:[#allocation3 + $0x198] sm:$0xff] }
 0x260   :  { %v4922_v39 = vpop.eup %4921  ;;  %1449 = vmatpush1.msra.mxu0 %v10230_v40  ;;  %1520 = vmatpush1.msra.mxu1 %v10231_v41  ;;  %v6844_v40 = vld [vmem:[#allocation3 + $0x190] sm:$0xff]  ;;  %v6847_v41 = vld [vmem:[#allocation3 + $0x168] sm:$0xff] }
 0x261   :  { %v4924_v43 = vpop.eup %4923  ;;  %1450 = vmatprep.subr.mxu0 %v10232_v45  ;;  %1521 = vmatprep.subr.mxu1 %v10233_v46  ;;  %v1286_v51 = vmul.f32 %v4922_v39, %v4920_v36  ;;  %v6832_v36 = vld [vmem:[#allocation3 + $0x1b0] sm:$0xff]  ;;  %v6841_v39 = vld [vmem:[#allocation3 + $0x180] sm:$0xff]  ;;  %v6859_v46 = vld [vmem:[#allocation3 + $0x148] sm:$0xff] }
 0x262   :  { %1451 = vmatpush1.msra.mxu0 %v10234_v47  ;;  %1522 = vmatpush1.msra.mxu1 %v10235_v48  ;;  %v1285_v49 = vmul.f32 %v4924_v43, %v6555_v2  ;;  %v10244_v2 = vld [vmem:[#allocation148_spill] sm:$0xff]  ;;  %v4926_v24 = vpop.eup %4925  ;;  %v6856_v45 = vld [vmem:[#allocation3 + $0x170] sm:$0xff] }
 0x263   :  { %1452 = vmatprep.subr.mxu0 %v10236_v53  ;;  %1523 = vmatprep.subr.mxu1 %v10237_v60  ;;  %v6850_v43 = vld [vmem:[#allocation3 + $0x178] sm:$0xff]  ;;  %v6865_v48 = vld [vmem:[#allocation3 + $0x140] sm:$0xff] }
 0x264   :  { %1453 = vmatpush1.msra.mxu0 %v10238_v59  ;;  %1524 = vmatpush1.msra.mxu1 %v10239_v6  ;;  %v6770_v14 = vadd.f32 %v1286_v51, %v1285_v49  ;;  %v6862_v47 = vld [vmem:[#allocation3 + $0x158] sm:$0xff]  ;;  %v6868_v49 = vld [vmem:[#allocation3 + $0x150] sm:$0xff]  ;;  %v6871_v51 = vld [vmem:[#allocation3 + $0x128] sm:$0xff] }
 0x265   :  { %1454 = vmatprep.subr.mxu0 %v10240_v63  ;;  %1525 = vmatprep.subr.mxu1 %v10241_v3  ;;  %v6874_v53 = vld [vmem:[#allocation3 + $0x138] sm:$0xff]  ;;  %v6877_v60 = vld [vmem:[#allocation3 + $0x120] sm:$0xff]  ;;  %v6880_v59 = vld [vmem:[#allocation3 + $0x130] sm:$0xff] }
 0x266   :  { %1455 = vmatpush1.msra.mxu0 %v10242_v54  ;;  %1526 = vmatpush1.msra.mxu1 %v10243_v55  ;;  %4927 = vtanh.f32 %v6770_v14  ;;  %v6883_v6 = vld [vmem:[#allocation3 + $0x108] sm:$0xff]  ;;  %v6886_v63 = vld [vmem:[#allocation3 + $0x118] sm:$0xff]  ;;  %v6889_v3 = vld [vmem:[#allocation3 + $0x100] sm:$0xff] }
 0x267   :  { %1456 = vmatprep.subr.mxu0 %v10244_v2  ;;  %1527 = vmatprep.subr.mxu1 %v10245_v52  ;;  %v6892_v54 = vld [vmem:[#allocation3 + $0x110] sm:$0xff]  ;;  %v6895_v55 = vld [vmem:[#allocation3 + $0xe8] sm:$0xff]  ;;  %v6898_v2 = vld [vmem:[#allocation3 + $0xf8] sm:$0xff] }
 0x268   :  { %1457 = vmatpush1.msra.mxu0 %v10246_v11  ;;  %1528 = vmatpush1.msra.mxu1 %v10247_v62  ;;  %v6901_v52 = vld [vmem:[#allocation3 + $0xe0] sm:$0xff]  ;;  %v6904_v11 = vld [vmem:[#allocation3 + $0xf0] sm:$0xff]  ;;  %v6907_v62 = vld [vmem:[#allocation3 + $0xc8] sm:$0xff] }
 0x269   :  { %1458 = vmatprep.subr.mxu0 %v10248_v4  ;;  %1529 = vmatprep.subr.mxu1 %v10249_v57  ;;  %10260 = vst [vmem:[#allocation13_spill] sm:$0xff] %v6901_v52  ;;  %10261 = vst [vmem:[#allocation18_spill] sm:$0xff] %v6904_v11  ;;  %v6910_v4 = vld [vmem:[#allocation3 + $0xd8] sm:$0xff]  ;;  %v6913_v57 = vld [vmem:[#allocation3 + $0xc0] sm:$0xff] }
 0x26a   :  { %1459 = vmatpush1.msra.mxu0 %v10250_v5  ;;  %1530 = vmatpush1.msra.mxu1 %v10251_v50  ;;  %10262 = vst [vmem:[#allocation14_spill] sm:$0xff] %v6907_v62  ;;  %10263 = vst [vmem:[#allocation20_spill] sm:$0xff] %v6910_v4  ;;  %v6916_v5 = vld [vmem:[#allocation3 + $0xd0] sm:$0xff]  ;;  %v6919_v50 = vld [vmem:[#allocation3 + $0xa8] sm:$0xff] }
 0x26b   :  { %1460 = vmatprep.subr.mxu0 %v10252_v7  ;;  %1531 = vmatprep.subr.mxu1 %v10253_v10  ;;  %10264 = vst [vmem:[#allocation15_spill] sm:$0xff] %v6913_v57  ;;  %10265 = vst [vmem:[#allocation22_spill] sm:$0xff] %v6916_v5  ;;  %v6922_v7 = vld [vmem:[#allocation3 + $0xb8] sm:$0xff]  ;;  %v6925_v10 = vld [vmem:[#allocation3 + $0xa0] sm:$0xff] }
 0x26c   :  { %1461 = vmatpush1.msra.mxu0 %v10254_v15  ;;  %1532 = vmatpush1.msra.mxu1 %v10255_v16  ;;  %10266 = vst [vmem:[#allocation17_spill] sm:$0xff] %v6919_v50  ;;  %10267 = vst [vmem:[#allocation24_spill] sm:$0xff] %v6922_v7  ;;  %v6928_v15 = vld [vmem:[#allocation3 + $0xb0] sm:$0xff]  ;;  %v6931_v16 = vld [vmem:[#allocation3 + $0x88] sm:$0xff] }
 0x26d   :  { %1462 = vmatprep.subr.mxu0 %v10256_v17  ;;  %1533 = vmatprep.subr.mxu1 %v10257_v19  ;;  %10268 = vst [vmem:[#allocation19_spill] sm:$0xff] %v6925_v10  ;;  %10269 = vst [vmem:[#allocation26_spill] sm:$0xff] %v6928_v15  ;;  %v6934_v17 = vld [vmem:[#allocation3 + $0x98] sm:$0xff]  ;;  %v6937_v19 = vld [vmem:[#allocation3 + $0x80] sm:$0xff] }
 0x26e   :  { %1463 = vmatpush1.msra.mxu0 %v10258_v20  ;;  %1534 = vmatpush1.msra.mxu1 %v10259_v21  ;;  %10270 = vst [vmem:[#allocation21_spill] sm:$0xff] %v6931_v16  ;;  %10271 = vst [vmem:[#allocation28_spill] sm:$0xff] %v6934_v17  ;;  %v6940_v20 = vld [vmem:[#allocation3 + $0x90] sm:$0xff]  ;;  %v6943_v21 = vld [vmem:[#allocation3 + $0x68] sm:$0xff] }
 0x26f   :  { %1496 = vmatprep.mubr.f32.mxu0 %v10124_v35  ;;  %1567 = vmatprep.mubr.f32.mxu1 %v10124_v35  ;;  %10272 = vst [vmem:[#allocation23_spill] sm:$0xff] %v6937_v19  ;;  %10273 = vst [vmem:[#allocation30_spill] sm:$0xff] %v6940_v20 }
 0x270   :  { %1603 = vmatprep.subr.mxu0 %v6795_v22  ;;  %1674 = vmatprep.subr.mxu1 %v6798_v23  ;;  %10274 = vst [vmem:[#allocation25_spill] sm:$0xff] %v6943_v21 }
 0x273   :  { %v4928_v25 = vpop.eup %4927 }
 0x274   :  { %v6801_v26 = vmul.f32 %v4928_v25, %v4926_v24  ;;  %v6946_v24 = vld [vmem:[#allocation3 + $0x78] sm:$0xff]  ;;  %v6949_v25 = vld [vmem:[#allocation3 + $0x60] sm:$0xff] }
 0x275   :  { %10275 = vst [vmem:[#allocation32_spill] sm:$0xff] %v6946_v24  ;;  %10276 = vst [vmem:[#allocation27_spill] sm:$0xff] %v6949_v25 }
 0x276   :  { %1497 = vmatmul.mubr.f32.vlgmr.msra.gmra.mxu0 %v6801_v26  ;;  %1568 = vmatmul.mubr.f32.vlgmr.msra.gmra.mxu1 %v6801_v26 }
 0x277   :  { %1604 = vmatpush1.msra.mxu0 %v6805_v27  ;;  %1675 = vmatpush1.msra.mxu1 %v6808_v28 }
 0x278   :  { %1605 = vmatprep.subr.mxu0 %v6811_v29  ;;  %1676 = vmatprep.subr.mxu1 %v6814_v30 }
 0x279   :  { %1606 = vmatpush1.msra.mxu0 %v6817_v0  ;;  %1677 = vmatpush1.msra.mxu1 %v6820_v31 }
 0x27a   :  { %1607 = vmatprep.subr.mxu0 %v6823_v32  ;;  %1678 = vmatprep.subr.mxu1 %v6826_v33 }
 0x27b   :  { %1608 = vmatpush1.msra.mxu0 %v6829_v34  ;;  %1679 = vmatpush1.msra.mxu1 %v6832_v36 }
 0x27c   :  { %1609 = vmatprep.subr.mxu0 %v6835_v37  ;;  %1680 = vmatprep.subr.mxu1 %v6838_v38 }
 0x27d   :  { %1610 = vmatpush1.msra.mxu0 %v6841_v39  ;;  %1681 = vmatpush1.msra.mxu1 %v6844_v40 }
 0x27e   :  { %1611 = vmatprep.subr.mxu0 %v6847_v41  ;;  %1682 = vmatprep.subr.mxu1 %v6850_v43 }
 0x27f   :  { %1612 = vmatpush1.msra.mxu0 %v6853_v44  ;;  %1683 = vmatpush1.msra.mxu1 %v6856_v45 }
 0x280   :  { %1613 = vmatprep.subr.mxu0 %v6859_v46  ;;  %1684 = vmatprep.subr.mxu1 %v6862_v47 }
 0x281   :  { %1614 = vmatpush1.msra.mxu0 %v6865_v48  ;;  %1685 = vmatpush1.msra.mxu1 %v6868_v49 }
 0x282   :  { %1615 = vmatprep.subr.mxu0 %v6871_v51  ;;  %1686 = vmatprep.subr.mxu1 %v6874_v53 }
 0x283   :  { %1616 = vmatpush1.msra.mxu0 %v6877_v60  ;;  %1687 = vmatpush1.msra.mxu1 %v6880_v59 }
 0x284   :  { %1617 = vmatprep.subr.mxu0 %v6883_v6  ;;  %1688 = vmatprep.subr.mxu1 %v6886_v63 }
 0x285   :  { %1618 = vmatpush1.msra.mxu0 %v6889_v3  ;;  %1689 = vmatpush1.msra.mxu1 %v6892_v54 }
 0x286   :  { %1619 = vmatprep.subr.mxu0 %v6895_v55  ;;  %1690 = vmatprep.subr.mxu1 %v6898_v2 }
 0x287   :  { %1620 = vmatpush1.msra.mxu0 %v6901_v52  ;;  %1691 = vmatpush1.msra.mxu1 %v6904_v11 }
 0x288   :  { %1621 = vmatprep.subr.mxu0 %v6907_v62  ;;  %1692 = vmatprep.subr.mxu1 %v6910_v4 }
 0x289   :  { %1622 = vmatpush1.msra.mxu0 %v6913_v57  ;;  %1693 = vmatpush1.msra.mxu1 %v6916_v5 }
 0x28a   :  { %1623 = vmatprep.subr.mxu0 %v6919_v50  ;;  %1694 = vmatprep.subr.mxu1 %v6922_v7 }
 0x28b   :  { %1624 = vmatpush1.msra.mxu0 %v6925_v10  ;;  %1695 = vmatpush1.msra.mxu1 %v6928_v15 }
 0x28c   :  { %1625 = vmatprep.subr.mxu0 %v6931_v16  ;;  %1696 = vmatprep.subr.mxu1 %v6934_v17 }
 0x28d   :  { %1626 = vmatpush1.msra.mxu0 %v6937_v19  ;;  %1697 = vmatpush1.msra.mxu1 %v6940_v20  ;;  %v6958_v20 = vld [vmem:[#allocation3 + $0x58] sm:$0xff] }
 0x28e   :  { %1627 = vmatprep.subr.mxu0 %v6943_v21  ;;  %1698 = vmatprep.subr.mxu1 %v6946_v24  ;;  %10279 = vst [vmem:[#allocation34_spill] sm:$0xff] %v6958_v20  ;;  %v6961_v21 = vld [vmem:[#allocation3 + $0x40] sm:$0xff]  ;;  %v6964_v24 = vld [vmem:[#allocation3 + $0x50] sm:$0xff] }
 0x28f   :  { %1628 = vmatpush1.msra.mxu0 %v6949_v25  ;;  %1699 = vmatpush1.msra.mxu1 %v6952_v9  ;;  %10280 = vst [vmem:[#allocation31_spill] sm:$0xff] %v6961_v21  ;;  %10281 = vst [vmem:[#allocation35_spill] sm:$0xff] %v6964_v24  ;;  %v6967_v25 = vld [vmem:[#allocation3 + $0x28] sm:$0xff]  ;;  %v6970_v9 = vld [vmem:[#allocation3 + $0x38] sm:$0xff] }
 0x290   :  { %1629 = vmatprep.subr.mxu0 %v6955_v58  ;;  %1700 = vmatprep.subr.mxu1 %v6958_v20  ;;  %10282 = vst [vmem:[#allocation36_spill] sm:$0xff] %v6967_v25  ;;  %10283 = vst [vmem:[#allocation37_spill] sm:$0xff] %v6970_v9  ;;  %v6973_v58 = vld [vmem:[#allocation3 + $0x20] sm:$0xff]  ;;  %v6976_v20 = vld [vmem:[#allocation3 + $0x30] sm:$0xff] }
 0x291   :  { %1630 = vmatpush1.msra.mxu0 %v6961_v21  ;;  %1701 = vmatpush1.msra.mxu1 %v6964_v24  ;;  %10284 = vst [vmem:[#allocation38_spill] sm:$0xff] %v6973_v58  ;;  %10285 = vst [vmem:[#allocation39_spill] sm:$0xff] %v6976_v20  ;;  %v6979_v21 = vld [vmem:[#allocation3 + $0x8] sm:$0xff]  ;;  %v6982_v24 = vld [vmem:[#allocation3 + $0x18] sm:$0xff] }
 0x292   :  { %1631 = vmatprep.subr.mxu0 %v6967_v25  ;;  %1702 = vmatprep.subr.mxu1 %v6970_v9  ;;  %10286 = vst [vmem:[#allocation40_spill] sm:$0xff] %v6979_v21  ;;  %10287 = vst [vmem:[#allocation41_spill] sm:$0xff] %v6982_v24  ;;  %v6985_v25 = vld [vmem:[#allocation3] sm:$0xff]  ;;  %v6989_v9 = vld [vmem:[#allocation3 + $0x10] sm:$0xff] }
 0x293   :  { %1632 = vmatpush1.msra.mxu0 %v6973_v58  ;;  %1703 = vmatpush1.msra.mxu1 %v6976_v20  ;;  %10288 = vst [vmem:[#allocation42_spill] sm:$0xff] %v6985_v25  ;;  %10289 = vst [vmem:[#allocation43_spill] sm:$0xff] %v6989_v9  ;;  %v7004_v20 = vld [vmem:[#allocation8 + $0x1f0] sm:$0xff] }
 0x294   :  { %1633 = vmatprep.subr.mxu0 %v6979_v21  ;;  %1704 = vmatprep.subr.mxu1 %v6982_v24  ;;  %v6995_v21 = vld [vmem:[#allocation8 + $0x1e8] sm:$0xff]  ;;  %v6998_v24 = vld [vmem:[#allocation8 + $0x1f8] sm:$0xff]  ;;  %10293 = vst [vmem:[#allocation47_spill] sm:$0xff] %v7004_v20 }
 0x295   :  { %1634 = vmatpush1.msra.mxu0 %v6985_v25  ;;  %1667 = vmatprep.mubr.f32.mxu0 %v10124_v35  ;;  %10290 = vst [vmem:[#allocation44_spill] sm:$0xff] %v6995_v21  ;;  %10291 = vst [vmem:[#allocation45_spill] sm:$0xff] %v6998_v24  ;;  %v7001_v25 = vld [vmem:[#allocation8 + $0x1e0] sm:$0xff] }
 0x296   :  { %1705 = vmatpush1.msra.mxu1 %v6989_v9  ;;  %1738 = vmatprep.mubr.f32.mxu1 %v10124_v35  ;;  %10292 = vst [vmem:[#allocation46_spill] sm:$0xff] %v7001_v25  ;;  %v7007_v9 = vld [vmem:[#allocation8 + $0x1c8] sm:$0xff] }
 0x297   :  { %1668 = vmatmul.mubr.f32.vlgmr.msra.gmra.mxu0 %v6801_v26  ;;  %1739 = vmatmul.mubr.f32.vlgmr.msra.gmra.mxu1 %v6801_v26  ;;  %10294 = vst [vmem:[#allocation48_spill] sm:$0xff] %v7007_v9  ;;  %v7010_v26 = vld [vmem:[#allocation8 + $0x1d8] sm:$0xff] }
 0x298   :  { %1799 = vmatprep.subr.mxu0 %v6995_v21  ;;  %1870 = vmatprep.subr.mxu1 %v6998_v24  ;;  %10295 = vst [vmem:[#allocation49_spill] sm:$0xff] %v7010_v26  ;;  %v7013_v21 = vld [vmem:[#allocation8 + $0x1c0] sm:$0xff]  ;;  %v7016_v24 = vld [vmem:[#allocation8 + $0x1d0] sm:$0xff] }
 0x299   :  { %1800 = vmatpush1.msra.mxu0 %v7001_v25  ;;  %1871 = vmatpush1.msra.mxu1 %v7004_v20  ;;  %10296 = vst [vmem:[#allocation50_spill] sm:$0xff] %v7013_v21  ;;  %10297 = vst [vmem:[#allocation51_spill] sm:$0xff] %v7016_v24  ;;  %v7019_v25 = vld [vmem:[#allocation8 + $0x1a8] sm:$0xff]  ;;  %v7022_v20 = vld [vmem:[#allocation8 + $0x1b8] sm:$0xff] }
 0x29a   :  { %1801 = vmatprep.subr.mxu0 %v7007_v9  ;;  %1872 = vmatprep.subr.mxu1 %v7010_v26  ;;  %10298 = vst [vmem:[#allocation52_spill] sm:$0xff] %v7019_v25  ;;  %10299 = vst [vmem:[#allocation53_spill] sm:$0xff] %v7022_v20  ;;  %v7025_v9 = vld [vmem:[#allocation8 + $0x1a0] sm:$0xff]  ;;  %v7028_v26 = vld [vmem:[#allocation8 + $0x1b0] sm:$0xff] }
 0x29b   :  { %1802 = vmatpush1.msra.mxu0 %v7013_v21  ;;  %1873 = vmatpush1.msra.mxu1 %v7016_v24  ;;  %10300 = vst [vmem:[#allocation54_spill] sm:$0xff] %v7025_v9  ;;  %10301 = vst [vmem:[#allocation55_spill] sm:$0xff] %v7028_v26  ;;  %v7031_v21 = vld [vmem:[#allocation8 + $0x188] sm:$0xff]  ;;  %v7034_v24 = vld [vmem:[#allocation8 + $0x198] sm:$0xff] }
 0x29c   :  { %1803 = vmatprep.subr.mxu0 %v7019_v25  ;;  %1874 = vmatprep.subr.mxu1 %v7022_v20  ;;  %10302 = vst [vmem:[#allocation56_spill] sm:$0xff] %v7031_v21  ;;  %10303 = vst [vmem:[#allocation57_spill] sm:$0xff] %v7034_v24  ;;  %v7037_v25 = vld [vmem:[#allocation8 + $0x180] sm:$0xff]  ;;  %v7040_v20 = vld [vmem:[#allocation8 + $0x190] sm:$0xff] }
 0x29d   :  { %1804 = vmatpush1.msra.mxu0 %v7025_v9  ;;  %1875 = vmatpush1.msra.mxu1 %v7028_v26  ;;  %10304 = vst [vmem:[#allocation58_spill] sm:$0xff] %v7037_v25  ;;  %10305 = vst [vmem:[#allocation59_spill] sm:$0xff] %v7040_v20  ;;  %v7043_v9 = vld [vmem:[#allocation8 + $0x168] sm:$0xff]  ;;  %v7046_v26 = vld [vmem:[#allocation8 + $0x178] sm:$0xff] }
 0x29e   :  { %1805 = vmatprep.subr.mxu0 %v7031_v21  ;;  %1876 = vmatprep.subr.mxu1 %v7034_v24  ;;  %10306 = vst [vmem:[#allocation60_spill] sm:$0xff] %v7043_v9  ;;  %10307 = vst [vmem:[#allocation61_spill] sm:$0xff] %v7046_v26  ;;  %v7049_v21 = vld [vmem:[#allocation8 + $0x160] sm:$0xff]  ;;  %v7052_v24 = vld [vmem:[#allocation8 + $0x170] sm:$0xff] }
 0x29f   :  { %1806 = vmatpush1.msra.mxu0 %v7037_v25  ;;  %1877 = vmatpush1.msra.mxu1 %v7040_v20  ;;  %10308 = vst [vmem:[#allocation62_spill] sm:$0xff] %v7049_v21  ;;  %10309 = vst [vmem:[#allocation63_spill] sm:$0xff] %v7052_v24  ;;  %v7055_v25 = vld [vmem:[#allocation8 + $0x148] sm:$0xff]  ;;  %v7058_v20 = vld [vmem:[#allocation8 + $0x158] sm:$0xff] }
 0x2a0   :  { %1807 = vmatprep.subr.mxu0 %v7043_v9  ;;  %1878 = vmatprep.subr.mxu1 %v7046_v26  ;;  %10310 = vst [vmem:[#allocation64_spill] sm:$0xff] %v7055_v25  ;;  %10311 = vst [vmem:[#allocation65_spill] sm:$0xff] %v7058_v20  ;;  %v7061_v9 = vld [vmem:[#allocation8 + $0x140] sm:$0xff]  ;;  %v7064_v26 = vld [vmem:[#allocation8 + $0x150] sm:$0xff] }
 0x2a1   :  { %1808 = vmatpush1.msra.mxu0 %v7049_v21  ;;  %1879 = vmatpush1.msra.mxu1 %v7052_v24  ;;  %10312 = vst [vmem:[#allocation66_spill] sm:$0xff] %v7061_v9  ;;  %10313 = vst [vmem:[#allocation67_spill] sm:$0xff] %v7064_v26  ;;  %v7067_v21 = vld [vmem:[#allocation8 + $0x128] sm:$0xff]  ;;  %v7070_v24 = vld [vmem:[#allocation8 + $0x138] sm:$0xff] }
 0x2a2   :  { %1809 = vmatprep.subr.mxu0 %v7055_v25  ;;  %1880 = vmatprep.subr.mxu1 %v7058_v20  ;;  %10314 = vst [vmem:[#allocation68_spill] sm:$0xff] %v7067_v21  ;;  %10315 = vst [vmem:[#allocation69_spill] sm:$0xff] %v7070_v24  ;;  %v7073_v25 = vld [vmem:[#allocation8 + $0x120] sm:$0xff]  ;;  %v7076_v20 = vld [vmem:[#allocation8 + $0x130] sm:$0xff] }
 0x2a3   :  { %1810 = vmatpush1.msra.mxu0 %v7061_v9  ;;  %1881 = vmatpush1.msra.mxu1 %v7064_v26  ;;  %10316 = vst [vmem:[#allocation70_spill] sm:$0xff] %v7073_v25  ;;  %10317 = vst [vmem:[#allocation71_spill] sm:$0xff] %v7076_v20  ;;  %v7079_v9 = vld [vmem:[#allocation8 + $0x108] sm:$0xff]  ;;  %v7082_v26 = vld [vmem:[#allocation8 + $0x118] sm:$0xff] }
 0x2a4   :  { %1811 = vmatprep.subr.mxu0 %v7067_v21  ;;  %1882 = vmatprep.subr.mxu1 %v7070_v24  ;;  %10318 = vst [vmem:[#allocation72_spill] sm:$0xff] %v7079_v9  ;;  %10319 = vst [vmem:[#allocation73_spill] sm:$0xff] %v7082_v26  ;;  %v7085_v21 = vld [vmem:[#allocation8 + $0x100] sm:$0xff]  ;;  %v7088_v24 = vld [vmem:[#allocation8 + $0x110] sm:$0xff] }
 0x2a5   :  { %1812 = vmatpush1.msra.mxu0 %v7073_v25  ;;  %1883 = vmatpush1.msra.mxu1 %v7076_v20  ;;  %10320 = vst [vmem:[#allocation74_spill] sm:$0xff] %v7085_v21  ;;  %10321 = vst [vmem:[#allocation75_spill] sm:$0xff] %v7088_v24  ;;  %v7091_v25 = vld [vmem:[#allocation8 + $0xe8] sm:$0xff]  ;;  %v7094_v20 = vld [vmem:[#allocation8 + $0xf8] sm:$0xff] }
 0x2a6   :  { %1813 = vmatprep.subr.mxu0 %v7079_v9  ;;  %1884 = vmatprep.subr.mxu1 %v7082_v26  ;;  %10322 = vst [vmem:[#allocation76_spill] sm:$0xff] %v7091_v25  ;;  %10323 = vst [vmem:[#allocation77_spill] sm:$0xff] %v7094_v20  ;;  %v7097_v9 = vld [vmem:[#allocation8 + $0xe0] sm:$0xff]  ;;  %v7100_v26 = vld [vmem:[#allocation8 + $0xf0] sm:$0xff] }
 0x2a7   :  { %1814 = vmatpush1.msra.mxu0 %v7085_v21  ;;  %1885 = vmatpush1.msra.mxu1 %v7088_v24  ;;  %10324 = vst [vmem:[#allocation78_spill] sm:$0xff] %v7097_v9  ;;  %10325 = vst [vmem:[#allocation79_spill] sm:$0xff] %v7100_v26  ;;  %v7103_v21 = vld [vmem:[#allocation8 + $0xc8] sm:$0xff]  ;;  %v7106_v24 = vld [vmem:[#allocation8 + $0xd8] sm:$0xff] }
 0x2a8   :  { %1815 = vmatprep.subr.mxu0 %v7091_v25  ;;  %1886 = vmatprep.subr.mxu1 %v7094_v20  ;;  %10326 = vst [vmem:[#allocation80_spill] sm:$0xff] %v7103_v21  ;;  %10327 = vst [vmem:[#allocation81_spill] sm:$0xff] %v7106_v24  ;;  %v7109_v25 = vld [vmem:[#allocation8 + $0xc0] sm:$0xff]  ;;  %v7112_v20 = vld [vmem:[#allocation8 + $0xd0] sm:$0xff] }
 0x2a9   :  { %1816 = vmatpush1.msra.mxu0 %v7097_v9  ;;  %1887 = vmatpush1.msra.mxu1 %v7100_v26  ;;  %10328 = vst [vmem:[#allocation82_spill] sm:$0xff] %v7109_v25  ;;  %10329 = vst [vmem:[#allocation83_spill] sm:$0xff] %v7112_v20  ;;  %v7115_v9 = vld [vmem:[#allocation8 + $0xa8] sm:$0xff]  ;;  %v7118_v26 = vld [vmem:[#allocation8 + $0xb8] sm:$0xff] }
 0x2aa   :  { %1817 = vmatprep.subr.mxu0 %v7103_v21  ;;  %1888 = vmatprep.subr.mxu1 %v7106_v24  ;;  %10330 = vst [vmem:[#allocation84_spill] sm:$0xff] %v7115_v9  ;;  %10331 = vst [vmem:[#allocation85_spill] sm:$0xff] %v7118_v26  ;;  %v7121_v21 = vld [vmem:[#allocation8 + $0xa0] sm:$0xff]  ;;  %v7124_v24 = vld [vmem:[#allocation8 + $0xb0] sm:$0xff] }
 0x2ab   :  { %1818 = vmatpush1.msra.mxu0 %v7109_v25  ;;  %1889 = vmatpush1.msra.mxu1 %v7112_v20  ;;  %10332 = vst [vmem:[#allocation86_spill] sm:$0xff] %v7121_v21  ;;  %10333 = vst [vmem:[#allocation87_spill] sm:$0xff] %v7124_v24  ;;  %v7127_v25 = vld [vmem:[#allocation8 + $0x88] sm:$0xff]  ;;  %v7130_v20 = vld [vmem:[#allocation8 + $0x98] sm:$0xff] }
 0x2ac   :  { %1819 = vmatprep.subr.mxu0 %v7115_v9  ;;  %1890 = vmatprep.subr.mxu1 %v7118_v26  ;;  %10334 = vst [vmem:[#allocation88_spill] sm:$0xff] %v7127_v25  ;;  %10335 = vst [vmem:[#allocation89_spill] sm:$0xff] %v7130_v20  ;;  %v7133_v9 = vld [vmem:[#allocation8 + $0x80] sm:$0xff]  ;;  %v7136_v26 = vld [vmem:[#allocation8 + $0x90] sm:$0xff] }
 0x2ad   :  { %1820 = vmatpush1.msra.mxu0 %v7121_v21  ;;  %1891 = vmatpush1.msra.mxu1 %v7124_v24  ;;  %10336 = vst [vmem:[#allocation90_spill] sm:$0xff] %v7133_v9  ;;  %10337 = vst [vmem:[#allocation91_spill] sm:$0xff] %v7136_v26  ;;  %v7139_v21 = vld [vmem:[#allocation8 + $0x68] sm:$0xff]  ;;  %v7142_v24 = vld [vmem:[#allocation8 + $0x78] sm:$0xff] }
 0x2ae   :  { %1821 = vmatprep.subr.mxu0 %v7127_v25  ;;  %1892 = vmatprep.subr.mxu1 %v7130_v20  ;;  %10338 = vst [vmem:[#allocation92_spill] sm:$0xff] %v7139_v21  ;;  %10339 = vst [vmem:[#allocation93_spill] sm:$0xff] %v7142_v24  ;;  %v7145_v25 = vld [vmem:[#allocation8 + $0x60] sm:$0xff]  ;;  %v7148_v20 = vld [vmem:[#allocation8 + $0x70] sm:$0xff] }
 0x2af   :  { %1822 = vmatpush1.msra.mxu0 %v7133_v9  ;;  %1893 = vmatpush1.msra.mxu1 %v7136_v26  ;;  %10340 = vst [vmem:[#allocation94_spill] sm:$0xff] %v7145_v25  ;;  %10341 = vst [vmem:[#allocation95_spill] sm:$0xff] %v7148_v20  ;;  %v7151_v9 = vld [vmem:[#allocation8 + $0x48] sm:$0xff]  ;;  %v7154_v26 = vld [vmem:[#allocation8 + $0x58] sm:$0xff] }
 0x2b0   :  { %1823 = vmatprep.subr.mxu0 %v7139_v21  ;;  %1894 = vmatprep.subr.mxu1 %v7142_v24  ;;  %10342 = vst [vmem:[#allocation96_spill] sm:$0xff] %v7151_v9  ;;  %10343 = vst [vmem:[#allocation97_spill] sm:$0xff] %v7154_v26  ;;  %v7157_v21 = vld [vmem:[#allocation8 + $0x40] sm:$0xff]  ;;  %v7160_v24 = vld [vmem:[#allocation8 + $0x50] sm:$0xff] }
 0x2b1   :  { %1824 = vmatpush1.msra.mxu0 %v7145_v25  ;;  %1895 = vmatpush1.msra.mxu1 %v7148_v20  ;;  %10344 = vst [vmem:[#allocation98_spill] sm:$0xff] %v7157_v21  ;;  %10345 = vst [vmem:[#allocation99_spill] sm:$0xff] %v7160_v24  ;;  %v7163_v25 = vld [vmem:[#allocation8 + $0x28] sm:$0xff]  ;;  %v7166_v20 = vld [vmem:[#allocation8 + $0x38] sm:$0xff] }
 0x2b2   :  { %1825 = vmatprep.subr.mxu0 %v7151_v9  ;;  %1896 = vmatprep.subr.mxu1 %v7154_v26  ;;  %10346 = vst [vmem:[#allocation100_spill] sm:$0xff] %v7163_v25  ;;  %10347 = vst [vmem:[#allocation101_spill] sm:$0xff] %v7166_v20  ;;  %v7169_v9 = vld [vmem:[#allocation8 + $0x20] sm:$0xff]  ;;  %v7172_v26 = vld [vmem:[#allocation8 + $0x30] sm:$0xff] }
 0x2b3   :  { %1826 = vmatpush1.msra.mxu0 %v7157_v21  ;;  %1897 = vmatpush1.msra.mxu1 %v7160_v24  ;;  %10348 = vst [vmem:[#allocation102_spill] sm:$0xff] %v7169_v9  ;;  %10349 = vst [vmem:[#allocation103_spill] sm:$0xff] %v7172_v26  ;;  %v7175_v21 = vld [vmem:[#allocation8 + $0x8] sm:$0xff]  ;;  %v7178_v24 = vld [vmem:[#allocation8 + $0x18] sm:$0xff] }
 0x2b4   :  { %1827 = vmatprep.subr.mxu0 %v7163_v25  ;;  %1898 = vmatprep.subr.mxu1 %v7166_v20  ;;  %10350 = vst [vmem:[#allocation104_spill] sm:$0xff] %v7175_v21  ;;  %10351 = vst [vmem:[#allocation105_spill] sm:$0xff] %v7178_v24  ;;  %v7181_v25 = vld [vmem:[#allocation8] sm:$0xff]  ;;  %v7185_v20 = vld [vmem:[#allocation8 + $0x10] sm:$0xff] }
 0x2b5   :  { %1828 = vmatpush1.msra.mxu0 %v7169_v9  ;;  %1899 = vmatpush1.msra.mxu1 %v7172_v26  ;;  %10352 = vst [vmem:[#allocation106_spill] sm:$0xff] %v7181_v25  ;;  %10353 = vst [vmem:[#allocation107_spill] sm:$0xff] %v7185_v20  ;;  %v7189_v26 = vld [vmem:[#allocation6 + $0x1e8] sm:$0xff] }
 0x2b6   :  { %1829 = vmatprep.subr.mxu0 %v7175_v21  ;;  %1900 = vmatprep.subr.mxu1 %v7178_v24  ;;  %10354 = vst [vmem:[#allocation108_spill] sm:$0xff] %v7189_v26  ;;  %v7192_v21 = vld [vmem:[#allocation6 + $0x1f8] sm:$0xff] }
 0x2b7   :  { %1830 = vmatpush1.msra.mxu0 %v7181_v25  ;;  %1863 = vmatprep.mubr.f32.mxu0 %v10124_v35  ;;  %10355 = vst [vmem:[#allocation109_spill] sm:$0xff] %v7192_v21 }
 0x2b8   :  { %1901 = vmatpush1.msra.mxu1 %v7185_v20  ;;  %1934 = vmatprep.mubr.f32.mxu1 %v10124_v35 }
 0x2b9   :  { %1941 = vmatprep.subr.mxu0 %v7189_v26  ;;  %2012 = vmatprep.subr.mxu1 %v7192_v21 }
 0x30f   :  { %v1356_v24 = vpop.f32.mrf.mxu0  ;;  %v1427_v9 = vpop.f32.mrf.mxu1 }
 0x311   :  { %v1358_v58 = vpop.f32.mrf.mxu0  ;;  %v1429_v19 = vpop.f32.mrf.mxu1 }
 0x336   :  { %v1498_v25 = vpop.f32.mrf.mxu0  ;;  %v1569_v20 = vpop.f32.mrf.mxu1 }
 0x337   :  { %v1499_v17 = vadd.f32 %v1498_v25, %v1356_v24  ;;  %v1570_v4 = vadd.f32 %v1569_v20, %v1427_v9 }
 0x338   :  { %v1500_v16 = vpop.f32.mrf.mxu0  ;;  %v1571_v5 = vpop.f32.mrf.mxu1 }
 0x339   :  { %v1574_v15 = vadd.f32 %v1499_v17, %v6701_v8  ;;  %v1501_v10 = vadd.f32 %v1500_v16, %v1358_v58  ;;  %v1572_v57 = vadd.f32 %v1571_v5, %v1429_v19  ;;  %v1576_v24 = vadd.f32 %v1570_v4, %v6716_v18 }
 0x33b   :  { %v4780_v7 = vmul.f32 -1.442695, %v1574_v15  ;;  %v1575_v50 = vadd.f32 %v1501_v10, %v6705_v61  ;;  %v1577_v21 = vadd.f32 %v1572_v57, %v6711_v12 }
 0x33d   :  { %4929 = vpow2.f32 %v4780_v7  ;;  %v4781_v26 = vmul.f32 -1.442695, %v1575_v50  ;;  %v4782_v62 = vmul.f32 -1.442695, %v1577_v21 }
 0x33f   :  { %4931 = vpow2.f32 %v4781_v26 }
 0x340   :  { %4933 = vpow2.f32 %v4782_v62 }
 0x34a   :  { %v4930_v11 = vpop.eup %4929 }
 0x34b   :  { %v1581_v25 = vadd.f32 1.0, %v4930_v11 }
 0x34c   :  { %v4932_v52 = vpop.eup %4931 }
 0x34d   :  { %4935 = vrcp.f32 %v1581_v25  ;;  %v1587_v58 = vadd.f32 1.0, %v4932_v52  ;;  %v4934_v50 = vpop.eup %4933 }
 0x34e   :  { %4937 = vtanh.f32 %v1576_v24  ;;  %v1594_v20 = vadd.f32 1.0, %v4934_v50  ;;  %v10356_v24 = vcombine.low %v6517_v13, %v6523_v56 }
 0x34f   :  { %4939 = vrcp.f32 %v1587_v58 }
 0x350   :  { %4941 = vrcp.f32 %v1594_v20  ;;  %v7211_v20 = vld [vmem:[#allocation6 + $0x1f0] sm:$0xff] }
 0x357   :  { %v1669_v10 = vpop.f32.mrf.mxu0  ;;  %v1740_v7 = vpop.f32.mrf.mxu1 }
 0x359   :  { %v1671_v15 = vpop.f32.mrf.mxu0  ;;  %v1742_v16 = vpop.f32.mrf.mxu1 }
 0x35a   :  { %v4936_v5 = vpop.eup %4935  ;;  %v1749_v17 = vcombine.low %v1669_v10, %v1671_v15  ;;  %v1750_v57 = vcombine.low %v1740_v7, %v1742_v16 }
 0x35b   :  { %v4938_v9 = vpop.eup %4937 }
 0x35c   :  { %v4940_v19 = vpop.eup %4939  ;;  %v1757_v4 = vrot.slane %v1749_v17, %v6511_v1  ;;  %v1764_v11 = vrot.slane %v1750_v57, %v6511_v1  ;;  %v1598_v62 = vmul.f32 %v4938_v9, %v4936_v5 }
 0x35d   :  { %v1597_v52 = vmul.f32 %v4940_v19, %v6721_v42  ;;  %v4942_v15 = vpop.eup %4941  ;;  %v7208_v19 = vld [vmem:[#allocation6 + $0x1e0] sm:$0xff] }
 0x35e   :  { %v1765_v21 = vcombine.low %v1757_v4, %v1764_v11  ;;  %v7214_v11 = vld [vmem:[#allocation6 + $0x1c8] sm:$0xff] }
 0x35f   :  { %v7202_v26 = vadd.f32 %v1598_v62, %v1597_v52  ;;  %v7217_v62 = vld [vmem:[#allocation6 + $0x1d8] sm:$0xff] }
 0x360   :  { %v1767_v25 = vadd.f32 %v1765_v21, %v10356_v24  ;;  %v7220_v21 = vld [vmem:[#allocation6 + $0x1c0] sm:$0xff]  ;;  %v7223_v24 = vld [vmem:[#allocation6 + $0x1d0] sm:$0xff] }
 0x361   :  { %4943 = vtanh.f32 %v7202_v26 }
 0x362   :  { %v4783_v58 = vmul.f32 -1.442695, %v1767_v25  ;;  %v1775_v10 = vrot.slane %v1767_v25, 2  ;;  %v1786_v50 = vrot.slane %v1767_v25, 6  ;;  %v1783_v57 = vrot.slane %v1767_v25, 4  ;;  %v7226_v25 = vld [vmem:[#allocation6 + $0x1a8] sm:$0xff] }
 0x364   :  { %4945 = vpow2.f32 %v4783_v58  ;;  %v4784_v7 = vmul.f32 -1.442695, %v1775_v10  ;;  %v4785_v5 = vmul.f32 -1.442695, %v1786_v50  ;;  %v7229_v58 = vld [vmem:[#allocation6 + $0x1b8] sm:$0xff]  ;;  %v7232_v10 = vld [vmem:[#allocation6 + $0x1a0] sm:$0xff] }
 0x365   :  { %v7238_v50 = vld [vmem:[#allocation6 + $0x188] sm:$0xff] }
 0x366   :  { %4947 = vpow2.f32 %v4784_v7  ;;  %v7235_v7 = vld [vmem:[#allocation6 + $0x1b0] sm:$0xff]  ;;  %10358 = vst [vmem:[#allocation111_spill] sm:$0xff] %v7238_v50 }
 0x367   :  { %4949 = vpow2.f32 %v4785_v5  ;;  %10357 = vst [vmem:[#allocation110_spill] sm:$0xff] %v7235_v7  ;;  %v7247_v5 = vld [vmem:[#allocation6 + $0x190] sm:$0xff] }
 0x368   :  { %10361 = vst [vmem:[#allocation114_spill] sm:$0xff] %v7247_v5 }
 0x36e   :  { %v4944_v16 = vpop.eup %4943 }
 0x36f   :  { %v1601_v42 = vmul.f32 %v4944_v16, %v4942_v15  ;;  %v7241_v15 = vld [vmem:[#allocation6 + $0x198] sm:$0xff]  ;;  %v7244_v16 = vld [vmem:[#allocation6 + $0x180] sm:$0xff] }
 0x370   :  { %10359 = vst [vmem:[#allocation112_spill] sm:$0xff] %v7241_v15  ;;  %10360 = vst [vmem:[#allocation113_spill] sm:$0xff] %v7244_v16 }
 0x371   :  { %v4946_v17 = vpop.eup %4945  ;;  %1864 = vmatmul.mubr.f32.vlgmr.msra.gmra.mxu0 %v1601_v42  ;;  %1935 = vmatmul.mubr.f32.vlgmr.msra.gmra.mxu1 %v1601_v42  ;;  %v7250_v42 = vld [vmem:[#allocation6 + $0x168] sm:$0xff] }
 0x372   :  { %v1771_v9 = vadd.f32 1.0, %v4946_v17  ;;  %1942 = vmatpush1.msra.mxu0 %v7208_v19  ;;  %2013 = vmatpush1.msra.mxu1 %v7211_v20  ;;  %10362 = vst [vmem:[#allocation115_spill] sm:$0xff] %v7250_v42  ;;  %v7253_v17 = vld [vmem:[#allocation6 + $0x178] sm:$0xff] }
 0x373   :  { %v4948_v4 = vpop.eup %4947  ;;  %1943 = vmatprep.subr.mxu0 %v7214_v11  ;;  %2014 = vmatprep.subr.mxu1 %v7217_v62  ;;  %10363 = vst [vmem:[#allocation116_spill] sm:$0xff] %v7253_v17 }
 0x374   :  { %4951 = vrcp.f32 %v1771_v9  ;;  %v1780_v52 = vadd.f32 1.0, %v4948_v4  ;;  %1944 = vmatpush1.msra.mxu0 %v7220_v21  ;;  %2015 = vmatpush1.msra.mxu1 %v7223_v24  ;;  %v7259_v9 = vld [vmem:[#allocation6 + $0x170] sm:$0xff]  ;;  %v7262_v4 = vld [vmem:[#allocation6 + $0x148] sm:$0xff] }
 0x375   :  { %4953 = vtanh.f32 %v1783_v57  ;;  %1945 = vmatprep.subr.mxu0 %v7226_v25  ;;  %2016 = vmatprep.subr.mxu1 %v7229_v58  ;;  %v7256_v57 = vld [vmem:[#allocation6 + $0x160] sm:$0xff]  ;;  %10365 = vst [vmem:[#allocation118_spill] sm:$0xff] %v7259_v9  ;;  %10366 = vst [vmem:[#allocation119_spill] sm:$0xff] %v7262_v4 }
 0x376   :  { %4955 = vrcp.f32 %v1780_v52  ;;  %1946 = vmatpush1.msra.mxu0 %v7232_v10  ;;  %2017 = vmatpush1.msra.mxu1 %v7235_v7  ;;  %10364 = vst [vmem:[#allocation117_spill] sm:$0xff] %v7256_v57  ;;  %v7265_v52 = vld [vmem:[#allocation6 + $0x158] sm:$0xff]  ;;  %v7319_v7 = vld [vmem:[#allocation6 + $0xd0] sm:$0xff] }
 0x377   :  { %1947 = vmatprep.subr.mxu0 %v7238_v50  ;;  %2018 = vmatprep.subr.mxu1 %v7241_v15  ;;  %10367 = vst [vmem:[#allocation120_spill] sm:$0xff] %v7265_v52  ;;  %v7307_v15 = vld [vmem:[#allocation6 + $0xf0] sm:$0xff]  ;;  %v7310_v50 = vld [vmem:[#allocation6 + $0xc8] sm:$0xff]  ;;  %10385 = vst [vmem:[#allocation138_spill] sm:$0xff] %v7319_v7 }
 0x378   :  { %1948 = vmatpush1.msra.mxu0 %v7244_v16  ;;  %2019 = vmatpush1.msra.mxu1 %v7247_v5  ;;  %v7292_v5 = vld [vmem:[#allocation6 + $0x100] sm:$0xff]  ;;  %v7298_v16 = vld [vmem:[#allocation6 + $0xe8] sm:$0xff]  ;;  %10381 = vst [vmem:[#allocation134_spill] sm:$0xff] %v7307_v15  ;;  %10382 = vst [vmem:[#allocation135_spill] sm:$0xff] %v7310_v50 }
 0x379   :  { %1949 = vmatprep.subr.mxu0 %v7250_v42  ;;  %2020 = vmatprep.subr.mxu1 %v7253_v17  ;;  %v7268_v42 = vld [vmem:[#allocation6 + $0x140] sm:$0xff]  ;;  %v7271_v17 = vld [vmem:[#allocation6 + $0x150] sm:$0xff]  ;;  %10376 = vst [vmem:[#allocation129_spill] sm:$0xff] %v7292_v5  ;;  %10378 = vst [vmem:[#allocation131_spill] sm:$0xff] %v7298_v16 }
 0x37a   :  { %1950 = vmatpush1.msra.mxu0 %v7256_v57  ;;  %2021 = vmatpush1.msra.mxu1 %v7259_v9  ;;  %10368 = vst [vmem:[#allocation121_spill] sm:$0xff] %v7268_v42  ;;  %10369 = vst [vmem:[#allocation122_spill] sm:$0xff] %v7271_v17  ;;  %v7274_v57 = vld [vmem:[#allocation6 + $0x128] sm:$0xff]  ;;  %v7277_v9 = vld [vmem:[#allocation6 + $0x138] sm:$0xff] }
 0x37b   :  { %1951 = vmatprep.subr.mxu0 %v7262_v4  ;;  %2022 = vmatprep.subr.mxu1 %v7265_v52  ;;  %10370 = vst [vmem:[#allocation123_spill] sm:$0xff] %v7274_v57  ;;  %10371 = vst [vmem:[#allocation124_spill] sm:$0xff] %v7277_v9  ;;  %v7280_v4 = vld [vmem:[#allocation6 + $0x120] sm:$0xff]  ;;  %v7283_v52 = vld [vmem:[#allocation6 + $0x130] sm:$0xff] }
 0x37c   :  { %1952 = vmatpush1.msra.mxu0 %v7268_v42  ;;  %2023 = vmatpush1.msra.mxu1 %v7271_v17  ;;  %10372 = vst [vmem:[#allocation125_spill] sm:$0xff] %v7280_v4  ;;  %10373 = vst [vmem:[#allocation126_spill] sm:$0xff] %v7283_v52  ;;  %v7286_v42 = vld [vmem:[#allocation6 + $0x108] sm:$0xff]  ;;  %v7289_v17 = vld [vmem:[#allocation6 + $0x118] sm:$0xff] }
 0x37d   :  { %1953 = vmatprep.subr.mxu0 %v7274_v57  ;;  %2024 = vmatprep.subr.mxu1 %v7277_v9  ;;  %10374 = vst [vmem:[#allocation127_spill] sm:$0xff] %v7286_v42  ;;  %10375 = vst [vmem:[#allocation128_spill] sm:$0xff] %v7289_v17  ;;  %v4950_v57 = vpop.eup %4949  ;;  %v7295_v9 = vld [vmem:[#allocation6 + $0x110] sm:$0xff] }
 0x37e   :  { %1954 = vmatpush1.msra.mxu0 %v7280_v4  ;;  %2025 = vmatpush1.msra.mxu1 %v7283_v52  ;;  %10377 = vst [vmem:[#allocation130_spill] sm:$0xff] %v7295_v9  ;;  %v7301_v52 = vld [vmem:[#allocation6 + $0xf8] sm:$0xff] }
 0x37f   :  { %1955 = vmatprep.subr.mxu0 %v7286_v42  ;;  %2026 = vmatprep.subr.mxu1 %v7289_v17  ;;  %10379 = vst [vmem:[#allocation132_spill] sm:$0xff] %v7301_v52  ;;  %v7304_v17 = vld [vmem:[#allocation6 + $0xe0] sm:$0xff] }
 0x380   :  { %1956 = vmatpush1.msra.mxu0 %v7292_v5  ;;  %2027 = vmatpush1.msra.mxu1 %v7295_v9  ;;  %10380 = vst [vmem:[#allocation133_spill] sm:$0xff] %v7304_v17  ;;  %v1791_v9 = vadd.f32 1.0, %v4950_v57  ;;  %v7323_v57 = vld [vmem:[#allocation6 + $0xa8] sm:$0xff] }
 0x381   :  { %v4952_v4 = vpop.eup %4951  ;;  %1957 = vmatprep.subr.mxu0 %v7298_v16  ;;  %2028 = vmatprep.subr.mxu1 %v7301_v52  ;;  %v7313_v16 = vld [vmem:[#allocation6 + $0xd8] sm:$0xff]  ;;  %v7316_v52 = vld [vmem:[#allocation6 + $0xc0] sm:$0xff] }
 0x382   :  { %v4954_v42 = vpop.eup %4953  ;;  %1958 = vmatpush1.msra.mxu0 %v7304_v17  ;;  %2029 = vmatpush1.msra.mxu1 %v7307_v15  ;;  %10383 = vst [vmem:[#allocation136_spill] sm:$0xff] %v7313_v16  ;;  %10384 = vst [vmem:[#allocation137_spill] sm:$0xff] %v7316_v52  ;;  %4957 = vrcp.f32 %v1791_v9  ;;  %v7356_v9 = vld [vmem:[#allocation6 + $0x60] sm:$0xff] }
 0x383   :  { %v4956_v5 = vpop.eup %4955  ;;  %1959 = vmatprep.subr.mxu0 %v7310_v50  ;;  %2030 = vmatprep.subr.mxu1 %v7313_v16  ;;  %v1795_v17 = vmul.f32 %v4954_v42, %v4952_v4  ;;  %v7326_v50 = vld [vmem:[#allocation6 + $0xb8] sm:$0xff]  ;;  %v7329_v16 = vld [vmem:[#allocation6 + $0xa0] sm:$0xff]  ;;  %v7346_v4 = vld [vmem:[#allocation6 + $0x90] sm:$0xff]  ;;  %10391 = vst [vmem:[#allocation144_spill] sm:$0xff] %v7356_v9 }
 0x384   :  { %1960 = vmatpush1.msra.mxu0 %v7316_v52  ;;  %2031 = vmatpush1.msra.mxu1 %v7319_v7  ;;  %v1794_v15 = vmul.f32 %v4956_v5, %v6770_v14  ;;  %v7332_v52 = vld [vmem:[#allocation6 + $0xb0] sm:$0xff]  ;;  %v7337_v14 = vld [vmem:[#allocation6 + $0x88] sm:$0xff]  ;;  %v7340_v5 = vld [vmem:[#allocation6 + $0x98] sm:$0xff]  ;;  %10388 = vst [vmem:[#allocation141_spill] sm:$0xff] %v7346_v4 }
 0x385   :  { %1961 = vmatprep.subr.mxu0 %v7323_v57  ;;  %2032 = vmatprep.subr.mxu1 %v7326_v50  ;;  %10386 = vst [vmem:[#allocation139_spill] sm:$0xff] %v7340_v5  ;;  %v7343_v42 = vld [vmem:[#allocation6 + $0x80] sm:$0xff] }
 0x386   :  { %1962 = vmatpush1.msra.mxu0 %v7329_v16  ;;  %2033 = vmatpush1.msra.mxu1 %v7332_v52  ;;  %v7335_v7 = vadd.f32 %v1795_v17, %v1794_v15  ;;  %10387 = vst [vmem:[#allocation140_spill] sm:$0xff] %v7343_v42  ;;  %v7350_v15 = vld [vmem:[#allocation6 + $0x68] sm:$0xff]  ;;  %v7353_v17 = vld [vmem:[#allocation6 + $0x78] sm:$0xff] }
 0x387   :  { %1963 = vmatprep.subr.mxu0 %v7337_v14  ;;  %2034 = vmatprep.subr.mxu1 %v7340_v5  ;;  %10389 = vst [vmem:[#allocation142_spill] sm:$0xff] %v7350_v15  ;;  %10390 = vst [vmem:[#allocation143_spill] sm:$0xff] %v7353_v17  ;;  %v7359_v5 = vld [vmem:[#allocation6 + $0x70] sm:$0xff] }
 0x388   :  { %1964 = vmatpush1.msra.mxu0 %v7343_v42  ;;  %2035 = vmatpush1.msra.mxu1 %v7346_v4  ;;  %4959 = vtanh.f32 %v7335_v7  ;;  %10392 = vst [vmem:[#allocation145_spill] sm:$0xff] %v7359_v5  ;;  %v7362_v42 = vld [vmem:[#allocation6 + $0x48] sm:$0xff]  ;;  %v7365_v4 = vld [vmem:[#allocation6 + $0x58] sm:$0xff] }
 0x389   :  { %1965 = vmatprep.subr.mxu0 %v7350_v15  ;;  %2036 = vmatprep.subr.mxu1 %v7353_v17  ;;  %10393 = vst [vmem:[#allocation146_spill] sm:$0xff] %v7362_v42  ;;  %10394 = vst [vmem:[#allocation147_spill] sm:$0xff] %v7365_v4  ;;  %v7368_v15 = vld [vmem:[#allocation6 + $0x40] sm:$0xff]  ;;  %v7371_v17 = vld [vmem:[#allocation6 + $0x50] sm:$0xff] }
 0x38a   :  { %1966 = vmatpush1.msra.mxu0 %v7356_v9  ;;  %2037 = vmatpush1.msra.mxu1 %v7359_v5  ;;  %10395 = vst [vmem:[#allocation148_spill] sm:$0xff] %v7368_v15  ;;  %10396 = vst [vmem:[#allocation149_spill] sm:$0xff] %v7371_v17  ;;  %v7374_v9 = vld [vmem:[#allocation6 + $0x28] sm:$0xff]  ;;  %v7377_v5 = vld [vmem:[#allocation6 + $0x38] sm:$0xff] }
 0x38b   :  { %1967 = vmatprep.subr.mxu0 %v7362_v42  ;;  %2038 = vmatprep.subr.mxu1 %v7365_v4  ;;  %10397 = vst [vmem:[#allocation150_spill] sm:$0xff] %v7374_v9  ;;  %10398 = vst [vmem:[#allocation151_spill] sm:$0xff] %v7377_v5  ;;  %v7380_v42 = vld [vmem:[#allocation6 + $0x20] sm:$0xff]  ;;  %v7383_v4 = vld [vmem:[#allocation6 + $0x30] sm:$0xff] }
 0x38c   :  { %1968 = vmatpush1.msra.mxu0 %v7368_v15  ;;  %2039 = vmatpush1.msra.mxu1 %v7371_v17  ;;  %10399 = vst [vmem:[#allocation152_spill] sm:$0xff] %v7380_v42  ;;  %10400 = vst [vmem:[#allocation153_spill] sm:$0xff] %v7383_v4  ;;  %v7386_v15 = vld [vmem:[#allocation6 + $0x8] sm:$0xff]  ;;  %v7389_v17 = vld [vmem:[#allocation6 + $0x18] sm:$0xff] }
 0x38d   :  { %1969 = vmatprep.subr.mxu0 %v7374_v9  ;;  %2040 = vmatprep.subr.mxu1 %v7377_v5  ;;  %10401 = vst [vmem:[#allocation154_spill] sm:$0xff] %v7386_v15  ;;  %v7392_v9 = vld [vmem:[#allocation6] sm:$0xff]  ;;  %v7395_v5 = vld [vmem:[#allocation6 + $0x10] sm:$0xff] }
 0x38e   :  { %1970 = vmatpush1.msra.mxu0 %v7380_v42  ;;  %2041 = vmatpush1.msra.mxu1 %v7383_v4 }
 0x38f   :  { %1971 = vmatprep.subr.mxu0 %v7386_v15  ;;  %2042 = vmatprep.subr.mxu1 %v7389_v17  ;;  %v4958_v15 = vpop.eup %4957 }
 0x390   :  { %1972 = vmatpush1.msra.mxu0 %v7392_v9  ;;  %2043 = vmatpush1.msra.mxu1 %v7395_v5 }
 0x391   :  { %2005 = vmatprep.mubr.f32.mxu0 %v10124_v35  ;;  %2076 = vmatprep.mubr.f32.mxu1 %v10124_v35 }
 0x392   :  { %2112 = vmatprep.subr.mxu0 %v6795_v22  ;;  %2183 = vmatprep.subr.mxu1 %v6798_v23  ;;  %v10402_v22 = vld [vmem:[#allocation13_spill] sm:$0xff]  ;;  %v10403_v23 = vld [vmem:[#allocation18_spill] sm:$0xff] }
 0x395   :  { %v4960_v4 = vpop.eup %4959 }
 0x396   :  { %v7402_v42 = vmul.f32 %v4960_v4, %v4958_v15  ;;  %v10436_v4 = vld [vmem:[#allocation48_spill] sm:$0xff]  ;;  %v10437_v15 = vld [vmem:[#allocation49_spill] sm:$0xff] }
 0x398   :  { %2006 = vmatmul.mubr.f32.vlgmr.msra.gmra.mxu0 %v7402_v42  ;;  %2077 = vmatmul.mubr.f32.vlgmr.msra.gmra.mxu1 %v7402_v42 }
 0x399   :  { %2113 = vmatpush1.msra.mxu0 %v6805_v27  ;;  %2184 = vmatpush1.msra.mxu1 %v6808_v28  ;;  %v10404_v27 = vld [vmem:[#allocation14_spill] sm:$0xff]  ;;  %v10405_v28 = vld [vmem:[#allocation20_spill] sm:$0xff] }
 0x39a   :  { %2114 = vmatprep.subr.mxu0 %v6811_v29  ;;  %2185 = vmatprep.subr.mxu1 %v6814_v30  ;;  %v10406_v29 = vld [vmem:[#allocation15_spill] sm:$0xff]  ;;  %v10407_v30 = vld [vmem:[#allocation22_spill] sm:$0xff] }
 0x39b   :  { %2115 = vmatpush1.msra.mxu0 %v6817_v0  ;;  %2186 = vmatpush1.msra.mxu1 %v6820_v31  ;;  %v10408_v0 = vld [vmem:[#allocation17_spill] sm:$0xff]  ;;  %v10409_v31 = vld [vmem:[#allocation24_spill] sm:$0xff] }
 0x39c   :  { %2116 = vmatprep.subr.mxu0 %v6823_v32  ;;  %2187 = vmatprep.subr.mxu1 %v6826_v33  ;;  %v10410_v32 = vld [vmem:[#allocation19_spill] sm:$0xff]  ;;  %v10411_v33 = vld [vmem:[#allocation26_spill] sm:$0xff] }
 0x39d   :  { %2117 = vmatpush1.msra.mxu0 %v6829_v34  ;;  %2188 = vmatpush1.msra.mxu1 %v6832_v36  ;;  %v10412_v34 = vld [vmem:[#allocation21_spill] sm:$0xff]  ;;  %v10413_v36 = vld [vmem:[#allocation28_spill] sm:$0xff] }
 0x39e   :  { %2118 = vmatprep.subr.mxu0 %v6835_v37  ;;  %2189 = vmatprep.subr.mxu1 %v6838_v38  ;;  %v10414_v37 = vld [vmem:[#allocation23_spill] sm:$0xff]  ;;  %v10415_v38 = vld [vmem:[#allocation30_spill] sm:$0xff] }
 0x39f   :  { %2119 = vmatpush1.msra.mxu0 %v6841_v39  ;;  %2190 = vmatpush1.msra.mxu1 %v6844_v40  ;;  %v10416_v39 = vld [vmem:[#allocation25_spill] sm:$0xff]  ;;  %v10417_v40 = vld [vmem:[#allocation32_spill] sm:$0xff] }
 0x3a0   :  { %2120 = vmatprep.subr.mxu0 %v6847_v41  ;;  %2191 = vmatprep.subr.mxu1 %v6850_v43  ;;  %v10418_v41 = vld [vmem:[#allocation27_spill] sm:$0xff]  ;;  %v10419_v43 = vld [vmem:[#allocation33_spill] sm:$0xff] }
 0x3a1   :  { %2121 = vmatpush1.msra.mxu0 %v6853_v44  ;;  %2192 = vmatpush1.msra.mxu1 %v6856_v45  ;;  %v10420_v44 = vld [vmem:[#allocation29_spill] sm:$0xff]  ;;  %v10421_v45 = vld [vmem:[#allocation34_spill] sm:$0xff] }
 0x3a2   :  { %2122 = vmatprep.subr.mxu0 %v6859_v46  ;;  %2193 = vmatprep.subr.mxu1 %v6862_v47  ;;  %v10422_v46 = vld [vmem:[#allocation31_spill] sm:$0xff] }
 0x3a3   :  { %2123 = vmatpush1.msra.mxu0 %v6865_v48  ;;  %2194 = vmatpush1.msra.mxu1 %v6868_v49  ;;  %v10423_v47 = vld [vmem:[#allocation35_spill] sm:$0xff]  ;;  %v10424_v48 = vld [vmem:[#allocation36_spill] sm:$0xff]  ;;  %v10425_v49 = vld [vmem:[#allocation37_spill] sm:$0xff] }
 0x3a4   :  { %2124 = vmatprep.subr.mxu0 %v6871_v51  ;;  %2195 = vmatprep.subr.mxu1 %v6874_v53  ;;  %v10426_v51 = vld [vmem:[#allocation38_spill] sm:$0xff]  ;;  %v10427_v53 = vld [vmem:[#allocation39_spill] sm:$0xff] }
 0x3a5   :  { %2125 = vmatpush1.msra.mxu0 %v6877_v60  ;;  %2196 = vmatpush1.msra.mxu1 %v6880_v59  ;;  %v10428_v60 = vld [vmem:[#allocation40_spill] sm:$0xff]  ;;  %v10429_v59 = vld [vmem:[#allocation41_spill] sm:$0xff] }
 0x3a6   :  { %2126 = vmatprep.subr.mxu0 %v6883_v6  ;;  %2197 = vmatprep.subr.mxu1 %v6886_v63  ;;  %v10430_v6 = vld [vmem:[#allocation42_spill] sm:$0xff]  ;;  %v10431_v63 = vld [vmem:[#allocation43_spill] sm:$0xff] }
 0x3a7   :  { %2127 = vmatpush1.msra.mxu0 %v6889_v3  ;;  %2198 = vmatpush1.msra.mxu1 %v6892_v54  ;;  %v10432_v3 = vld [vmem:[#allocation44_spill] sm:$0xff]  ;;  %v10433_v54 = vld [vmem:[#allocation45_spill] sm:$0xff] }
 0x3a8   :  { %2128 = vmatprep.subr.mxu0 %v6895_v55  ;;  %2199 = vmatprep.subr.mxu1 %v6898_v2  ;;  %v10434_v55 = vld [vmem:[#allocation46_spill] sm:$0xff]  ;;  %v10435_v2 = vld [vmem:[#allocation47_spill] sm:$0xff] }
 0x3a9   :  { %2129 = vmatpush1.msra.mxu0 %v10402_v22  ;;  %2200 = vmatpush1.msra.mxu1 %v10403_v23  ;;  %v10438_v22 = vld [vmem:[#allocation50_spill] sm:$0xff]  ;;  %v10439_v23 = vld [vmem:[#allocation51_spill] sm:$0xff] }
 0x3aa   :  { %2130 = vmatprep.subr.mxu0 %v10404_v27  ;;  %2201 = vmatprep.subr.mxu1 %v10405_v28  ;;  %v10440_v27 = vld [vmem:[#allocation52_spill] sm:$0xff]  ;;  %v10441_v28 = vld [vmem:[#allocation53_spill] sm:$0xff] }
 0x3ab   :  { %2131 = vmatpush1.msra.mxu0 %v10406_v29  ;;  %2202 = vmatpush1.msra.mxu1 %v10407_v30  ;;  %v10443_v29 = vld [vmem:[#allocation55_spill] sm:$0xff]  ;;  %v10444_v30 = vld [vmem:[#allocation56_spill] sm:$0xff] }
 0x3ac   :  { %2132 = vmatprep.subr.mxu0 %v10408_v0  ;;  %2203 = vmatprep.subr.mxu1 %v10409_v31  ;;  %v10445_v0 = vld [vmem:[#allocation57_spill] sm:$0xff]  ;;  %v10446_v31 = vld [vmem:[#allocation58_spill] sm:$0xff] }
 0x3ad   :  { %2133 = vmatpush1.msra.mxu0 %v10410_v32  ;;  %2204 = vmatpush1.msra.mxu1 %v10411_v33  ;;  %v10447_v32 = vld [vmem:[#allocation59_spill] sm:$0xff]  ;;  %v10448_v33 = vld [vmem:[#allocation60_spill] sm:$0xff] }
 0x3ae   :  { %2134 = vmatprep.subr.mxu0 %v10412_v34  ;;  %2205 = vmatprep.subr.mxu1 %v10413_v36  ;;  %v10449_v34 = vld [vmem:[#allocation61_spill] sm:$0xff]  ;;  %v10450_v36 = vld [vmem:[#allocation62_spill] sm:$0xff] }
 0x3af   :  { %2135 = vmatpush1.msra.mxu0 %v10414_v37  ;;  %2206 = vmatpush1.msra.mxu1 %v10415_v38  ;;  %v10451_v37 = vld [vmem:[#allocation63_spill] sm:$0xff]  ;;  %v10452_v38 = vld [vmem:[#allocation64_spill] sm:$0xff] }
 0x3b0   :  { %2136 = vmatprep.subr.mxu0 %v10416_v39  ;;  %2207 = vmatprep.subr.mxu1 %v10417_v40  ;;  %v10453_v39 = vld [vmem:[#allocation65_spill] sm:$0xff]  ;;  %v10454_v40 = vld [vmem:[#allocation66_spill] sm:$0xff] }
 0x3b1   :  { %2137 = vmatpush1.msra.mxu0 %v10418_v41  ;;  %2208 = vmatpush1.msra.mxu1 %v10419_v43  ;;  %v10455_v41 = vld [vmem:[#allocation67_spill] sm:$0xff]  ;;  %v10456_v43 = vld [vmem:[#allocation68_spill] sm:$0xff] }
 0x3b2   :  { %2138 = vmatprep.subr.mxu0 %v10420_v44  ;;  %2209 = vmatprep.subr.mxu1 %v10421_v45  ;;  %v10457_v44 = vld [vmem:[#allocation69_spill] sm:$0xff]  ;;  %v10458_v45 = vld [vmem:[#allocation70_spill] sm:$0xff] }
 0x3b3   :  { %2139 = vmatpush1.msra.mxu0 %v10422_v46  ;;  %2210 = vmatpush1.msra.mxu1 %v10423_v47  ;;  %v10459_v46 = vld [vmem:[#allocation71_spill] sm:$0xff]  ;;  %v10460_v47 = vld [vmem:[#allocation72_spill] sm:$0xff] }
 0x3b4   :  { %2140 = vmatprep.subr.mxu0 %v10424_v48  ;;  %2211 = vmatprep.subr.mxu1 %v10425_v49  ;;  %v10461_v48 = vld [vmem:[#allocation73_spill] sm:$0xff]  ;;  %v10462_v49 = vld [vmem:[#allocation74_spill] sm:$0xff] }
 0x3b5   :  { %2141 = vmatpush1.msra.mxu0 %v10426_v51  ;;  %2212 = vmatpush1.msra.mxu1 %v10427_v53  ;;  %v10463_v51 = vld [vmem:[#allocation75_spill] sm:$0xff]  ;;  %v10464_v53 = vld [vmem:[#allocation76_spill] sm:$0xff] }
 0x3b6   :  { %2142 = vmatprep.subr.mxu0 %v10428_v60  ;;  %2213 = vmatprep.subr.mxu1 %v10429_v59  ;;  %v10465_v60 = vld [vmem:[#allocation77_spill] sm:$0xff]  ;;  %v10466_v59 = vld [vmem:[#allocation78_spill] sm:$0xff] }
 0x3b7   :  { %2143 = vmatpush1.msra.mxu0 %v10430_v6  ;;  %2176 = vmatprep.mubr.f32.mxu0 %v10124_v35  ;;  %v10467_v6 = vld [vmem:[#allocation79_spill] sm:$0xff] }
 0x3b8   :  { %2214 = vmatpush1.msra.mxu1 %v10431_v63  ;;  %2247 = vmatprep.mubr.f32.mxu1 %v10124_v35  ;;  %v10468_v63 = vld [vmem:[#allocation80_spill] sm:$0xff] }
 0x3b9   :  { %2177 = vmatmul.mubr.f32.vlgmr.msra.gmra.mxu0 %v7402_v42  ;;  %2248 = vmatmul.mubr.f32.vlgmr.msra.gmra.mxu1 %v7402_v42  ;;  %v10442_v42 = vld [vmem:[#allocation54_spill] sm:$0xff] }
 0x3ba   :  { %2308 = vmatprep.subr.mxu0 %v10432_v3  ;;  %2379 = vmatprep.subr.mxu1 %v10433_v54  ;;  %v10469_v3 = vld [vmem:[#allocation81_spill] sm:$0xff]  ;;  %v10470_v54 = vld [vmem:[#allocation82_spill] sm:$0xff] }
 0x3bb   :  { %2309 = vmatpush1.msra.mxu0 %v10434_v55  ;;  %2380 = vmatpush1.msra.mxu1 %v10435_v2  ;;  %v10471_v55 = vld [vmem:[#allocation83_spill] sm:$0xff]  ;;  %v10472_v2 = vld [vmem:[#allocation84_spill] sm:$0xff] }
 0x3bc   :  { %2310 = vmatprep.subr.mxu0 %v10436_v4  ;;  %2381 = vmatprep.subr.mxu1 %v10437_v15  ;;  %v10473_v4 = vld [vmem:[#allocation85_spill] sm:$0xff]  ;;  %v10474_v15 = vld [vmem:[#allocation86_spill] sm:$0xff] }
 0x3bd   :  { %2311 = vmatpush1.msra.mxu0 %v10438_v22  ;;  %2382 = vmatpush1.msra.mxu1 %v10439_v23  ;;  %v10475_v22 = vld [vmem:[#allocation87_spill] sm:$0xff]  ;;  %v10476_v23 = vld [vmem:[#allocation88_spill] sm:$0xff] }
 0x3be   :  { %2312 = vmatprep.subr.mxu0 %v10440_v27  ;;  %2383 = vmatprep.subr.mxu1 %v10441_v28  ;;  %v10477_v27 = vld [vmem:[#allocation89_spill] sm:$0xff]  ;;  %v10478_v28 = vld [vmem:[#allocation90_spill] sm:$0xff] }
 0x3bf   :  { %2313 = vmatpush1.msra.mxu0 %v10442_v42  ;;  %2384 = vmatpush1.msra.mxu1 %v10443_v29  ;;  %v10479_v42 = vld [vmem:[#allocation91_spill] sm:$0xff]  ;;  %v10480_v29 = vld [vmem:[#allocation92_spill] sm:$0xff] }
 0x3c0   :  { %2314 = vmatprep.subr.mxu0 %v10444_v30  ;;  %2385 = vmatprep.subr.mxu1 %v10445_v0  ;;  %v10481_v30 = vld [vmem:[#allocation93_spill] sm:$0xff]  ;;  %v10482_v0 = vld [vmem:[#allocation94_spill] sm:$0xff] }
 0x3c1   :  { %2315 = vmatpush1.msra.mxu0 %v10446_v31  ;;  %2386 = vmatpush1.msra.mxu1 %v10447_v32  ;;  %v10483_v31 = vld [vmem:[#allocation95_spill] sm:$0xff]  ;;  %v10484_v32 = vld [vmem:[#allocation96_spill] sm:$0xff] }
 0x3c2   :  { %2316 = vmatprep.subr.mxu0 %v10448_v33  ;;  %2387 = vmatprep.subr.mxu1 %v10449_v34  ;;  %v10485_v33 = vld [vmem:[#allocation97_spill] sm:$0xff]  ;;  %v10486_v34 = vld [vmem:[#allocation98_spill] sm:$0xff] }
 0x3c3   :  { %2317 = vmatpush1.msra.mxu0 %v10450_v36  ;;  %2388 = vmatpush1.msra.mxu1 %v10451_v37  ;;  %v10487_v36 = vld [vmem:[#allocation99_spill] sm:$0xff]  ;;  %v10488_v37 = vld [vmem:[#allocation100_spill] sm:$0xff] }
 0x3c4   :  { %2318 = vmatprep.subr.mxu0 %v10452_v38  ;;  %2389 = vmatprep.subr.mxu1 %v10453_v39  ;;  %v10489_v38 = vld [vmem:[#allocation101_spill] sm:$0xff]  ;;  %v10490_v39 = vld [vmem:[#allocation102_spill] sm:$0xff] }
 0x3c5   :  { %2319 = vmatpush1.msra.mxu0 %v10454_v40  ;;  %2390 = vmatpush1.msra.mxu1 %v10455_v41  ;;  %v10491_v40 = vld [vmem:[#allocation103_spill] sm:$0xff]  ;;  %v10492_v41 = vld [vmem:[#allocation104_spill] sm:$0xff] }
 0x3c6   :  { %2320 = vmatprep.subr.mxu0 %v10456_v43  ;;  %2391 = vmatprep.subr.mxu1 %v10457_v44  ;;  %v10493_v43 = vld [vmem:[#allocation105_spill] sm:$0xff]  ;;  %v10494_v44 = vld [vmem:[#allocation106_spill] sm:$0xff] }
 0x3c7   :  { %2321 = vmatpush1.msra.mxu0 %v10458_v45  ;;  %2392 = vmatpush1.msra.mxu1 %v10459_v46  ;;  %v10495_v45 = vld [vmem:[#allocation107_spill] sm:$0xff]  ;;  %v10496_v46 = vld [vmem:[#allocation108_spill] sm:$0xff] }
 0x3c8   :  { %2322 = vmatprep.subr.mxu0 %v10460_v47  ;;  %2393 = vmatprep.subr.mxu1 %v10461_v48  ;;  %v10497_v47 = vld [vmem:[#allocation109_spill] sm:$0xff] }
 0x3c9   :  { %2323 = vmatpush1.msra.mxu0 %v10462_v49  ;;  %2394 = vmatpush1.msra.mxu1 %v10463_v51 }
 0x3ca   :  { %2324 = vmatprep.subr.mxu0 %v10464_v53  ;;  %2395 = vmatprep.subr.mxu1 %v10465_v60 }
 0x3cb   :  { %2325 = vmatpush1.msra.mxu0 %v10466_v59  ;;  %2396 = vmatpush1.msra.mxu1 %v10467_v6 }
 0x3cc   :  { %2326 = vmatprep.subr.mxu0 %v10468_v63  ;;  %2397 = vmatprep.subr.mxu1 %v10469_v3 }
 0x3cd   :  { %2327 = vmatpush1.msra.mxu0 %v10470_v54  ;;  %2398 = vmatpush1.msra.mxu1 %v10471_v55 }
 0x3ce   :  { %2328 = vmatprep.subr.mxu0 %v10472_v2  ;;  %2399 = vmatprep.subr.mxu1 %v10473_v4 }
 0x3cf   :  { %2329 = vmatpush1.msra.mxu0 %v10474_v15  ;;  %2400 = vmatpush1.msra.mxu1 %v10475_v22 }
 0x3d0   :  { %2330 = vmatprep.subr.mxu0 %v10476_v23  ;;  %2401 = vmatprep.subr.mxu1 %v10477_v27 }
 0x3d1   :  { %2331 = vmatpush1.msra.mxu0 %v10478_v28  ;;  %2402 = vmatpush1.msra.mxu1 %v10479_v42 }
 0x3d2   :  { %2332 = vmatprep.subr.mxu0 %v10480_v29  ;;  %2403 = vmatprep.subr.mxu1 %v10481_v30 }
 0x3d3   :  { %2333 = vmatpush1.msra.mxu0 %v10482_v0  ;;  %2404 = vmatpush1.msra.mxu1 %v10483_v31 }
 0x3d4   :  { %2334 = vmatprep.subr.mxu0 %v10484_v32  ;;  %2405 = vmatprep.subr.mxu1 %v10485_v33 }
 0x3d5   :  { %2335 = vmatpush1.msra.mxu0 %v10486_v34  ;;  %2406 = vmatpush1.msra.mxu1 %v10487_v36 }
 0x3d6   :  { %2336 = vmatprep.subr.mxu0 %v10488_v37  ;;  %2407 = vmatprep.subr.mxu1 %v10489_v38 }
 0x3d7   :  { %2337 = vmatpush1.msra.mxu0 %v10490_v39  ;;  %2408 = vmatpush1.msra.mxu1 %v10491_v40 }
 0x3d8   :  { %2338 = vmatprep.subr.mxu0 %v10492_v41  ;;  %2409 = vmatprep.subr.mxu1 %v10493_v43 }
 0x3d9   :  { %2339 = vmatpush1.msra.mxu0 %v10494_v44  ;;  %2372 = vmatprep.mubr.f32.mxu0 %v10124_v35 }
 0x3da   :  { %2410 = vmatpush1.msra.mxu1 %v10495_v45  ;;  %2443 = vmatprep.mubr.f32.mxu1 %v10124_v35 }
 0x3db   :  { %2450 = vmatprep.subr.mxu0 %v10496_v46  ;;  %2521 = vmatprep.subr.mxu1 %v10497_v47 }
 0x431   :  { %v1865_v48 = vpop.f32.mrf.mxu0  ;;  %v1936_v49 = vpop.f32.mrf.mxu1 }
 0x433   :  { %v1867_v51 = vpop.f32.mrf.mxu0  ;;  %v1938_v60 = vpop.f32.mrf.mxu1 }
 0x458   :  { %v2007_v53 = vpop.f32.mrf.mxu0  ;;  %v2078_v3 = vpop.f32.mrf.mxu1 }
 0x459   :  { %v2008_v59 = vadd.f32 %v2007_v53, %v1865_v48  ;;  %v2079_v27 = vadd.f32 %v2078_v3, %v1936_v49  ;;  %v10498_v53 = vcombine.high %v6517_v13, %v6523_v56 }
 0x45a   :  { %v2009_v6 = vpop.f32.mrf.mxu0  ;;  %v2080_v15 = vpop.f32.mrf.mxu1 }
 0x45b   :  { %v2083_v63 = vadd.f32 %v2008_v59, %v6701_v8  ;;  %v2010_v54 = vadd.f32 %v2009_v6, %v1867_v51  ;;  %v2081_v22 = vadd.f32 %v2080_v15, %v1938_v60  ;;  %v2085_v29 = vadd.f32 %v2079_v27, %v6716_v18  ;;  %v10508_v27 = vld [vmem:[#allocation119_spill] sm:$0xff] }
 0x45d   :  { %v4786_v55 = vmul.f32 -1.442695, %v2083_v63  ;;  %v2084_v2 = vadd.f32 %v2010_v54, %v6705_v61  ;;  %v2086_v23 = vadd.f32 %v2081_v22, %v6711_v12 }
 0x45f   :  { %4961 = vpow2.f32 %v4786_v55  ;;  %v4787_v4 = vmul.f32 -1.442695, %v2084_v2  ;;  %v4788_v28 = vmul.f32 -1.442695, %v2086_v23  ;;  %v10503_v23 = vld [vmem:[#allocation114_spill] sm:$0xff] }
 0x461   :  { %4963 = vpow2.f32 %v4787_v4 }
 0x462   :  { %4965 = vpow2.f32 %v4788_v28  ;;  %v10510_v28 = vld [vmem:[#allocation121_spill] sm:$0xff] }
 0x46c   :  { %v4962_v42 = vpop.eup %4961 }
 0x46d   :  { %v2090_v30 = vadd.f32 1.0, %v4962_v42  ;;  %v10511_v42 = vld [vmem:[#allocation122_spill] sm:$0xff] }
 0x46e   :  { %v4964_v0 = vpop.eup %4963 }
 0x46f   :  { %4967 = vrcp.f32 %v2090_v30  ;;  %v2096_v31 = vadd.f32 1.0, %v4964_v0  ;;  %v4966_v34 = vpop.eup %4965  ;;  %v10513_v30 = vld [vmem:[#allocation124_spill] sm:$0xff]  ;;  %v10514_v0 = vld [vmem:[#allocation125_spill] sm:$0xff] }
 0x470   :  { %4969 = vtanh.f32 %v2085_v29  ;;  %v2103_v44 = vadd.f32 1.0, %v4966_v34  ;;  %v10512_v29 = vld [vmem:[#allocation123_spill] sm:$0xff] }
 0x471   :  { %4971 = vrcp.f32 %v2096_v31  ;;  %v10515_v31 = vld [vmem:[#allocation126_spill] sm:$0xff] }
 0x472   :  { %4973 = vrcp.f32 %v2103_v44  ;;  %v10523_v44 = vld [vmem:[#allocation134_spill] sm:$0xff] }
 0x479   :  { %v2178_v32 = vpop.f32.mrf.mxu0  ;;  %v2249_v33 = vpop.f32.mrf.mxu1 }
 0x47b   :  { %v2180_v36 = vpop.f32.mrf.mxu0  ;;  %v2251_v37 = vpop.f32.mrf.mxu1 }
 0x47c   :  { %v4968_v38 = vpop.eup %4967  ;;  %v2258_v39 = vcombine.low %v2178_v32, %v2180_v36  ;;  %v2259_v40 = vcombine.low %v2249_v33, %v2251_v37  ;;  %v10516_v32 = vld [vmem:[#allocation127_spill] sm:$0xff]  ;;  %v10517_v33 = vld [vmem:[#allocation128_spill] sm:$0xff]  ;;  %v10518_v36 = vld [vmem:[#allocation129_spill] sm:$0xff] }
 0x47d   :  { %v4970_v41 = vpop.eup %4969  ;;  %v10519_v37 = vld [vmem:[#allocation130_spill] sm:$0xff] }
 0x47e   :  { %v4972_v43 = vpop.eup %4971  ;;  %v2266_v45 = vrot.slane %v2258_v39, %v6511_v1  ;;  %v2273_v46 = vrot.slane %v2259_v40, %v6511_v1  ;;  %v2107_v47 = vmul.f32 %v4970_v41, %v4968_v38  ;;  %v10520_v39 = vld [vmem:[#allocation131_spill] sm:$0xff]  ;;  %v10521_v40 = vld [vmem:[#allocation132_spill] sm:$0xff] }
 0x47f   :  { %v2106_v48 = vmul.f32 %v4972_v43, %v7202_v26  ;;  %v4974_v54 = vpop.eup %4973  ;;  %v10522_v43 = vld [vmem:[#allocation133_spill] sm:$0xff] }
 0x480   :  { %v2274_v49 = vcombine.low %v2266_v45, %v2273_v46 }
 0x481   :  { %v7547_v51 = vadd.f32 %v2107_v47, %v2106_v48  ;;  %v10524_v47 = vld [vmem:[#allocation135_spill] sm:$0xff]  ;;  %v10525_v48 = vld [vmem:[#allocation136_spill] sm:$0xff] }
 0x482   :  { %v2276_v60 = vadd.f32 %v2274_v49, %v10498_v53  ;;  %v10526_v49 = vld [vmem:[#allocation137_spill] sm:$0xff]  ;;  %v10527_v53 = vld [vmem:[#allocation138_spill] sm:$0xff] }
 0x483   :  { %4975 = vtanh.f32 %v7547_v51 }
 0x484   :  { %v4789_v59 = vmul.f32 -1.442695, %v2276_v60  ;;  %v2284_v6 = vrot.slane %v2276_v60, 2  ;;  %v2295_v3 = vrot.slane %v2276_v60, 6  ;;  %v2292_v15 = vrot.slane %v2276_v60, 4 }
 0x486   :  { %4977 = vpow2.f32 %v4789_v59  ;;  %v4790_v63 = vmul.f32 -1.442695, %v2284_v6  ;;  %v4791_v2 = vmul.f32 -1.442695, %v2295_v3  ;;  %v10529_v3 = vld [vmem:[#allocation140_spill] sm:$0xff] }
 0x488   :  { %4979 = vpow2.f32 %v4790_v63  ;;  %v10528_v63 = vld [vmem:[#allocation139_spill] sm:$0xff] }
 0x489   :  { %4981 = vpow2.f32 %v4791_v2  ;;  %v10538_v2 = vld [vmem:[#allocation149_spill] sm:$0xff] }
 0x490   :  { %v4976_v55 = vpop.eup %4975 }
 0x491   :  { %v2110_v26 = vmul.f32 %v4976_v55, %v4974_v54  ;;  %v10530_v54 = vld [vmem:[#allocation141_spill] sm:$0xff]  ;;  %v10536_v55 = vld [vmem:[#allocation147_spill] sm:$0xff] }
 0x493   :  { %v4978_v4 = vpop.eup %4977  ;;  %2373 = vmatmul.mubr.f32.vlgmr.msra.gmra.mxu0 %v2110_v26  ;;  %2444 = vmatmul.mubr.f32.vlgmr.msra.gmra.mxu1 %v2110_v26  ;;  %v10539_v26 = vld [vmem:[#allocation150_spill] sm:$0xff] }
 0x494   :  { %v2280_v22 = vadd.f32 1.0, %v4978_v4  ;;  %2451 = vmatpush1.msra.mxu0 %v7208_v19  ;;  %2522 = vmatpush1.msra.mxu1 %v7211_v20  ;;  %v10499_v19 = vld [vmem:[#allocation110_spill] sm:$0xff]  ;;  %v10500_v20 = vld [vmem:[#allocation111_spill] sm:$0xff] }
 0x495   :  { %v4980_v13 = vpop.eup %4979  ;;  %2452 = vmatprep.subr.mxu0 %v7214_v11  ;;  %2523 = vmatprep.subr.mxu1 %v7217_v62  ;;  %v10501_v11 = vld [vmem:[#allocation112_spill] sm:$0xff]  ;;  %v10502_v62 = vld [vmem:[#allocation113_spill] sm:$0xff]  ;;  %v10540_v4 = vld [vmem:[#allocation151_spill] sm:$0xff] }
 0x496   :  { %4983 = vrcp.f32 %v2280_v22  ;;  %v2289_v56 = vadd.f32 1.0, %v4980_v13  ;;  %2453 = vmatpush1.msra.mxu0 %v7220_v21  ;;  %2524 = vmatpush1.msra.mxu1 %v7223_v24  ;;  %v10504_v21 = vld [vmem:[#allocation115_spill] sm:$0xff]  ;;  %v10505_v24 = vld [vmem:[#allocation116_spill] sm:$0xff]  ;;  %v4982_v34 = vpop.eup %4981  ;;  %v10542_v22 = vld [vmem:[#allocation153_spill] sm:$0xff] }
 0x497   :  { %4985 = vtanh.f32 %v2292_v15  ;;  %2454 = vmatprep.subr.mxu0 %v7226_v25  ;;  %2525 = vmatprep.subr.mxu1 %v7229_v58  ;;  %v10506_v25 = vld [vmem:[#allocation117_spill] sm:$0xff]  ;;  %v10507_v58 = vld [vmem:[#allocation118_spill] sm:$0xff]  ;;  %v2300_v46 = vadd.f32 1.0, %v4982_v34  ;;  %v10541_v15 = vld [vmem:[#allocation152_spill] sm:$0xff] }
 0x498   :  { %4987 = vrcp.f32 %v2289_v56  ;;  %2455 = vmatpush1.msra.mxu0 %v7232_v10  ;;  %2526 = vmatpush1.msra.mxu1 %v10499_v19  ;;  %v10509_v10 = vld [vmem:[#allocation120_spill] sm:$0xff]  ;;  %v10543_v13 = vld [vmem:[#allocation154_spill] sm:$0xff] }
 0x499   :  { %2456 = vmatprep.subr.mxu0 %v10500_v20  ;;  %2527 = vmatprep.subr.mxu1 %v10501_v11  ;;  %4989 = vrcp.f32 %v2300_v46  ;;  %v7621_v56 = vld [vmem:[#allocation3 + $0x1e8] sm:$0xff]  ;;  %v7624_v19 = vld [vmem:[#allocation3 + $0x1f8] sm:$0xff]  ;;  %v7715_v46 = vld [vmem:[#allocation3 + $0x100] sm:$0xff] }
 0x49a   :  { %2457 = vmatpush1.msra.mxu0 %v10502_v62  ;;  %2528 = vmatpush1.msra.mxu1 %v10503_v23  ;;  %v7640_v23 = vld [vmem:[#allocation3 + $0x1d8] sm:$0xff]  ;;  %v7685_v34 = vld [vmem:[#allocation3 + $0x148] sm:$0xff] }
 0x49b   :  { %2458 = vmatprep.subr.mxu0 %v10504_v21  ;;  %2529 = vmatprep.subr.mxu1 %v10505_v24  ;;  %v7643_v21 = vld [vmem:[#allocation3 + $0x1c0] sm:$0xff]  ;;  %v7646_v24 = vld [vmem:[#allocation3 + $0x1d0] sm:$0xff] }
 0x49c   :  { %2459 = vmatpush1.msra.mxu0 %v10506_v25  ;;  %2530 = vmatpush1.msra.mxu1 %v10507_v58  ;;  %v7649_v25 = vld [vmem:[#allocation3 + $0x1a8] sm:$0xff]  ;;  %v7652_v58 = vld [vmem:[#allocation3 + $0x1b8] sm:$0xff] }
 0x49d   :  { %2460 = vmatprep.subr.mxu0 %v10508_v27  ;;  %2531 = vmatprep.subr.mxu1 %v10509_v10  ;;  %v7655_v27 = vld [vmem:[#allocation3 + $0x1a0] sm:$0xff]  ;;  %v7658_v10 = vld [vmem:[#allocation3 + $0x1b0] sm:$0xff] }
 0x49e   :  { %2461 = vmatpush1.msra.mxu0 %v10510_v28  ;;  %2532 = vmatpush1.msra.mxu1 %v10511_v42  ;;  %v7661_v28 = vld [vmem:[#allocation3 + $0x188] sm:$0xff]  ;;  %v7664_v42 = vld [vmem:[#allocation3 + $0x198] sm:$0xff] }
 0x49f   :  { %2462 = vmatprep.subr.mxu0 %v10512_v29  ;;  %2533 = vmatprep.subr.mxu1 %v10513_v30  ;;  %v7667_v29 = vld [vmem:[#allocation3 + $0x180] sm:$0xff]  ;;  %v7670_v30 = vld [vmem:[#allocation3 + $0x190] sm:$0xff] }
 0x4a0   :  { %2463 = vmatpush1.msra.mxu0 %v10514_v0  ;;  %2534 = vmatpush1.msra.mxu1 %v10515_v31  ;;  %v7673_v0 = vld [vmem:[#allocation3 + $0x168] sm:$0xff]  ;;  %v7676_v31 = vld [vmem:[#allocation3 + $0x178] sm:$0xff] }
 0x4a1   :  { %2464 = vmatprep.subr.mxu0 %v10516_v32  ;;  %2535 = vmatprep.subr.mxu1 %v10517_v33  ;;  %v7679_v32 = vld [vmem:[#allocation3 + $0x160] sm:$0xff]  ;;  %v7682_v33 = vld [vmem:[#allocation3 + $0x170] sm:$0xff] }
 0x4a2   :  { %2465 = vmatpush1.msra.mxu0 %v10518_v36  ;;  %2536 = vmatpush1.msra.mxu1 %v10519_v37  ;;  %v7688_v36 = vld [vmem:[#allocation3 + $0x158] sm:$0xff]  ;;  %v7691_v37 = vld [vmem:[#allocation3 + $0x140] sm:$0xff] }
 0x4a3   :  { %v4984_v38 = vpop.eup %4983  ;;  %2466 = vmatprep.subr.mxu0 %v10520_v39  ;;  %2537 = vmatprep.subr.mxu1 %v10521_v40  ;;  %v7697_v39 = vld [vmem:[#allocation3 + $0x128] sm:$0xff]  ;;  %v7700_v40 = vld [vmem:[#allocation3 + $0x138] sm:$0xff] }
 0x4a4   :  { %v4986_v41 = vpop.eup %4985  ;;  %2467 = vmatpush1.msra.mxu0 %v10522_v43  ;;  %2538 = vmatpush1.msra.mxu1 %v10523_v44  ;;  %v7706_v43 = vld [vmem:[#allocation3 + $0x130] sm:$0xff]  ;;  %v7709_v44 = vld [vmem:[#allocation3 + $0x108] sm:$0xff] }
 0x4a5   :  { %v4988_v45 = vpop.eup %4987  ;;  %2468 = vmatprep.subr.mxu0 %v10524_v47  ;;  %2539 = vmatprep.subr.mxu1 %v10525_v48  ;;  %v2304_v59 = vmul.f32 %v4986_v41, %v4984_v38  ;;  %v7694_v38 = vld [vmem:[#allocation3 + $0x150] sm:$0xff]  ;;  %v7703_v41 = vld [vmem:[#allocation3 + $0x120] sm:$0xff]  ;;  %v7721_v48 = vld [vmem:[#allocation3 + $0xe8] sm:$0xff] }
 0x4a6   :  { %2469 = vmatpush1.msra.mxu0 %v10526_v49  ;;  %2540 = vmatpush1.msra.mxu1 %v10527_v53  ;;  %v2303_v60 = vmul.f32 %v4988_v45, %v7335_v7  ;;  %v10531_v7 = vld [vmem:[#allocation142_spill] sm:$0xff]  ;;  %v4990_v20 = vpop.eup %4989  ;;  %v7712_v45 = vld [vmem:[#allocation3 + $0x118] sm:$0xff]  ;;  %v7727_v53 = vld [vmem:[#allocation3 + $0xe0] sm:$0xff] }
 0x4a7   :  { %2470 = vmatprep.subr.mxu0 %v7323_v57  ;;  %2541 = vmatprep.subr.mxu1 %v7326_v50  ;;  %v10532_v50 = vld [vmem:[#allocation143_spill] sm:$0xff]  ;;  %v10535_v57 = vld [vmem:[#allocation146_spill] sm:$0xff] }
 0x4a8   :  { %2471 = vmatpush1.msra.mxu0 %v7329_v16  ;;  %2542 = vmatpush1.msra.mxu1 %v7332_v52  ;;  %v7596_v6 = vadd.f32 %v2304_v59, %v2303_v60  ;;  %v10533_v16 = vld [vmem:[#allocation144_spill] sm:$0xff]  ;;  %v10534_v52 = vld [vmem:[#allocation145_spill] sm:$0xff]  ;;  %v7718_v47 = vld [vmem:[#allocation3 + $0x110] sm:$0xff] }
 0x4a9   :  { %2472 = vmatprep.subr.mxu0 %v7337_v14  ;;  %2543 = vmatprep.subr.mxu1 %v10528_v63  ;;  %v10537_v14 = vld [vmem:[#allocation148_spill] sm:$0xff]  ;;  %v7730_v60 = vld [vmem:[#allocation3 + $0xf0] sm:$0xff]  ;;  %v7733_v59 = vld [vmem:[#allocation3 + $0xc8] sm:$0xff] }
 0x4aa   :  { %2473 = vmatpush1.msra.mxu0 %v10529_v3  ;;  %2544 = vmatpush1.msra.mxu1 %v10530_v54  ;;  %4991 = vtanh.f32 %v7596_v6  ;;  %v7724_v49 = vld [vmem:[#allocation3 + $0xf8] sm:$0xff]  ;;  %10544 = vst [vmem:[#allocation155_spill] sm:$0xff] %v7733_v59  ;;  %v7739_v3 = vld [vmem:[#allocation3 + $0xc0] sm:$0xff]  ;;  %v7742_v54 = vld [vmem:[#allocation3 + $0xd0] sm:$0xff] }
 0x4ab   :  { %2474 = vmatprep.subr.mxu0 %v10531_v7  ;;  %2545 = vmatprep.subr.mxu1 %v10532_v50  ;;  %v7736_v63 = vld [vmem:[#allocation3 + $0xd8] sm:$0xff]  ;;  %10546 = vst [vmem:[#allocation157_spill] sm:$0xff] %v7739_v3  ;;  %10547 = vst [vmem:[#allocation158_spill] sm:$0xff] %v7742_v54  ;;  %v7745_v7 = vld [vmem:[#allocation3 + $0xa8] sm:$0xff] }
 0x4ac   :  { %2475 = vmatpush1.msra.mxu0 %v10533_v16  ;;  %2546 = vmatpush1.msra.mxu1 %v10534_v52  ;;  %10545 = vst [vmem:[#allocation156_spill] sm:$0xff] %v7736_v63  ;;  %10548 = vst [vmem:[#allocation159_spill] sm:$0xff] %v7745_v7  ;;  %v7748_v50 = vld [vmem:[#allocation3 + $0xb8] sm:$0xff]  ;;  %v7751_v16 = vld [vmem:[#allocation3 + $0xa0] sm:$0xff] }
 0x4ad   :  { %2476 = vmatprep.subr.mxu0 %v10535_v57  ;;  %2547 = vmatprep.subr.mxu1 %v10536_v55  ;;  %10549 = vst [vmem:[#allocation160_spill] sm:$0xff] %v7748_v50  ;;  %10550 = vst [vmem:[#allocation161_spill] sm:$0xff] %v7751_v16  ;;  %v7754_v52 = vld [vmem:[#allocation3 + $0xb0] sm:$0xff]  ;;  %v7757_v57 = vld [vmem:[#allocation3 + $0x88] sm:$0xff] }
 0x4ae   :  { %2477 = vmatpush1.msra.mxu0 %v10537_v14  ;;  %2548 = vmatpush1.msra.mxu1 %v10538_v2  ;;  %10551 = vst [vmem:[#allocation162_spill] sm:$0xff] %v7754_v52  ;;  %10552 = vst [vmem:[#allocation163_spill] sm:$0xff] %v7757_v57  ;;  %v7760_v55 = vld [vmem:[#allocation3 + $0x98] sm:$0xff]  ;;  %v7763_v14 = vld [vmem:[#allocation3 + $0x80] sm:$0xff] }
 0x4af   :  { %2478 = vmatprep.subr.mxu0 %v10539_v26  ;;  %2549 = vmatprep.subr.mxu1 %v10540_v4  ;;  %10553 = vst [vmem:[#allocation13_spill] sm:$0xff] %v7760_v55  ;;  %10554 = vst [vmem:[#allocation18_spill] sm:$0xff] %v7763_v14  ;;  %v7766_v2 = vld [vmem:[#allocation3 + $0x90] sm:$0xff]  ;;  %v7769_v26 = vld [vmem:[#allocation3 + $0x68] sm:$0xff] }
 0x4b0   :  { %2479 = vmatpush1.msra.mxu0 %v10541_v15  ;;  %2550 = vmatpush1.msra.mxu1 %v10542_v22  ;;  %10555 = vst [vmem:[#allocation14_spill] sm:$0xff] %v7766_v2  ;;  %10556 = vst [vmem:[#allocation20_spill] sm:$0xff] %v7769_v26  ;;  %v7772_v4 = vld [vmem:[#allocation3 + $0x78] sm:$0xff]  ;;  %v7775_v15 = vld [vmem:[#allocation3 + $0x60] sm:$0xff] }
 0x4b1   :  { %2480 = vmatprep.subr.mxu0 %v10543_v13  ;;  %2551 = vmatprep.subr.mxu1 %v7389_v17  ;;  %v7634_v17 = vld [vmem:[#allocation3 + $0x1f0] sm:$0xff]  ;;  %10557 = vst [vmem:[#allocation15_spill] sm:$0xff] %v7772_v4  ;;  %10558 = vst [vmem:[#allocation22_spill] sm:$0xff] %v7775_v15  ;;  %v7781_v13 = vld [vmem:[#allocation3 + $0x48] sm:$0xff] }
 0x4b2   :  { %2481 = vmatpush1.msra.mxu0 %v7392_v9  ;;  %2552 = vmatpush1.msra.mxu1 %v7395_v5  ;;  %v7631_v5 = vld [vmem:[#allocation3 + $0x1e0] sm:$0xff]  ;;  %v7637_v9 = vld [vmem:[#allocation3 + $0x1c8] sm:$0xff]  ;;  %v7778_v22 = vld [vmem:[#allocation3 + $0x70] sm:$0xff]  ;;  %10560 = vst [vmem:[#allocation24_spill] sm:$0xff] %v7781_v13 }
 0x4b3   :  { %2514 = vmatprep.mubr.f32.mxu0 %v10124_v35  ;;  %2585 = vmatprep.mubr.f32.mxu1 %v10124_v35  ;;  %10559 = vst [vmem:[#allocation17_spill] sm:$0xff] %v7778_v22 }
 0x4b4   :  { %2621 = vmatprep.subr.mxu0 %v7621_v56  ;;  %2692 = vmatprep.subr.mxu1 %v7624_v19 }
 0x4b7   :  { %v4992_v11 = vpop.eup %4991 }
 0x4b8   :  { %v7627_v62 = vmul.f32 %v4992_v11, %v4990_v20  ;;  %v7784_v20 = vld [vmem:[#allocation3 + $0x58] sm:$0xff]  ;;  %v7787_v11 = vld [vmem:[#allocation3 + $0x40] sm:$0xff] }
 0x4b9   :  { %10561 = vst [vmem:[#allocation19_spill] sm:$0xff] %v7784_v20  ;;  %10562 = vst [vmem:[#allocation26_spill] sm:$0xff] %v7787_v11 }
 0x4ba   :  { %2515 = vmatmul.mubr.f32.vlgmr.msra.gmra.mxu0 %v7627_v62  ;;  %2586 = vmatmul.mubr.f32.vlgmr.msra.gmra.mxu1 %v7627_v62 }
 0x4bb   :  { %2622 = vmatpush1.msra.mxu0 %v7631_v5  ;;  %2693 = vmatpush1.msra.mxu1 %v7634_v17 }
 0x4bc   :  { %2623 = vmatprep.subr.mxu0 %v7637_v9  ;;  %2694 = vmatprep.subr.mxu1 %v7640_v23 }
 0x4bd   :  { %2624 = vmatpush1.msra.mxu0 %v7643_v21  ;;  %2695 = vmatpush1.msra.mxu1 %v7646_v24 }
 0x4be   :  { %2625 = vmatprep.subr.mxu0 %v7649_v25  ;;  %2696 = vmatprep.subr.mxu1 %v7652_v58 }
 0x4bf   :  { %2626 = vmatpush1.msra.mxu0 %v7655_v27  ;;  %2697 = vmatpush1.msra.mxu1 %v7658_v10 }
 0x4c0   :  { %2627 = vmatprep.subr.mxu0 %v7661_v28  ;;  %2698 = vmatprep.subr.mxu1 %v7664_v42 }
 0x4c1   :  { %2628 = vmatpush1.msra.mxu0 %v7667_v29  ;;  %2699 = vmatpush1.msra.mxu1 %v7670_v30 }
 0x4c2   :  { %2629 = vmatprep.subr.mxu0 %v7673_v0  ;;  %2700 = vmatprep.subr.mxu1 %v7676_v31 }
 0x4c3   :  { %2630 = vmatpush1.msra.mxu0 %v7679_v32  ;;  %2701 = vmatpush1.msra.mxu1 %v7682_v33 }
 0x4c4   :  { %2631 = vmatprep.subr.mxu0 %v7685_v34  ;;  %2702 = vmatprep.subr.mxu1 %v7688_v36 }
 0x4c5   :  { %2632 = vmatpush1.msra.mxu0 %v7691_v37  ;;  %2703 = vmatpush1.msra.mxu1 %v7694_v38 }
 0x4c6   :  { %2633 = vmatprep.subr.mxu0 %v7697_v39  ;;  %2704 = vmatprep.subr.mxu1 %v7700_v40 }
 0x4c7   :  { %2634 = vmatpush1.msra.mxu0 %v7703_v41  ;;  %2705 = vmatpush1.msra.mxu1 %v7706_v43 }
 0x4c8   :  { %2635 = vmatprep.subr.mxu0 %v7709_v44  ;;  %2706 = vmatprep.subr.mxu1 %v7712_v45 }
 0x4c9   :  { %2636 = vmatpush1.msra.mxu0 %v7715_v46  ;;  %2707 = vmatpush1.msra.mxu1 %v7718_v47 }
 0x4ca   :  { %2637 = vmatprep.subr.mxu0 %v7721_v48  ;;  %2708 = vmatprep.subr.mxu1 %v7724_v49 }
 0x4cb   :  { %2638 = vmatpush1.msra.mxu0 %v7727_v53  ;;  %2709 = vmatpush1.msra.mxu1 %v7730_v60 }
 0x4cc   :  { %2639 = vmatprep.subr.mxu0 %v7733_v59  ;;  %2710 = vmatprep.subr.mxu1 %v7736_v63 }
 0x4cd   :  { %2640 = vmatpush1.msra.mxu0 %v7739_v3  ;;  %2711 = vmatpush1.msra.mxu1 %v7742_v54 }
 0x4ce   :  { %2641 = vmatprep.subr.mxu0 %v7745_v7  ;;  %2712 = vmatprep.subr.mxu1 %v7748_v50 }
 0x4cf   :  { %2642 = vmatpush1.msra.mxu0 %v7751_v16  ;;  %2713 = vmatpush1.msra.mxu1 %v7754_v52 }
 0x4d0   :  { %2643 = vmatprep.subr.mxu0 %v7757_v57  ;;  %2714 = vmatprep.subr.mxu1 %v7760_v55 }
 0x4d1   :  { %2644 = vmatpush1.msra.mxu0 %v7763_v14  ;;  %2715 = vmatpush1.msra.mxu1 %v7766_v2 }
 0x4d2   :  { %2645 = vmatprep.subr.mxu0 %v7769_v26  ;;  %2716 = vmatprep.subr.mxu1 %v7772_v4  ;;  %v7790_v4 = vld [vmem:[#allocation3 + $0x50] sm:$0xff] }
 0x4d3   :  { %2646 = vmatpush1.msra.mxu0 %v7775_v15  ;;  %2717 = vmatpush1.msra.mxu1 %v7778_v22  ;;  %10563 = vst [vmem:[#allocation21_spill] sm:$0xff] %v7790_v4  ;;  %v7793_v15 = vld [vmem:[#allocation3 + $0x28] sm:$0xff]  ;;  %v7796_v22 = vld [vmem:[#allocation3 + $0x38] sm:$0xff] }
 0x4d4   :  { %2647 = vmatprep.subr.mxu0 %v7781_v13  ;;  %2718 = vmatprep.subr.mxu1 %v7784_v20  ;;  %10564 = vst [vmem:[#allocation28_spill] sm:$0xff] %v7793_v15  ;;  %10565 = vst [vmem:[#allocation23_spill] sm:$0xff] %v7796_v22  ;;  %v7799_v13 = vld [vmem:[#allocation3 + $0x20] sm:$0xff]  ;;  %v7802_v20 = vld [vmem:[#allocation3 + $0x30] sm:$0xff] }
 0x4d5   :  { %2648 = vmatpush1.msra.mxu0 %v7787_v11  ;;  %2719 = vmatpush1.msra.mxu1 %v7790_v4  ;;  %10566 = vst [vmem:[#allocation30_spill] sm:$0xff] %v7799_v13  ;;  %10567 = vst [vmem:[#allocation25_spill] sm:$0xff] %v7802_v20  ;;  %v7805_v11 = vld [vmem:[#allocation3 + $0x8] sm:$0xff]  ;;  %v7808_v4 = vld [vmem:[#allocation3 + $0x18] sm:$0xff] }
 0x4d6   :  { %2649 = vmatprep.subr.mxu0 %v7793_v15  ;;  %2720 = vmatprep.subr.mxu1 %v7796_v22  ;;  %10568 = vst [vmem:[#allocation32_spill] sm:$0xff] %v7805_v11  ;;  %10569 = vst [vmem:[#allocation27_spill] sm:$0xff] %v7808_v4  ;;  %v7811_v15 = vld [vmem:[#allocation3] sm:$0xff]  ;;  %v7815_v22 = vld [vmem:[#allocation3 + $0x10] sm:$0xff] }
 0x4d7   :  { %2650 = vmatpush1.msra.mxu0 %v7799_v13  ;;  %2721 = vmatpush1.msra.mxu1 %v7802_v20  ;;  %10570 = vst [vmem:[#allocation33_spill] sm:$0xff] %v7811_v15  ;;  %10571 = vst [vmem:[#allocation29_spill] sm:$0xff] %v7815_v22  ;;  %v7830_v20 = vld [vmem:[#allocation8 + $0x1f0] sm:$0xff] }
 0x4d8   :  { %2651 = vmatprep.subr.mxu0 %v7805_v11  ;;  %2722 = vmatprep.subr.mxu1 %v7808_v4  ;;  %v7821_v11 = vld [vmem:[#allocation8 + $0x1e8] sm:$0xff]  ;;  %v7824_v4 = vld [vmem:[#allocation8 + $0x1f8] sm:$0xff]  ;;  %10575 = vst [vmem:[#allocation36_spill] sm:$0xff] %v7830_v20 }
 0x4d9   :  { %2652 = vmatpush1.msra.mxu0 %v7811_v15  ;;  %2685 = vmatprep.mubr.f32.mxu0 %v10124_v35  ;;  %10572 = vst [vmem:[#allocation34_spill] sm:$0xff] %v7821_v11  ;;  %10573 = vst [vmem:[#allocation31_spill] sm:$0xff] %v7824_v4  ;;  %v7827_v15 = vld [vmem:[#allocation8 + $0x1e0] sm:$0xff] }
 0x4da   :  { %2723 = vmatpush1.msra.mxu1 %v7815_v22  ;;  %2756 = vmatprep.mubr.f32.mxu1 %v10124_v35  ;;  %10574 = vst [vmem:[#allocation35_spill] sm:$0xff] %v7827_v15  ;;  %v7833_v22 = vld [vmem:[#allocation8 + $0x1c8] sm:$0xff] }
 0x4db   :  { %2686 = vmatmul.mubr.f32.vlgmr.msra.gmra.mxu0 %v7627_v62  ;;  %2757 = vmatmul.mubr.f32.vlgmr.msra.gmra.mxu1 %v7627_v62  ;;  %10576 = vst [vmem:[#allocation37_spill] sm:$0xff] %v7833_v22  ;;  %v7836_v62 = vld [vmem:[#allocation8 + $0x1d8] sm:$0xff] }
 0x4dc   :  { %2817 = vmatprep.subr.mxu0 %v7821_v11  ;;  %2888 = vmatprep.subr.mxu1 %v7824_v4  ;;  %10577 = vst [vmem:[#allocation38_spill] sm:$0xff] %v7836_v62  ;;  %v7839_v11 = vld [vmem:[#allocation8 + $0x1c0] sm:$0xff]  ;;  %v7842_v4 = vld [vmem:[#allocation8 + $0x1d0] sm:$0xff] }
 0x4dd   :  { %2818 = vmatpush1.msra.mxu0 %v7827_v15  ;;  %2889 = vmatpush1.msra.mxu1 %v7830_v20  ;;  %10578 = vst [vmem:[#allocation39_spill] sm:$0xff] %v7839_v11  ;;  %10579 = vst [vmem:[#allocation40_spill] sm:$0xff] %v7842_v4  ;;  %v7845_v15 = vld [vmem:[#allocation8 + $0x1a8] sm:$0xff]  ;;  %v7848_v20 = vld [vmem:[#allocation8 + $0x1b8] sm:$0xff] }
 0x4de   :  { %2819 = vmatprep.subr.mxu0 %v7833_v22  ;;  %2890 = vmatprep.subr.mxu1 %v7836_v62  ;;  %10580 = vst [vmem:[#allocation41_spill] sm:$0xff] %v7845_v15  ;;  %10581 = vst [vmem:[#allocation42_spill] sm:$0xff] %v7848_v20  ;;  %v7851_v22 = vld [vmem:[#allocation8 + $0x1a0] sm:$0xff]  ;;  %v7854_v62 = vld [vmem:[#allocation8 + $0x1b0] sm:$0xff] }
 0x4df   :  { %2820 = vmatpush1.msra.mxu0 %v7839_v11  ;;  %2891 = vmatpush1.msra.mxu1 %v7842_v4  ;;  %10582 = vst [vmem:[#allocation43_spill] sm:$0xff] %v7851_v22  ;;  %10583 = vst [vmem:[#allocation44_spill] sm:$0xff] %v7854_v62  ;;  %v7857_v11 = vld [vmem:[#allocation8 + $0x188] sm:$0xff]  ;;  %v7860_v4 = vld [vmem:[#allocation8 + $0x198] sm:$0xff] }
 0x4e0   :  { %2821 = vmatprep.subr.mxu0 %v7845_v15  ;;  %2892 = vmatprep.subr.mxu1 %v7848_v20  ;;  %10584 = vst [vmem:[#allocation45_spill] sm:$0xff] %v7857_v11  ;;  %10585 = vst [vmem:[#allocation46_spill] sm:$0xff] %v7860_v4  ;;  %v7863_v15 = vld [vmem:[#allocation8 + $0x180] sm:$0xff]  ;;  %v7866_v20 = vld [vmem:[#allocation8 + $0x190] sm:$0xff] }
 0x4e1   :  { %2822 = vmatpush1.msra.mxu0 %v7851_v22  ;;  %2893 = vmatpush1.msra.mxu1 %v7854_v62  ;;  %10586 = vst [vmem:[#allocation47_spill] sm:$0xff] %v7863_v15  ;;  %10587 = vst [vmem:[#allocation48_spill] sm:$0xff] %v7866_v20  ;;  %v7869_v22 = vld [vmem:[#allocation8 + $0x168] sm:$0xff]  ;;  %v7872_v62 = vld [vmem:[#allocation8 + $0x178] sm:$0xff] }
 0x4e2   :  { %2823 = vmatprep.subr.mxu0 %v7857_v11  ;;  %2894 = vmatprep.subr.mxu1 %v7860_v4  ;;  %10588 = vst [vmem:[#allocation49_spill] sm:$0xff] %v7869_v22  ;;  %10589 = vst [vmem:[#allocation50_spill] sm:$0xff] %v7872_v62  ;;  %v7875_v11 = vld [vmem:[#allocation8 + $0x160] sm:$0xff]  ;;  %v7878_v4 = vld [vmem:[#allocation8 + $0x170] sm:$0xff] }
 0x4e3   :  { %2824 = vmatpush1.msra.mxu0 %v7863_v15  ;;  %2895 = vmatpush1.msra.mxu1 %v7866_v20  ;;  %10590 = vst [vmem:[#allocation51_spill] sm:$0xff] %v7875_v11  ;;  %10591 = vst [vmem:[#allocation52_spill] sm:$0xff] %v7878_v4  ;;  %v7881_v15 = vld [vmem:[#allocation8 + $0x148] sm:$0xff]  ;;  %v7884_v20 = vld [vmem:[#allocation8 + $0x158] sm:$0xff] }
 0x4e4   :  { %2825 = vmatprep.subr.mxu0 %v7869_v22  ;;  %2896 = vmatprep.subr.mxu1 %v7872_v62  ;;  %10592 = vst [vmem:[#allocation53_spill] sm:$0xff] %v7881_v15  ;;  %10593 = vst [vmem:[#allocation54_spill] sm:$0xff] %v7884_v20  ;;  %v7887_v22 = vld [vmem:[#allocation8 + $0x140] sm:$0xff]  ;;  %v7890_v62 = vld [vmem:[#allocation8 + $0x150] sm:$0xff] }
 0x4e5   :  { %2826 = vmatpush1.msra.mxu0 %v7875_v11  ;;  %2897 = vmatpush1.msra.mxu1 %v7878_v4  ;;  %10594 = vst [vmem:[#allocation55_spill] sm:$0xff] %v7887_v22  ;;  %10595 = vst [vmem:[#allocation56_spill] sm:$0xff] %v7890_v62  ;;  %v7893_v11 = vld [vmem:[#allocation8 + $0x128] sm:$0xff]  ;;  %v7896_v4 = vld [vmem:[#allocation8 + $0x138] sm:$0xff] }
 0x4e6   :  { %2827 = vmatprep.subr.mxu0 %v7881_v15  ;;  %2898 = vmatprep.subr.mxu1 %v7884_v20  ;;  %10596 = vst [vmem:[#allocation57_spill] sm:$0xff] %v7893_v11  ;;  %10597 = vst [vmem:[#allocation58_spill] sm:$0xff] %v7896_v4  ;;  %v7899_v15 = vld [vmem:[#allocation8 + $0x120] sm:$0xff]  ;;  %v7902_v20 = vld [vmem:[#allocation8 + $0x130] sm:$0xff] }
 0x4e7   :  { %2828 = vmatpush1.msra.mxu0 %v7887_v22  ;;  %2899 = vmatpush1.msra.mxu1 %v7890_v62  ;;  %10598 = vst [vmem:[#allocation59_spill] sm:$0xff] %v7899_v15  ;;  %10599 = vst [vmem:[#allocation60_spill] sm:$0xff] %v7902_v20  ;;  %v7905_v22 = vld [vmem:[#allocation8 + $0x108] sm:$0xff]  ;;  %v7908_v62 = vld [vmem:[#allocation8 + $0x118] sm:$0xff] }
 0x4e8   :  { %2829 = vmatprep.subr.mxu0 %v7893_v11  ;;  %2900 = vmatprep.subr.mxu1 %v7896_v4  ;;  %10600 = vst [vmem:[#allocation61_spill] sm:$0xff] %v7905_v22  ;;  %10601 = vst [vmem:[#allocation62_spill] sm:$0xff] %v7908_v62  ;;  %v7911_v11 = vld [vmem:[#allocation8 + $0x100] sm:$0xff]  ;;  %v7914_v4 = vld [vmem:[#allocation8 + $0x110] sm:$0xff] }
 0x4e9   :  { %2830 = vmatpush1.msra.mxu0 %v7899_v15  ;;  %2901 = vmatpush1.msra.mxu1 %v7902_v20  ;;  %10602 = vst [vmem:[#allocation63_spill] sm:$0xff] %v7911_v11  ;;  %10603 = vst [vmem:[#allocation64_spill] sm:$0xff] %v7914_v4  ;;  %v7917_v15 = vld [vmem:[#allocation8 + $0xe8] sm:$0xff]  ;;  %v7920_v20 = vld [vmem:[#allocation8 + $0xf8] sm:$0xff] }
 0x4ea   :  { %2831 = vmatprep.subr.mxu0 %v7905_v22  ;;  %2902 = vmatprep.subr.mxu1 %v7908_v62  ;;  %10604 = vst [vmem:[#allocation65_spill] sm:$0xff] %v7917_v15  ;;  %10605 = vst [vmem:[#allocation66_spill] sm:$0xff] %v7920_v20  ;;  %v7923_v22 = vld [vmem:[#allocation8 + $0xe0] sm:$0xff]  ;;  %v7926_v62 = vld [vmem:[#allocation8 + $0xf0] sm:$0xff] }
 0x4eb   :  { %2832 = vmatpush1.msra.mxu0 %v7911_v11  ;;  %2903 = vmatpush1.msra.mxu1 %v7914_v4  ;;  %10606 = vst [vmem:[#allocation67_spill] sm:$0xff] %v7923_v22  ;;  %10607 = vst [vmem:[#allocation68_spill] sm:$0xff] %v7926_v62  ;;  %v7929_v11 = vld [vmem:[#allocation8 + $0xc8] sm:$0xff]  ;;  %v7932_v4 = vld [vmem:[#allocation8 + $0xd8] sm:$0xff] }
 0x4ec   :  { %2833 = vmatprep.subr.mxu0 %v7917_v15  ;;  %2904 = vmatprep.subr.mxu1 %v7920_v20  ;;  %10608 = vst [vmem:[#allocation69_spill] sm:$0xff] %v7929_v11  ;;  %10609 = vst [vmem:[#allocation70_spill] sm:$0xff] %v7932_v4  ;;  %v7935_v15 = vld [vmem:[#allocation8 + $0xc0] sm:$0xff]  ;;  %v7938_v20 = vld [vmem:[#allocation8 + $0xd0] sm:$0xff] }
 0x4ed   :  { %2834 = vmatpush1.msra.mxu0 %v7923_v22  ;;  %2905 = vmatpush1.msra.mxu1 %v7926_v62  ;;  %10610 = vst [vmem:[#allocation71_spill] sm:$0xff] %v7935_v15  ;;  %10611 = vst [vmem:[#allocation72_spill] sm:$0xff] %v7938_v20  ;;  %v7941_v22 = vld [vmem:[#allocation8 + $0xa8] sm:$0xff]  ;;  %v7944_v62 = vld [vmem:[#allocation8 + $0xb8] sm:$0xff] }
 0x4ee   :  { %2835 = vmatprep.subr.mxu0 %v7929_v11  ;;  %2906 = vmatprep.subr.mxu1 %v7932_v4  ;;  %10612 = vst [vmem:[#allocation73_spill] sm:$0xff] %v7941_v22  ;;  %10613 = vst [vmem:[#allocation74_spill] sm:$0xff] %v7944_v62  ;;  %v7947_v11 = vld [vmem:[#allocation8 + $0xa0] sm:$0xff]  ;;  %v7950_v4 = vld [vmem:[#allocation8 + $0xb0] sm:$0xff] }
 0x4ef   :  { %2836 = vmatpush1.msra.mxu0 %v7935_v15  ;;  %2907 = vmatpush1.msra.mxu1 %v7938_v20  ;;  %10614 = vst [vmem:[#allocation75_spill] sm:$0xff] %v7947_v11  ;;  %10615 = vst [vmem:[#allocation76_spill] sm:$0xff] %v7950_v4  ;;  %v7953_v15 = vld [vmem:[#allocation8 + $0x88] sm:$0xff]  ;;  %v7956_v20 = vld [vmem:[#allocation8 + $0x98] sm:$0xff] }
 0x4f0   :  { %2837 = vmatprep.subr.mxu0 %v7941_v22  ;;  %2908 = vmatprep.subr.mxu1 %v7944_v62  ;;  %10616 = vst [vmem:[#allocation77_spill] sm:$0xff] %v7953_v15  ;;  %10617 = vst [vmem:[#allocation78_spill] sm:$0xff] %v7956_v20  ;;  %v7959_v22 = vld [vmem:[#allocation8 + $0x80] sm:$0xff]  ;;  %v7962_v62 = vld [vmem:[#allocation8 + $0x90] sm:$0xff] }
 0x4f1   :  { %2838 = vmatpush1.msra.mxu0 %v7947_v11  ;;  %2909 = vmatpush1.msra.mxu1 %v7950_v4  ;;  %10618 = vst [vmem:[#allocation79_spill] sm:$0xff] %v7959_v22  ;;  %10619 = vst [vmem:[#allocation80_spill] sm:$0xff] %v7962_v62  ;;  %v7965_v11 = vld [vmem:[#allocation8 + $0x68] sm:$0xff]  ;;  %v7968_v4 = vld [vmem:[#allocation8 + $0x78] sm:$0xff] }
 0x4f2   :  { %2839 = vmatprep.subr.mxu0 %v7953_v15  ;;  %2910 = vmatprep.subr.mxu1 %v7956_v20  ;;  %10620 = vst [vmem:[#allocation81_spill] sm:$0xff] %v7965_v11  ;;  %10621 = vst [vmem:[#allocation82_spill] sm:$0xff] %v7968_v4  ;;  %v7971_v15 = vld [vmem:[#allocation8 + $0x60] sm:$0xff]  ;;  %v7974_v20 = vld [vmem:[#allocation8 + $0x70] sm:$0xff] }
 0x4f3   :  { %2840 = vmatpush1.msra.mxu0 %v7959_v22  ;;  %2911 = vmatpush1.msra.mxu1 %v7962_v62  ;;  %10622 = vst [vmem:[#allocation83_spill] sm:$0xff] %v7971_v15  ;;  %10623 = vst [vmem:[#allocation84_spill] sm:$0xff] %v7974_v20  ;;  %v7977_v22 = vld [vmem:[#allocation8 + $0x48] sm:$0xff]  ;;  %v7980_v62 = vld [vmem:[#allocation8 + $0x58] sm:$0xff] }
 0x4f4   :  { %2841 = vmatprep.subr.mxu0 %v7965_v11  ;;  %2912 = vmatprep.subr.mxu1 %v7968_v4  ;;  %10624 = vst [vmem:[#allocation85_spill] sm:$0xff] %v7977_v22  ;;  %10625 = vst [vmem:[#allocation86_spill] sm:$0xff] %v7980_v62  ;;  %v7983_v11 = vld [vmem:[#allocation8 + $0x40] sm:$0xff]  ;;  %v7986_v4 = vld [vmem:[#allocation8 + $0x50] sm:$0xff] }
 0x4f5   :  { %2842 = vmatpush1.msra.mxu0 %v7971_v15  ;;  %2913 = vmatpush1.msra.mxu1 %v7974_v20  ;;  %10626 = vst [vmem:[#allocation87_spill] sm:$0xff] %v7983_v11  ;;  %10627 = vst [vmem:[#allocation88_spill] sm:$0xff] %v7986_v4  ;;  %v7989_v15 = vld [vmem:[#allocation8 + $0x28] sm:$0xff]  ;;  %v7992_v20 = vld [vmem:[#allocation8 + $0x38] sm:$0xff] }
 0x4f6   :  { %2843 = vmatprep.subr.mxu0 %v7977_v22  ;;  %2914 = vmatprep.subr.mxu1 %v7980_v62  ;;  %10628 = vst [vmem:[#allocation89_spill] sm:$0xff] %v7989_v15  ;;  %10629 = vst [vmem:[#allocation90_spill] sm:$0xff] %v7992_v20  ;;  %v7995_v22 = vld [vmem:[#allocation8 + $0x20] sm:$0xff]  ;;  %v7998_v62 = vld [vmem:[#allocation8 + $0x30] sm:$0xff] }
 0x4f7   :  { %2844 = vmatpush1.msra.mxu0 %v7983_v11  ;;  %2915 = vmatpush1.msra.mxu1 %v7986_v4  ;;  %10630 = vst [vmem:[#allocation91_spill] sm:$0xff] %v7995_v22  ;;  %10631 = vst [vmem:[#allocation92_spill] sm:$0xff] %v7998_v62  ;;  %v8001_v11 = vld [vmem:[#allocation8 + $0x8] sm:$0xff]  ;;  %v8004_v4 = vld [vmem:[#allocation8 + $0x18] sm:$0xff] }
 0x4f8   :  { %2845 = vmatprep.subr.mxu0 %v7989_v15  ;;  %2916 = vmatprep.subr.mxu1 %v7992_v20  ;;  %10632 = vst [vmem:[#allocation93_spill] sm:$0xff] %v8001_v11  ;;  %10633 = vst [vmem:[#allocation94_spill] sm:$0xff] %v8004_v4  ;;  %v8007_v15 = vld [vmem:[#allocation8] sm:$0xff]  ;;  %v8011_v20 = vld [vmem:[#allocation8 + $0x10] sm:$0xff] }
 0x4f9   :  { %2846 = vmatpush1.msra.mxu0 %v7995_v22  ;;  %2917 = vmatpush1.msra.mxu1 %v7998_v62  ;;  %10634 = vst [vmem:[#allocation95_spill] sm:$0xff] %v8007_v15  ;;  %10635 = vst [vmem:[#allocation96_spill] sm:$0xff] %v8011_v20  ;;  %v8015_v62 = vld [vmem:[#allocation6 + $0x1e8] sm:$0xff] }
 0x4fa   :  { %2847 = vmatprep.subr.mxu0 %v8001_v11  ;;  %2918 = vmatprep.subr.mxu1 %v8004_v4  ;;  %10636 = vst [vmem:[#allocation97_spill] sm:$0xff] %v8015_v62  ;;  %v8018_v11 = vld [vmem:[#allocation6 + $0x1f8] sm:$0xff] }
 0x4fb   :  { %2848 = vmatpush1.msra.mxu0 %v8007_v15  ;;  %2881 = vmatprep.mubr.f32.mxu0 %v10124_v35  ;;  %10637 = vst [vmem:[#allocation98_spill] sm:$0xff] %v8018_v11 }
 0x4fc   :  { %2919 = vmatpush1.msra.mxu1 %v8011_v20  ;;  %2952 = vmatprep.mubr.f32.mxu1 %v10124_v35 }
 0x4fd   :  { %2959 = vmatprep.subr.mxu0 %v8015_v62  ;;  %3030 = vmatprep.subr.mxu1 %v8018_v11 }
 0x553   :  { %v2374_v4 = vpop.f32.mrf.mxu0  ;;  %v2445_v22 = vpop.f32.mrf.mxu1 }
 0x555   :  { %v2376_v13 = vpop.f32.mrf.mxu0  ;;  %v2447_v26 = vpop.f32.mrf.mxu1 }
 0x57a   :  { %v2516_v15 = vpop.f32.mrf.mxu0  ;;  %v2587_v20 = vpop.f32.mrf.mxu1 }
 0x57b   :  { %v2517_v2 = vadd.f32 %v2516_v15, %v2374_v4  ;;  %v2588_v54 = vadd.f32 %v2587_v20, %v2445_v22 }
 0x57c   :  { %v2518_v14 = vpop.f32.mrf.mxu0  ;;  %v2589_v50 = vpop.f32.mrf.mxu1 }
 0x57d   :  { %v2592_v55 = vadd.f32 %v2517_v2, %v6701_v8  ;;  %v2519_v57 = vadd.f32 %v2518_v14, %v2376_v13  ;;  %v2590_v7 = vadd.f32 %v2589_v50, %v2447_v26  ;;  %v2594_v4 = vadd.f32 %v2588_v54, %v6716_v18 }
 0x57f   :  { %v4792_v52 = vmul.f32 -1.442695, %v2592_v55  ;;  %v2593_v16 = vadd.f32 %v2519_v57, %v6705_v61  ;;  %v2595_v11 = vadd.f32 %v2590_v7, %v6711_v12 }
 0x581   :  { %4993 = vpow2.f32 %v4792_v52  ;;  %v4793_v62 = vmul.f32 -1.442695, %v2593_v16  ;;  %v4794_v3 = vmul.f32 -1.442695, %v2595_v11 }
 0x583   :  { %4995 = vpow2.f32 %v4793_v62 }
 0x584   :  { %4997 = vpow2.f32 %v4794_v3 }
 0x58e   :  { %v4994_v63 = vpop.eup %4993 }
 0x58f   :  { %v2599_v15 = vadd.f32 1.0, %v4994_v63 }
 0x590   :  { %v4996_v59 = vpop.eup %4995 }
 0x591   :  { %4999 = vrcp.f32 %v2599_v15  ;;  %v2605_v14 = vadd.f32 1.0, %v4996_v59  ;;  %v4998_v16 = vpop.eup %4997  ;;  %v10639_v15 = vld [vmem:[#allocation166_spill] sm:$0xff] }
 0x592   :  { %5001 = vtanh.f32 %v2594_v4  ;;  %v2612_v20 = vadd.f32 1.0, %v4998_v16  ;;  %v10638_v4 = vld [vmem:[#allocation164_spill] sm:$0xff] }
 0x593   :  { %5003 = vrcp.f32 %v2605_v14  ;;  %v10640_v14 = vcombine.low %v10638_v4, %v10639_v15 }
 0x594   :  { %5005 = vrcp.f32 %v2612_v20  ;;  %v8034_v20 = vld [vmem:[#allocation6 + $0x1e0] sm:$0xff] }
 0x59b   :  { %v2687_v57 = vpop.f32.mrf.mxu0  ;;  %v2758_v52 = vpop.f32.mrf.mxu1 }
 0x59d   :  { %v2689_v55 = vpop.f32.mrf.mxu0  ;;  %v2760_v2 = vpop.f32.mrf.mxu1 }
 0x59e   :  { %v5000_v50 = vpop.eup %4999  ;;  %v2767_v26 = vcombine.low %v2687_v57, %v2689_v55  ;;  %v2768_v7 = vcombine.low %v2758_v52, %v2760_v2 }
 0x59f   :  { %v5002_v22 = vpop.eup %5001 }
 0x5a0   :  { %v5004_v13 = vpop.eup %5003  ;;  %v2775_v54 = vrot.slane %v2767_v26, %v6511_v1  ;;  %v2782_v63 = vrot.slane %v2768_v7, %v6511_v1  ;;  %v2616_v3 = vmul.f32 %v5002_v22, %v5000_v50 }
 0x5a1   :  { %v2615_v59 = vmul.f32 %v5004_v13, %v7547_v51  ;;  %v5006_v2 = vpop.eup %5005 }
 0x5a2   :  { %v2783_v11 = vcombine.low %v2775_v54, %v2782_v63  ;;  %v8037_v54 = vld [vmem:[#allocation6 + $0x1f0] sm:$0xff] }
 0x5a3   :  { %v8028_v62 = vadd.f32 %v2616_v3, %v2615_v59  ;;  %v8040_v3 = vld [vmem:[#allocation6 + $0x1c8] sm:$0xff]  ;;  %v8043_v59 = vld [vmem:[#allocation6 + $0x1d8] sm:$0xff] }
 0x5a4   :  { %v2785_v18 = vadd.f32 %v2783_v11, %v10640_v14  ;;  %v8046_v11 = vld [vmem:[#allocation6 + $0x1c0] sm:$0xff]  ;;  %v8049_v14 = vld [vmem:[#allocation6 + $0x1d0] sm:$0xff] }
 0x5a5   :  { %5007 = vtanh.f32 %v8028_v62 }
 0x5a6   :  { %v4795_v57 = vmul.f32 -1.442695, %v2785_v18  ;;  %v2793_v52 = vrot.slane %v2785_v18, 2  ;;  %v2804_v55 = vrot.slane %v2785_v18, 6  ;;  %v2801_v22 = vrot.slane %v2785_v18, 4 }
 0x5a8   :  { %5009 = vpow2.f32 %v4795_v57  ;;  %v4796_v16 = vmul.f32 -1.442695, %v2793_v52  ;;  %v4797_v26 = vmul.f32 -1.442695, %v2804_v55  ;;  %v8052_v57 = vld [vmem:[#allocation6 + $0x1a8] sm:$0xff]  ;;  %v8055_v52 = vld [vmem:[#allocation6 + $0x1b8] sm:$0xff] }
 0x5a9   :  { %v8061_v55 = vld [vmem:[#allocation6 + $0x1b0] sm:$0xff] }
 0x5aa   :  { %5011 = vpow2.f32 %v4796_v16  ;;  %v8058_v16 = vld [vmem:[#allocation6 + $0x1a0] sm:$0xff]  ;;  %10642 = vst [vmem:[#allocation100_spill] sm:$0xff] %v8061_v55 }
 0x5ab   :  { %5013 = vpow2.f32 %v4797_v26  ;;  %10641 = vst [vmem:[#allocation99_spill] sm:$0xff] %v8058_v16  ;;  %v8070_v26 = vld [vmem:[#allocation6 + $0x180] sm:$0xff] }
 0x5ac   :  { %10645 = vst [vmem:[#allocation103_spill] sm:$0xff] %v8070_v26 }
 0x5b2   :  { %v5008_v50 = vpop.eup %5007 }
 0x5b3   :  { %v2619_v51 = vmul.f32 %v5008_v50, %v5006_v2  ;;  %v8064_v2 = vld [vmem:[#allocation6 + $0x188] sm:$0xff]  ;;  %v8067_v50 = vld [vmem:[#allocation6 + $0x198] sm:$0xff] }
 0x5b4   :  { %10643 = vst [vmem:[#allocation101_spill] sm:$0xff] %v8064_v2  ;;  %10644 = vst [vmem:[#allocation102_spill] sm:$0xff] %v8067_v50 }
 0x5b5   :  { %v5010_v7 = vpop.eup %5009  ;;  %2882 = vmatmul.mubr.f32.vlgmr.msra.gmra.mxu0 %v2619_v51  ;;  %2953 = vmatmul.mubr.f32.vlgmr.msra.gmra.mxu1 %v2619_v51  ;;  %v8073_v51 = vld [vmem:[#allocation6 + $0x190] sm:$0xff] }
 0x5b6   :  { %v2789_v13 = vadd.f32 1.0, %v5010_v7  ;;  %2960 = vmatpush1.msra.mxu0 %v8034_v20  ;;  %3031 = vmatpush1.msra.mxu1 %v8037_v54  ;;  %10646 = vst [vmem:[#allocation104_spill] sm:$0xff] %v8073_v51  ;;  %v8076_v7 = vld [vmem:[#allocation6 + $0x168] sm:$0xff] }
 0x5b7   :  { %v5012_v63 = vpop.eup %5011  ;;  %2961 = vmatprep.subr.mxu0 %v8040_v3  ;;  %3032 = vmatprep.subr.mxu1 %v8043_v59  ;;  %10647 = vst [vmem:[#allocation105_spill] sm:$0xff] %v8076_v7 }
 0x5b8   :  { %5015 = vrcp.f32 %v2789_v13  ;;  %v2798_v18 = vadd.f32 1.0, %v5012_v63  ;;  %2962 = vmatpush1.msra.mxu0 %v8046_v11  ;;  %3033 = vmatpush1.msra.mxu1 %v8049_v14  ;;  %v8082_v13 = vld [vmem:[#allocation6 + $0x160] sm:$0xff]  ;;  %v8085_v63 = vld [vmem:[#allocation6 + $0x170] sm:$0xff] }
 0x5b9   :  { %5017 = vtanh.f32 %v2801_v22  ;;  %2963 = vmatprep.subr.mxu0 %v8052_v57  ;;  %3034 = vmatprep.subr.mxu1 %v8055_v52  ;;  %v8079_v22 = vld [vmem:[#allocation6 + $0x178] sm:$0xff]  ;;  %10649 = vst [vmem:[#allocation107_spill] sm:$0xff] %v8082_v13  ;;  %10650 = vst [vmem:[#allocation108_spill] sm:$0xff] %v8085_v63 }
 0x5ba   :  { %5019 = vrcp.f32 %v2798_v18  ;;  %2964 = vmatpush1.msra.mxu0 %v8058_v16  ;;  %3035 = vmatpush1.msra.mxu1 %v8061_v55  ;;  %10648 = vst [vmem:[#allocation106_spill] sm:$0xff] %v8079_v22  ;;  %v8088_v18 = vld [vmem:[#allocation6 + $0x148] sm:$0xff]  ;;  %v8145_v16 = vld [vmem:[#allocation6 + $0xd0] sm:$0xff] }
 0x5bb   :  { %2965 = vmatprep.subr.mxu0 %v8064_v2  ;;  %3036 = vmatprep.subr.mxu1 %v8067_v50  ;;  %10651 = vst [vmem:[#allocation109_spill] sm:$0xff] %v8088_v18  ;;  %v8124_v50 = vld [vmem:[#allocation6 + $0xe8] sm:$0xff]  ;;  %v8133_v2 = vld [vmem:[#allocation6 + $0xf0] sm:$0xff]  ;;  %10670 = vst [vmem:[#allocation128_spill] sm:$0xff] %v8145_v16 }
 0x5bc   :  { %2966 = vmatpush1.msra.mxu0 %v8070_v26  ;;  %3037 = vmatpush1.msra.mxu1 %v8073_v51  ;;  %v8091_v51 = vld [vmem:[#allocation6 + $0x158] sm:$0xff]  ;;  %v8118_v26 = vld [vmem:[#allocation6 + $0x100] sm:$0xff]  ;;  %10663 = vst [vmem:[#allocation121_spill] sm:$0xff] %v8124_v50  ;;  %10666 = vst [vmem:[#allocation124_spill] sm:$0xff] %v8133_v2 }
 0x5bd   :  { %2967 = vmatprep.subr.mxu0 %v8076_v7  ;;  %3038 = vmatprep.subr.mxu1 %v8079_v22  ;;  %10652 = vst [vmem:[#allocation110_spill] sm:$0xff] %v8091_v51  ;;  %v8094_v7 = vld [vmem:[#allocation6 + $0x140] sm:$0xff]  ;;  %v8097_v22 = vld [vmem:[#allocation6 + $0x150] sm:$0xff]  ;;  %10661 = vst [vmem:[#allocation119_spill] sm:$0xff] %v8118_v26 }
 0x5be   :  { %2968 = vmatpush1.msra.mxu0 %v8082_v13  ;;  %3039 = vmatpush1.msra.mxu1 %v8085_v63  ;;  %10653 = vst [vmem:[#allocation111_spill] sm:$0xff] %v8094_v7  ;;  %10654 = vst [vmem:[#allocation112_spill] sm:$0xff] %v8097_v22  ;;  %v8100_v13 = vld [vmem:[#allocation6 + $0x128] sm:$0xff]  ;;  %v8103_v63 = vld [vmem:[#allocation6 + $0x138] sm:$0xff] }
 0x5bf   :  { %2969 = vmatprep.subr.mxu0 %v8088_v18  ;;  %3040 = vmatprep.subr.mxu1 %v8091_v51  ;;  %10655 = vst [vmem:[#allocation113_spill] sm:$0xff] %v8100_v13  ;;  %10656 = vst [vmem:[#allocation114_spill] sm:$0xff] %v8103_v63  ;;  %v8106_v18 = vld [vmem:[#allocation6 + $0x120] sm:$0xff]  ;;  %v8109_v51 = vld [vmem:[#allocation6 + $0x130] sm:$0xff] }
 0x5c0   :  { %2970 = vmatpush1.msra.mxu0 %v8094_v7  ;;  %3041 = vmatpush1.msra.mxu1 %v8097_v22  ;;  %10657 = vst [vmem:[#allocation115_spill] sm:$0xff] %v8106_v18  ;;  %10658 = vst [vmem:[#allocation116_spill] sm:$0xff] %v8109_v51  ;;  %v8112_v7 = vld [vmem:[#allocation6 + $0x108] sm:$0xff]  ;;  %v8115_v22 = vld [vmem:[#allocation6 + $0x118] sm:$0xff] }
 0x5c1   :  { %2971 = vmatprep.subr.mxu0 %v8100_v13  ;;  %3042 = vmatprep.subr.mxu1 %v8103_v63  ;;  %10659 = vst [vmem:[#allocation117_spill] sm:$0xff] %v8112_v7  ;;  %10660 = vst [vmem:[#allocation118_spill] sm:$0xff] %v8115_v22  ;;  %v5014_v13 = vpop.eup %5013  ;;  %v8121_v63 = vld [vmem:[#allocation6 + $0x110] sm:$0xff]  ;;  %v8136_v55 = vld [vmem:[#allocation6 + $0xc8] sm:$0xff] }
 0x5c2   :  { %2972 = vmatpush1.msra.mxu0 %v8106_v18  ;;  %3043 = vmatpush1.msra.mxu1 %v8109_v51  ;;  %10662 = vst [vmem:[#allocation120_spill] sm:$0xff] %v8121_v63  ;;  %v8127_v51 = vld [vmem:[#allocation6 + $0xf8] sm:$0xff]  ;;  %10667 = vst [vmem:[#allocation125_spill] sm:$0xff] %v8136_v55 }
 0x5c3   :  { %2973 = vmatprep.subr.mxu0 %v8112_v7  ;;  %3044 = vmatprep.subr.mxu1 %v8115_v22  ;;  %10664 = vst [vmem:[#allocation122_spill] sm:$0xff] %v8127_v51  ;;  %v8130_v22 = vld [vmem:[#allocation6 + $0xe0] sm:$0xff] }
 0x5c4   :  { %2974 = vmatpush1.msra.mxu0 %v8118_v26  ;;  %3045 = vmatpush1.msra.mxu1 %v8121_v63  ;;  %10665 = vst [vmem:[#allocation123_spill] sm:$0xff] %v8130_v22  ;;  %v2809_v63 = vadd.f32 1.0, %v5014_v13  ;;  %v8149_v13 = vld [vmem:[#allocation6 + $0xa8] sm:$0xff] }
 0x5c5   :  { %v5016_v18 = vpop.eup %5015  ;;  %2975 = vmatprep.subr.mxu0 %v8124_v50  ;;  %3046 = vmatprep.subr.mxu1 %v8127_v51  ;;  %v8139_v50 = vld [vmem:[#allocation6 + $0xd8] sm:$0xff]  ;;  %v8142_v51 = vld [vmem:[#allocation6 + $0xc0] sm:$0xff] }
 0x5c6   :  { %v5018_v7 = vpop.eup %5017  ;;  %2976 = vmatpush1.msra.mxu0 %v8130_v22  ;;  %3047 = vmatpush1.msra.mxu1 %v8133_v2  ;;  %10668 = vst [vmem:[#allocation126_spill] sm:$0xff] %v8139_v50  ;;  %10669 = vst [vmem:[#allocation127_spill] sm:$0xff] %v8142_v51  ;;  %5021 = vrcp.f32 %v2809_v63  ;;  %v8182_v63 = vld [vmem:[#allocation6 + $0x60] sm:$0xff] }
 0x5c7   :  { %v5020_v26 = vpop.eup %5019  ;;  %2977 = vmatprep.subr.mxu0 %v8136_v55  ;;  %3048 = vmatprep.subr.mxu1 %v8139_v50  ;;  %v2813_v22 = vmul.f32 %v5018_v7, %v5016_v18  ;;  %v8152_v55 = vld [vmem:[#allocation6 + $0xb8] sm:$0xff]  ;;  %v8155_v50 = vld [vmem:[#allocation6 + $0xa0] sm:$0xff]  ;;  %v8172_v18 = vld [vmem:[#allocation6 + $0x90] sm:$0xff]  ;;  %10676 = vst [vmem:[#allocation134_spill] sm:$0xff] %v8182_v63 }
 0x5c8   :  { %2978 = vmatpush1.msra.mxu0 %v8142_v51  ;;  %3049 = vmatpush1.msra.mxu1 %v8145_v16  ;;  %v2812_v2 = vmul.f32 %v5020_v26, %v7596_v6  ;;  %v8158_v51 = vld [vmem:[#allocation6 + $0xb0] sm:$0xff]  ;;  %v8163_v6 = vld [vmem:[#allocation6 + $0x88] sm:$0xff]  ;;  %v8166_v26 = vld [vmem:[#allocation6 + $0x98] sm:$0xff]  ;;  %10673 = vst [vmem:[#allocation131_spill] sm:$0xff] %v8172_v18 }
 0x5c9   :  { %2979 = vmatprep.subr.mxu0 %v8149_v13  ;;  %3050 = vmatprep.subr.mxu1 %v8152_v55  ;;  %10671 = vst [vmem:[#allocation129_spill] sm:$0xff] %v8166_v26  ;;  %v8169_v7 = vld [vmem:[#allocation6 + $0x80] sm:$0xff] }
 0x5ca   :  { %2980 = vmatpush1.msra.mxu0 %v8155_v50  ;;  %3051 = vmatpush1.msra.mxu1 %v8158_v51  ;;  %v8161_v16 = vadd.f32 %v2813_v22, %v2812_v2  ;;  %10672 = vst [vmem:[#allocation130_spill] sm:$0xff] %v8169_v7  ;;  %v8176_v2 = vld [vmem:[#allocation6 + $0x68] sm:$0xff]  ;;  %v8179_v22 = vld [vmem:[#allocation6 + $0x78] sm:$0xff] }
 0x5cb   :  { %2981 = vmatprep.subr.mxu0 %v8163_v6  ;;  %3052 = vmatprep.subr.mxu1 %v8166_v26  ;;  %10674 = vst [vmem:[#allocation132_spill] sm:$0xff] %v8176_v2  ;;  %10675 = vst [vmem:[#allocation133_spill] sm:$0xff] %v8179_v22  ;;  %v8185_v26 = vld [vmem:[#allocation6 + $0x70] sm:$0xff] }
 0x5cc   :  { %2982 = vmatpush1.msra.mxu0 %v8169_v7  ;;  %3053 = vmatpush1.msra.mxu1 %v8172_v18  ;;  %5023 = vtanh.f32 %v8161_v16  ;;  %10677 = vst [vmem:[#allocation135_spill] sm:$0xff] %v8185_v26  ;;  %v8188_v7 = vld [vmem:[#allocation6 + $0x48] sm:$0xff]  ;;  %v8191_v18 = vld [vmem:[#allocation6 + $0x58] sm:$0xff] }
 0x5cd   :  { %2983 = vmatprep.subr.mxu0 %v8176_v2  ;;  %3054 = vmatprep.subr.mxu1 %v8179_v22  ;;  %10678 = vst [vmem:[#allocation136_spill] sm:$0xff] %v8188_v7  ;;  %10679 = vst [vmem:[#allocation137_spill] sm:$0xff] %v8191_v18  ;;  %v8194_v2 = vld [vmem:[#allocation6 + $0x40] sm:$0xff]  ;;  %v8197_v22 = vld [vmem:[#allocation6 + $0x50] sm:$0xff] }
 0x5ce   :  { %2984 = vmatpush1.msra.mxu0 %v8182_v63  ;;  %3055 = vmatpush1.msra.mxu1 %v8185_v26  ;;  %10680 = vst [vmem:[#allocation138_spill] sm:$0xff] %v8194_v2  ;;  %10681 = vst [vmem:[#allocation139_spill] sm:$0xff] %v8197_v22  ;;  %v8200_v63 = vld [vmem:[#allocation6 + $0x28] sm:$0xff]  ;;  %v8203_v26 = vld [vmem:[#allocation6 + $0x38] sm:$0xff] }
 0x5cf   :  { %2985 = vmatprep.subr.mxu0 %v8188_v7  ;;  %3056 = vmatprep.subr.mxu1 %v8191_v18  ;;  %10682 = vst [vmem:[#allocation140_spill] sm:$0xff] %v8200_v63  ;;  %10683 = vst [vmem:[#allocation141_spill] sm:$0xff] %v8203_v26  ;;  %v8206_v7 = vld [vmem:[#allocation6 + $0x20] sm:$0xff]  ;;  %v8209_v18 = vld [vmem:[#allocation6 + $0x30] sm:$0xff] }
 0x5d0   :  { %2986 = vmatpush1.msra.mxu0 %v8194_v2  ;;  %3057 = vmatpush1.msra.mxu1 %v8197_v22  ;;  %10684 = vst [vmem:[#allocation142_spill] sm:$0xff] %v8206_v7  ;;  %10685 = vst [vmem:[#allocation143_spill] sm:$0xff] %v8209_v18  ;;  %v8212_v2 = vld [vmem:[#allocation6 + $0x8] sm:$0xff]  ;;  %v8215_v22 = vld [vmem:[#allocation6 + $0x18] sm:$0xff] }
 0x5d1   :  { %2987 = vmatprep.subr.mxu0 %v8200_v63  ;;  %3058 = vmatprep.subr.mxu1 %v8203_v26  ;;  %10686 = vst [vmem:[#allocation144_spill] sm:$0xff] %v8212_v2  ;;  %v8218_v63 = vld [vmem:[#allocation6] sm:$0xff]  ;;  %v8221_v26 = vld [vmem:[#allocation6 + $0x10] sm:$0xff] }
 0x5d2   :  { %2988 = vmatpush1.msra.mxu0 %v8206_v7  ;;  %3059 = vmatpush1.msra.mxu1 %v8209_v18 }
 0x5d3   :  { %2989 = vmatprep.subr.mxu0 %v8212_v2  ;;  %3060 = vmatprep.subr.mxu1 %v8215_v22  ;;  %v5022_v2 = vpop.eup %5021 }
 0x5d4   :  { %2990 = vmatpush1.msra.mxu0 %v8218_v63  ;;  %3061 = vmatpush1.msra.mxu1 %v8221_v26 }
 0x5d5   :  { %3023 = vmatprep.mubr.f32.mxu0 %v10124_v35  ;;  %3094 = vmatprep.mubr.f32.mxu1 %v10124_v35 }
 0x5d6   :  { %3130 = vmatprep.subr.mxu0 %v7621_v56  ;;  %3201 = vmatprep.subr.mxu1 %v7624_v19  ;;  %v10687_v56 = vld [vmem:[#allocation155_spill] sm:$0xff]  ;;  %v10688_v19 = vld [vmem:[#allocation156_spill] sm:$0xff] }
 0x5d9   :  { %v5024_v18 = vpop.eup %5023 }
 0x5da   :  { %v8228_v7 = vmul.f32 %v5024_v18, %v5022_v2  ;;  %v10723_v18 = vld [vmem:[#allocation41_spill] sm:$0xff]  ;;  %v10724_v2 = vld [vmem:[#allocation42_spill] sm:$0xff] }
 0x5dc   :  { %3024 = vmatmul.mubr.f32.vlgmr.msra.gmra.mxu0 %v8228_v7  ;;  %3095 = vmatmul.mubr.f32.vlgmr.msra.gmra.mxu1 %v8228_v7 }
 0x5dd   :  { %3131 = vmatpush1.msra.mxu0 %v7631_v5  ;;  %3202 = vmatpush1.msra.mxu1 %v7634_v17  ;;  %v10689_v5 = vld [vmem:[#allocation157_spill] sm:$0xff]  ;;  %v10690_v17 = vld [vmem:[#allocation158_spill] sm:$0xff] }
 0x5de   :  { %3132 = vmatprep.subr.mxu0 %v7637_v9  ;;  %3203 = vmatprep.subr.mxu1 %v7640_v23  ;;  %v10691_v9 = vld [vmem:[#allocation159_spill] sm:$0xff]  ;;  %v10692_v23 = vld [vmem:[#allocation160_spill] sm:$0xff] }
 0x5df   :  { %3133 = vmatpush1.msra.mxu0 %v7643_v21  ;;  %3204 = vmatpush1.msra.mxu1 %v7646_v24  ;;  %v10693_v21 = vld [vmem:[#allocation161_spill] sm:$0xff]  ;;  %v10694_v24 = vld [vmem:[#allocation162_spill] sm:$0xff] }
 0x5e0   :  { %3134 = vmatprep.subr.mxu0 %v7649_v25  ;;  %3205 = vmatprep.subr.mxu1 %v7652_v58  ;;  %v10695_v25 = vld [vmem:[#allocation163_spill] sm:$0xff]  ;;  %v10696_v58 = vld [vmem:[#allocation13_spill] sm:$0xff] }
 0x5e1   :  { %3135 = vmatpush1.msra.mxu0 %v7655_v27  ;;  %3206 = vmatpush1.msra.mxu1 %v7658_v10  ;;  %v10697_v27 = vld [vmem:[#allocation18_spill] sm:$0xff] }
 0x5e2   :  { %3136 = vmatprep.subr.mxu0 %v7661_v28  ;;  %3207 = vmatprep.subr.mxu1 %v7664_v42  ;;  %v10698_v10 = vld [vmem:[#allocation14_spill] sm:$0xff]  ;;  %v10699_v28 = vld [vmem:[#allocation20_spill] sm:$0xff]  ;;  %v10700_v42 = vld [vmem:[#allocation15_spill] sm:$0xff] }
 0x5e3   :  { %3137 = vmatpush1.msra.mxu0 %v7667_v29  ;;  %3208 = vmatpush1.msra.mxu1 %v7670_v30  ;;  %v10701_v29 = vld [vmem:[#allocation22_spill] sm:$0xff]  ;;  %v10702_v30 = vld [vmem:[#allocation17_spill] sm:$0xff] }
 0x5e4   :  { %3138 = vmatprep.subr.mxu0 %v7673_v0  ;;  %3209 = vmatprep.subr.mxu1 %v7676_v31  ;;  %v10703_v0 = vld [vmem:[#allocation24_spill] sm:$0xff]  ;;  %v10704_v31 = vld [vmem:[#allocation19_spill] sm:$0xff] }
 0x5e5   :  { %3139 = vmatpush1.msra.mxu0 %v7679_v32  ;;  %3210 = vmatpush1.msra.mxu1 %v7682_v33  ;;  %v10705_v32 = vld [vmem:[#allocation26_spill] sm:$0xff]  ;;  %v10706_v33 = vld [vmem:[#allocation21_spill] sm:$0xff] }
 0x5e6   :  { %3140 = vmatprep.subr.mxu0 %v7685_v34  ;;  %3211 = vmatprep.subr.mxu1 %v7688_v36  ;;  %v10707_v34 = vld [vmem:[#allocation28_spill] sm:$0xff]  ;;  %v10708_v36 = vld [vmem:[#allocation23_spill] sm:$0xff] }
 0x5e7   :  { %3141 = vmatpush1.msra.mxu0 %v7691_v37  ;;  %3212 = vmatpush1.msra.mxu1 %v7694_v38  ;;  %v10709_v37 = vld [vmem:[#allocation30_spill] sm:$0xff]  ;;  %v10710_v38 = vld [vmem:[#allocation25_spill] sm:$0xff] }
 0x5e8   :  { %3142 = vmatprep.subr.mxu0 %v7697_v39  ;;  %3213 = vmatprep.subr.mxu1 %v7700_v40  ;;  %v10711_v39 = vld [vmem:[#allocation32_spill] sm:$0xff]  ;;  %v10712_v40 = vld [vmem:[#allocation27_spill] sm:$0xff] }
 0x5e9   :  { %3143 = vmatpush1.msra.mxu0 %v7703_v41  ;;  %3214 = vmatpush1.msra.mxu1 %v7706_v43  ;;  %v10713_v41 = vld [vmem:[#allocation33_spill] sm:$0xff] }
 0x5ea   :  { %3144 = vmatprep.subr.mxu0 %v7709_v44  ;;  %3215 = vmatprep.subr.mxu1 %v7712_v45  ;;  %v10714_v43 = vld [vmem:[#allocation29_spill] sm:$0xff]  ;;  %v10715_v44 = vld [vmem:[#allocation34_spill] sm:$0xff]  ;;  %v10716_v45 = vld [vmem:[#allocation31_spill] sm:$0xff] }
 0x5eb   :  { %3145 = vmatpush1.msra.mxu0 %v7715_v46  ;;  %3216 = vmatpush1.msra.mxu1 %v7718_v47  ;;  %v10717_v46 = vld [vmem:[#allocation35_spill] sm:$0xff]  ;;  %v10718_v47 = vld [vmem:[#allocation36_spill] sm:$0xff] }
 0x5ec   :  { %3146 = vmatprep.subr.mxu0 %v7721_v48  ;;  %3217 = vmatprep.subr.mxu1 %v7724_v49  ;;  %v10719_v48 = vld [vmem:[#allocation37_spill] sm:$0xff]  ;;  %v10720_v49 = vld [vmem:[#allocation38_spill] sm:$0xff] }
 0x5ed   :  { %3147 = vmatpush1.msra.mxu0 %v7727_v53  ;;  %3218 = vmatpush1.msra.mxu1 %v7730_v60  ;;  %v10721_v53 = vld [vmem:[#allocation39_spill] sm:$0xff]  ;;  %v10722_v60 = vld [vmem:[#allocation40_spill] sm:$0xff] }
 0x5ee   :  { %3148 = vmatprep.subr.mxu0 %v10687_v56  ;;  %3219 = vmatprep.subr.mxu1 %v10688_v19  ;;  %v10726_v56 = vld [vmem:[#allocation44_spill] sm:$0xff]  ;;  %v10727_v19 = vld [vmem:[#allocation45_spill] sm:$0xff] }
 0x5ef   :  { %3149 = vmatpush1.msra.mxu0 %v10689_v5  ;;  %3220 = vmatpush1.msra.mxu1 %v10690_v17  ;;  %v10728_v5 = vld [vmem:[#allocation46_spill] sm:$0xff]  ;;  %v10729_v17 = vld [vmem:[#allocation47_spill] sm:$0xff] }
 0x5f0   :  { %3150 = vmatprep.subr.mxu0 %v10691_v9  ;;  %3221 = vmatprep.subr.mxu1 %v10692_v23  ;;  %v10730_v9 = vld [vmem:[#allocation48_spill] sm:$0xff]  ;;  %v10731_v23 = vld [vmem:[#allocation49_spill] sm:$0xff] }
 0x5f1   :  { %3151 = vmatpush1.msra.mxu0 %v10693_v21  ;;  %3222 = vmatpush1.msra.mxu1 %v10694_v24  ;;  %v10732_v21 = vld [vmem:[#allocation50_spill] sm:$0xff]  ;;  %v10733_v24 = vld [vmem:[#allocation51_spill] sm:$0xff] }
 0x5f2   :  { %3152 = vmatprep.subr.mxu0 %v10695_v25  ;;  %3223 = vmatprep.subr.mxu1 %v10696_v58  ;;  %v10734_v25 = vld [vmem:[#allocation52_spill] sm:$0xff]  ;;  %v10735_v58 = vld [vmem:[#allocation53_spill] sm:$0xff] }
 0x5f3   :  { %3153 = vmatpush1.msra.mxu0 %v10697_v27  ;;  %3224 = vmatpush1.msra.mxu1 %v10698_v10  ;;  %v10736_v27 = vld [vmem:[#allocation54_spill] sm:$0xff]  ;;  %v10737_v10 = vld [vmem:[#allocation55_spill] sm:$0xff] }
 0x5f4   :  { %3154 = vmatprep.subr.mxu0 %v10699_v28  ;;  %3225 = vmatprep.subr.mxu1 %v10700_v42  ;;  %v10738_v28 = vld [vmem:[#allocation56_spill] sm:$0xff]  ;;  %v10739_v42 = vld [vmem:[#allocation57_spill] sm:$0xff] }
 0x5f5   :  { %3155 = vmatpush1.msra.mxu0 %v10701_v29  ;;  %3226 = vmatpush1.msra.mxu1 %v10702_v30  ;;  %v10740_v29 = vld [vmem:[#allocation58_spill] sm:$0xff]  ;;  %v10741_v30 = vld [vmem:[#allocation59_spill] sm:$0xff] }
 0x5f6   :  { %3156 = vmatprep.subr.mxu0 %v10703_v0  ;;  %3227 = vmatprep.subr.mxu1 %v10704_v31  ;;  %v10742_v0 = vld [vmem:[#allocation60_spill] sm:$0xff]  ;;  %v10743_v31 = vld [vmem:[#allocation61_spill] sm:$0xff] }
 0x5f7   :  { %3157 = vmatpush1.msra.mxu0 %v10705_v32  ;;  %3228 = vmatpush1.msra.mxu1 %v10706_v33  ;;  %v10744_v32 = vld [vmem:[#allocation62_spill] sm:$0xff]  ;;  %v10745_v33 = vld [vmem:[#allocation63_spill] sm:$0xff] }
 0x5f8   :  { %3158 = vmatprep.subr.mxu0 %v10707_v34  ;;  %3229 = vmatprep.subr.mxu1 %v10708_v36  ;;  %v10746_v34 = vld [vmem:[#allocation64_spill] sm:$0xff]  ;;  %v10747_v36 = vld [vmem:[#allocation65_spill] sm:$0xff] }
 0x5f9   :  { %3159 = vmatpush1.msra.mxu0 %v10709_v37  ;;  %3230 = vmatpush1.msra.mxu1 %v10710_v38  ;;  %v10748_v37 = vld [vmem:[#allocation66_spill] sm:$0xff]  ;;  %v10749_v38 = vld [vmem:[#allocation67_spill] sm:$0xff] }
 0x5fa   :  { %3160 = vmatprep.subr.mxu0 %v10711_v39  ;;  %3231 = vmatprep.subr.mxu1 %v10712_v40  ;;  %v10750_v39 = vld [vmem:[#allocation68_spill] sm:$0xff]  ;;  %v10751_v40 = vld [vmem:[#allocation69_spill] sm:$0xff] }
 0x5fb   :  { %3161 = vmatpush1.msra.mxu0 %v10713_v41  ;;  %3194 = vmatprep.mubr.f32.mxu0 %v10124_v35  ;;  %v10752_v41 = vld [vmem:[#allocation70_spill] sm:$0xff] }
 0x5fc   :  { %3232 = vmatpush1.msra.mxu1 %v10714_v43  ;;  %3265 = vmatprep.mubr.f32.mxu1 %v10124_v35  ;;  %v10753_v43 = vld [vmem:[#allocation71_spill] sm:$0xff] }
 0x5fd   :  { %3195 = vmatmul.mubr.f32.vlgmr.msra.gmra.mxu0 %v8228_v7  ;;  %3266 = vmatmul.mubr.f32.vlgmr.msra.gmra.mxu1 %v8228_v7  ;;  %v10725_v7 = vld [vmem:[#allocation43_spill] sm:$0xff] }
 0x5fe   :  { %3326 = vmatprep.subr.mxu0 %v10715_v44  ;;  %3397 = vmatprep.subr.mxu1 %v10716_v45  ;;  %v10754_v44 = vld [vmem:[#allocation72_spill] sm:$0xff]  ;;  %v10755_v45 = vld [vmem:[#allocation73_spill] sm:$0xff] }
 0x5ff   :  { %3327 = vmatpush1.msra.mxu0 %v10717_v46  ;;  %3398 = vmatpush1.msra.mxu1 %v10718_v47  ;;  %v10756_v46 = vld [vmem:[#allocation74_spill] sm:$0xff]  ;;  %v10757_v47 = vld [vmem:[#allocation75_spill] sm:$0xff] }
 0x600   :  { %3328 = vmatprep.subr.mxu0 %v10719_v48  ;;  %3399 = vmatprep.subr.mxu1 %v10720_v49  ;;  %v10758_v48 = vld [vmem:[#allocation76_spill] sm:$0xff]  ;;  %v10759_v49 = vld [vmem:[#allocation77_spill] sm:$0xff] }
 0x601   :  { %3329 = vmatpush1.msra.mxu0 %v10721_v53  ;;  %3400 = vmatpush1.msra.mxu1 %v10722_v60  ;;  %v10760_v53 = vld [vmem:[#allocation78_spill] sm:$0xff]  ;;  %v10761_v60 = vld [vmem:[#allocation79_spill] sm:$0xff] }
 0x602   :  { %3330 = vmatprep.subr.mxu0 %v10723_v18  ;;  %3401 = vmatprep.subr.mxu1 %v10724_v2  ;;  %v10762_v18 = vld [vmem:[#allocation80_spill] sm:$0xff]  ;;  %v10763_v2 = vld [vmem:[#allocation81_spill] sm:$0xff] }
 0x603   :  { %3331 = vmatpush1.msra.mxu0 %v10725_v7  ;;  %3402 = vmatpush1.msra.mxu1 %v10726_v56  ;;  %v10764_v7 = vld [vmem:[#allocation82_spill] sm:$0xff]  ;;  %v10765_v56 = vld [vmem:[#allocation83_spill] sm:$0xff] }
 0x604   :  { %3332 = vmatprep.subr.mxu0 %v10727_v19  ;;  %3403 = vmatprep.subr.mxu1 %v10728_v5  ;;  %v10766_v19 = vld [vmem:[#allocation84_spill] sm:$0xff]  ;;  %v10767_v5 = vld [vmem:[#allocation85_spill] sm:$0xff] }
 0x605   :  { %3333 = vmatpush1.msra.mxu0 %v10729_v17  ;;  %3404 = vmatpush1.msra.mxu1 %v10730_v9  ;;  %v10768_v17 = vld [vmem:[#allocation86_spill] sm:$0xff]  ;;  %v10769_v9 = vld [vmem:[#allocation87_spill] sm:$0xff] }
 0x606   :  { %3334 = vmatprep.subr.mxu0 %v10731_v23  ;;  %3405 = vmatprep.subr.mxu1 %v10732_v21  ;;  %v10770_v23 = vld [vmem:[#allocation88_spill] sm:$0xff]  ;;  %v10771_v21 = vld [vmem:[#allocation89_spill] sm:$0xff] }
 0x607   :  { %3335 = vmatpush1.msra.mxu0 %v10733_v24  ;;  %3406 = vmatpush1.msra.mxu1 %v10734_v25  ;;  %v10772_v24 = vld [vmem:[#allocation90_spill] sm:$0xff]  ;;  %v10773_v25 = vld [vmem:[#allocation91_spill] sm:$0xff] }
 0x608   :  { %3336 = vmatprep.subr.mxu0 %v10735_v58  ;;  %3407 = vmatprep.subr.mxu1 %v10736_v27  ;;  %v10774_v58 = vld [vmem:[#allocation92_spill] sm:$0xff]  ;;  %v10775_v27 = vld [vmem:[#allocation93_spill] sm:$0xff] }
 0x609   :  { %3337 = vmatpush1.msra.mxu0 %v10737_v10  ;;  %3408 = vmatpush1.msra.mxu1 %v10738_v28  ;;  %v10776_v10 = vld [vmem:[#allocation94_spill] sm:$0xff]  ;;  %v10777_v28 = vld [vmem:[#allocation95_spill] sm:$0xff] }
 0x60a   :  { %3338 = vmatprep.subr.mxu0 %v10739_v42  ;;  %3409 = vmatprep.subr.mxu1 %v10740_v29  ;;  %v10778_v42 = vld [vmem:[#allocation96_spill] sm:$0xff]  ;;  %v10779_v29 = vld [vmem:[#allocation97_spill] sm:$0xff] }
 0x60b   :  { %3339 = vmatpush1.msra.mxu0 %v10741_v30  ;;  %3410 = vmatpush1.msra.mxu1 %v10742_v0  ;;  %v10780_v30 = vld [vmem:[#allocation98_spill] sm:$0xff] }
 0x60c   :  { %3340 = vmatprep.subr.mxu0 %v10743_v31  ;;  %3411 = vmatprep.subr.mxu1 %v10744_v32 }
 0x60d   :  { %3341 = vmatpush1.msra.mxu0 %v10745_v33  ;;  %3412 = vmatpush1.msra.mxu1 %v10746_v34 }
 0x60e   :  { %3342 = vmatprep.subr.mxu0 %v10747_v36  ;;  %3413 = vmatprep.subr.mxu1 %v10748_v37 }
 0x60f   :  { %3343 = vmatpush1.msra.mxu0 %v10749_v38  ;;  %3414 = vmatpush1.msra.mxu1 %v10750_v39 }
 0x610   :  { %3344 = vmatprep.subr.mxu0 %v10751_v40  ;;  %3415 = vmatprep.subr.mxu1 %v10752_v41 }
 0x611   :  { %3345 = vmatpush1.msra.mxu0 %v10753_v43  ;;  %3416 = vmatpush1.msra.mxu1 %v10754_v44 }
 0x612   :  { %3346 = vmatprep.subr.mxu0 %v10755_v45  ;;  %3417 = vmatprep.subr.mxu1 %v10756_v46 }
 0x613   :  { %3347 = vmatpush1.msra.mxu0 %v10757_v47  ;;  %3418 = vmatpush1.msra.mxu1 %v10758_v48 }
 0x614   :  { %3348 = vmatprep.subr.mxu0 %v10759_v49  ;;  %3419 = vmatprep.subr.mxu1 %v10760_v53 }
 0x615   :  { %3349 = vmatpush1.msra.mxu0 %v10761_v60  ;;  %3420 = vmatpush1.msra.mxu1 %v10762_v18  ;;  %v10781_v60 = vld [vmem:[#allocation16_spill] sm:$0xff] }
 0x616   :  { %3350 = vmatprep.subr.mxu0 %v10763_v2  ;;  %3421 = vmatprep.subr.mxu1 %v10764_v7 }
 0x617   :  { %3351 = vmatpush1.msra.mxu0 %v10765_v56  ;;  %3422 = vmatpush1.msra.mxu1 %v10766_v19 }
 0x618   :  { %3352 = vmatprep.subr.mxu0 %v10767_v5  ;;  %3423 = vmatprep.subr.mxu1 %v10768_v17 }
 0x619   :  { %3353 = vmatpush1.msra.mxu0 %v10769_v9  ;;  %3424 = vmatpush1.msra.mxu1 %v10770_v23 }
 0x61a   :  { %3354 = vmatprep.subr.mxu0 %v10771_v21  ;;  %3425 = vmatprep.subr.mxu1 %v10772_v24 }
 0x61b   :  { %3355 = vmatpush1.msra.mxu0 %v10773_v25  ;;  %3426 = vmatpush1.msra.mxu1 %v10774_v58 }
 0x61c   :  { %3356 = vmatprep.subr.mxu0 %v10775_v27  ;;  %3427 = vmatprep.subr.mxu1 %v10776_v10 }
 0x61d   :  { %3357 = vmatpush1.msra.mxu0 %v10777_v28  ;;  %3390 = vmatprep.mubr.f32.mxu0 %v10124_v35 }
 0x61e   :  { %3428 = vmatpush1.msra.mxu1 %v10778_v42  ;;  %3461 = vmatprep.mubr.f32.mxu1 %v10124_v35 }
 0x61f   :  { %3468 = vmatprep.subr.mxu0 %v10779_v29  ;;  %3539 = vmatprep.subr.mxu1 %v10780_v30 }
 0x675   :  { %v2883_v0 = vpop.f32.mrf.mxu0  ;;  %v2954_v31 = vpop.f32.mrf.mxu1 }
 0x677   :  { %v2885_v32 = vpop.f32.mrf.mxu0  ;;  %v2956_v34 = vpop.f32.mrf.mxu1 }
 0x69c   :  { %v3025_v33 = vpop.f32.mrf.mxu0  ;;  %v3096_v39 = vpop.f32.mrf.mxu1 }
 0x69d   :  { %v3026_v36 = vadd.f32 %v3025_v33, %v2883_v0  ;;  %v3097_v48 = vadd.f32 %v3096_v39, %v2954_v31 }
 0x69e   :  { %v3027_v37 = vpop.f32.mrf.mxu0  ;;  %v3098_v45 = vpop.f32.mrf.mxu1 }
 0x69f   :  { %v3101_v38 = vadd.f32 %v3026_v36, %v6701_v8  ;;  %v3028_v40 = vadd.f32 %v3027_v37, %v2885_v32  ;;  %v3099_v46 = vadd.f32 %v3098_v45, %v2956_v34  ;;  %v3103_v18 = vadd.f32 %v3097_v48, %v10781_v60  ;;  %v10793_v48 = vld [vmem:[#allocation109_spill] sm:$0xff] }
 0x6a0   :  { %v10782_v32 = vcombine.high %v10638_v4, %v10639_v15 }
 0x6a1   :  { %v4798_v41 = vmul.f32 -1.442695, %v3101_v38  ;;  %v3102_v43 = vadd.f32 %v3028_v40, %v6705_v61  ;;  %v3104_v47 = vadd.f32 %v3099_v46, %v6711_v12  ;;  %v10785_v46 = vld [vmem:[#allocation101_spill] sm:$0xff] }
 0x6a3   :  { %5025 = vpow2.f32 %v4798_v41  ;;  %v4799_v44 = vmul.f32 -1.442695, %v3102_v43  ;;  %v4800_v49 = vmul.f32 -1.442695, %v3104_v47  ;;  %v10788_v47 = vld [vmem:[#allocation104_spill] sm:$0xff] }
 0x6a5   :  { %5027 = vpow2.f32 %v4799_v44 }
 0x6a6   :  { %5029 = vpow2.f32 %v4800_v49  ;;  %v10794_v49 = vld [vmem:[#allocation110_spill] sm:$0xff] }
 0x6b0   :  { %v5026_v53 = vpop.eup %5025 }
 0x6b1   :  { %v3108_v2 = vadd.f32 1.0, %v5026_v53  ;;  %v10795_v53 = vld [vmem:[#allocation111_spill] sm:$0xff] }
 0x6b2   :  { %v5028_v7 = vpop.eup %5027 }
 0x6b3   :  { %5031 = vrcp.f32 %v3108_v2  ;;  %v3114_v56 = vadd.f32 1.0, %v5028_v7  ;;  %v5030_v17 = vpop.eup %5029  ;;  %v10797_v2 = vld [vmem:[#allocation113_spill] sm:$0xff]  ;;  %v10798_v7 = vld [vmem:[#allocation114_spill] sm:$0xff] }
 0x6b4   :  { %5033 = vtanh.f32 %v3103_v18  ;;  %v3121_v10 = vadd.f32 1.0, %v5030_v17  ;;  %v10796_v18 = vld [vmem:[#allocation112_spill] sm:$0xff]  ;;  %v10802_v17 = vld [vmem:[#allocation118_spill] sm:$0xff] }
 0x6b5   :  { %5035 = vrcp.f32 %v3114_v56  ;;  %v10799_v56 = vld [vmem:[#allocation115_spill] sm:$0xff] }
 0x6b6   :  { %5037 = vrcp.f32 %v3121_v10  ;;  %v10807_v10 = vld [vmem:[#allocation123_spill] sm:$0xff] }
 0x6bd   :  { %v3196_v19 = vpop.f32.mrf.mxu0  ;;  %v3267_v5 = vpop.f32.mrf.mxu1 }
 0x6bf   :  { %v3198_v9 = vpop.f32.mrf.mxu0  ;;  %v3269_v23 = vpop.f32.mrf.mxu1 }
 0x6c0   :  { %v5032_v21 = vpop.eup %5031  ;;  %v3276_v24 = vcombine.low %v3196_v19, %v3198_v9  ;;  %v3277_v25 = vcombine.low %v3267_v5, %v3269_v23  ;;  %v10800_v19 = vld [vmem:[#allocation116_spill] sm:$0xff]  ;;  %v10801_v5 = vld [vmem:[#allocation117_spill] sm:$0xff]  ;;  %v10803_v23 = vld [vmem:[#allocation119_spill] sm:$0xff] }
 0x6c1   :  { %v5034_v58 = vpop.eup %5033 }
 0x6c2   :  { %v5036_v27 = vpop.eup %5035  ;;  %v3284_v28 = vrot.slane %v3276_v24, %v6511_v1  ;;  %v3291_v42 = vrot.slane %v3277_v25, %v6511_v1  ;;  %v3125_v29 = vmul.f32 %v5034_v58, %v5032_v21  ;;  %v10804_v21 = vld [vmem:[#allocation120_spill] sm:$0xff]  ;;  %v10805_v25 = vld [vmem:[#allocation121_spill] sm:$0xff]  ;;  %v10806_v58 = vld [vmem:[#allocation122_spill] sm:$0xff] }
 0x6c3   :  { %v3124_v30 = vmul.f32 %v5036_v27, %v8028_v62  ;;  %v5038_v39 = vpop.eup %5037 }
 0x6c4   :  { %v3292_v0 = vcombine.low %v3284_v28, %v3291_v42  ;;  %v10808_v28 = vld [vmem:[#allocation124_spill] sm:$0xff] }
 0x6c5   :  { %v8373_v31 = vadd.f32 %v3125_v29, %v3124_v30  ;;  %v10809_v30 = vld [vmem:[#allocation125_spill] sm:$0xff] }
 0x6c6   :  { %v3294_v33 = vadd.f32 %v3292_v0, %v10782_v32  ;;  %v10810_v0 = vld [vmem:[#allocation126_spill] sm:$0xff]  ;;  %v10811_v32 = vld [vmem:[#allocation127_spill] sm:$0xff] }
 0x6c7   :  { %5039 = vtanh.f32 %v8373_v31 }
 0x6c8   :  { %v4801_v34 = vmul.f32 -1.442695, %v3294_v33  ;;  %v3302_v36 = vrot.slane %v3294_v33, 2  ;;  %v3313_v38 = vrot.slane %v3294_v33, 6  ;;  %v3310_v44 = vrot.slane %v3294_v33, 4  ;;  %v10812_v33 = vld [vmem:[#allocation128_spill] sm:$0xff] }
 0x6ca   :  { %5041 = vpow2.f32 %v4801_v34  ;;  %v4802_v37 = vmul.f32 -1.442695, %v3302_v36  ;;  %v4803_v41 = vmul.f32 -1.442695, %v3313_v38  ;;  %v10813_v38 = vld [vmem:[#allocation129_spill] sm:$0xff] }
 0x6cc   :  { %5043 = vpow2.f32 %v4802_v37 }
 0x6cd   :  { %5045 = vpow2.f32 %v4803_v41  ;;  %v10821_v41 = vld [vmem:[#allocation137_spill] sm:$0xff] }
 0x6d4   :  { %v5040_v40 = vpop.eup %5039 }
 0x6d5   :  { %v3128_v62 = vmul.f32 %v5040_v40, %v5038_v39  ;;  %v10814_v39 = vld [vmem:[#allocation130_spill] sm:$0xff]  ;;  %v10815_v40 = vld [vmem:[#allocation131_spill] sm:$0xff] }
 0x6d7   :  { %v5042_v43 = vpop.eup %5041  ;;  %3391 = vmatmul.mubr.f32.vlgmr.msra.gmra.mxu0 %v3128_v62  ;;  %3462 = vmatmul.mubr.f32.vlgmr.msra.gmra.mxu1 %v3128_v62  ;;  %v10823_v62 = vld [vmem:[#allocation139_spill] sm:$0xff] }
 0x6d8   :  { %v3298_v45 = vadd.f32 1.0, %v5042_v43  ;;  %3469 = vmatpush1.msra.mxu0 %v8034_v20  ;;  %3540 = vmatpush1.msra.mxu1 %v8037_v54  ;;  %v10783_v20 = vld [vmem:[#allocation99_spill] sm:$0xff]  ;;  %v10784_v54 = vld [vmem:[#allocation100_spill] sm:$0xff] }
 0x6d9   :  { %v5044_v4 = vpop.eup %5043  ;;  %3470 = vmatprep.subr.mxu0 %v8040_v3  ;;  %3541 = vmatprep.subr.mxu1 %v8043_v59  ;;  %v10786_v3 = vld [vmem:[#allocation102_spill] sm:$0xff]  ;;  %v10787_v59 = vld [vmem:[#allocation103_spill] sm:$0xff]  ;;  %v10824_v43 = vld [vmem:[#allocation140_spill] sm:$0xff] }
 0x6da   :  { %5047 = vrcp.f32 %v3298_v45  ;;  %v3307_v15 = vadd.f32 1.0, %v5044_v4  ;;  %3471 = vmatpush1.msra.mxu0 %v8046_v11  ;;  %3542 = vmatpush1.msra.mxu1 %v8049_v14  ;;  %v10789_v11 = vld [vmem:[#allocation105_spill] sm:$0xff]  ;;  %v10790_v14 = vld [vmem:[#allocation106_spill] sm:$0xff]  ;;  %v5046_v9 = vpop.eup %5045  ;;  %v10827_v4 = vld [vmem:[#allocation143_spill] sm:$0xff] }
 0x6db   :  { %5049 = vtanh.f32 %v3310_v44  ;;  %3472 = vmatprep.subr.mxu0 %v8052_v57  ;;  %3543 = vmatprep.subr.mxu1 %v8055_v52  ;;  %v10791_v57 = vld [vmem:[#allocation107_spill] sm:$0xff]  ;;  %v10792_v52 = vld [vmem:[#allocation108_spill] sm:$0xff]  ;;  %v3318_v29 = vadd.f32 1.0, %v5046_v9  ;;  %v10825_v44 = vld [vmem:[#allocation141_spill] sm:$0xff] }
 0x6dc   :  { %5051 = vrcp.f32 %v3307_v15  ;;  %3473 = vmatpush1.msra.mxu0 %v10783_v20  ;;  %3544 = vmatpush1.msra.mxu1 %v10784_v54  ;;  %v10826_v45 = vld [vmem:[#allocation142_spill] sm:$0xff]  ;;  %v10828_v15 = vld [vmem:[#allocation144_spill] sm:$0xff] }
 0x6dd   :  { %3474 = vmatprep.subr.mxu0 %v10785_v46  ;;  %3545 = vmatprep.subr.mxu1 %v10786_v3  ;;  %5053 = vrcp.f32 %v3318_v29  ;;  %v8447_v20 = vld [vmem:[#allocation3 + $0x1e8] sm:$0xff]  ;;  %v8450_v54 = vld [vmem:[#allocation3 + $0x1f8] sm:$0xff]  ;;  %v8541_v29 = vld [vmem:[#allocation3 + $0x100] sm:$0xff] }
 0x6de   :  { %3475 = vmatpush1.msra.mxu0 %v10787_v59  ;;  %3546 = vmatpush1.msra.mxu1 %v10788_v47  ;;  %v8466_v47 = vld [vmem:[#allocation3 + $0x1d8] sm:$0xff]  ;;  %v8511_v9 = vld [vmem:[#allocation3 + $0x148] sm:$0xff] }
 0x6df   :  { %3476 = vmatprep.subr.mxu0 %v10789_v11  ;;  %3547 = vmatprep.subr.mxu1 %v10790_v14  ;;  %v8469_v11 = vld [vmem:[#allocation3 + $0x1c0] sm:$0xff]  ;;  %v8472_v14 = vld [vmem:[#allocation3 + $0x1d0] sm:$0xff] }
 0x6e0   :  { %3477 = vmatpush1.msra.mxu0 %v10791_v57  ;;  %3548 = vmatpush1.msra.mxu1 %v10792_v52  ;;  %v8475_v57 = vld [vmem:[#allocation3 + $0x1a8] sm:$0xff]  ;;  %v8478_v52 = vld [vmem:[#allocation3 + $0x1b8] sm:$0xff] }
 0x6e1   :  { %3478 = vmatprep.subr.mxu0 %v10793_v48  ;;  %3549 = vmatprep.subr.mxu1 %v10794_v49  ;;  %v8481_v48 = vld [vmem:[#allocation3 + $0x1a0] sm:$0xff]  ;;  %v8484_v49 = vld [vmem:[#allocation3 + $0x1b0] sm:$0xff] }
 0x6e2   :  { %3479 = vmatpush1.msra.mxu0 %v10795_v53  ;;  %3550 = vmatpush1.msra.mxu1 %v10796_v18  ;;  %v8487_v53 = vld [vmem:[#allocation3 + $0x188] sm:$0xff]  ;;  %v8490_v18 = vld [vmem:[#allocation3 + $0x198] sm:$0xff] }
 0x6e3   :  { %3480 = vmatprep.subr.mxu0 %v10797_v2  ;;  %3551 = vmatprep.subr.mxu1 %v10798_v7  ;;  %v8493_v2 = vld [vmem:[#allocation3 + $0x180] sm:$0xff]  ;;  %v8496_v7 = vld [vmem:[#allocation3 + $0x190] sm:$0xff] }
 0x6e4   :  { %3481 = vmatpush1.msra.mxu0 %v10799_v56  ;;  %3552 = vmatpush1.msra.mxu1 %v10800_v19  ;;  %v8499_v56 = vld [vmem:[#allocation3 + $0x168] sm:$0xff]  ;;  %v8502_v19 = vld [vmem:[#allocation3 + $0x178] sm:$0xff] }
 0x6e5   :  { %3482 = vmatprep.subr.mxu0 %v10801_v5  ;;  %3553 = vmatprep.subr.mxu1 %v10802_v17  ;;  %v8505_v5 = vld [vmem:[#allocation3 + $0x160] sm:$0xff]  ;;  %v8508_v17 = vld [vmem:[#allocation3 + $0x170] sm:$0xff] }
 0x6e6   :  { %3483 = vmatpush1.msra.mxu0 %v10803_v23  ;;  %3554 = vmatpush1.msra.mxu1 %v10804_v21  ;;  %v8514_v23 = vld [vmem:[#allocation3 + $0x158] sm:$0xff]  ;;  %v8517_v21 = vld [vmem:[#allocation3 + $0x140] sm:$0xff] }
 0x6e7   :  { %v5048_v24 = vpop.eup %5047  ;;  %3484 = vmatprep.subr.mxu0 %v10805_v25  ;;  %3555 = vmatprep.subr.mxu1 %v10806_v58  ;;  %v8523_v25 = vld [vmem:[#allocation3 + $0x128] sm:$0xff]  ;;  %v8526_v58 = vld [vmem:[#allocation3 + $0x138] sm:$0xff] }
 0x6e8   :  { %v5050_v27 = vpop.eup %5049  ;;  %3485 = vmatpush1.msra.mxu0 %v10807_v10  ;;  %3556 = vmatpush1.msra.mxu1 %v10808_v28  ;;  %v8532_v10 = vld [vmem:[#allocation3 + $0x130] sm:$0xff]  ;;  %v8535_v28 = vld [vmem:[#allocation3 + $0x108] sm:$0xff] }
 0x6e9   :  { %v5052_v42 = vpop.eup %5051  ;;  %3486 = vmatprep.subr.mxu0 %v10809_v30  ;;  %3557 = vmatprep.subr.mxu1 %v10810_v0  ;;  %v3322_v36 = vmul.f32 %v5050_v27, %v5048_v24  ;;  %v8520_v24 = vld [vmem:[#allocation3 + $0x150] sm:$0xff]  ;;  %v8529_v27 = vld [vmem:[#allocation3 + $0x120] sm:$0xff]  ;;  %v8547_v0 = vld [vmem:[#allocation3 + $0xe8] sm:$0xff] }
 0x6ea   :  { %3487 = vmatpush1.msra.mxu0 %v10811_v32  ;;  %3558 = vmatpush1.msra.mxu1 %v10812_v33  ;;  %v3321_v34 = vmul.f32 %v5052_v42, %v8161_v16  ;;  %v10816_v16 = vld [vmem:[#allocation132_spill] sm:$0xff]  ;;  %v5054_v46 = vpop.eup %5053  ;;  %v8544_v30 = vld [vmem:[#allocation3 + $0x110] sm:$0xff] }
 0x6eb   :  { %3488 = vmatprep.subr.mxu0 %v8149_v13  ;;  %3559 = vmatprep.subr.mxu1 %v8152_v55  ;;  %v10817_v55 = vld [vmem:[#allocation133_spill] sm:$0xff]  ;;  %v10820_v13 = vld [vmem:[#allocation136_spill] sm:$0xff] }
 0x6ec   :  { %3489 = vmatpush1.msra.mxu0 %v8155_v50  ;;  %3560 = vmatpush1.msra.mxu1 %v8158_v51  ;;  %v8422_v37 = vadd.f32 %v3322_v36, %v3321_v34  ;;  %v10818_v50 = vld [vmem:[#allocation134_spill] sm:$0xff]  ;;  %v10819_v51 = vld [vmem:[#allocation135_spill] sm:$0xff]  ;;  %v8553_v33 = vld [vmem:[#allocation3 + $0xe0] sm:$0xff] }
 0x6ed   :  { %3490 = vmatprep.subr.mxu0 %v8163_v6  ;;  %3561 = vmatprep.subr.mxu1 %v10813_v38  ;;  %v10822_v6 = vld [vmem:[#allocation138_spill] sm:$0xff]  ;;  %v8538_v42 = vld [vmem:[#allocation3 + $0x118] sm:$0xff] }
 0x6ee   :  { %3491 = vmatpush1.msra.mxu0 %v10814_v39  ;;  %3562 = vmatpush1.msra.mxu1 %v10815_v40  ;;  %5055 = vtanh.f32 %v8422_v37  ;;  %v8550_v32 = vld [vmem:[#allocation3 + $0xf8] sm:$0xff]  ;;  %v8556_v34 = vld [vmem:[#allocation3 + $0xf0] sm:$0xff]  ;;  %v8559_v36 = vld [vmem:[#allocation3 + $0xc8] sm:$0xff] }
 0x6ef   :  { %3492 = vmatprep.subr.mxu0 %v10816_v16  ;;  %3563 = vmatprep.subr.mxu1 %v10817_v55  ;;  %10829 = vst [vmem:[#allocation145_spill] sm:$0xff] %v8559_v36  ;;  %v8562_v38 = vld [vmem:[#allocation3 + $0xd8] sm:$0xff]  ;;  %v8565_v39 = vld [vmem:[#allocation3 + $0xc0] sm:$0xff]  ;;  %v8568_v40 = vld [vmem:[#allocation3 + $0xd0] sm:$0xff] }
 0x6f0   :  { %3493 = vmatpush1.msra.mxu0 %v10818_v50  ;;  %3564 = vmatpush1.msra.mxu1 %v10819_v51  ;;  %10830 = vst [vmem:[#allocation146_spill] sm:$0xff] %v8562_v38  ;;  %10831 = vst [vmem:[#allocation147_spill] sm:$0xff] %v8565_v39  ;;  %v8571_v16 = vld [vmem:[#allocation3 + $0xa8] sm:$0xff]  ;;  %v8574_v55 = vld [vmem:[#allocation3 + $0xb8] sm:$0xff] }
 0x6f1   :  { %3494 = vmatprep.subr.mxu0 %v10820_v13  ;;  %3565 = vmatprep.subr.mxu1 %v10821_v41  ;;  %10832 = vst [vmem:[#allocation148_spill] sm:$0xff] %v8568_v40  ;;  %10833 = vst [vmem:[#allocation149_spill] sm:$0xff] %v8571_v16  ;;  %v8577_v50 = vld [vmem:[#allocation3 + $0xa0] sm:$0xff]  ;;  %v8580_v51 = vld [vmem:[#allocation3 + $0xb0] sm:$0xff] }
 0x6f2   :  { %3495 = vmatpush1.msra.mxu0 %v10822_v6  ;;  %3566 = vmatpush1.msra.mxu1 %v10823_v62  ;;  %10834 = vst [vmem:[#allocation150_spill] sm:$0xff] %v8574_v55  ;;  %10835 = vst [vmem:[#allocation151_spill] sm:$0xff] %v8577_v50  ;;  %v8583_v13 = vld [vmem:[#allocation3 + $0x88] sm:$0xff]  ;;  %v8586_v41 = vld [vmem:[#allocation3 + $0x98] sm:$0xff] }
 0x6f3   :  { %3496 = vmatprep.subr.mxu0 %v10824_v43  ;;  %3567 = vmatprep.subr.mxu1 %v10825_v44  ;;  %10836 = vst [vmem:[#allocation152_spill] sm:$0xff] %v8580_v51  ;;  %10837 = vst [vmem:[#allocation153_spill] sm:$0xff] %v8583_v13  ;;  %v8589_v6 = vld [vmem:[#allocation3 + $0x80] sm:$0xff]  ;;  %v8592_v62 = vld [vmem:[#allocation3 + $0x90] sm:$0xff] }
 0x6f4   :  { %3497 = vmatpush1.msra.mxu0 %v10826_v45  ;;  %3568 = vmatpush1.msra.mxu1 %v10827_v4  ;;  %10838 = vst [vmem:[#allocation154_spill] sm:$0xff] %v8586_v41  ;;  %10839 = vst [vmem:[#allocation164_spill] sm:$0xff] %v8589_v6  ;;  %v8595_v43 = vld [vmem:[#allocation3 + $0x68] sm:$0xff]  ;;  %v8598_v44 = vld [vmem:[#allocation3 + $0x78] sm:$0xff] }
 0x6f5   :  { %3498 = vmatprep.subr.mxu0 %v10828_v15  ;;  %3569 = vmatprep.subr.mxu1 %v8215_v22  ;;  %v8460_v22 = vld [vmem:[#allocation3 + $0x1f0] sm:$0xff]  ;;  %10840 = vst [vmem:[#allocation166_spill] sm:$0xff] %v8592_v62  ;;  %10841 = vst [vmem:[#allocation155_spill] sm:$0xff] %v8595_v43  ;;  %v8601_v45 = vld [vmem:[#allocation3 + $0x60] sm:$0xff] }
 0x6f6   :  { %3499 = vmatpush1.msra.mxu0 %v8218_v63  ;;  %3570 = vmatpush1.msra.mxu1 %v8221_v26  ;;  %v8457_v26 = vld [vmem:[#allocation3 + $0x1e0] sm:$0xff]  ;;  %v8463_v63 = vld [vmem:[#allocation3 + $0x1c8] sm:$0xff]  ;;  %10842 = vst [vmem:[#allocation156_spill] sm:$0xff] %v8598_v44  ;;  %10843 = vst [vmem:[#allocation157_spill] sm:$0xff] %v8601_v45 }
 0x6f7   :  { %3532 = vmatprep.mubr.f32.mxu0 %v10124_v35  ;;  %3603 = vmatprep.mubr.f32.mxu1 %v10124_v35  ;;  %v8604_v4 = vld [vmem:[#allocation3 + $0x70] sm:$0xff]  ;;  %v8607_v15 = vld [vmem:[#allocation3 + $0x48] sm:$0xff] }
 0x6f8   :  { %3639 = vmatprep.subr.mxu0 %v8447_v20  ;;  %3710 = vmatprep.subr.mxu1 %v8450_v54  ;;  %10844 = vst [vmem:[#allocation158_spill] sm:$0xff] %v8604_v4  ;;  %10845 = vst [vmem:[#allocation159_spill] sm:$0xff] %v8607_v15 }
 0x6fb   :  { %v5056_v3 = vpop.eup %5055 }
 0x6fc   :  { %v8453_v59 = vmul.f32 %v5056_v3, %v5054_v46  ;;  %v8610_v46 = vld [vmem:[#allocation3 + $0x58] sm:$0xff]  ;;  %v8613_v3 = vld [vmem:[#allocation3 + $0x40] sm:$0xff] }
 0x6fd   :  { %10846 = vst [vmem:[#allocation160_spill] sm:$0xff] %v8610_v46  ;;  %10847 = vst [vmem:[#allocation161_spill] sm:$0xff] %v8613_v3 }
 0x6fe   :  { %3533 = vmatmul.mubr.f32.vlgmr.msra.gmra.mxu0 %v8453_v59  ;;  %3604 = vmatmul.mubr.f32.vlgmr.msra.gmra.mxu1 %v8453_v59 }
 0x6ff   :  { %3640 = vmatpush1.msra.mxu0 %v8457_v26  ;;  %3711 = vmatpush1.msra.mxu1 %v8460_v22 }
 0x700   :  { %3641 = vmatprep.subr.mxu0 %v8463_v63  ;;  %3712 = vmatprep.subr.mxu1 %v8466_v47 }
 0x701   :  { %3642 = vmatpush1.msra.mxu0 %v8469_v11  ;;  %3713 = vmatpush1.msra.mxu1 %v8472_v14 }
 0x702   :  { %3643 = vmatprep.subr.mxu0 %v8475_v57  ;;  %3714 = vmatprep.subr.mxu1 %v8478_v52 }
 0x703   :  { %3644 = vmatpush1.msra.mxu0 %v8481_v48  ;;  %3715 = vmatpush1.msra.mxu1 %v8484_v49 }
 0x704   :  { %3645 = vmatprep.subr.mxu0 %v8487_v53  ;;  %3716 = vmatprep.subr.mxu1 %v8490_v18 }
 0x705   :  { %3646 = vmatpush1.msra.mxu0 %v8493_v2  ;;  %3717 = vmatpush1.msra.mxu1 %v8496_v7 }
 0x706   :  { %3647 = vmatprep.subr.mxu0 %v8499_v56  ;;  %3718 = vmatprep.subr.mxu1 %v8502_v19 }
 0x707   :  { %3648 = vmatpush1.msra.mxu0 %v8505_v5  ;;  %3719 = vmatpush1.msra.mxu1 %v8508_v17 }
 0x708   :  { %3649 = vmatprep.subr.mxu0 %v8511_v9  ;;  %3720 = vmatprep.subr.mxu1 %v8514_v23 }
 0x709   :  { %3650 = vmatpush1.msra.mxu0 %v8517_v21  ;;  %3721 = vmatpush1.msra.mxu1 %v8520_v24 }
 0x70a   :  { %3651 = vmatprep.subr.mxu0 %v8523_v25  ;;  %3722 = vmatprep.subr.mxu1 %v8526_v58 }
 0x70b   :  { %3652 = vmatpush1.msra.mxu0 %v8529_v27  ;;  %3723 = vmatpush1.msra.mxu1 %v8532_v10 }
 0x70c   :  { %3653 = vmatprep.subr.mxu0 %v8535_v28  ;;  %3724 = vmatprep.subr.mxu1 %v8538_v42 }
 0x70d   :  { %3654 = vmatpush1.msra.mxu0 %v8541_v29  ;;  %3725 = vmatpush1.msra.mxu1 %v8544_v30 }
 0x70e   :  { %3655 = vmatprep.subr.mxu0 %v8547_v0  ;;  %3726 = vmatprep.subr.mxu1 %v8550_v32 }
 0x70f   :  { %3656 = vmatpush1.msra.mxu0 %v8553_v33  ;;  %3727 = vmatpush1.msra.mxu1 %v8556_v34 }
 0x710   :  { %3657 = vmatprep.subr.mxu0 %v8559_v36  ;;  %3728 = vmatprep.subr.mxu1 %v8562_v38 }
 0x711   :  { %3658 = vmatpush1.msra.mxu0 %v8565_v39  ;;  %3729 = vmatpush1.msra.mxu1 %v8568_v40 }
 0x712   :  { %3659 = vmatprep.subr.mxu0 %v8571_v16  ;;  %3730 = vmatprep.subr.mxu1 %v8574_v55 }
 0x713   :  { %3660 = vmatpush1.msra.mxu0 %v8577_v50  ;;  %3731 = vmatpush1.msra.mxu1 %v8580_v51 }
 0x714   :  { %3661 = vmatprep.subr.mxu0 %v8583_v13  ;;  %3732 = vmatprep.subr.mxu1 %v8586_v41 }
 0x715   :  { %3662 = vmatpush1.msra.mxu0 %v8589_v6  ;;  %3733 = vmatpush1.msra.mxu1 %v8592_v62 }
 0x716   :  { %3663 = vmatprep.subr.mxu0 %v8595_v43  ;;  %3734 = vmatprep.subr.mxu1 %v8598_v44  ;;  %v8616_v44 = vld [vmem:[#allocation3 + $0x50] sm:$0xff] }
 0x717   :  { %3664 = vmatpush1.msra.mxu0 %v8601_v45  ;;  %3735 = vmatpush1.msra.mxu1 %v8604_v4  ;;  %10848 = vst [vmem:[#allocation162_spill] sm:$0xff] %v8616_v44  ;;  %v8619_v45 = vld [vmem:[#allocation3 + $0x28] sm:$0xff]  ;;  %v8622_v4 = vld [vmem:[#allocation3 + $0x38] sm:$0xff] }
 0x718   :  { %3665 = vmatprep.subr.mxu0 %v8607_v15  ;;  %3736 = vmatprep.subr.mxu1 %v8610_v46  ;;  %10849 = vst [vmem:[#allocation163_spill] sm:$0xff] %v8619_v45  ;;  %10850 = vst [vmem:[#allocation13_spill] sm:$0xff] %v8622_v4  ;;  %v8625_v15 = vld [vmem:[#allocation3 + $0x20] sm:$0xff]  ;;  %v8628_v46 = vld [vmem:[#allocation3 + $0x30] sm:$0xff] }
 0x719   :  { %3666 = vmatpush1.msra.mxu0 %v8613_v3  ;;  %3737 = vmatpush1.msra.mxu1 %v8616_v44  ;;  %10851 = vst [vmem:[#allocation18_spill] sm:$0xff] %v8625_v15  ;;  %10852 = vst [vmem:[#allocation14_spill] sm:$0xff] %v8628_v46  ;;  %v8631_v3 = vld [vmem:[#allocation3 + $0x8] sm:$0xff]  ;;  %v8634_v44 = vld [vmem:[#allocation3 + $0x18] sm:$0xff] }
 0x71a   :  { %3667 = vmatprep.subr.mxu0 %v8619_v45  ;;  %3738 = vmatprep.subr.mxu1 %v8622_v4  ;;  %10853 = vst [vmem:[#allocation20_spill] sm:$0xff] %v8631_v3  ;;  %10854 = vst [vmem:[#allocation15_spill] sm:$0xff] %v8634_v44  ;;  %v8637_v45 = vld [vmem:[#allocation3] sm:$0xff]  ;;  %v8641_v4 = vld [vmem:[#allocation3 + $0x10] sm:$0xff] }
 0x71b   :  { %3668 = vmatpush1.msra.mxu0 %v8625_v15  ;;  %3739 = vmatpush1.msra.mxu1 %v8628_v46  ;;  %10855 = vst [vmem:[#allocation22_spill] sm:$0xff] %v8637_v45  ;;  %10856 = vst [vmem:[#allocation17_spill] sm:$0xff] %v8641_v4  ;;  %v8656_v46 = vld [vmem:[#allocation8 + $0x1f0] sm:$0xff] }
 0x71c   :  { %3669 = vmatprep.subr.mxu0 %v8631_v3  ;;  %3740 = vmatprep.subr.mxu1 %v8634_v44  ;;  %v8647_v3 = vld [vmem:[#allocation8 + $0x1e8] sm:$0xff]  ;;  %v8650_v44 = vld [vmem:[#allocation8 + $0x1f8] sm:$0xff]  ;;  %10860 = vst [vmem:[#allocation21_spill] sm:$0xff] %v8656_v46 }
 0x71d   :  { %3670 = vmatpush1.msra.mxu0 %v8637_v45  ;;  %3703 = vmatprep.mubr.f32.mxu0 %v10124_v35  ;;  %10857 = vst [vmem:[#allocation24_spill] sm:$0xff] %v8647_v3  ;;  %10858 = vst [vmem:[#allocation19_spill] sm:$0xff] %v8650_v44  ;;  %v8653_v45 = vld [vmem:[#allocation8 + $0x1e0] sm:$0xff] }
 0x71e   :  { %3741 = vmatpush1.msra.mxu1 %v8641_v4  ;;  %3774 = vmatprep.mubr.f32.mxu1 %v10124_v35  ;;  %10859 = vst [vmem:[#allocation26_spill] sm:$0xff] %v8653_v45  ;;  %v8659_v4 = vld [vmem:[#allocation8 + $0x1c8] sm:$0xff] }
 0x71f   :  { %3704 = vmatmul.mubr.f32.vlgmr.msra.gmra.mxu0 %v8453_v59  ;;  %3775 = vmatmul.mubr.f32.vlgmr.msra.gmra.mxu1 %v8453_v59  ;;  %10861 = vst [vmem:[#allocation28_spill] sm:$0xff] %v8659_v4  ;;  %v8662_v59 = vld [vmem:[#allocation8 + $0x1d8] sm:$0xff] }
 0x720   :  { %3835 = vmatprep.subr.mxu0 %v8647_v3  ;;  %3906 = vmatprep.subr.mxu1 %v8650_v44  ;;  %10862 = vst [vmem:[#allocation23_spill] sm:$0xff] %v8662_v59  ;;  %v8665_v3 = vld [vmem:[#allocation8 + $0x1c0] sm:$0xff]  ;;  %v8668_v44 = vld [vmem:[#allocation8 + $0x1d0] sm:$0xff] }
 0x721   :  { %3836 = vmatpush1.msra.mxu0 %v8653_v45  ;;  %3907 = vmatpush1.msra.mxu1 %v8656_v46  ;;  %10863 = vst [vmem:[#allocation30_spill] sm:$0xff] %v8665_v3  ;;  %10864 = vst [vmem:[#allocation25_spill] sm:$0xff] %v8668_v44  ;;  %v8671_v45 = vld [vmem:[#allocation8 + $0x1a8] sm:$0xff]  ;;  %v8674_v46 = vld [vmem:[#allocation8 + $0x1b8] sm:$0xff] }
 0x722   :  { %3837 = vmatprep.subr.mxu0 %v8659_v4  ;;  %3908 = vmatprep.subr.mxu1 %v8662_v59  ;;  %10865 = vst [vmem:[#allocation32_spill] sm:$0xff] %v8671_v45  ;;  %10866 = vst [vmem:[#allocation27_spill] sm:$0xff] %v8674_v46  ;;  %v8677_v4 = vld [vmem:[#allocation8 + $0x1a0] sm:$0xff]  ;;  %v8680_v59 = vld [vmem:[#allocation8 + $0x1b0] sm:$0xff] }
 0x723   :  { %3838 = vmatpush1.msra.mxu0 %v8665_v3  ;;  %3909 = vmatpush1.msra.mxu1 %v8668_v44  ;;  %10867 = vst [vmem:[#allocation33_spill] sm:$0xff] %v8677_v4  ;;  %10868 = vst [vmem:[#allocation29_spill] sm:$0xff] %v8680_v59  ;;  %v8683_v3 = vld [vmem:[#allocation8 + $0x188] sm:$0xff]  ;;  %v8686_v44 = vld [vmem:[#allocation8 + $0x198] sm:$0xff] }
 0x724   :  { %3839 = vmatprep.subr.mxu0 %v8671_v45  ;;  %3910 = vmatprep.subr.mxu1 %v8674_v46  ;;  %10869 = vst [vmem:[#allocation34_spill] sm:$0xff] %v8683_v3  ;;  %10870 = vst [vmem:[#allocation31_spill] sm:$0xff] %v8686_v44  ;;  %v8689_v45 = vld [vmem:[#allocation8 + $0x180] sm:$0xff]  ;;  %v8692_v46 = vld [vmem:[#allocation8 + $0x190] sm:$0xff] }
 0x725   :  { %3840 = vmatpush1.msra.mxu0 %v8677_v4  ;;  %3911 = vmatpush1.msra.mxu1 %v8680_v59  ;;  %10871 = vst [vmem:[#allocation35_spill] sm:$0xff] %v8689_v45  ;;  %10872 = vst [vmem:[#allocation36_spill] sm:$0xff] %v8692_v46  ;;  %v8695_v4 = vld [vmem:[#allocation8 + $0x168] sm:$0xff]  ;;  %v8698_v59 = vld [vmem:[#allocation8 + $0x178] sm:$0xff] }
 0x726   :  { %3841 = vmatprep.subr.mxu0 %v8683_v3  ;;  %3912 = vmatprep.subr.mxu1 %v8686_v44  ;;  %10873 = vst [vmem:[#allocation37_spill] sm:$0xff] %v8695_v4  ;;  %10874 = vst [vmem:[#allocation38_spill] sm:$0xff] %v8698_v59  ;;  %v8701_v3 = vld [vmem:[#allocation8 + $0x160] sm:$0xff]  ;;  %v8704_v44 = vld [vmem:[#allocation8 + $0x170] sm:$0xff] }
 0x727   :  { %3842 = vmatpush1.msra.mxu0 %v8689_v45  ;;  %3913 = vmatpush1.msra.mxu1 %v8692_v46  ;;  %10875 = vst [vmem:[#allocation39_spill] sm:$0xff] %v8701_v3  ;;  %10876 = vst [vmem:[#allocation40_spill] sm:$0xff] %v8704_v44  ;;  %v8707_v45 = vld [vmem:[#allocation8 + $0x148] sm:$0xff]  ;;  %v8710_v46 = vld [vmem:[#allocation8 + $0x158] sm:$0xff] }
 0x728   :  { %3843 = vmatprep.subr.mxu0 %v8695_v4  ;;  %3914 = vmatprep.subr.mxu1 %v8698_v59  ;;  %10877 = vst [vmem:[#allocation41_spill] sm:$0xff] %v8707_v45  ;;  %10878 = vst [vmem:[#allocation42_spill] sm:$0xff] %v8710_v46  ;;  %v8713_v4 = vld [vmem:[#allocation8 + $0x140] sm:$0xff]  ;;  %v8716_v59 = vld [vmem:[#allocation8 + $0x150] sm:$0xff] }
 0x729   :  { %3844 = vmatpush1.msra.mxu0 %v8701_v3  ;;  %3915 = vmatpush1.msra.mxu1 %v8704_v44  ;;  %10879 = vst [vmem:[#allocation43_spill] sm:$0xff] %v8713_v4  ;;  %10880 = vst [vmem:[#allocation44_spill] sm:$0xff] %v8716_v59  ;;  %v8719_v3 = vld [vmem:[#allocation8 + $0x128] sm:$0xff]  ;;  %v8722_v44 = vld [vmem:[#allocation8 + $0x138] sm:$0xff] }
 0x72a   :  { %3845 = vmatprep.subr.mxu0 %v8707_v45  ;;  %3916 = vmatprep.subr.mxu1 %v8710_v46  ;;  %10881 = vst [vmem:[#allocation45_spill] sm:$0xff] %v8719_v3  ;;  %10882 = vst [vmem:[#allocation46_spill] sm:$0xff] %v8722_v44  ;;  %v8725_v45 = vld [vmem:[#allocation8 + $0x120] sm:$0xff]  ;;  %v8728_v46 = vld [vmem:[#allocation8 + $0x130] sm:$0xff] }
 0x72b   :  { %3846 = vmatpush1.msra.mxu0 %v8713_v4  ;;  %3917 = vmatpush1.msra.mxu1 %v8716_v59  ;;  %10883 = vst [vmem:[#allocation47_spill] sm:$0xff] %v8725_v45  ;;  %10884 = vst [vmem:[#allocation48_spill] sm:$0xff] %v8728_v46  ;;  %v8731_v4 = vld [vmem:[#allocation8 + $0x108] sm:$0xff]  ;;  %v8734_v59 = vld [vmem:[#allocation8 + $0x118] sm:$0xff] }
 0x72c   :  { %3847 = vmatprep.subr.mxu0 %v8719_v3  ;;  %3918 = vmatprep.subr.mxu1 %v8722_v44  ;;  %10885 = vst [vmem:[#allocation49_spill] sm:$0xff] %v8731_v4  ;;  %10886 = vst [vmem:[#allocation50_spill] sm:$0xff] %v8734_v59  ;;  %v8737_v3 = vld [vmem:[#allocation8 + $0x100] sm:$0xff]  ;;  %v8740_v44 = vld [vmem:[#allocation8 + $0x110] sm:$0xff] }
 0x72d   :  { %3848 = vmatpush1.msra.mxu0 %v8725_v45  ;;  %3919 = vmatpush1.msra.mxu1 %v8728_v46  ;;  %10887 = vst [vmem:[#allocation51_spill] sm:$0xff] %v8737_v3  ;;  %10888 = vst [vmem:[#allocation52_spill] sm:$0xff] %v8740_v44  ;;  %v8743_v45 = vld [vmem:[#allocation8 + $0xe8] sm:$0xff]  ;;  %v8746_v46 = vld [vmem:[#allocation8 + $0xf8] sm:$0xff] }
 0x72e   :  { %3849 = vmatprep.subr.mxu0 %v8731_v4  ;;  %3920 = vmatprep.subr.mxu1 %v8734_v59  ;;  %10889 = vst [vmem:[#allocation53_spill] sm:$0xff] %v8743_v45  ;;  %10890 = vst [vmem:[#allocation54_spill] sm:$0xff] %v8746_v46  ;;  %v8749_v4 = vld [vmem:[#allocation8 + $0xe0] sm:$0xff]  ;;  %v8752_v59 = vld [vmem:[#allocation8 + $0xf0] sm:$0xff] }
 0x72f   :  { %3850 = vmatpush1.msra.mxu0 %v8737_v3  ;;  %3921 = vmatpush1.msra.mxu1 %v8740_v44  ;;  %10891 = vst [vmem:[#allocation55_spill] sm:$0xff] %v8749_v4  ;;  %10892 = vst [vmem:[#allocation56_spill] sm:$0xff] %v8752_v59  ;;  %v8755_v3 = vld [vmem:[#allocation8 + $0xc8] sm:$0xff]  ;;  %v8758_v44 = vld [vmem:[#allocation8 + $0xd8] sm:$0xff] }
 0x730   :  { %3851 = vmatprep.subr.mxu0 %v8743_v45  ;;  %3922 = vmatprep.subr.mxu1 %v8746_v46  ;;  %10893 = vst [vmem:[#allocation57_spill] sm:$0xff] %v8755_v3  ;;  %10894 = vst [vmem:[#allocation58_spill] sm:$0xff] %v8758_v44  ;;  %v8761_v45 = vld [vmem:[#allocation8 + $0xc0] sm:$0xff]  ;;  %v8764_v46 = vld [vmem:[#allocation8 + $0xd0] sm:$0xff] }
 0x731   :  { %3852 = vmatpush1.msra.mxu0 %v8749_v4  ;;  %3923 = vmatpush1.msra.mxu1 %v8752_v59  ;;  %10895 = vst [vmem:[#allocation59_spill] sm:$0xff] %v8761_v45  ;;  %10896 = vst [vmem:[#allocation60_spill] sm:$0xff] %v8764_v46  ;;  %v8767_v4 = vld [vmem:[#allocation8 + $0xa8] sm:$0xff]  ;;  %v8770_v59 = vld [vmem:[#allocation8 + $0xb8] sm:$0xff] }
 0x732   :  { %3853 = vmatprep.subr.mxu0 %v8755_v3  ;;  %3924 = vmatprep.subr.mxu1 %v8758_v44  ;;  %10897 = vst [vmem:[#allocation61_spill] sm:$0xff] %v8767_v4  ;;  %10898 = vst [vmem:[#allocation62_spill] sm:$0xff] %v8770_v59  ;;  %v8773_v3 = vld [vmem:[#allocation8 + $0xa0] sm:$0xff]  ;;  %v8776_v44 = vld [vmem:[#allocation8 + $0xb0] sm:$0xff] }
 0x733   :  { %3854 = vmatpush1.msra.mxu0 %v8761_v45  ;;  %3925 = vmatpush1.msra.mxu1 %v8764_v46  ;;  %10899 = vst [vmem:[#allocation63_spill] sm:$0xff] %v8773_v3  ;;  %10900 = vst [vmem:[#allocation64_spill] sm:$0xff] %v8776_v44  ;;  %v8779_v45 = vld [vmem:[#allocation8 + $0x88] sm:$0xff]  ;;  %v8782_v46 = vld [vmem:[#allocation8 + $0x98] sm:$0xff] }
 0x734   :  { %3855 = vmatprep.subr.mxu0 %v8767_v4  ;;  %3926 = vmatprep.subr.mxu1 %v8770_v59  ;;  %10901 = vst [vmem:[#allocation65_spill] sm:$0xff] %v8779_v45  ;;  %10902 = vst [vmem:[#allocation66_spill] sm:$0xff] %v8782_v46  ;;  %v8785_v4 = vld [vmem:[#allocation8 + $0x80] sm:$0xff]  ;;  %v8788_v59 = vld [vmem:[#allocation8 + $0x90] sm:$0xff] }
 0x735   :  { %3856 = vmatpush1.msra.mxu0 %v8773_v3  ;;  %3927 = vmatpush1.msra.mxu1 %v8776_v44  ;;  %10903 = vst [vmem:[#allocation67_spill] sm:$0xff] %v8785_v4  ;;  %10904 = vst [vmem:[#allocation68_spill] sm:$0xff] %v8788_v59  ;;  %v8791_v3 = vld [vmem:[#allocation8 + $0x68] sm:$0xff]  ;;  %v8794_v44 = vld [vmem:[#allocation8 + $0x78] sm:$0xff] }
 0x736   :  { %3857 = vmatprep.subr.mxu0 %v8779_v45  ;;  %3928 = vmatprep.subr.mxu1 %v8782_v46  ;;  %10905 = vst [vmem:[#allocation69_spill] sm:$0xff] %v8791_v3  ;;  %10906 = vst [vmem:[#allocation70_spill] sm:$0xff] %v8794_v44  ;;  %v8797_v45 = vld [vmem:[#allocation8 + $0x60] sm:$0xff]  ;;  %v8800_v46 = vld [vmem:[#allocation8 + $0x70] sm:$0xff] }
 0x737   :  { %3858 = vmatpush1.msra.mxu0 %v8785_v4  ;;  %3929 = vmatpush1.msra.mxu1 %v8788_v59  ;;  %10907 = vst [vmem:[#allocation71_spill] sm:$0xff] %v8797_v45  ;;  %10908 = vst [vmem:[#allocation72_spill] sm:$0xff] %v8800_v46  ;;  %v8803_v4 = vld [vmem:[#allocation8 + $0x48] sm:$0xff]  ;;  %v8806_v59 = vld [vmem:[#allocation8 + $0x58] sm:$0xff] }
 0x738   :  { %3859 = vmatprep.subr.mxu0 %v8791_v3  ;;  %3930 = vmatprep.subr.mxu1 %v8794_v44  ;;  %10909 = vst [vmem:[#allocation73_spill] sm:$0xff] %v8803_v4  ;;  %10910 = vst [vmem:[#allocation74_spill] sm:$0xff] %v8806_v59  ;;  %v8809_v3 = vld [vmem:[#allocation8 + $0x40] sm:$0xff]  ;;  %v8812_v44 = vld [vmem:[#allocation8 + $0x50] sm:$0xff] }
 0x739   :  { %3860 = vmatpush1.msra.mxu0 %v8797_v45  ;;  %3931 = vmatpush1.msra.mxu1 %v8800_v46  ;;  %10911 = vst [vmem:[#allocation75_spill] sm:$0xff] %v8809_v3  ;;  %10912 = vst [vmem:[#allocation76_spill] sm:$0xff] %v8812_v44  ;;  %v8815_v45 = vld [vmem:[#allocation8 + $0x28] sm:$0xff]  ;;  %v8818_v46 = vld [vmem:[#allocation8 + $0x38] sm:$0xff] }
 0x73a   :  { %3861 = vmatprep.subr.mxu0 %v8803_v4  ;;  %3932 = vmatprep.subr.mxu1 %v8806_v59  ;;  %10913 = vst [vmem:[#allocation77_spill] sm:$0xff] %v8815_v45  ;;  %10914 = vst [vmem:[#allocation78_spill] sm:$0xff] %v8818_v46  ;;  %v8821_v4 = vld [vmem:[#allocation8 + $0x20] sm:$0xff]  ;;  %v8824_v59 = vld [vmem:[#allocation8 + $0x30] sm:$0xff] }
 0x73b   :  { %3862 = vmatpush1.msra.mxu0 %v8809_v3  ;;  %3933 = vmatpush1.msra.mxu1 %v8812_v44  ;;  %10915 = vst [vmem:[#allocation79_spill] sm:$0xff] %v8821_v4  ;;  %10916 = vst [vmem:[#allocation80_spill] sm:$0xff] %v8824_v59  ;;  %v8827_v3 = vld [vmem:[#allocation8 + $0x8] sm:$0xff]  ;;  %v8830_v44 = vld [vmem:[#allocation8 + $0x18] sm:$0xff] }
 0x73c   :  { %3863 = vmatprep.subr.mxu0 %v8815_v45  ;;  %3934 = vmatprep.subr.mxu1 %v8818_v46  ;;  %10917 = vst [vmem:[#allocation81_spill] sm:$0xff] %v8827_v3  ;;  %10918 = vst [vmem:[#allocation82_spill] sm:$0xff] %v8830_v44  ;;  %v8833_v45 = vld [vmem:[#allocation8] sm:$0xff]  ;;  %v8837_v46 = vld [vmem:[#allocation8 + $0x10] sm:$0xff] }
 0x73d   :  { %3864 = vmatpush1.msra.mxu0 %v8821_v4  ;;  %3935 = vmatpush1.msra.mxu1 %v8824_v59  ;;  %10919 = vst [vmem:[#allocation83_spill] sm:$0xff] %v8833_v45  ;;  %10920 = vst [vmem:[#allocation84_spill] sm:$0xff] %v8837_v46  ;;  %v8841_v59 = vld [vmem:[#allocation6 + $0x1e8] sm:$0xff] }
 0x73e   :  { %3865 = vmatprep.subr.mxu0 %v8827_v3  ;;  %3936 = vmatprep.subr.mxu1 %v8830_v44  ;;  %10921 = vst [vmem:[#allocation85_spill] sm:$0xff] %v8841_v59  ;;  %v8844_v3 = vld [vmem:[#allocation6 + $0x1f8] sm:$0xff] }
 0x73f   :  { %3866 = vmatpush1.msra.mxu0 %v8833_v45  ;;  %3899 = vmatprep.mubr.f32.mxu0 %v10124_v35  ;;  %10922 = vst [vmem:[#allocation86_spill] sm:$0xff] %v8844_v3 }
 0x740   :  { %3937 = vmatpush1.msra.mxu1 %v8837_v46  ;;  %3970 = vmatprep.mubr.f32.mxu1 %v10124_v35 }
 0x741   :  { %3977 = vmatprep.subr.mxu0 %v8841_v59  ;;  %4048 = vmatprep.subr.mxu1 %v8844_v3 }
 0x797   :  { %v3392_v44 = vpop.f32.mrf.mxu0  ;;  %v3463_v4 = vpop.f32.mrf.mxu1 }
 0x799   :  { %v3394_v15 = vpop.f32.mrf.mxu0  ;;  %v3465_v43 = vpop.f32.mrf.mxu1 }
 0x7be   :  { %v3534_v45 = vpop.f32.mrf.mxu0  ;;  %v3605_v46 = vpop.f32.mrf.mxu1 }
 0x7bf   :  { %v3535_v62 = vadd.f32 %v3534_v45, %v3392_v44  ;;  %v3606_v40 = vadd.f32 %v3605_v46, %v3463_v4 }
 0x7c0   :  { %v3536_v6 = vpop.f32.mrf.mxu0  ;;  %v3607_v55 = vpop.f32.mrf.mxu1 }
 0x7c1   :  { %v3610_v41 = vadd.f32 %v3535_v62, %v6701_v8  ;;  %v3537_v13 = vadd.f32 %v3536_v6, %v3394_v15  ;;  %v3608_v16 = vadd.f32 %v3607_v55, %v3465_v43  ;;  %v3612_v44 = vadd.f32 %v3606_v40, %v10781_v60 }
 0x7c3   :  { %v4804_v51 = vmul.f32 -1.442695, %v3610_v41  ;;  %v3611_v50 = vadd.f32 %v3537_v13, %v6705_v61  ;;  %v3613_v3 = vadd.f32 %v3608_v16, %v6711_v12 }
 0x7c5   :  { %5057 = vpow2.f32 %v4804_v51  ;;  %v4805_v59 = vmul.f32 -1.442695, %v3611_v50  ;;  %v4806_v39 = vmul.f32 -1.442695, %v3613_v3 }
 0x7c7   :  { %5059 = vpow2.f32 %v4805_v59 }
 0x7c8   :  { %5061 = vpow2.f32 %v4806_v39 }
 0x7d2   :  { %v5058_v38 = vpop.eup %5057 }
 0x7d3   :  { %v3617_v45 = vadd.f32 1.0, %v5058_v38 }
 0x7d4   :  { %v5060_v36 = vpop.eup %5059 }
 0x7d5   :  { %5063 = vrcp.f32 %v3617_v45  ;;  %v3623_v6 = vadd.f32 1.0, %v5060_v36  ;;  %v5062_v50 = vpop.eup %5061  ;;  %v10924_v45 = vld [vmem:[#allocation167_spill] sm:$0xff] }
 0x7d6   :  { %5065 = vtanh.f32 %v3612_v44  ;;  %v3630_v46 = vadd.f32 1.0, %v5062_v50  ;;  %v10923_v44 = vld [vmem:[#allocation165_spill] sm:$0xff] }
 0x7d7   :  { %5067 = vrcp.f32 %v3623_v6  ;;  %v10925_v6 = vcombine.low %v10923_v44, %v10924_v45 }
 0x7d8   :  { %5069 = vrcp.f32 %v3630_v46  ;;  %v8860_v46 = vld [vmem:[#allocation6 + $0x1e0] sm:$0xff] }
 0x7df   :  { %v3705_v13 = vpop.f32.mrf.mxu0  ;;  %v3776_v51 = vpop.f32.mrf.mxu1 }
 0x7e1   :  { %v3707_v41 = vpop.f32.mrf.mxu0  ;;  %v3778_v62 = vpop.f32.mrf.mxu1 }
 0x7e2   :  { %v5064_v55 = vpop.eup %5063  ;;  %v3785_v43 = vcombine.low %v3705_v13, %v3707_v41  ;;  %v3786_v16 = vcombine.low %v3776_v51, %v3778_v62 }
 0x7e3   :  { %v5066_v4 = vpop.eup %5065 }
 0x7e4   :  { %v5068_v15 = vpop.eup %5067  ;;  %v3793_v40 = vrot.slane %v3785_v43, %v6511_v1  ;;  %v3800_v38 = vrot.slane %v3786_v16, %v6511_v1  ;;  %v3634_v39 = vmul.f32 %v5066_v4, %v5064_v55 }
 0x7e5   :  { %v3633_v36 = vmul.f32 %v5068_v15, %v8373_v31  ;;  %v5070_v62 = vpop.eup %5069 }
 0x7e6   :  { %v3801_v3 = vcombine.low %v3793_v40, %v3800_v38  ;;  %v8863_v40 = vld [vmem:[#allocation6 + $0x1f0] sm:$0xff] }
 0x7e7   :  { %v8854_v59 = vadd.f32 %v3634_v39, %v3633_v36  ;;  %v8866_v39 = vld [vmem:[#allocation6 + $0x1c8] sm:$0xff]  ;;  %v8869_v36 = vld [vmem:[#allocation6 + $0x1d8] sm:$0xff] }
 0x7e8   :  { %v3803_v60 = vadd.f32 %v3801_v3, %v10925_v6  ;;  %v8872_v3 = vld [vmem:[#allocation6 + $0x1c0] sm:$0xff]  ;;  %v8875_v6 = vld [vmem:[#allocation6 + $0x1d0] sm:$0xff] }
 0x7e9   :  { %5071 = vtanh.f32 %v8854_v59 }
 0x7ea   :  { %v4807_v13 = vmul.f32 -1.442695, %v3803_v60  ;;  %v3811_v51 = vrot.slane %v3803_v60, 2  ;;  %v3822_v41 = vrot.slane %v3803_v60, 6  ;;  %v3819_v4 = vrot.slane %v3803_v60, 4 }
 0x7ec   :  { %5073 = vpow2.f32 %v4807_v13  ;;  %v4808_v50 = vmul.f32 -1.442695, %v3811_v51  ;;  %v4809_v43 = vmul.f32 -1.442695, %v3822_v41  ;;  %v8878_v13 = vld [vmem:[#allocation6 + $0x1a8] sm:$0xff]  ;;  %v8881_v51 = vld [vmem:[#allocation6 + $0x1b8] sm:$0xff] }
 0x7ed   :  { %v8887_v41 = vld [vmem:[#allocation6 + $0x1b0] sm:$0xff] }
 0x7ee   :  { %5075 = vpow2.f32 %v4808_v50  ;;  %v8884_v50 = vld [vmem:[#allocation6 + $0x1a0] sm:$0xff]  ;;  %10927 = vst [vmem:[#allocation88_spill] sm:$0xff] %v8887_v41 }
 0x7ef   :  { %5077 = vpow2.f32 %v4809_v43  ;;  %10926 = vst [vmem:[#allocation87_spill] sm:$0xff] %v8884_v50  ;;  %v8896_v43 = vld [vmem:[#allocation6 + $0x180] sm:$0xff] }
 0x7f0   :  { %10930 = vst [vmem:[#allocation91_spill] sm:$0xff] %v8896_v43 }
 0x7f6   :  { %v5072_v55 = vpop.eup %5071 }
 0x7f7   :  { %v3637_v31 = vmul.f32 %v5072_v55, %v5070_v62  ;;  %v8890_v62 = vld [vmem:[#allocation6 + $0x188] sm:$0xff]  ;;  %v8893_v55 = vld [vmem:[#allocation6 + $0x198] sm:$0xff] }
 0x7f8   :  { %10928 = vst [vmem:[#allocation89_spill] sm:$0xff] %v8890_v62  ;;  %10929 = vst [vmem:[#allocation90_spill] sm:$0xff] %v8893_v55 }
 0x7f9   :  { %v5074_v16 = vpop.eup %5073  ;;  %3900 = vmatmul.mubr.f32.vlgmr.msra.gmra.mxu0 %v3637_v31  ;;  %3971 = vmatmul.mubr.f32.vlgmr.msra.gmra.mxu1 %v3637_v31  ;;  %v8899_v31 = vld [vmem:[#allocation6 + $0x190] sm:$0xff] }
 0x7fa   :  { %v3807_v15 = vadd.f32 1.0, %v5074_v16  ;;  %3978 = vmatpush1.msra.mxu0 %v8860_v46  ;;  %4049 = vmatpush1.msra.mxu1 %v8863_v40  ;;  %10931 = vst [vmem:[#allocation92_spill] sm:$0xff] %v8899_v31  ;;  %v8902_v16 = vld [vmem:[#allocation6 + $0x168] sm:$0xff] }
 0x7fb   :  { %v5076_v38 = vpop.eup %5075  ;;  %3979 = vmatprep.subr.mxu0 %v8866_v39  ;;  %4050 = vmatprep.subr.mxu1 %v8869_v36  ;;  %10932 = vst [vmem:[#allocation93_spill] sm:$0xff] %v8902_v16 }
 0x7fc   :  { %5079 = vrcp.f32 %v3807_v15  ;;  %v3816_v60 = vadd.f32 1.0, %v5076_v38  ;;  %3980 = vmatpush1.msra.mxu0 %v8872_v3  ;;  %4051 = vmatpush1.msra.mxu1 %v8875_v6  ;;  %v8908_v15 = vld [vmem:[#allocation6 + $0x160] sm:$0xff]  ;;  %v8911_v38 = vld [vmem:[#allocation6 + $0x170] sm:$0xff] }
 0x7fd   :  { %5081 = vtanh.f32 %v3819_v4  ;;  %3981 = vmatprep.subr.mxu0 %v8878_v13  ;;  %4052 = vmatprep.subr.mxu1 %v8881_v51  ;;  %v8905_v4 = vld [vmem:[#allocation6 + $0x178] sm:$0xff]  ;;  %10934 = vst [vmem:[#allocation95_spill] sm:$0xff] %v8908_v15  ;;  %10935 = vst [vmem:[#allocation96_spill] sm:$0xff] %v8911_v38 }
 0x7fe   :  { %5083 = vrcp.f32 %v3816_v60  ;;  %3982 = vmatpush1.msra.mxu0 %v8884_v50  ;;  %4053 = vmatpush1.msra.mxu1 %v8887_v41  ;;  %10933 = vst [vmem:[#allocation94_spill] sm:$0xff] %v8905_v4  ;;  %v8914_v60 = vld [vmem:[#allocation6 + $0x148] sm:$0xff]  ;;  %v8971_v50 = vld [vmem:[#allocation6 + $0xd0] sm:$0xff] }
 0x7ff   :  { %3983 = vmatprep.subr.mxu0 %v8890_v62  ;;  %4054 = vmatprep.subr.mxu1 %v8893_v55  ;;  %10936 = vst [vmem:[#allocation97_spill] sm:$0xff] %v8914_v60  ;;  %v8950_v55 = vld [vmem:[#allocation6 + $0xe8] sm:$0xff]  ;;  %v8959_v62 = vld [vmem:[#allocation6 + $0xf0] sm:$0xff]  ;;  %10955 = vst [vmem:[#allocation116_spill] sm:$0xff] %v8971_v50 }
 0x800   :  { %3984 = vmatpush1.msra.mxu0 %v8896_v43  ;;  %4055 = vmatpush1.msra.mxu1 %v8899_v31  ;;  %v8917_v31 = vld [vmem:[#allocation6 + $0x158] sm:$0xff]  ;;  %v8944_v43 = vld [vmem:[#allocation6 + $0x100] sm:$0xff]  ;;  %10948 = vst [vmem:[#allocation109_spill] sm:$0xff] %v8950_v55  ;;  %10951 = vst [vmem:[#allocation112_spill] sm:$0xff] %v8959_v62 }
 0x801   :  { %3985 = vmatprep.subr.mxu0 %v8902_v16  ;;  %4056 = vmatprep.subr.mxu1 %v8905_v4  ;;  %10937 = vst [vmem:[#allocation98_spill] sm:$0xff] %v8917_v31  ;;  %v8920_v16 = vld [vmem:[#allocation6 + $0x140] sm:$0xff]  ;;  %v8923_v4 = vld [vmem:[#allocation6 + $0x150] sm:$0xff]  ;;  %10946 = vst [vmem:[#allocation107_spill] sm:$0xff] %v8944_v43 }
 0x802   :  { %3986 = vmatpush1.msra.mxu0 %v8908_v15  ;;  %4057 = vmatpush1.msra.mxu1 %v8911_v38  ;;  %10938 = vst [vmem:[#allocation99_spill] sm:$0xff] %v8920_v16  ;;  %10939 = vst [vmem:[#allocation100_spill] sm:$0xff] %v8923_v4  ;;  %v8926_v15 = vld [vmem:[#allocation6 + $0x128] sm:$0xff]  ;;  %v8929_v38 = vld [vmem:[#allocation6 + $0x138] sm:$0xff] }
 0x803   :  { %3987 = vmatprep.subr.mxu0 %v8914_v60  ;;  %4058 = vmatprep.subr.mxu1 %v8917_v31  ;;  %10940 = vst [vmem:[#allocation101_spill] sm:$0xff] %v8926_v15  ;;  %10941 = vst [vmem:[#allocation102_spill] sm:$0xff] %v8929_v38  ;;  %v8932_v60 = vld [vmem:[#allocation6 + $0x120] sm:$0xff]  ;;  %v8935_v31 = vld [vmem:[#allocation6 + $0x130] sm:$0xff] }
 0x804   :  { %3988 = vmatpush1.msra.mxu0 %v8920_v16  ;;  %4059 = vmatpush1.msra.mxu1 %v8923_v4  ;;  %10942 = vst [vmem:[#allocation103_spill] sm:$0xff] %v8932_v60  ;;  %10943 = vst [vmem:[#allocation104_spill] sm:$0xff] %v8935_v31  ;;  %v8938_v16 = vld [vmem:[#allocation6 + $0x108] sm:$0xff]  ;;  %v8941_v4 = vld [vmem:[#allocation6 + $0x118] sm:$0xff] }
 0x805   :  { %3989 = vmatprep.subr.mxu0 %v8926_v15  ;;  %4060 = vmatprep.subr.mxu1 %v8929_v38  ;;  %10944 = vst [vmem:[#allocation105_spill] sm:$0xff] %v8938_v16  ;;  %10945 = vst [vmem:[#allocation106_spill] sm:$0xff] %v8941_v4  ;;  %v5078_v15 = vpop.eup %5077  ;;  %v8947_v38 = vld [vmem:[#allocation6 + $0x110] sm:$0xff]  ;;  %v8962_v41 = vld [vmem:[#allocation6 + $0xc8] sm:$0xff] }
 0x806   :  { %3990 = vmatpush1.msra.mxu0 %v8932_v60  ;;  %4061 = vmatpush1.msra.mxu1 %v8935_v31  ;;  %10947 = vst [vmem:[#allocation108_spill] sm:$0xff] %v8947_v38  ;;  %v8953_v31 = vld [vmem:[#allocation6 + $0xf8] sm:$0xff]  ;;  %10952 = vst [vmem:[#allocation113_spill] sm:$0xff] %v8962_v41 }
 0x807   :  { %3991 = vmatprep.subr.mxu0 %v8938_v16  ;;  %4062 = vmatprep.subr.mxu1 %v8941_v4  ;;  %10949 = vst [vmem:[#allocation110_spill] sm:$0xff] %v8953_v31  ;;  %v8956_v4 = vld [vmem:[#allocation6 + $0xe0] sm:$0xff] }
 0x808   :  { %3992 = vmatpush1.msra.mxu0 %v8944_v43  ;;  %4063 = vmatpush1.msra.mxu1 %v8947_v38  ;;  %10950 = vst [vmem:[#allocation111_spill] sm:$0xff] %v8956_v4  ;;  %v3827_v38 = vadd.f32 1.0, %v5078_v15  ;;  %v8975_v15 = vld [vmem:[#allocation6 + $0xa8] sm:$0xff] }
 0x809   :  { %v5080_v60 = vpop.eup %5079  ;;  %3993 = vmatprep.subr.mxu0 %v8950_v55  ;;  %4064 = vmatprep.subr.mxu1 %v8953_v31  ;;  %v8965_v55 = vld [vmem:[#allocation6 + $0xd8] sm:$0xff]  ;;  %v8968_v31 = vld [vmem:[#allocation6 + $0xc0] sm:$0xff] }
 0x80a   :  { %v5082_v16 = vpop.eup %5081  ;;  %3994 = vmatpush1.msra.mxu0 %v8956_v4  ;;  %4065 = vmatpush1.msra.mxu1 %v8959_v62  ;;  %10953 = vst [vmem:[#allocation114_spill] sm:$0xff] %v8965_v55  ;;  %10954 = vst [vmem:[#allocation115_spill] sm:$0xff] %v8968_v31  ;;  %5085 = vrcp.f32 %v3827_v38  ;;  %v9008_v38 = vld [vmem:[#allocation6 + $0x60] sm:$0xff] }
 0x80b   :  { %v5084_v43 = vpop.eup %5083  ;;  %3995 = vmatprep.subr.mxu0 %v8962_v41  ;;  %4066 = vmatprep.subr.mxu1 %v8965_v55  ;;  %v3831_v4 = vmul.f32 %v5082_v16, %v5080_v60  ;;  %v8978_v41 = vld [vmem:[#allocation6 + $0xb8] sm:$0xff]  ;;  %v8981_v55 = vld [vmem:[#allocation6 + $0xa0] sm:$0xff]  ;;  %v8998_v60 = vld [vmem:[#allocation6 + $0x90] sm:$0xff]  ;;  %10961 = vst [vmem:[#allocation122_spill] sm:$0xff] %v9008_v38 }
 0x80c   :  { %3996 = vmatpush1.msra.mxu0 %v8968_v31  ;;  %4067 = vmatpush1.msra.mxu1 %v8971_v50  ;;  %v3830_v62 = vmul.f32 %v5084_v43, %v8422_v37  ;;  %v8984_v31 = vld [vmem:[#allocation6 + $0xb0] sm:$0xff]  ;;  %v8989_v37 = vld [vmem:[#allocation6 + $0x88] sm:$0xff]  ;;  %v8992_v43 = vld [vmem:[#allocation6 + $0x98] sm:$0xff]  ;;  %10958 = vst [vmem:[#allocation119_spill] sm:$0xff] %v8998_v60 }
 0x80d   :  { %3997 = vmatprep.subr.mxu0 %v8975_v15  ;;  %4068 = vmatprep.subr.mxu1 %v8978_v41  ;;  %10956 = vst [vmem:[#allocation117_spill] sm:$0xff] %v8992_v43  ;;  %v8995_v16 = vld [vmem:[#allocation6 + $0x80] sm:$0xff] }
 0x80e   :  { %3998 = vmatpush1.msra.mxu0 %v8981_v55  ;;  %4069 = vmatpush1.msra.mxu1 %v8984_v31  ;;  %v8987_v50 = vadd.f32 %v3831_v4, %v3830_v62  ;;  %10957 = vst [vmem:[#allocation118_spill] sm:$0xff] %v8995_v16  ;;  %v9002_v62 = vld [vmem:[#allocation6 + $0x68] sm:$0xff]  ;;  %v9005_v4 = vld [vmem:[#allocation6 + $0x78] sm:$0xff] }
 0x80f   :  { %3999 = vmatprep.subr.mxu0 %v8989_v37  ;;  %4070 = vmatprep.subr.mxu1 %v8992_v43  ;;  %10959 = vst [vmem:[#allocation120_spill] sm:$0xff] %v9002_v62  ;;  %10960 = vst [vmem:[#allocation121_spill] sm:$0xff] %v9005_v4  ;;  %v9011_v43 = vld [vmem:[#allocation6 + $0x70] sm:$0xff] }
 0x810   :  { %4000 = vmatpush1.msra.mxu0 %v8995_v16  ;;  %4071 = vmatpush1.msra.mxu1 %v8998_v60  ;;  %5087 = vtanh.f32 %v8987_v50  ;;  %10962 = vst [vmem:[#allocation123_spill] sm:$0xff] %v9011_v43  ;;  %v9014_v16 = vld [vmem:[#allocation6 + $0x48] sm:$0xff]  ;;  %v9017_v60 = vld [vmem:[#allocation6 + $0x58] sm:$0xff] }
 0x811   :  { %4001 = vmatprep.subr.mxu0 %v9002_v62  ;;  %4072 = vmatprep.subr.mxu1 %v9005_v4  ;;  %10963 = vst [vmem:[#allocation124_spill] sm:$0xff] %v9014_v16  ;;  %10964 = vst [vmem:[#allocation125_spill] sm:$0xff] %v9017_v60  ;;  %v9020_v62 = vld [vmem:[#allocation6 + $0x40] sm:$0xff]  ;;  %v9023_v4 = vld [vmem:[#allocation6 + $0x50] sm:$0xff] }
 0x812   :  { %4002 = vmatpush1.msra.mxu0 %v9008_v38  ;;  %4073 = vmatpush1.msra.mxu1 %v9011_v43  ;;  %10965 = vst [vmem:[#allocation126_spill] sm:$0xff] %v9020_v62  ;;  %10966 = vst [vmem:[#allocation127_spill] sm:$0xff] %v9023_v4  ;;  %v9026_v38 = vld [vmem:[#allocation6 + $0x28] sm:$0xff]  ;;  %v9029_v43 = vld [vmem:[#allocation6 + $0x38] sm:$0xff] }
 0x813   :  { %4003 = vmatprep.subr.mxu0 %v9014_v16  ;;  %4074 = vmatprep.subr.mxu1 %v9017_v60  ;;  %10967 = vst [vmem:[#allocation128_spill] sm:$0xff] %v9026_v38  ;;  %10968 = vst [vmem:[#allocation129_spill] sm:$0xff] %v9029_v43  ;;  %v9032_v16 = vld [vmem:[#allocation6 + $0x20] sm:$0xff]  ;;  %v9035_v60 = vld [vmem:[#allocation6 + $0x30] sm:$0xff] }
 0x814   :  { %4004 = vmatpush1.msra.mxu0 %v9020_v62  ;;  %4075 = vmatpush1.msra.mxu1 %v9023_v4  ;;  %10969 = vst [vmem:[#allocation130_spill] sm:$0xff] %v9032_v16  ;;  %10970 = vst [vmem:[#allocation131_spill] sm:$0xff] %v9035_v60  ;;  %v9038_v62 = vld [vmem:[#allocation6 + $0x8] sm:$0xff]  ;;  %v9041_v4 = vld [vmem:[#allocation6 + $0x18] sm:$0xff] }
 0x815   :  { %4005 = vmatprep.subr.mxu0 %v9026_v38  ;;  %4076 = vmatprep.subr.mxu1 %v9029_v43  ;;  %10971 = vst [vmem:[#allocation132_spill] sm:$0xff] %v9038_v62  ;;  %v9044_v38 = vld [vmem:[#allocation6] sm:$0xff]  ;;  %v9047_v43 = vld [vmem:[#allocation6 + $0x10] sm:$0xff] }
 0x816   :  { %4006 = vmatpush1.msra.mxu0 %v9032_v16  ;;  %4077 = vmatpush1.msra.mxu1 %v9035_v60 }
 0x817   :  { %4007 = vmatprep.subr.mxu0 %v9038_v62  ;;  %4078 = vmatprep.subr.mxu1 %v9041_v4  ;;  %v5086_v62 = vpop.eup %5085 }
 0x818   :  { %4008 = vmatpush1.msra.mxu0 %v9044_v38  ;;  %4079 = vmatpush1.msra.mxu1 %v9047_v43 }
 0x819   :  { %4041 = vmatprep.mubr.f32.mxu0 %v10124_v35  ;;  %4112 = vmatprep.mubr.f32.mxu1 %v10124_v35 }
 0x81a   :  { %4148 = vmatprep.subr.mxu0 %v8447_v20  ;;  %4219 = vmatprep.subr.mxu1 %v8450_v54  ;;  %v10972_v20 = vld [vmem:[#allocation145_spill] sm:$0xff]  ;;  %v10973_v54 = vld [vmem:[#allocation146_spill] sm:$0xff] }
 0x81d   :  { %v5088_v60 = vpop.eup %5087 }
 0x81e   :  { %v9054_v16 = vmul.f32 %v5088_v60, %v5086_v62  ;;  %v11008_v60 = vld [vmem:[#allocation32_spill] sm:$0xff]  ;;  %v11009_v62 = vld [vmem:[#allocation27_spill] sm:$0xff] }
 0x820   :  { %4042 = vmatmul.mubr.f32.vlgmr.msra.gmra.mxu0 %v9054_v16  ;;  %4113 = vmatmul.mubr.f32.vlgmr.msra.gmra.mxu1 %v9054_v16 }
 0x821   :  { %4149 = vmatpush1.msra.mxu0 %v8457_v26  ;;  %4220 = vmatpush1.msra.mxu1 %v8460_v22  ;;  %v10974_v26 = vld [vmem:[#allocation147_spill] sm:$0xff]  ;;  %v10975_v22 = vld [vmem:[#allocation148_spill] sm:$0xff] }
 0x822   :  { %4150 = vmatprep.subr.mxu0 %v8463_v63  ;;  %4221 = vmatprep.subr.mxu1 %v8466_v47  ;;  %v10976_v63 = vld [vmem:[#allocation149_spill] sm:$0xff]  ;;  %v10977_v47 = vld [vmem:[#allocation150_spill] sm:$0xff] }
 0x823   :  { %4151 = vmatpush1.msra.mxu0 %v8469_v11  ;;  %4222 = vmatpush1.msra.mxu1 %v8472_v14  ;;  %v10978_v11 = vld [vmem:[#allocation151_spill] sm:$0xff]  ;;  %v10979_v14 = vld [vmem:[#allocation152_spill] sm:$0xff] }
 0x824   :  { %4152 = vmatprep.subr.mxu0 %v8475_v57  ;;  %4223 = vmatprep.subr.mxu1 %v8478_v52  ;;  %v10980_v57 = vld [vmem:[#allocation153_spill] sm:$0xff]  ;;  %v10981_v52 = vld [vmem:[#allocation154_spill] sm:$0xff] }
 0x825   :  { %4153 = vmatpush1.msra.mxu0 %v8481_v48  ;;  %4224 = vmatpush1.msra.mxu1 %v8484_v49  ;;  %v10982_v48 = vld [vmem:[#allocation164_spill] sm:$0xff]  ;;  %v10983_v49 = vld [vmem:[#allocation166_spill] sm:$0xff] }
 0x826   :  { %4154 = vmatprep.subr.mxu0 %v8487_v53  ;;  %4225 = vmatprep.subr.mxu1 %v8490_v18  ;;  %v10984_v53 = vld [vmem:[#allocation155_spill] sm:$0xff]  ;;  %v10985_v18 = vld [vmem:[#allocation156_spill] sm:$0xff] }
 0x827   :  { %4155 = vmatpush1.msra.mxu0 %v8493_v2  ;;  %4226 = vmatpush1.msra.mxu1 %v8496_v7  ;;  %v10986_v2 = vld [vmem:[#allocation157_spill] sm:$0xff]  ;;  %v10987_v7 = vld [vmem:[#allocation158_spill] sm:$0xff] }
 0x828   :  { %4156 = vmatprep.subr.mxu0 %v8499_v56  ;;  %4227 = vmatprep.subr.mxu1 %v8502_v19  ;;  %v10988_v56 = vld [vmem:[#allocation159_spill] sm:$0xff]  ;;  %v10989_v19 = vld [vmem:[#allocation160_spill] sm:$0xff] }
 0x829   :  { %4157 = vmatpush1.msra.mxu0 %v8505_v5  ;;  %4228 = vmatpush1.msra.mxu1 %v8508_v17  ;;  %v10990_v5 = vld [vmem:[#allocation161_spill] sm:$0xff]  ;;  %v10991_v17 = vld [vmem:[#allocation162_spill] sm:$0xff] }
 0x82a   :  { %4158 = vmatprep.subr.mxu0 %v8511_v9  ;;  %4229 = vmatprep.subr.mxu1 %v8514_v23  ;;  %v10992_v9 = vld [vmem:[#allocation163_spill] sm:$0xff]  ;;  %v10993_v23 = vld [vmem:[#allocation13_spill] sm:$0xff] }
 0x82b   :  { %4159 = vmatpush1.msra.mxu0 %v8517_v21  ;;  %4230 = vmatpush1.msra.mxu1 %v8520_v24  ;;  %v10994_v21 = vld [vmem:[#allocation18_spill] sm:$0xff] }
 0x82c   :  { %4160 = vmatprep.subr.mxu0 %v8523_v25  ;;  %4231 = vmatprep.subr.mxu1 %v8526_v58  ;;  %v10995_v24 = vld [vmem:[#allocation14_spill] sm:$0xff]  ;;  %v10996_v25 = vld [vmem:[#allocation20_spill] sm:$0xff]  ;;  %v10997_v58 = vld [vmem:[#allocation15_spill] sm:$0xff] }
 0x82d   :  { %4161 = vmatpush1.msra.mxu0 %v8529_v27  ;;  %4232 = vmatpush1.msra.mxu1 %v8532_v10  ;;  %v10998_v27 = vld [vmem:[#allocation22_spill] sm:$0xff]  ;;  %v10999_v10 = vld [vmem:[#allocation17_spill] sm:$0xff] }
 0x82e   :  { %4162 = vmatprep.subr.mxu0 %v8535_v28  ;;  %4233 = vmatprep.subr.mxu1 %v8538_v42  ;;  %v11000_v28 = vld [vmem:[#allocation24_spill] sm:$0xff]  ;;  %v11001_v42 = vld [vmem:[#allocation19_spill] sm:$0xff] }
 0x82f   :  { %4163 = vmatpush1.msra.mxu0 %v8541_v29  ;;  %4234 = vmatpush1.msra.mxu1 %v8544_v30  ;;  %v11002_v29 = vld [vmem:[#allocation26_spill] sm:$0xff]  ;;  %v11003_v30 = vld [vmem:[#allocation21_spill] sm:$0xff] }
 0x830   :  { %4164 = vmatprep.subr.mxu0 %v8547_v0  ;;  %4235 = vmatprep.subr.mxu1 %v8550_v32  ;;  %v11004_v0 = vld [vmem:[#allocation28_spill] sm:$0xff]  ;;  %v11005_v32 = vld [vmem:[#allocation23_spill] sm:$0xff] }
 0x831   :  { %4165 = vmatpush1.msra.mxu0 %v8553_v33  ;;  %4236 = vmatpush1.msra.mxu1 %v8556_v34  ;;  %v11006_v33 = vld [vmem:[#allocation30_spill] sm:$0xff]  ;;  %v11007_v34 = vld [vmem:[#allocation25_spill] sm:$0xff] }
 0x832   :  { %4166 = vmatprep.subr.mxu0 %v10972_v20  ;;  %4237 = vmatprep.subr.mxu1 %v10973_v54  ;;  %v11011_v20 = vld [vmem:[#allocation29_spill] sm:$0xff]  ;;  %v11012_v54 = vld [vmem:[#allocation34_spill] sm:$0xff] }
 0x833   :  { %4167 = vmatpush1.msra.mxu0 %v10974_v26  ;;  %4238 = vmatpush1.msra.mxu1 %v10975_v22  ;;  %v11013_v26 = vld [vmem:[#allocation31_spill] sm:$0xff] }
 0x834   :  { %4168 = vmatprep.subr.mxu0 %v10976_v63  ;;  %4239 = vmatprep.subr.mxu1 %v10977_v47  ;;  %v11014_v22 = vld [vmem:[#allocation35_spill] sm:$0xff]  ;;  %v11015_v63 = vld [vmem:[#allocation36_spill] sm:$0xff]  ;;  %v11016_v47 = vld [vmem:[#allocation37_spill] sm:$0xff] }
 0x835   :  { %4169 = vmatpush1.msra.mxu0 %v10978_v11  ;;  %4240 = vmatpush1.msra.mxu1 %v10979_v14  ;;  %v11017_v11 = vld [vmem:[#allocation38_spill] sm:$0xff]  ;;  %v11018_v14 = vld [vmem:[#allocation39_spill] sm:$0xff] }
 0x836   :  { %4170 = vmatprep.subr.mxu0 %v10980_v57  ;;  %4241 = vmatprep.subr.mxu1 %v10981_v52  ;;  %v11019_v57 = vld [vmem:[#allocation40_spill] sm:$0xff]  ;;  %v11020_v52 = vld [vmem:[#allocation41_spill] sm:$0xff] }
 0x837   :  { %4171 = vmatpush1.msra.mxu0 %v10982_v48  ;;  %4242 = vmatpush1.msra.mxu1 %v10983_v49  ;;  %v11021_v48 = vld [vmem:[#allocation42_spill] sm:$0xff]  ;;  %v11022_v49 = vld [vmem:[#allocation43_spill] sm:$0xff] }
 0x838   :  { %4172 = vmatprep.subr.mxu0 %v10984_v53  ;;  %4243 = vmatprep.subr.mxu1 %v10985_v18  ;;  %v11023_v53 = vld [vmem:[#allocation44_spill] sm:$0xff]  ;;  %v11024_v18 = vld [vmem:[#allocation45_spill] sm:$0xff] }
 0x839   :  { %4173 = vmatpush1.msra.mxu0 %v10986_v2  ;;  %4244 = vmatpush1.msra.mxu1 %v10987_v7  ;;  %v11025_v2 = vld [vmem:[#allocation46_spill] sm:$0xff]  ;;  %v11026_v7 = vld [vmem:[#allocation47_spill] sm:$0xff] }
 0x83a   :  { %4174 = vmatprep.subr.mxu0 %v10988_v56  ;;  %4245 = vmatprep.subr.mxu1 %v10989_v19  ;;  %v11027_v56 = vld [vmem:[#allocation48_spill] sm:$0xff]  ;;  %v11028_v19 = vld [vmem:[#allocation49_spill] sm:$0xff] }
 0x83b   :  { %4175 = vmatpush1.msra.mxu0 %v10990_v5  ;;  %4246 = vmatpush1.msra.mxu1 %v10991_v17  ;;  %v11029_v5 = vld [vmem:[#allocation50_spill] sm:$0xff]  ;;  %v11030_v17 = vld [vmem:[#allocation51_spill] sm:$0xff] }
 0x83c   :  { %4176 = vmatprep.subr.mxu0 %v10992_v9  ;;  %4247 = vmatprep.subr.mxu1 %v10993_v23  ;;  %v11031_v9 = vld [vmem:[#allocation52_spill] sm:$0xff]  ;;  %v11032_v23 = vld [vmem:[#allocation53_spill] sm:$0xff] }
 0x83d   :  { %4177 = vmatpush1.msra.mxu0 %v10994_v21  ;;  %4248 = vmatpush1.msra.mxu1 %v10995_v24  ;;  %v11033_v21 = vld [vmem:[#allocation54_spill] sm:$0xff]  ;;  %v11034_v24 = vld [vmem:[#allocation55_spill] sm:$0xff] }
 0x83e   :  { %4178 = vmatprep.subr.mxu0 %v10996_v25  ;;  %4249 = vmatprep.subr.mxu1 %v10997_v58  ;;  %v11035_v25 = vld [vmem:[#allocation56_spill] sm:$0xff]  ;;  %v11036_v58 = vld [vmem:[#allocation57_spill] sm:$0xff] }
 0x83f   :  { %4179 = vmatpush1.msra.mxu0 %v10998_v27  ;;  %4212 = vmatprep.mubr.f32.mxu0 %v10124_v35  ;;  %v11037_v27 = vld [vmem:[#allocation58_spill] sm:$0xff] }
 0x840   :  { %4250 = vmatpush1.msra.mxu1 %v10999_v10  ;;  %4283 = vmatprep.mubr.f32.mxu1 %v10124_v35  ;;  %v11038_v10 = vld [vmem:[#allocation59_spill] sm:$0xff] }
 0x841   :  { %4213 = vmatmul.mubr.f32.vlgmr.msra.gmra.mxu0 %v9054_v16  ;;  %4284 = vmatmul.mubr.f32.vlgmr.msra.gmra.mxu1 %v9054_v16  ;;  %v11010_v16 = vld [vmem:[#allocation33_spill] sm:$0xff] }
 0x842   :  { %4344 = vmatprep.subr.mxu0 %v11000_v28  ;;  %4415 = vmatprep.subr.mxu1 %v11001_v42  ;;  %v11039_v28 = vld [vmem:[#allocation60_spill] sm:$0xff]  ;;  %v11040_v42 = vld [vmem:[#allocation61_spill] sm:$0xff] }
 0x843   :  { %4345 = vmatpush1.msra.mxu0 %v11002_v29  ;;  %4416 = vmatpush1.msra.mxu1 %v11003_v30  ;;  %v11041_v29 = vld [vmem:[#allocation62_spill] sm:$0xff]  ;;  %v11042_v30 = vld [vmem:[#allocation63_spill] sm:$0xff] }
 0x844   :  { %4346 = vmatprep.subr.mxu0 %v11004_v0  ;;  %4417 = vmatprep.subr.mxu1 %v11005_v32  ;;  %v11043_v0 = vld [vmem:[#allocation64_spill] sm:$0xff]  ;;  %v11044_v32 = vld [vmem:[#allocation65_spill] sm:$0xff] }
 0x845   :  { %4347 = vmatpush1.msra.mxu0 %v11006_v33  ;;  %4418 = vmatpush1.msra.mxu1 %v11007_v34  ;;  %v11045_v33 = vld [vmem:[#allocation66_spill] sm:$0xff]  ;;  %v11046_v34 = vld [vmem:[#allocation67_spill] sm:$0xff] }
 0x846   :  { %4348 = vmatprep.subr.mxu0 %v11008_v60  ;;  %4419 = vmatprep.subr.mxu1 %v11009_v62  ;;  %v11047_v60 = vld [vmem:[#allocation68_spill] sm:$0xff]  ;;  %v11048_v62 = vld [vmem:[#allocation69_spill] sm:$0xff] }
 0x847   :  { %4349 = vmatpush1.msra.mxu0 %v11010_v16  ;;  %4420 = vmatpush1.msra.mxu1 %v11011_v20  ;;  %v11049_v16 = vld [vmem:[#allocation70_spill] sm:$0xff]  ;;  %v11050_v20 = vld [vmem:[#allocation71_spill] sm:$0xff] }
 0x848   :  { %4350 = vmatprep.subr.mxu0 %v11012_v54  ;;  %4421 = vmatprep.subr.mxu1 %v11013_v26  ;;  %v11051_v54 = vld [vmem:[#allocation72_spill] sm:$0xff]  ;;  %v11052_v26 = vld [vmem:[#allocation73_spill] sm:$0xff] }
 0x849   :  { %4351 = vmatpush1.msra.mxu0 %v11014_v22  ;;  %4422 = vmatpush1.msra.mxu1 %v11015_v63  ;;  %v11053_v22 = vld [vmem:[#allocation74_spill] sm:$0xff]  ;;  %v11054_v63 = vld [vmem:[#allocation75_spill] sm:$0xff] }
 0x84a   :  { %4352 = vmatprep.subr.mxu0 %v11016_v47  ;;  %4423 = vmatprep.subr.mxu1 %v11017_v11  ;;  %v11055_v47 = vld [vmem:[#allocation76_spill] sm:$0xff]  ;;  %v11056_v11 = vld [vmem:[#allocation77_spill] sm:$0xff] }
 0x84b   :  { %4353 = vmatpush1.msra.mxu0 %v11018_v14  ;;  %4424 = vmatpush1.msra.mxu1 %v11019_v57  ;;  %v11057_v14 = vld [vmem:[#allocation78_spill] sm:$0xff]  ;;  %v11058_v57 = vld [vmem:[#allocation79_spill] sm:$0xff] }
 0x84c   :  { %4354 = vmatprep.subr.mxu0 %v11020_v52  ;;  %4425 = vmatprep.subr.mxu1 %v11021_v48  ;;  %v11059_v52 = vld [vmem:[#allocation80_spill] sm:$0xff]  ;;  %v11060_v48 = vld [vmem:[#allocation81_spill] sm:$0xff] }
 0x84d   :  { %4355 = vmatpush1.msra.mxu0 %v11022_v49  ;;  %4426 = vmatpush1.msra.mxu1 %v11023_v53  ;;  %v11061_v49 = vld [vmem:[#allocation82_spill] sm:$0xff]  ;;  %v11062_v53 = vld [vmem:[#allocation83_spill] sm:$0xff] }
 0x84e   :  { %4356 = vmatprep.subr.mxu0 %v11024_v18  ;;  %4427 = vmatprep.subr.mxu1 %v11025_v2  ;;  %v11063_v18 = vld [vmem:[#allocation84_spill] sm:$0xff]  ;;  %v11064_v2 = vld [vmem:[#allocation85_spill] sm:$0xff] }
 0x84f   :  { %4357 = vmatpush1.msra.mxu0 %v11026_v7  ;;  %4428 = vmatpush1.msra.mxu1 %v11027_v56  ;;  %v11065_v7 = vld [vmem:[#allocation86_spill] sm:$0xff] }
 0x850   :  { %4358 = vmatprep.subr.mxu0 %v11028_v19  ;;  %4429 = vmatprep.subr.mxu1 %v11029_v5 }
 0x851   :  { %4359 = vmatpush1.msra.mxu0 %v11030_v17  ;;  %4430 = vmatpush1.msra.mxu1 %v11031_v9 }
 0x852   :  { %4360 = vmatprep.subr.mxu0 %v11032_v23  ;;  %4431 = vmatprep.subr.mxu1 %v11033_v21 }
 0x853   :  { %4361 = vmatpush1.msra.mxu0 %v11034_v24  ;;  %4432 = vmatpush1.msra.mxu1 %v11035_v25 }
 0x854   :  { %4362 = vmatprep.subr.mxu0 %v11036_v58  ;;  %4433 = vmatprep.subr.mxu1 %v11037_v27 }
 0x855   :  { %4363 = vmatpush1.msra.mxu0 %v11038_v10  ;;  %4434 = vmatpush1.msra.mxu1 %v11039_v28 }
 0x856   :  { %4364 = vmatprep.subr.mxu0 %v11040_v42  ;;  %4435 = vmatprep.subr.mxu1 %v11041_v29 }
 0x857   :  { %4365 = vmatpush1.msra.mxu0 %v11042_v30  ;;  %4436 = vmatpush1.msra.mxu1 %v11043_v0 }
 0x858   :  { %4366 = vmatprep.subr.mxu0 %v11044_v32  ;;  %4437 = vmatprep.subr.mxu1 %v11045_v33 }
 0x859   :  { %4367 = vmatpush1.msra.mxu0 %v11046_v34  ;;  %4438 = vmatpush1.msra.mxu1 %v11047_v60  ;;  %v11066_v34 = vld [vmem:[#allocation16_spill] sm:$0xff] }
 0x85a   :  { %4368 = vmatprep.subr.mxu0 %v11048_v62  ;;  %4439 = vmatprep.subr.mxu1 %v11049_v16 }
 0x85b   :  { %4369 = vmatpush1.msra.mxu0 %v11050_v20  ;;  %4440 = vmatpush1.msra.mxu1 %v11051_v54 }
 0x85c   :  { %4370 = vmatprep.subr.mxu0 %v11052_v26  ;;  %4441 = vmatprep.subr.mxu1 %v11053_v22 }
 0x85d   :  { %4371 = vmatpush1.msra.mxu0 %v11054_v63  ;;  %4442 = vmatpush1.msra.mxu1 %v11055_v47 }
 0x85e   :  { %4372 = vmatprep.subr.mxu0 %v11056_v11  ;;  %4443 = vmatprep.subr.mxu1 %v11057_v14 }
 0x85f   :  { %4373 = vmatpush1.msra.mxu0 %v11058_v57  ;;  %4444 = vmatpush1.msra.mxu1 %v11059_v52 }
 0x860   :  { %4374 = vmatprep.subr.mxu0 %v11060_v48  ;;  %4445 = vmatprep.subr.mxu1 %v11061_v49 }
 0x861   :  { %4375 = vmatpush1.msra.mxu0 %v11062_v53  ;;  %4408 = vmatprep.mubr.f32.mxu0 %v10124_v35 }
 0x862   :  { %4446 = vmatpush1.msra.mxu1 %v11063_v18  ;;  %4479 = vmatprep.mubr.f32.mxu1 %v10124_v35 }
 0x863   :  { %4486 = vmatprep.subr.mxu0 %v11064_v2  ;;  %4557 = vmatprep.subr.mxu1 %v11065_v7 }
 0x8b9   :  { %v3901_v56 = vpop.f32.mrf.mxu0  ;;  %v3972_v19 = vpop.f32.mrf.mxu1 }
 0x8bb   :  { %v3903_v5 = vpop.f32.mrf.mxu0  ;;  %v3974_v9 = vpop.f32.mrf.mxu1 }
 0x8e0   :  { %v4043_v17 = vpop.f32.mrf.mxu0  ;;  %v4114_v25 = vpop.f32.mrf.mxu1 }
 0x8e1   :  { %v4044_v23 = vadd.f32 %v4043_v17, %v3901_v56  ;;  %v4115_v0 = vadd.f32 %v4114_v25, %v3972_v19 }
 0x8e2   :  { %v4045_v21 = vpop.f32.mrf.mxu0  ;;  %v4116_v42 = vpop.f32.mrf.mxu1 }
 0x8e3   :  { %v4119_v24 = vadd.f32 %v4044_v23, %v6701_v8  ;;  %v4046_v58 = vadd.f32 %v4045_v21, %v3903_v5  ;;  %v4117_v29 = vadd.f32 %v4116_v42, %v3974_v9  ;;  %v4121_v60 = vadd.f32 %v4115_v0, %v11066_v34  ;;  %v11070_v42 = vld [vmem:[#allocation89_spill] sm:$0xff]  ;;  %v11079_v0 = vld [vmem:[#allocation98_spill] sm:$0xff] }
 0x8e4   :  { %v11067_v5 = vcombine.high %v10923_v44, %v10924_v45 }
 0x8e5   :  { %v4810_v27 = vmul.f32 -1.442695, %v4119_v24  ;;  %v4120_v10 = vadd.f32 %v4046_v58, %v6705_v61  ;;  %v4122_v30 = vadd.f32 %v4117_v29, %v6711_v12  ;;  %v11073_v29 = vld [vmem:[#allocation92_spill] sm:$0xff] }
 0x8e7   :  { %5089 = vpow2.f32 %v4810_v27  ;;  %v4811_v28 = vmul.f32 -1.442695, %v4120_v10  ;;  %v4812_v32 = vmul.f32 -1.442695, %v4122_v30  ;;  %v11078_v30 = vld [vmem:[#allocation97_spill] sm:$0xff] }
 0x8e9   :  { %5091 = vpow2.f32 %v4811_v28 }
 0x8ea   :  { %5093 = vpow2.f32 %v4812_v32  ;;  %v11080_v32 = vld [vmem:[#allocation99_spill] sm:$0xff] }
 0x8f4   :  { %v5090_v33 = vpop.eup %5089 }
 0x8f5   :  { %v4126_v62 = vadd.f32 1.0, %v5090_v33  ;;  %v11081_v33 = vld [vmem:[#allocation100_spill] sm:$0xff] }
 0x8f6   :  { %v5092_v16 = vpop.eup %5091 }
 0x8f7   :  { %5095 = vrcp.f32 %v4126_v62  ;;  %v4132_v20 = vadd.f32 1.0, %v5092_v16  ;;  %v5094_v22 = vpop.eup %5093  ;;  %v11083_v62 = vld [vmem:[#allocation102_spill] sm:$0xff]  ;;  %v11084_v16 = vld [vmem:[#allocation103_spill] sm:$0xff] }
 0x8f8   :  { %5097 = vtanh.f32 %v4121_v60  ;;  %v4139_v49 = vadd.f32 1.0, %v5094_v22  ;;  %v11082_v60 = vld [vmem:[#allocation101_spill] sm:$0xff] }
 0x8f9   :  { %5099 = vrcp.f32 %v4132_v20  ;;  %v11085_v20 = vld [vmem:[#allocation104_spill] sm:$0xff] }
 0x8fa   :  { %5101 = vrcp.f32 %v4139_v49  ;;  %v11093_v49 = vld [vmem:[#allocation112_spill] sm:$0xff] }
 0x901   :  { %v4214_v54 = vpop.f32.mrf.mxu0  ;;  %v4285_v26 = vpop.f32.mrf.mxu1 }
 0x903   :  { %v4216_v63 = vpop.f32.mrf.mxu0  ;;  %v4287_v47 = vpop.f32.mrf.mxu1 }
 0x904   :  { %v5096_v11 = vpop.eup %5095  ;;  %v4294_v14 = vcombine.low %v4214_v54, %v4216_v63  ;;  %v4295_v57 = vcombine.low %v4285_v26, %v4287_v47  ;;  %v11086_v54 = vld [vmem:[#allocation105_spill] sm:$0xff]  ;;  %v11087_v26 = vld [vmem:[#allocation106_spill] sm:$0xff]  ;;  %v11088_v63 = vld [vmem:[#allocation107_spill] sm:$0xff] }
 0x905   :  { %v5098_v52 = vpop.eup %5097  ;;  %v11089_v47 = vld [vmem:[#allocation108_spill] sm:$0xff] }
 0x906   :  { %v5100_v48 = vpop.eup %5099  ;;  %v4302_v53 = vrot.slane %v4294_v14, %v6511_v1  ;;  %v4309_v18 = vrot.slane %v4295_v57, %v6511_v1  ;;  %v4143_v2 = vmul.f32 %v5098_v52, %v5096_v11  ;;  %v11090_v14 = vld [vmem:[#allocation109_spill] sm:$0xff]  ;;  %v11091_v57 = vld [vmem:[#allocation110_spill] sm:$0xff] }
 0x907   :  { %v4142_v7 = vmul.f32 %v5100_v48, %v8854_v59  ;;  %v5102_v1 = vpop.eup %5101  ;;  %v11092_v48 = vld [vmem:[#allocation111_spill] sm:$0xff] }
 0x908   :  { %v4310_v56 = vcombine.low %v4302_v53, %v4309_v18 }
 0x909   :  { %v9199_v19 = vadd.f32 %v4143_v2, %v4142_v7  ;;  %v11094_v2 = vld [vmem:[#allocation113_spill] sm:$0xff]  ;;  %v11095_v7 = vld [vmem:[#allocation114_spill] sm:$0xff] }
 0x90a   :  { %v4312_v17 = vadd.f32 %v4310_v56, %v11067_v5  ;;  %v11096_v56 = vld [vmem:[#allocation115_spill] sm:$0xff]  ;;  %v11097_v5 = vld [vmem:[#allocation116_spill] sm:$0xff] }
 0x90b   :  { %5103 = vtanh.f32 %v9199_v19 }
 0x90c   :  { %v4813_v9 = vmul.f32 -1.442695, %v4312_v17  ;;  %v4320_v23 = vrot.slane %v4312_v17, 2  ;;  %v4331_v24 = vrot.slane %v4312_v17, 6  ;;  %v4328_v10 = vrot.slane %v4312_v17, 4 }
 0x90e   :  { %5105 = vpow2.f32 %v4813_v9  ;;  %v4814_v21 = vmul.f32 -1.442695, %v4320_v23  ;;  %v4815_v58 = vmul.f32 -1.442695, %v4331_v24  ;;  %v11099_v24 = vld [vmem:[#allocation118_spill] sm:$0xff] }
 0x910   :  { %5107 = vpow2.f32 %v4814_v21  ;;  %v11098_v21 = vld [vmem:[#allocation117_spill] sm:$0xff] }
 0x911   :  { %5109 = vpow2.f32 %v4815_v58  ;;  %v11108_v58 = vld [vmem:[#allocation127_spill] sm:$0xff] }
 0x918   :  { %v5104_v25 = vpop.eup %5103 }
 0x919   :  { %v4146_v59 = vmul.f32 %v5104_v25, %v5102_v1  ;;  %v11100_v1 = vld [vmem:[#allocation119_spill] sm:$0xff]  ;;  %v11106_v25 = vld [vmem:[#allocation125_spill] sm:$0xff] }
 0x91b   :  { %v5106_v27 = vpop.eup %5105  ;;  %4409 = vmatmul.mubr.f32.vlgmr.msra.gmra.mxu0 %v4146_v59  ;;  %4480 = vmatmul.mubr.f32.vlgmr.msra.gmra.mxu1 %v4146_v59  ;;  %v11109_v59 = vld [vmem:[#allocation128_spill] sm:$0xff] }
 0x91c   :  { %v4316_v28 = vadd.f32 1.0, %v5106_v27  ;;  %4487 = vmatpush1.msra.mxu0 %v8860_v46  ;;  %4558 = vmatpush1.msra.mxu1 %v8863_v40  ;;  %v11068_v46 = vld [vmem:[#allocation87_spill] sm:$0xff]  ;;  %v11069_v40 = vld [vmem:[#allocation88_spill] sm:$0xff]  ;;  %v11110_v27 = vld [vmem:[#allocation129_spill] sm:$0xff] }
 0x91d   :  { %v5108_v44 = vpop.eup %5107  ;;  %4488 = vmatprep.subr.mxu0 %v8866_v39  ;;  %4559 = vmatprep.subr.mxu1 %v8869_v36  ;;  %v11071_v39 = vld [vmem:[#allocation90_spill] sm:$0xff]  ;;  %v11072_v36 = vld [vmem:[#allocation91_spill] sm:$0xff] }
 0x91e   :  { %5111 = vrcp.f32 %v4316_v28  ;;  %v4325_v45 = vadd.f32 1.0, %v5108_v44  ;;  %4489 = vmatpush1.msra.mxu0 %v8872_v3  ;;  %4560 = vmatpush1.msra.mxu1 %v8875_v6  ;;  %v11074_v3 = vld [vmem:[#allocation93_spill] sm:$0xff]  ;;  %v11075_v6 = vld [vmem:[#allocation94_spill] sm:$0xff]  ;;  %v5110_v22 = vpop.eup %5109  ;;  %v11112_v28 = vld [vmem:[#allocation131_spill] sm:$0xff] }
 0x91f   :  { %5113 = vtanh.f32 %v4328_v10  ;;  %4490 = vmatprep.subr.mxu0 %v8878_v13  ;;  %4561 = vmatprep.subr.mxu1 %v8881_v51  ;;  %v11076_v13 = vld [vmem:[#allocation95_spill] sm:$0xff]  ;;  %v11077_v51 = vld [vmem:[#allocation96_spill] sm:$0xff]  ;;  %v4336_v18 = vadd.f32 1.0, %v5110_v22  ;;  %v11111_v10 = vld [vmem:[#allocation130_spill] sm:$0xff] }
 0x920   :  { %5115 = vrcp.f32 %v4325_v45  ;;  %4491 = vmatpush1.msra.mxu0 %v11068_v46  ;;  %4562 = vmatpush1.msra.mxu1 %v11069_v40  ;;  %v11113_v44 = vld [vmem:[#allocation132_spill] sm:$0xff] }
 0x921   :  { %4492 = vmatprep.subr.mxu0 %v11070_v42  ;;  %4563 = vmatprep.subr.mxu1 %v11071_v39  ;;  %5117 = vrcp.f32 %v4336_v18  ;;  %v4671_v42 = vld [vmem:[%s9353_s7 + $0x78] sm:$0xff] }
 0x922   :  { %4493 = vmatpush1.msra.mxu0 %v11072_v36  ;;  %4564 = vmatpush1.msra.mxu1 %v11073_v29  ;;  %v4667_v39 = vld [vmem:[%s9353_s7 + $0x58] sm:$0xff]  ;;  %v4666_v36 = vld [vmem:[%s9353_s7 + $0x50] sm:$0xff]  ;;  %v4665_v29 = vld [vmem:[%s9353_s7 + $0x48] sm:$0xff] }
 0x923   :  { %4494 = vmatprep.subr.mxu0 %v11074_v3  ;;  %4565 = vmatprep.subr.mxu1 %v11075_v6  ;;  %v4664_v3 = vld [vmem:[%s9353_s7 + $0x40] sm:$0xff]  ;;  %v4663_v6 = vld [vmem:[%s9353_s7 + $0x38] sm:$0xff] }
 0x924   :  { %4495 = vmatpush1.msra.mxu0 %v11076_v13  ;;  %4566 = vmatpush1.msra.mxu1 %v11077_v51  ;;  %v4662_v13 = vld [vmem:[%s9353_s7 + $0x30] sm:$0xff]  ;;  %v4661_v51 = vld [vmem:[%s9353_s7 + $0x28] sm:$0xff] }
 0x925   :  { %4496 = vmatprep.subr.mxu0 %v11078_v30  ;;  %4567 = vmatprep.subr.mxu1 %v11079_v0  ;;  %v4660_v30 = vld [vmem:[%s9353_s7 + $0x20] sm:$0xff]  ;;  %v4659_v0 = vld [vmem:[%s9353_s7 + $0x18] sm:$0xff] }
 0x926   :  { %4497 = vmatpush1.msra.mxu0 %v11080_v32  ;;  %4568 = vmatpush1.msra.mxu1 %v11081_v33  ;;  %v4658_v32 = vld [vmem:[%s9353_s7 + $0x10] sm:$0xff]  ;;  %v4657_v33 = vld [vmem:[%s9353_s7 + $0x8] sm:$0xff] }
 0x927   :  { %4498 = vmatprep.subr.mxu0 %v11082_v60  ;;  %4569 = vmatprep.subr.mxu1 %v11083_v62  ;;  %v4656_v60 = vld [vmem:[%s9353_s7] sm:$0xff] }
 0x928   :  { %4499 = vmatpush1.msra.mxu0 %v11084_v16  ;;  %4570 = vmatpush1.msra.mxu1 %v11085_v20 }
 0x929   :  { %4500 = vmatprep.subr.mxu0 %v11086_v54  ;;  %4571 = vmatprep.subr.mxu1 %v11087_v26 }
 0x92a   :  { %4501 = vmatpush1.msra.mxu0 %v11088_v63  ;;  %4572 = vmatpush1.msra.mxu1 %v11089_v47 }
 0x92b   :  { %v5112_v11 = vpop.eup %5111  ;;  %4502 = vmatprep.subr.mxu0 %v11090_v14  ;;  %4573 = vmatprep.subr.mxu1 %v11091_v57 }
 0x92c   :  { %v5114_v52 = vpop.eup %5113  ;;  %4503 = vmatpush1.msra.mxu0 %v11092_v48  ;;  %4574 = vmatpush1.msra.mxu1 %v11093_v49 }
 0x92d   :  { %v5116_v53 = vpop.eup %5115  ;;  %4504 = vmatprep.subr.mxu0 %v11094_v2  ;;  %4575 = vmatprep.subr.mxu1 %v11095_v7  ;;  %v4340_v9 = vmul.f32 %v5114_v52, %v5112_v11 }
 0x92e   :  { %4505 = vmatpush1.msra.mxu0 %v11096_v56  ;;  %4576 = vmatpush1.msra.mxu1 %v11097_v5  ;;  %v4339_v17 = vmul.f32 %v5116_v53, %v8987_v50  ;;  %v11101_v50 = vld [vmem:[#allocation120_spill] sm:$0xff]  ;;  %v5118_v45 = vpop.eup %5117 }
 0x92f   :  { %4506 = vmatprep.subr.mxu0 %v8975_v15  ;;  %4577 = vmatprep.subr.mxu1 %v8978_v41  ;;  %v11102_v15 = vld [vmem:[#allocation121_spill] sm:$0xff]  ;;  %v11103_v41 = vld [vmem:[#allocation122_spill] sm:$0xff] }
 0x930   :  { %4507 = vmatpush1.msra.mxu0 %v8981_v55  ;;  %4578 = vmatpush1.msra.mxu1 %v8984_v31  ;;  %v4341_v23 = vadd.f32 %v4340_v9, %v4339_v17  ;;  %v11104_v55 = vld [vmem:[#allocation123_spill] sm:$0xff]  ;;  %v11105_v31 = vld [vmem:[#allocation124_spill] sm:$0xff] }
 0x931   :  { %4508 = vmatprep.subr.mxu0 %v8989_v37  ;;  %4579 = vmatprep.subr.mxu1 %v11098_v21  ;;  %v11107_v37 = vld [vmem:[#allocation126_spill] sm:$0xff] }
 0x932   :  { %4509 = vmatpush1.msra.mxu0 %v11099_v24  ;;  %4580 = vmatpush1.msra.mxu1 %v11100_v1  ;;  %5119 = vtanh.f32 %v4341_v23 }
 0x933   :  { %4510 = vmatprep.subr.mxu0 %v11101_v50  ;;  %4581 = vmatprep.subr.mxu1 %v11102_v15 }
 0x934   :  { %4511 = vmatpush1.msra.mxu0 %v11103_v41  ;;  %4582 = vmatpush1.msra.mxu1 %v11104_v55  ;;  %v4819_v55 = vld [vmem:[%s9354_s8] ss:$0 sm:$0xff] }
 0x935   :  { %4512 = vmatprep.subr.mxu0 %v11105_v31  ;;  %4583 = vmatprep.subr.mxu1 %v11106_v25 }
 0x936   :  { %4513 = vmatpush1.msra.mxu0 %v11107_v37  ;;  %4584 = vmatpush1.msra.mxu1 %v11108_v58 }
 0x937   :  { %4514 = vmatprep.subr.mxu0 %v11109_v59  ;;  %4585 = vmatprep.subr.mxu1 %v11110_v27 }
 0x938   :  { %4515 = vmatpush1.msra.mxu0 %v11111_v10  ;;  %4586 = vmatpush1.msra.mxu1 %v11112_v28 }
 0x939   :  { %4516 = vmatprep.subr.mxu0 %v11113_v44  ;;  %4587 = vmatprep.subr.mxu1 %v9041_v4  ;;  %v4669_v4 = vld [vmem:[%s9353_s7 + $0x68] sm:$0xff] }
 0x93a   :  { %4517 = vmatpush1.msra.mxu0 %v9044_v38  ;;  %4550 = vmatprep.mubr.f32.mxu0 %v10124_v35  ;;  %v4668_v38 = vld [vmem:[%s9353_s7 + $0x60] sm:$0xff] }
 0x93b   :  { %4588 = vmatpush1.msra.mxu1 %v9047_v43  ;;  %4621 = vmatprep.mubr.f32.mxu1 %v10124_v35  ;;  %v4670_v43 = vld [vmem:[%s9353_s7 + $0x70] sm:$0xff] }
 0x93c   :  { %4837 = vmatprep.subr.mxu0 %v10124_v35 }
 0x93f   :  { %v5120_v46 = vpop.eup %5119 }
 0x940   :  { %v4343_v40 = vmul.f32 %v5120_v46, %v5118_v45 }
 0x942   :  { %4551 = vmatmul.mubr.f32.vlgmr.msra.gmra.mxu0 %v4343_v40  ;;  %4622 = vmatmul.mubr.f32.vlgmr.msra.gmra.mxu1 %v4343_v40 }
 0x943   :  { %4838 = vmatpush3.msra.mxu0 %v4671_v42  ;;  %4869 = vmatprep.mubr.msk.f32.mxu0 %vm5806_vm1, %v10124_v35 }
 0x944   :  { %4839 = vmatprep.subr.mxu0 %v10124_v35 }
 0x945   :  { %4840 = vmatpush3.msra.mxu0 %v4670_v43 }
 0x946   :  { %4841 = vmatprep.subr.mxu0 %v10124_v35 }
 0x947   :  { %4842 = vmatpush3.msra.mxu0 %v4669_v4 }
 0x948   :  { %4843 = vmatprep.subr.mxu0 %v10124_v35 }
 0x949   :  { %4844 = vmatpush3.msra.mxu0 %v4668_v38 }
 0x94a   :  { %4845 = vmatprep.subr.mxu0 %v10124_v35 }
 0x94b   :  { %4846 = vmatpush3.msra.mxu0 %v4667_v39 }
 0x94c   :  { %4847 = vmatprep.subr.mxu0 %v10124_v35 }
 0x94d   :  { %4848 = vmatpush3.msra.mxu0 %v4666_v36 }
 0x94e   :  { %4849 = vmatprep.subr.mxu0 %v10124_v35 }
 0x94f   :  { %4850 = vmatpush3.msra.mxu0 %v4665_v29 }
 0x950   :  { %4851 = vmatprep.subr.mxu0 %v10124_v35 }
 0x951   :  { %4852 = vmatpush3.msra.mxu0 %v4664_v3 }
 0x952   :  { %4853 = vmatprep.subr.mxu0 %v10124_v35 }
 0x953   :  { %4854 = vmatpush3.msra.mxu0 %v4663_v6 }
 0x954   :  { %4855 = vmatprep.subr.mxu0 %v10124_v35 }
 0x955   :  { %4856 = vmatpush3.msra.mxu0 %v4662_v13 }
 0x956   :  { %4857 = vmatprep.subr.mxu0 %v10124_v35 }
 0x957   :  { %4858 = vmatpush3.msra.mxu0 %v4661_v51 }
 0x958   :  { %4859 = vmatprep.subr.mxu0 %v10124_v35 }
 0x959   :  { %4860 = vmatpush3.msra.mxu0 %v4660_v30 }
 0x95a   :  { %4861 = vmatprep.subr.mxu0 %v10124_v35 }
 0x95b   :  { %4862 = vmatpush3.msra.mxu0 %v4659_v0 }
 0x95c   :  { %4863 = vmatprep.subr.mxu0 %v10124_v35 }
 0x95d   :  { %4864 = vmatpush3.msra.mxu0 %v4658_v32 }
 0x95e   :  { %4865 = vmatprep.subr.mxu0 %v10124_v35 }
 0x95f   :  { %4866 = vmatpush3.msra.mxu0 %v4657_v33 }
 0x960   :  { %4867 = vmatprep.subr.mxu0 %v10124_v35 }
 0x961   :  { %4868 = vmatpush3.msra.mxu0 %v4656_v60 }
 0x9db   :  { %v4410_v62 = vpop.f32.mrf.mxu0  ;;  %v4481_v16 = vpop.f32.mrf.mxu1 }
 0x9dd   :  { %v4412_v20 = vpop.f32.mrf.mxu0  ;;  %v4483_v26 = vpop.f32.mrf.mxu1 }
 0xa02   :  { %v4552_v54 = vpop.f32.mrf.mxu0  ;;  %v4623_v11 = vpop.f32.mrf.mxu1 }
 0xa03   :  { %v4553_v22 = vadd.f32 %v4552_v54, %v4410_v62  ;;  %v4624_v18 = vadd.f32 %v4623_v11, %v4481_v16 }
 0xa04   :  { %v4554_v63 = vpop.f32.mrf.mxu0  ;;  %v4625_v49 = vpop.f32.mrf.mxu1 }
 0xa05   :  { %v4628_v47 = vadd.f32 %v4553_v22, %v6701_v8  ;;  %v4555_v14 = vadd.f32 %v4554_v63, %v4412_v20  ;;  %v4626_v35 = vadd.f32 %v4625_v49, %v4483_v26  ;;  %v4630_v56 = vadd.f32 %v4624_v18, %v11066_v34 }
 0xa07   :  { %v4816_v57 = vmul.f32 -1.442695, %v4628_v47  ;;  %v4629_v52 = vadd.f32 %v4555_v14, %v6705_v61  ;;  %v4631_v53 = vadd.f32 %v4626_v35, %v6711_v12 }
 0xa09   :  { %5121 = vpow2.f32 %v4816_v57  ;;  %v4817_v48 = vmul.f32 -1.442695, %v4629_v52  ;;  %v4818_v2 = vmul.f32 -1.442695, %v4631_v53 }
 0xa0b   :  { %5123 = vpow2.f32 %v4817_v48 }
 0xa0c   :  { %5125 = vpow2.f32 %v4818_v2 }
 0xa16   :  { %v5122_v7 = vpop.eup %5121 }
 0xa17   :  { %v4635_v5 = vadd.f32 1.0, %v5122_v7 }
 0xa18   :  { %v5124_v17 = vpop.eup %5123 }
 0xa19   :  { %5127 = vrcp.f32 %v4635_v5  ;;  %v4641_v8 = vadd.f32 1.0, %v5124_v17  ;;  %v5126_v61 = vpop.eup %5125 }
 0xa1a   :  { %5129 = vtanh.f32 %v4630_v56  ;;  %v4648_v24 = vadd.f32 1.0, %v5126_v61 }
 0xa1b   :  { %5131 = vrcp.f32 %v4641_v8 }
 0xa1c   :  { %5133 = vrcp.f32 %v4648_v24 }
 0xa26   :  { %v5128_v9 = vpop.eup %5127 }
 0xa27   :  { %v5130_v23 = vpop.eup %5129 }
 0xa28   :  { %v5132_v21 = vpop.eup %5131  ;;  %v4652_v1 = vmul.f32 %v5130_v23, %v5128_v9 }
 0xa29   :  { %v4651_v12 = vmul.f32 %v5132_v21, %v9199_v19  ;;  %v5134_v15 = vpop.eup %5133 }
 0xa2b   :  { %v4653_v50 = vadd.f32 %v4652_v1, %v4651_v12 }
 0xa2d   :  { %5135 = vtanh.f32 %v4653_v50 }
 0xa3a   :  { %v5136_v34 = vpop.eup %5135 }
 0xa3b   :  { %v4655_v41 = vmul.f32 %v5136_v34, %v5134_v15 }
 0xa3d   :  { %4870 = vmatmul.mubr.f32.vlgmr.msra.gmra.mxu0 %v4655_v41 }
 0xafd   :  { %v4745_v31 = vpop.f32.mrf.mxu0 }
 0xafe   :  { %v4746_v25 = vadd.f32 %v4819_v55, %v4745_v31 }
 0xaff   :  { %v4871_v37 = vpop.f32.mrf.mxu0 }
 0xb00   :  { %4750 = vst.msk [vmem:[#allocation9] sm:$0x3] %vm4749_vm2, %v4746_v25 }
 0xb01   :  { %5784 = shalt.err (!%p5781_p5)
}
 0xb02   :  { %4760 = dma.vmem_to_hbm [thread:$0]  %s4758_s26, 32, %s9355_s9, [#allocation5]  }
 0xb03   :  { %5797 = dma.done.wait [#allocation5], 32  }
 0xb04   :  { %5798 = vsyncadd [#allocation5], 4294967264 }
 0xb05   :  { %4764 = vsyncpa [#allocation4], 1 }
 0xb06   :  { %4765 = vsyncpa [#allocation7], 1 }
 0xb07   :  { %4766 = vsyncpa [#allocation5], 1 }

</bundles_post_ra>
